<compile_context>
chip_gen: v7x
topology: tpu7x:2x2x1
jax: 0.10.0
libtpu: 0.0.40
codegen_flags: <defaults>
</compile_context>

<pallas_src>
import functools
import numpy as np
import jax
import jax.numpy as jnp
from jax.experimental import pallas as pl
from jax.experimental.pallas import tpu as pltpu

BN_EPS = 1e-5
POOL_K, POOL_S = 5, 3


def _build_pool_matrix(H, W, k, s, hwp):
    """AvgPool2d(k, s) expressed as a (OH*OW, hwp) matrix (zero-padded to hwp columns)."""
    OH = (H - k) // s + 1
    OW = (W - k) // s + 1
    P = np.zeros((OH * OW, hwp), dtype=np.float32)
    inv = 1.0 / float(k * k)
    for oh in range(OH):
        for ow in range(OW):
            for kh in range(k):
                for kw in range(k):
                    P[oh * OW + ow, (s * oh + kh) * W + (s * ow + kw)] = inv
    return P, OH, OW


# ---------------- fused Pallas kernel ----------------

def _make_kernel(tb, ohw):
    def kernel(x_ref, p_ref, wc_ref, sh_ref, w1_ref, b1_ref, w2_ref, b2_ref,
               o_ref, a_sc):
        # x_ref: (TB, C, HWp) f32  -- channel-major, lane-dense spatial axis.
        x = x_ref[...]

        # AvgPool(5,3) as a batched matmul contracting the spatial axis (flash-style).
        pb = jnp.broadcast_to(p_ref[...], (tb, *p_ref.shape))            # (TB, OHW, HWp)
        pooled = jnp.einsum("bop,bcp->boc", pb, x,
                            preferred_element_type=jnp.float32)           # (TB, OHW, C)

        # 1x1 conv (BN scale pre-folded into the weight) as one 2D MXU dot.
        pooled2 = pooled.reshape(tb * ohw, pooled.shape[-1])               # (TB*OHW, C)
        a = jnp.dot(pooled2, wc_ref[...], preferred_element_type=jnp.float32)
        a = jnp.maximum(a + sh_ref[...], 0.0)                              # conv bias + BN shift, ReLU
        a_sc[...] = a                                                      # rows ordered (b, s)

        # fc1 over the NCHW flatten without any in-kernel transpose:
        #   h[b] = sum_s a[b, s, :] @ W1p[s]   with W1p[s, c, :] = fc1_w.T[c*OHW + s, :]
        def part(s):
            a_s = a_sc[pl.ds(s, tb, stride=ohw), :].astype(jnp.bfloat16)   # (TB, 128)
            return jnp.dot(a_s, w1_ref[s], preferred_element_type=jnp.float32)

        h0 = part(0) + b1_ref[...]          # seed one accumulator with the bias
        h1 = part(1)
        for s in range(2, ohw, 2):          # two parallel accumulators (shorter dep chain)
            h0 = h0 + part(s)
            h1 = h1 + part(s + 1)
        h = jnp.maximum(h0 + h1, 0.0).astype(jnp.bfloat16)                 # relu(fc1); dropout = id

        o_ref[...] = jnp.dot(h, w2_ref[...],
                             preferred_element_type=jnp.float32) + b2_ref[...]
    return kernel


# ---------------- one-time parameter preparation (hoisted out of forward) ----------------

def prepare_params(params, num_class, H, W):
    C = params["conv_w"].shape[1]
    HID, FIN = params["fc1_w"].shape                                  # (1024, 2048)
    HW = H * W
    HWp = ((HW + 127) // 128) * 128
    P_np, OH, OW = _build_pool_matrix(H, W, POOL_K, POOL_S, HWp)
    OHW = OH * OW
    assert 128 * OHW == FIN, "fc1 expects 2048 features -> pooled spatial must be 4x4"

    scale = params["bn_gamma"] / jnp.sqrt(params["bn_var"] + BN_EPS)
    shift = params["bn_beta"] + (params["conv_b"] - params["bn_mean"]) * scale
    wcs = params["conv_w"].reshape(128, C).T * scale[None, :]          # (C, 128), BN scale folded

    # fc1 weight permuted so w1p[s, c, :] == fc1_w.T[c*OHW + s, :]; bf16 (f32 accumulation).
    w1p = (params["fc1_w"].T.reshape(128, OHW, HID)
           .transpose(1, 0, 2).astype(jnp.bfloat16))                  # (OHW, 128, HID)

    ncp = ((num_class + 127) // 128) * 128                            # lane-dense output pad
    w2p = jnp.pad(params["fc2_w"].T, ((0, 0), (0, ncp - num_class))).astype(jnp.bfloat16)
    b2p = jnp.pad(params["fc2_b"], (0, ncp - num_class)).reshape(1, ncp)

    return {
        "pool": jnp.asarray(P_np),                                     # (OHW, HWp) f32
        "wc": wcs.astype(jnp.float32),                                 # (C, 128)
        "shift": shift.reshape(1, 128).astype(jnp.float32),
        "w1": w1p,                                                     # (OHW, 128, HID) bf16
        "b1": params["fc1_b"].reshape(1, HID).astype(jnp.float32),
        "w2": w2p,                                                     # (HID, ncp) bf16
        "b2": b2p.astype(jnp.float32),
    }


# ---------------- forward wrapper ----------------

@functools.partial(jax.jit, static_argnames=("num_class", "tb"))
def inception_aux_forward(x_nchw, prep, *, num_class, tb=8):
    B, C, H, W = x_nchw.shape
    pool = prep["pool"]
    OHW, HWp = pool.shape
    HID = prep["b1"].shape[1]
    ncp = prep["b2"].shape[1]

    tb = max(8, (min(tb, 128) // 8) * 8)            # multiple of 8, modest VMEM footprint
    Bp = ((B + tb - 1) // tb) * tb

    # NCHW -> channel-major (B, C, HW) with spatial axis zero-padded to HWp lanes.
    x_cm = x_nchw.reshape(B, C, H * W)
    x_cm = jnp.pad(x_cm, ((0, Bp - B), (0, 0), (0, HWp - H * W)))

    flops = 2 * Bp * (OHW * C * HWp + OHW * C * 128 + OHW * 128 * HID + HID * ncp)
    bytes_accessed = (x_cm.size * 4 + prep["w1"].size * 2 + prep["w2"].size * 2
                      + pool.size * 4 + Bp * ncp * 4)

    out = pl.pallas_call(
        _make_kernel(tb, OHW),
        out_shape=jax.ShapeDtypeStruct((Bp, ncp), jnp.float32),
        grid_spec=pltpu.PrefetchScalarGridSpec(
            num_scalar_prefetch=0,
            grid=(Bp // tb,),
            in_specs=[
                pl.BlockSpec((tb, C, HWp), lambda i: (i, 0, 0)),      # TB images / step
                pl.BlockSpec((OHW, HWp), lambda i: (0, 0)),           # pooling matrix (resident)
                pl.BlockSpec((C, 128), lambda i: (0, 0)),             # conv weight * BN scale
                pl.BlockSpec((1, 128), lambda i: (0, 0)),             # conv bias + BN shift
                pl.BlockSpec((OHW, 128, HID), lambda i: (0, 0, 0)),   # fc1 weight bf16 (resident)
                pl.BlockSpec((1, HID), lambda i: (0, 0)),             # fc1 bias
                pl.BlockSpec((HID, ncp), lambda i: (0, 0)),           # fc2 weight bf16 (resident)
                pl.BlockSpec((1, ncp), lambda i: (0, 0)),             # fc2 bias (padded)
            ],
            out_specs=pl.BlockSpec((tb, ncp), lambda i: (i, 0)),
            scratch_shapes=[pltpu.VMEM((tb * OHW, 128), jnp.float32)],
        ),
        compiler_params=pltpu.CompilerParams(
            dimension_semantics=("parallel",),
            vmem_limit_bytes=32 * 1024 * 1024),
        cost_estimate=pl.CostEstimate(
            flops=flops, transcendentals=0, bytes_accessed=bytes_accessed),
    )(x_cm, pool, prep["wc"], prep["shift"], prep["w1"], prep["b1"],
      prep["w2"], prep["b2"])

    return out[:B, :num_class]


# ---------------- pure-JAX reference (f32, for sanity check) ----------------

def reference_forward(x_nchw, params):
    B = x_nchw.shape[0]
    pooled = jax.lax.reduce_window(
        x_nchw, 0.0, jax.lax.add,
        (1, 1, POOL_K, POOL_K), (1, 1, POOL_S, POOL_S), "VALID") / float(POOL_K * POOL_K)
    conv = jnp.einsum("bchw,oc->bohw", pooled, params["conv_w"].reshape(128, -1))
    conv = conv + params["conv_b"][None, :, None, None]
    bn = (conv - params["bn_mean"][None, :, None, None]) \
        / jnp.sqrt(params["bn_var"][None, :, None, None] + BN_EPS) \
        * params["bn_gamma"][None, :, None, None] + params["bn_beta"][None, :, None, None]
    f = jnp.maximum(bn, 0.0).reshape(B, -1)                            # NCHW flatten -> (B, 2048)
    h = jnp.maximum(f @ params["fc1_w"].T + params["fc1_b"], 0.0)
    return h @ params["fc2_w"].T + params["fc2_b"]


# ---------------- main ----------------

if __name__ == "__main__":
    B, C_IN, H, W = 6, 16, 14, 14          # 14x14 -> AvgPool(5,3) -> 4x4 -> 128*16 = 2048
    NUM_CLASS = 10

    key = jax.random.PRNGKey(0)
    ks = jax.random.split(key, 11)

    params = {
        "conv_w":  0.05 * jax.random.normal(ks[0], (128, C_IN, 1, 1), jnp.float32),
        "conv_b":  0.05 * jax.random.normal(ks[1], (128,), jnp.float32),
        "bn_gamma": 1.0 + 0.1 * jax.random.normal(ks[2], (128,), jnp.float32),
        "bn_beta": 0.1 * jax.random.normal(ks[3], (128,), jnp.float32),
        "bn_mean": 0.1 * jax.random.normal(ks[4], (128,), jnp.float32),
        "bn_var":  jax.random.uniform(ks[5], (128,), jnp.float32, 0.5, 1.5),
        "fc1_w":   0.02 * jax.random.normal(ks[6], (1024, 2048), jnp.float32),
        "fc1_b":   0.02 * jax.random.normal(ks[7], (1024,), jnp.float32),
        "fc2_w":   0.02 * jax.random.normal(ks[8], (NUM_CLASS, 1024), jnp.float32),
        "fc2_b":   0.02 * jax.random.normal(ks[9], (NUM_CLASS,), jnp.float32),
    }
    x = jax.random.normal(ks[10], (B, C_IN, H, W), jnp.float32)

    prep = prepare_params(params, NUM_CLASS, H, W)     # one-time weight prep (hoisted)

    out = inception_aux_forward(x, prep, num_class=NUM_CLASS, tb=8)
    out = jax.block_until_ready(out)

    ref = jax.block_until_ready(reference_forward(x, params))
    # tolerance loosened for bf16 fc weights / activations (f32 accumulation)
    np.testing.assert_allclose(np.asarray(out), np.asarray(ref), rtol=2e-2, atol=2e-2)

    print("KERNEL_OK")
</pallas_src>

<mosaic_0001>
module attributes {stable_mosaic.version = 11 : i64} {
  func.func @kernel(%arg0: i32, %arg1: memref<8x16x256xf32, #tpu.memory_space<vmem>>, %arg2: memref<16x256xf32, #tpu.memory_space<vmem>>, %arg3: memref<16x128xf32, #tpu.memory_space<vmem>>, %arg4: memref<1x128xf32, #tpu.memory_space<vmem>>, %arg5: memref<16x128x1024xbf16, #tpu.memory_space<vmem>>, %arg6: memref<1x1024xf32, #tpu.memory_space<vmem>>, %arg7: memref<1024x128xbf16, #tpu.memory_space<vmem>>, %arg8: memref<1x128xf32, #tpu.memory_space<vmem>>, %arg9: memref<8x128xf32, #tpu.memory_space<vmem>>, %arg10: memref<128x128xf32, #tpu.memory_space<vmem>>) attributes {dimension_semantics = [#tpu.dimension_semantics<parallel>], iteration_bounds = array<i64: 1>, scalar_prefetch = 0 : i64, scratch_operands = 1 : i64, tpu.core_type = #tpu.core_type<tc>, window_params = [{transform_indices = @transform_0, window_bounds = array<i64: 8, 16, 256>}, {pipeline_mode = #tpu.pipeline_mode<synchronous>, transform_indices = @transform_1, window_bounds = array<i64: 16, 256>}, {pipeline_mode = #tpu.pipeline_mode<synchronous>, transform_indices = @transform_2, window_bounds = array<i64: 16, 128>}, {pipeline_mode = #tpu.pipeline_mode<synchronous>, transform_indices = @transform_3, window_bounds = array<i64: 1, 128>}, {pipeline_mode = #tpu.pipeline_mode<synchronous>, transform_indices = @transform_4, window_bounds = array<i64: 16, 128, 1024>}, {pipeline_mode = #tpu.pipeline_mode<synchronous>, transform_indices = @transform_5, window_bounds = array<i64: 1, 1024>}, {pipeline_mode = #tpu.pipeline_mode<synchronous>, transform_indices = @transform_6, window_bounds = array<i64: 1024, 128>}, {pipeline_mode = #tpu.pipeline_mode<synchronous>, transform_indices = @transform_7, window_bounds = array<i64: 1, 128>}, {transform_indices = @transform_8, window_bounds = array<i64: 8, 128>}]} {
    %c0 = arith.constant 0 : index
    %c0_0 = arith.constant 0 : index
    %c0_1 = arith.constant 0 : index
    %0 = vector.load %arg1[%c0, %c0_0, %c0_1] : memref<8x16x256xf32, #tpu.memory_space<vmem>>, vector<8x16x256xf32>
    %c0_2 = arith.constant 0 : index
    %c0_3 = arith.constant 0 : index
    %1 = vector.load %arg2[%c0_2, %c0_3] : memref<16x256xf32, #tpu.memory_space<vmem>>, vector<16x256xf32>
    %2 = vector.shape_cast %1 : vector<16x256xf32> to vector<1x16x256xf32>
    %3 = vector.broadcast %2 : vector<1x16x256xf32> to vector<8x16x256xf32>
    "tpu.trace_start"() <{level = 10 : i32, message = "bop,bcp->boc"}> : () -> ()
    %cst = arith.constant dense<0.000000e+00> : vector<8x16x16xf32>
    %4 = tpu.matmul %3, %0, %cst {dimension_numbers = #tpu.dot_dimension_numbers<[2], [2], [1], [1], [0, 0, 0, 1, 1, 1], [0], [0]>} : vector<8x16x256xf32>, vector<8x16x256xf32>, vector<8x16x16xf32> -> vector<8x16x16xf32>
    "tpu.trace_stop"() : () -> ()
    %5 = vector.shape_cast %4 : vector<8x16x16xf32> to vector<128x16xf32>
    %c0_4 = arith.constant 0 : index
    %c0_5 = arith.constant 0 : index
    %6 = vector.load %arg3[%c0_4, %c0_5] : memref<16x128xf32, #tpu.memory_space<vmem>>, vector<16x128xf32>
    %cst_6 = arith.constant dense<0.000000e+00> : vector<128x128xf32>
    %7 = tpu.matmul %5, %6, %cst_6 {dimension_numbers = #tpu.dot_dimension_numbers<[1], [0], [0], [1], [0, 0, 1, 1], [], []>} : vector<128x16xf32>, vector<16x128xf32>, vector<128x128xf32> -> vector<128x128xf32>
    %c0_7 = arith.constant 0 : index
    %c0_8 = arith.constant 0 : index
    %8 = vector.load %arg4[%c0_7, %c0_8] : memref<1x128xf32, #tpu.memory_space<vmem>>, vector<1x128xf32>
    %9 = vector.broadcast %8 : vector<1x128xf32> to vector<128x128xf32>
    %10 = arith.addf %7, %9 : vector<128x128xf32>
    %cst_9 = arith.constant 0.000000e+00 : f32
    %11 = vector.broadcast %cst_9 : f32 to vector<128x128xf32>
    %12 = arith.maximumf %10, %11 : vector<128x128xf32>
    %c0_10 = arith.constant 0 : index
    %c0_11 = arith.constant 0 : index
    %13 = vector.load %arg10[%c0_10, %c0_11] : memref<128x128xf32, #tpu.memory_space<vmem>>, vector<128x128xf32>
    tpu.vector_store %arg10[%c0_10, %c0_11], %12 {strides = array<i32>} : memref<128x128xf32, #tpu.memory_space<vmem>>, vector<128x128xf32>,
    %c0_12 = arith.constant 0 : index
    %c0_13 = arith.constant 0 : index
    %14 = tpu.strided_load %arg10[%c0_12, %c0_13] {strides = array<i32: 16, 1>} : memref<128x128xf32, #tpu.memory_space<vmem>>, vector<8x128xf32>
    %15 = arith.truncf %14 : vector<8x128xf32> to vector<8x128xbf16>
    %c0_14 = arith.constant 0 : index
    %c0_15 = arith.constant 0 : index
    %c0_16 = arith.constant 0 : index
    %16 = vector.load %arg5[%c0_14, %c0_15, %c0_16] : memref<16x128x1024xbf16, #tpu.memory_space<vmem>>, vector<1x128x1024xbf16>
    %17 = vector.shape_cast %16 : vector<1x128x1024xbf16> to vector<128x1024xbf16>
    %cst_17 = arith.constant dense<0.000000e+00> : vector<8x1024xf32>
    %18 = tpu.matmul %15, %17, %cst_17 {dimension_numbers = #tpu.dot_dimension_numbers<[1], [0], [0], [1], [0, 0, 1, 1], [], []>} : vector<8x128xbf16>, vector<128x1024xbf16>, vector<8x1024xf32> -> vector<8x1024xf32>
    %c0_18 = arith.constant 0 : index
    %c0_19 = arith.constant 0 : index
    %19 = vector.load %arg6[%c0_18, %c0_19] : memref<1x1024xf32, #tpu.memory_space<vmem>>, vector<1x1024xf32>
    %20 = vector.broadcast %19 : vector<1x1024xf32> to vector<8x1024xf32>
    %21 = arith.addf %18, %20 : vector<8x1024xf32>
    %c1 = arith.constant 1 : index
    %c0_20 = arith.constant 0 : index
    %22 = tpu.strided_load %arg10[%c1, %c0_20] {strides = array<i32: 16, 1>} : memref<128x128xf32, #tpu.memory_space<vmem>>, vector<8x128xf32>
    %23 = arith.truncf %22 : vector<8x128xf32> to vector<8x128xbf16>
    %c1_21 = arith.constant 1 : index
    %c0_22 = arith.constant 0 : index
    %c0_23 = arith.constant 0 : index
    %24 = vector.load %arg5[%c1_21, %c0_22, %c0_23] : memref<16x128x1024xbf16, #tpu.memory_space<vmem>>, vector<1x128x1024xbf16>
    %25 = vector.shape_cast %24 : vector<1x128x1024xbf16> to vector<128x1024xbf16>
    %cst_24 = arith.constant dense<0.000000e+00> : vector<8x1024xf32>
    %26 = tpu.matmul %23, %25, %cst_24 {dimension_numbers = #tpu.dot_dimension_numbers<[1], [0], [0], [1], [0, 0, 1, 1], [], []>} : vector<8x128xbf16>, vector<128x1024xbf16>, vector<8x1024xf32> -> vector<8x1024xf32>
    %c2 = arith.constant 2 : index
    %c0_25 = arith.constant 0 : index
    %27 = tpu.strided_load %arg10[%c2, %c0_25] {strides = array<i32: 16, 1>} : memref<128x128xf32, #tpu.memory_space<vmem>>, vector<8x128xf32>
    %28 = arith.truncf %27 : vector<8x128xf32> to vector<8x128xbf16>
    %c2_26 = arith.constant 2 : index
    %c0_27 = arith.constant 0 : index
    %c0_28 = arith.constant 0 : index
    %29 = vector.load %arg5[%c2_26, %c0_27, %c0_28] : memref<16x128x1024xbf16, #tpu.memory_space<vmem>>, vector<1x128x1024xbf16>
    %30 = vector.shape_cast %29 : vector<1x128x1024xbf16> to vector<128x1024xbf16>
    %cst_29 = arith.constant dense<0.000000e+00> : vector<8x1024xf32>
    %31 = tpu.matmul %28, %30, %cst_29 {dimension_numbers = #tpu.dot_dimension_numbers<[1], [0], [0], [1], [0, 0, 1, 1], [], []>} : vector<8x128xbf16>, vector<128x1024xbf16>, vector<8x1024xf32> -> vector<8x1024xf32>
    %32 = arith.addf %21, %31 : vector<8x1024xf32>
    %c3 = arith.constant 3 : index
    %c0_30 = arith.constant 0 : index
    %33 = tpu.strided_load %arg10[%c3, %c0_30] {strides = array<i32: 16, 1>} : memref<128x128xf32, #tpu.memory_space<vmem>>, vector<8x128xf32>
    %34 = arith.truncf %33 : vector<8x128xf32> to vector<8x128xbf16>
    %c3_31 = arith.constant 3 : index
    %c0_32 = arith.constant 0 : index
    %c0_33 = arith.constant 0 : index
    %35 = vector.load %arg5[%c3_31, %c0_32, %c0_33] : memref<16x128x1024xbf16, #tpu.memory_space<vmem>>, vector<1x128x1024xbf16>
    %36 = vector.shape_cast %35 : vector<1x128x1024xbf16> to vector<128x1024xbf16>
    %cst_34 = arith.constant dense<0.000000e+00> : vector<8x1024xf32>
    %37 = tpu.matmul %34, %36, %cst_34 {dimension_numbers = #tpu.dot_dimension_numbers<[1], [0], [0], [1], [0, 0, 1, 1], [], []>} : vector<8x128xbf16>, vector<128x1024xbf16>, vector<8x1024xf32> -> vector<8x1024xf32>
    %38 = arith.addf %26, %37 : vector<8x1024xf32>
    %c4 = arith.constant 4 : index
    %c0_35 = arith.constant 0 : index
    %39 = tpu.strided_load %arg10[%c4, %c0_35] {strides = array<i32: 16, 1>} : memref<128x128xf32, #tpu.memory_space<vmem>>, vector<8x128xf32>
    %40 = arith.truncf %39 : vector<8x128xf32> to vector<8x128xbf16>
    %c4_36 = arith.constant 4 : index
    %c0_37 = arith.constant 0 : index
    %c0_38 = arith.constant 0 : index
    %41 = vector.load %arg5[%c4_36, %c0_37, %c0_38] : memref<16x128x1024xbf16, #tpu.memory_space<vmem>>, vector<1x128x1024xbf16>
    %42 = vector.shape_cast %41 : vector<1x128x1024xbf16> to vector<128x1024xbf16>
    %cst_39 = arith.constant dense<0.000000e+00> : vector<8x1024xf32>
    %43 = tpu.matmul %40, %42, %cst_39 {dimension_numbers = #tpu.dot_dimension_numbers<[1], [0], [0], [1], [0, 0, 1, 1], [], []>} : vector<8x128xbf16>, vector<128x1024xbf16>, vector<8x1024xf32> -> vector<8x1024xf32>
    %44 = arith.addf %32, %43 : vector<8x1024xf32>
    %c5 = arith.constant 5 : index
    %c0_40 = arith.constant 0 : index
    %45 = tpu.strided_load %arg10[%c5, %c0_40] {strides = array<i32: 16, 1>} : memref<128x128xf32, #tpu.memory_space<vmem>>, vector<8x128xf32>
    %46 = arith.truncf %45 : vector<8x128xf32> to vector<8x128xbf16>
    %c5_41 = arith.constant 5 : index
    %c0_42 = arith.constant 0 : index
    %c0_43 = arith.constant 0 : index
    %47 = vector.load %arg5[%c5_41, %c0_42, %c0_43] : memref<16x128x1024xbf16, #tpu.memory_space<vmem>>, vector<1x128x1024xbf16>
    %48 = vector.shape_cast %47 : vector<1x128x1024xbf16> to vector<128x1024xbf16>
    %cst_44 = arith.constant dense<0.000000e+00> : vector<8x1024xf32>
    %49 = tpu.matmul %46, %48, %cst_44 {dimension_numbers = #tpu.dot_dimension_numbers<[1], [0], [0], [1], [0, 0, 1, 1], [], []>} : vector<8x128xbf16>, vector<128x1024xbf16>, vector<8x1024xf32> -> vector<8x1024xf32>
    %50 = arith.addf %38, %49 : vector<8x1024xf32>
    %c6 = arith.constant 6 : index
    %c0_45 = arith.constant 0 : index
    %51 = tpu.strided_load %arg10[%c6, %c0_45] {strides = array<i32: 16, 1>} : memref<128x128xf32, #tpu.memory_space<vmem>>, vector<8x128xf32>
    %52 = arith.truncf %51 : vector<8x128xf32> to vector<8x128xbf16>
    %c6_46 = arith.constant 6 : index
    %c0_47 = arith.constant 0 : index
    %c0_48 = arith.constant 0 : index
    %53 = vector.load %arg5[%c6_46, %c0_47, %c0_48] : memref<16x128x1024xbf16, #tpu.memory_space<vmem>>, vector<1x128x1024xbf16>
    %54 = vector.shape_cast %53 : vector<1x128x1024xbf16> to vector<128x1024xbf16>
    %cst_49 = arith.constant dense<0.000000e+00> : vector<8x1024xf32>
    %55 = tpu.matmul %52, %54, %cst_49 {dimension_numbers = #tpu.dot_dimension_numbers<[1], [0], [0], [1], [0, 0, 1, 1], [], []>} : vector<8x128xbf16>, vector<128x1024xbf16>, vector<8x1024xf32> -> vector<8x1024xf32>
    %56 = arith.addf %44, %55 : vector<8x1024xf32>
    %c7 = arith.constant 7 : index
    %c0_50 = arith.constant 0 : index
    %57 = tpu.strided_load %arg10[%c7, %c0_50] {strides = array<i32: 16, 1>} : memref<128x128xf32, #tpu.memory_space<vmem>>, vector<8x128xf32>
    %58 = arith.truncf %57 : vector<8x128xf32> to vector<8x128xbf16>
    %c7_51 = arith.constant 7 : index
    %c0_52 = arith.constant 0 : index
    %c0_53 = arith.constant 0 : index
    %59 = vector.load %arg5[%c7_51, %c0_52, %c0_53] : memref<16x128x1024xbf16, #tpu.memory_space<vmem>>, vector<1x128x1024xbf16>
    %60 = vector.shape_cast %59 : vector<1x128x1024xbf16> to vector<128x1024xbf16>
    %cst_54 = arith.constant dense<0.000000e+00> : vector<8x1024xf32>
    %61 = tpu.matmul %58, %60, %cst_54 {dimension_numbers = #tpu.dot_dimension_numbers<[1], [0], [0], [1], [0, 0, 1, 1], [], []>} : vector<8x128xbf16>, vector<128x1024xbf16>, vector<8x1024xf32> -> vector<8x1024xf32>
    %62 = arith.addf %50, %61 : vector<8x1024xf32>
    %c8 = arith.constant 8 : index
    %c0_55 = arith.constant 0 : index
    %63 = tpu.strided_load %arg10[%c8, %c0_55] {strides = array<i32: 16, 1>} : memref<128x128xf32, #tpu.memory_space<vmem>>, vector<8x128xf32>
    %64 = arith.truncf %63 : vector<8x128xf32> to vector<8x128xbf16>
    %c8_56 = arith.constant 8 : index
    %c0_57 = arith.constant 0 : index
    %c0_58 = arith.constant 0 : index
    %65 = vector.load %arg5[%c8_56, %c0_57, %c0_58] : memref<16x128x1024xbf16, #tpu.memory_space<vmem>>, vector<1x128x1024xbf16>
    %66 = vector.shape_cast %65 : vector<1x128x1024xbf16> to vector<128x1024xbf16>
    %cst_59 = arith.constant dense<0.000000e+00> : vector<8x1024xf32>
    %67 = tpu.matmul %64, %66, %cst_59 {dimension_numbers = #tpu.dot_dimension_numbers<[1], [0], [0], [1], [0, 0, 1, 1], [], []>} : vector<8x128xbf16>, vector<128x1024xbf16>, vector<8x1024xf32> -> vector<8x1024xf32>
    %68 = arith.addf %56, %67 : vector<8x1024xf32>
    %c9 = arith.constant 9 : index
    %c0_60 = arith.constant 0 : index
    %69 = tpu.strided_load %arg10[%c9, %c0_60] {strides = array<i32: 16, 1>} : memref<128x128xf32, #tpu.memory_space<vmem>>, vector<8x128xf32>
    %70 = arith.truncf %69 : vector<8x128xf32> to vector<8x128xbf16>
    %c9_61 = arith.constant 9 : index
    %c0_62 = arith.constant 0 : index
    %c0_63 = arith.constant 0 : index
    %71 = vector.load %arg5[%c9_61, %c0_62, %c0_63] : memref<16x128x1024xbf16, #tpu.memory_space<vmem>>, vector<1x128x1024xbf16>
    %72 = vector.shape_cast %71 : vector<1x128x1024xbf16> to vector<128x1024xbf16>
    %cst_64 = arith.constant dense<0.000000e+00> : vector<8x1024xf32>
    %73 = tpu.matmul %70, %72, %cst_64 {dimension_numbers = #tpu.dot_dimension_numbers<[1], [0], [0], [1], [0, 0, 1, 1], [], []>} : vector<8x128xbf16>, vector<128x1024xbf16>, vector<8x1024xf32> -> vector<8x1024xf32>
    %74 = arith.addf %62, %73 : vector<8x1024xf32>
    %c10 = arith.constant 10 : index
    %c0_65 = arith.constant 0 : index
    %75 = tpu.strided_load %arg10[%c10, %c0_65] {strides = array<i32: 16, 1>} : memref<128x128xf32, #tpu.memory_space<vmem>>, vector<8x128xf32>
    %76 = arith.truncf %75 : vector<8x128xf32> to vector<8x128xbf16>
    %c10_66 = arith.constant 10 : index
    %c0_67 = arith.constant 0 : index
    %c0_68 = arith.constant 0 : index
    %77 = vector.load %arg5[%c10_66, %c0_67, %c0_68] : memref<16x128x1024xbf16, #tpu.memory_space<vmem>>, vector<1x128x1024xbf16>
    %78 = vector.shape_cast %77 : vector<1x128x1024xbf16> to vector<128x1024xbf16>
    %cst_69 = arith.constant dense<0.000000e+00> : vector<8x1024xf32>
    %79 = tpu.matmul %76, %78, %cst_69 {dimension_numbers = #tpu.dot_dimension_numbers<[1], [0], [0], [1], [0, 0, 1, 1], [], []>} : vector<8x128xbf16>, vector<128x1024xbf16>, vector<8x1024xf32> -> vector<8x1024xf32>
    %80 = arith.addf %68, %79 : vector<8x1024xf32>
    %c11 = arith.constant 11 : index
    %c0_70 = arith.constant 0 : index
    %81 = tpu.strided_load %arg10[%c11, %c0_70] {strides = array<i32: 16, 1>} : memref<128x128xf32, #tpu.memory_space<vmem>>, vector<8x128xf32>
    %82 = arith.truncf %81 : vector<8x128xf32> to vector<8x128xbf16>
    %c11_71 = arith.constant 11 : index
    %c0_72 = arith.constant 0 : index
    %c0_73 = arith.constant 0 : index
    %83 = vector.load %arg5[%c11_71, %c0_72, %c0_73] : memref<16x128x1024xbf16, #tpu.memory_space<vmem>>, vector<1x128x1024xbf16>
    %84 = vector.shape_cast %83 : vector<1x128x1024xbf16> to vector<128x1024xbf16>
    %cst_74 = arith.constant dense<0.000000e+00> : vector<8x1024xf32>
    %85 = tpu.matmul %82, %84, %cst_74 {dimension_numbers = #tpu.dot_dimension_numbers<[1], [0], [0], [1], [0, 0, 1, 1], [], []>} : vector<8x128xbf16>, vector<128x1024xbf16>, vector<8x1024xf32> -> vector<8x1024xf32>
    %86 = arith.addf %74, %85 : vector<8x1024xf32>
    %c12 = arith.constant 12 : index
    %c0_75 = arith.constant 0 : index
    %87 = tpu.strided_load %arg10[%c12, %c0_75] {strides = array<i32: 16, 1>} : memref<128x128xf32, #tpu.memory_space<vmem>>, vector<8x128xf32>
    %88 = arith.truncf %87 : vector<8x128xf32> to vector<8x128xbf16>
    %c12_76 = arith.constant 12 : index
    %c0_77 = arith.constant 0 : index
    %c0_78 = arith.constant 0 : index
    %89 = vector.load %arg5[%c12_76, %c0_77, %c0_78] : memref<16x128x1024xbf16, #tpu.memory_space<vmem>>, vector<1x128x1024xbf16>
    %90 = vector.shape_cast %89 : vector<1x128x1024xbf16> to vector<128x1024xbf16>
    %cst_79 = arith.constant dense<0.000000e+00> : vector<8x1024xf32>
    %91 = tpu.matmul %88, %90, %cst_79 {dimension_numbers = #tpu.dot_dimension_numbers<[1], [0], [0], [1], [0, 0, 1, 1], [], []>} : vector<8x128xbf16>, vector<128x1024xbf16>, vector<8x1024xf32> -> vector<8x1024xf32>
    %92 = arith.addf %80, %91 : vector<8x1024xf32>
    %c13 = arith.constant 13 : index
    %c0_80 = arith.constant 0 : index
    %93 = tpu.strided_load %arg10[%c13, %c0_80] {strides = array<i32: 16, 1>} : memref<128x128xf32, #tpu.memory_space<vmem>>, vector<8x128xf32>
    %94 = arith.truncf %93 : vector<8x128xf32> to vector<8x128xbf16>
    %c13_81 = arith.constant 13 : index
    %c0_82 = arith.constant 0 : index
    %c0_83 = arith.constant 0 : index
    %95 = vector.load %arg5[%c13_81, %c0_82, %c0_83] : memref<16x128x1024xbf16, #tpu.memory_space<vmem>>, vector<1x128x1024xbf16>
    %96 = vector.shape_cast %95 : vector<1x128x1024xbf16> to vector<128x1024xbf16>
    %cst_84 = arith.constant dense<0.000000e+00> : vector<8x1024xf32>
    %97 = tpu.matmul %94, %96, %cst_84 {dimension_numbers = #tpu.dot_dimension_numbers<[1], [0], [0], [1], [0, 0, 1, 1], [], []>} : vector<8x128xbf16>, vector<128x1024xbf16>, vector<8x1024xf32> -> vector<8x1024xf32>
    %98 = arith.addf %86, %97 : vector<8x1024xf32>
    %c14 = arith.constant 14 : index
    %c0_85 = arith.constant 0 : index
    %99 = tpu.strided_load %arg10[%c14, %c0_85] {strides = array<i32: 16, 1>} : memref<128x128xf32, #tpu.memory_space<vmem>>, vector<8x128xf32>
    %100 = arith.truncf %99 : vector<8x128xf32> to vector<8x128xbf16>
    %c14_86 = arith.constant 14 : index
    %c0_87 = arith.constant 0 : index
    %c0_88 = arith.constant 0 : index
    %101 = vector.load %arg5[%c14_86, %c0_87, %c0_88] : memref<16x128x1024xbf16, #tpu.memory_space<vmem>>, vector<1x128x1024xbf16>
    %102 = vector.shape_cast %101 : vector<1x128x1024xbf16> to vector<128x1024xbf16>
    %cst_89 = arith.constant dense<0.000000e+00> : vector<8x1024xf32>
    %103 = tpu.matmul %100, %102, %cst_89 {dimension_numbers = #tpu.dot_dimension_numbers<[1], [0], [0], [1], [0, 0, 1, 1], [], []>} : vector<8x128xbf16>, vector<128x1024xbf16>, vector<8x1024xf32> -> vector<8x1024xf32>
    %104 = arith.addf %92, %103 : vector<8x1024xf32>
    %c15 = arith.constant 15 : index
    %c0_90 = arith.constant 0 : index
    %105 = tpu.strided_load %arg10[%c15, %c0_90] {strides = array<i32: 16, 1>} : memref<128x128xf32, #tpu.memory_space<vmem>>, vector<8x128xf32>
    %106 = arith.truncf %105 : vector<8x128xf32> to vector<8x128xbf16>
    %c15_91 = arith.constant 15 : index
    %c0_92 = arith.constant 0 : index
    %c0_93 = arith.constant 0 : index
    %107 = vector.load %arg5[%c15_91, %c0_92, %c0_93] : memref<16x128x1024xbf16, #tpu.memory_space<vmem>>, vector<1x128x1024xbf16>
    %108 = vector.shape_cast %107 : vector<1x128x1024xbf16> to vector<128x1024xbf16>
    %cst_94 = arith.constant dense<0.000000e+00> : vector<8x1024xf32>
    %109 = tpu.matmul %106, %108, %cst_94 {dimension_numbers = #tpu.dot_dimension_numbers<[1], [0], [0], [1], [0, 0, 1, 1], [], []>} : vector<8x128xbf16>, vector<128x1024xbf16>, vector<8x1024xf32> -> vector<8x1024xf32>
    %110 = arith.addf %98, %109 : vector<8x1024xf32>
    %111 = arith.addf %104, %110 : vector<8x1024xf32>
    %cst_95 = arith.constant 0.000000e+00 : f32
    %112 = vector.broadcast %cst_95 : f32 to vector<8x1024xf32>
    %113 = arith.maximumf %111, %112 : vector<8x1024xf32>
    %114 = arith.truncf %113 : vector<8x1024xf32> to vector<8x1024xbf16>
    %c0_96 = arith.constant 0 : index
    %c0_97 = arith.constant 0 : index
    %115 = vector.load %arg7[%c0_96, %c0_97] : memref<1024x128xbf16, #tpu.memory_space<vmem>>, vector<1024x128xbf16>
    %cst_98 = arith.constant dense<0.000000e+00> : vector<8x128xf32>
    %116 = tpu.matmul %114, %115, %cst_98 {dimension_numbers = #tpu.dot_dimension_numbers<[1], [0], [0], [1], [0, 0, 1, 1], [], []>} : vector<8x1024xbf16>, vector<1024x128xbf16>, vector<8x128xf32> -> vector<8x128xf32>
    %c0_99 = arith.constant 0 : index
    %c0_100 = arith.constant 0 : index
    %117 = vector.load %arg8[%c0_99, %c0_100] : memref<1x128xf32, #tpu.memory_space<vmem>>, vector<1x128xf32>
    %118 = vector.broadcast %117 : vector<1x128xf32> to vector<8x128xf32>
    %119 = arith.addf %116, %118 : vector<8x128xf32>
    %c0_101 = arith.constant 0 : index
    %c0_102 = arith.constant 0 : index
    %120 = vector.load %arg9[%c0_101, %c0_102] : memref<8x128xf32, #tpu.memory_space<vmem>>, vector<8x128xf32>
    tpu.vector_store %arg9[%c0_101, %c0_102], %119 {strides = array<i32>} : memref<8x128xf32, #tpu.memory_space<vmem>>, vector<8x128xf32>,
    return
  }
  func.func @transform_0(%arg0: i32) -> (i32, i32, i32) {
    %c0_i32 = arith.constant 0 : i32
    %c0_i32_0 = arith.constant 0 : i32
    %c0_i32_1 = arith.constant 0 : i32
    return %arg0, %c0_i32, %c0_i32_0 : i32, i32, i32
  }
  func.func @transform_1(%arg0: i32) -> (i32, i32) {
    %c0_i32 = arith.constant 0 : i32
    %c0_i32_0 = arith.constant 0 : i32
    %c0_i32_1 = arith.constant 0 : i32
    return %c0_i32, %c0_i32_0 : i32, i32
  }
  func.func @transform_2(%arg0: i32) -> (i32, i32) {
    %c0_i32 = arith.constant 0 : i32
    %c0_i32_0 = arith.constant 0 : i32
    %c0_i32_1 = arith.constant 0 : i32
    return %c0_i32, %c0_i32_0 : i32, i32
  }
  func.func @transform_3(%arg0: i32) -> (i32, i32) {
    %c0_i32 = arith.constant 0 : i32
    %c0_i32_0 = arith.constant 0 : i32
    %c0_i32_1 = arith.constant 0 : i32
    return %c0_i32, %c0_i32_0 : i32, i32
  }
  func.func @transform_4(%arg0: i32) -> (i32, i32, i32) {
    %c0_i32 = arith.constant 0 : i32
    %c0_i32_0 = arith.constant 0 : i32
    %c0_i32_1 = arith.constant 0 : i32
    %c0_i32_2 = arith.constant 0 : i32
    return %c0_i32, %c0_i32_0, %c0_i32_1 : i32, i32, i32
  }
  func.func @transform_5(%arg0: i32) -> (i32, i32) {
    %c0_i32 = arith.constant 0 : i32
    %c0_i32_0 = arith.constant 0 : i32
    %c0_i32_1 = arith.constant 0 : i32
    return %c0_i32, %c0_i32_0 : i32, i32
  }
  func.func @transform_6(%arg0: i32) -> (i32, i32) {
    %c0_i32 = arith.constant 0 : i32
    %c0_i32_0 = arith.constant 0 : i32
    %c0_i32_1 = arith.constant 0 : i32
    return %c0_i32, %c0_i32_0 : i32, i32
  }
  func.func @transform_7(%arg0: i32) -> (i32, i32) {
    %c0_i32 = arith.constant 0 : i32
    %c0_i32_0 = arith.constant 0 : i32
    %c0_i32_1 = arith.constant 0 : i32
    return %c0_i32, %c0_i32_0 : i32, i32
  }
  func.func @transform_8(%arg0: i32) -> (i32, i32) {
    %c0_i32 = arith.constant 0 : i32
    %c0_i32_0 = arith.constant 0 : i32
    return %arg0, %c0_i32 : i32, i32
  }
}

</mosaic_0001>

<bundles_post_ra>
// kernel: inception_aux_forward.1
= control target key start
LH: loop header
LB: loop body
LE: loop exit
PB: predicated region body
PF: predicated region fallthrough
CT: control target
= control target key end

     0   :  { %13 = vsyncpa [#allocation4], 0  ;;  %s13078_s0 = inlined_call_operand.vmem [shape: f32[8,16,256], index: 0, kind: input, shape index: {}]   ;;  %s13079_s1 = inlined_call_operand.hbm [shape: f32[16,256], index: 1, kind: input, shape index: {}]   ;;  %s13080_s2 = inlined_call_operand.hbm [shape: f32[16,128], index: 2, kind: input, shape index: {}]   ;;  %s13081_s3 = inlined_call_operand.hbm [shape: f32[1,128], index: 3, kind: input, shape index: {}]   ;;  %s13082_s4 = inlined_call_operand.hbm [shape: bf16[16,128,1024], index: 4, kind: input, shape index: {}]   ;;  %s13083_s5 = inlined_call_operand.hbm [shape: f32[1,1024], index: 5, kind: input, shape index: {}]   ;;  %s13084_s6 = inlined_call_operand.hbm [shape: bf16[1024,128], index: 6, kind: input, shape index: {}]   ;;  %s13085_s7 = inlined_call_operand.hbm [shape: f32[1,128], index: 7, kind: input, shape index: {}]   ;;  %s13086_s8 = inlined_call_operand.hbm [shape: f32[8,128], index: 8, kind: output, shape index: {}]  }
   0x1   :  { %14 = vsyncpa [#allocation7], 0 }
   0x2   :  { %15 = vsyncpa [#allocation10], 0 }
   0x3   :  { %16 = vsyncpa [#allocation13], 0 }
   0x4   :  { %17 = vsyncpa [#allocation5], 0  ;;  %s12576_s27 = smov [#allocation6]   ;;  %s12390_s9 = scalar_lea.hbm %s13080_s2, 256 }
   0x5   :  { %s37_s28 = sshll.u32 %s12576_s27, 4  ;;  %p12391_p0 = scmp.ne.s32.totalorder %s13080_s2, %s12390_s9  ;;  %s38_s28 = int_to_ptr.vmem [resolvable:$true] %s37_s28 }
   0x6   :  { %p12394_p1 = scmp.lt.u32.totalorder %s12390_s9, %s13080_s2 }
   0x8   :  { %p12396_p2 = pnand %p12394_p1, %p12391_p0 }
   0xa   :  { %12399 = shalt.err (!%p12396_p2)
}
   0xb   :  { %s12400_s14 = scalar_lea.vmem %s38_s28, 256  ;;  %p12405_p4 = scmp.lt.s32.totalorder %s38_s28, %s38_s28 }
   0xc   :  { %p12401_p3 = scmp.ne.s32.totalorder %s38_s28, %s12400_s14  ;;  %p12406_p5 = scmp.lt.s32.totalorder %s12400_s14, %s12400_s14 }
   0xe   :  { %p12407_p6 = por %p12406_p5, %p12405_p4 }
  0x10   :  { %p12408_p7 = pnand %p12407_p6, %p12401_p3 }
  0x12   :  { %12411 = shalt.err (!%p12408_p7)
}
  0x13   :  { %s12577_s15 = smov 128   ;;  %s12578_s16 = smov 8  }
  0x14   :  { %43 = dma.hbm_to_vmem [thread:$0]  %s13080_s2, 256, %s38_s28, [#allocation7], %s12577_s15, %s12577_s15, %s12578_s16  }
  0x15   :  { %s12579_s19 = smov [#allocation9]   ;;  %s12412_s23 = scalar_lea.hbm %s13082_s4, 131072 }
  0x16   :  { %s59_s20 = sshll.u32 %s12579_s19, 4  ;;  %p12413_p8 = scmp.ne.s32.totalorder %s13082_s4, %s12412_s23  ;;  %s60_s20 = int_to_ptr.vmem [resolvable:$true] %s59_s20 }
  0x17   :  { %p12416_p9 = scmp.lt.u32.totalorder %s12412_s23, %s13082_s4 }
  0x19   :  { %p12418_p10 = pnand %p12416_p9, %p12413_p8 }
  0x1b   :  { %12421 = shalt.err (!%p12418_p10)
}
  0x1c   :  { %s12422_s29 = scalar_lea.vmem %s60_s20, 131072  ;;  %p12427_p12 = scmp.lt.s32.totalorder %s60_s20, %s60_s20 }
  0x1d   :  { %p12423_p11 = scmp.ne.s32.totalorder %s60_s20, %s12422_s29  ;;  %p12428_p13 = scmp.lt.s32.totalorder %s12422_s29, %s12422_s29 }
  0x1f   :  { %p12429_p0 = por %p12428_p13, %p12427_p12 }
  0x21   :  { %p12430_p1 = pnand %p12429_p0, %p12423_p11 }
  0x23   :  { %12433 = shalt.err (!%p12430_p1)
}
  0x24   :  { %s12580_s2 = smov 512   ;;  %s12581_s28 = smov 32  }
  0x25   :  { %65 = dma.hbm_to_vmem [thread:$0]  %s13082_s4, 131072, %s60_s20, [#allocation10], %s12580_s2, %s12580_s2, %s12581_s28  }
  0x26   :  { %s12582_s10 = smov [#allocation12]   ;;  %s12434_s14 = scalar_lea.hbm %s13084_s6, 8192 }
  0x27   :  { %s81_s11 = sshll.u32 %s12582_s10, 4  ;;  %p12435_p2 = scmp.ne.s32.totalorder %s13084_s6, %s12434_s14  ;;  %s82_s11 = int_to_ptr.vmem [resolvable:$true] %s81_s11 }
  0x28   :  { %p12438_p3 = scmp.lt.u32.totalorder %s12434_s14, %s13084_s6 }
  0x2a   :  { %p12440_p4 = pnand %p12438_p3, %p12435_p2 }
  0x2c   :  { %12443 = shalt.err (!%p12440_p4)
}
  0x2d   :  { %s12444_s19 = scalar_lea.vmem %s82_s11, 8192  ;;  %p12449_p6 = scmp.lt.s32.totalorder %s82_s11, %s82_s11 }
  0x2e   :  { %p12445_p5 = scmp.ne.s32.totalorder %s82_s11, %s12444_s19  ;;  %p12450_p7 = scmp.lt.s32.totalorder %s12444_s19, %s12444_s19 }
  0x30   :  { %p12451_p8 = por %p12450_p7, %p12449_p6 }
  0x32   :  { %p12452_p9 = pnand %p12451_p8, %p12445_p5 }
  0x34   :  { %12455 = shalt.err (!%p12452_p9)
}
  0x35   :  { %s12583_s4 = smov 64   ;;  %s12584_s20 = smov 4  }
  0x36   :  { %87 = dma.hbm_to_vmem [thread:$0]  %s13084_s6, 8192, %s82_s11, [#allocation13], %s12583_s4, %s12583_s4, %s12584_s20  }
  0x37   :  { %s12585_s23 = smov [#allocation3]   ;;  %s12456_s27 = scalar_lea.hbm %s13079_s1, 512 }
  0x38   :  { %s25_s24 = sshll.u32 %s12585_s23, 4  ;;  %p12457_p10 = scmp.ne.s32.totalorder %s13079_s1, %s12456_s27  ;;  %s26_s24 = int_to_ptr.vmem [resolvable:$true] %s25_s24 }
  0x39   :  { %p12460_p11 = scmp.lt.u32.totalorder %s12456_s27, %s13079_s1 }
  0x3b   :  { %p12462_p12 = pnand %p12460_p11, %p12457_p10 }
  0x3d   :  { %12465 = shalt.err (!%p12462_p12)
}
  0x3e   :  { %s12466_s9 = scalar_lea.vmem %s26_s24, 512  ;;  %p12471_p0 = scmp.lt.s32.totalorder %s26_s24, %s26_s24 }
  0x3f   :  { %p12467_p13 = scmp.ne.s32.totalorder %s26_s24, %s12466_s9  ;;  %p12472_p1 = scmp.lt.s32.totalorder %s12466_s9, %s12466_s9 }
  0x41   :  { %p12473_p2 = por %p12472_p1, %p12471_p0 }
  0x43   :  { %p12474_p3 = pnand %p12473_p2, %p12467_p13 }
  0x45   :  { %12477 = shalt.err (!%p12474_p3)
}
  0x46   :  { %s12586_s6 = smov 256   ;;  %s12587_s10 = smov 16  }
  0x47   :  { %31 = dma.hbm_to_vmem [thread:$0]  %s13079_s1, 512, %s26_s24, [#allocation4], %s12586_s6, %s12586_s6, %s12587_s10  }
  0x48   :  { %s12588_s13 = smov [#allocation8]   ;;  %s12589_s15 = smov [#allocation11]  }
  0x49   :  { %s50_s14 = sshll.u32 %s12588_s13, 4  ;;  %s72_s16 = sshll.u32 %s12589_s15, 4  ;;  %s51_s14 = int_to_ptr.vmem [resolvable:$true] %s50_s14  ;;  %s73_s16 = int_to_ptr.vmem [resolvable:$true] %s72_s16 }
  0x4a   :  { %s12478_s19 = scalar_lea.hbm %s13081_s3, 16 }
  0x4b   :  { %p12479_p4 = scmp.ne.s32.totalorder %s13081_s3, %s12478_s19  ;;  %p12482_p5 = scmp.lt.u32.totalorder %s12478_s19, %s13081_s3 }
  0x4d   :  { %p12484_p6 = pnand %p12482_p5, %p12479_p4 }
  0x4f   :  { %12487 = shalt.err (!%p12484_p6)
}
  0x50   :  { %s12488_s1 = scalar_lea.vmem %s51_s14, 16  ;;  %s12492_s23 = scalar_lea.vmem %s51_s14, 32 }
  0x51   :  { %p12489_p7 = scmp.ne.s32.totalorder %s51_s14, %s12488_s1  ;;  %p12493_p8 = scmp.lt.s32.totalorder %s51_s14, %s51_s14 }
  0x52   :  { %p12494_p9 = scmp.lt.s32.totalorder %s12492_s23, %s12488_s1 }
  0x54   :  { %p12495_p10 = por %p12494_p9, %p12493_p8 }
  0x56   :  { %p12496_p11 = pnand %p12495_p10, %p12489_p7 }
  0x58   :  { %12499 = shalt.err (!%p12496_p11)
}
  0x59   :  { %53 = dma.hbm_to_vmem [thread:$0]  %s13081_s3, 16, %s51_s14, [#allocation7]  }
  0x5a   :  { %s12500_s29 = scalar_lea.hbm %s13083_s5, 128 }
  0x5b   :  { %p12501_p12 = scmp.ne.s32.totalorder %s13083_s5, %s12500_s29  ;;  %p12504_p13 = scmp.lt.u32.totalorder %s12500_s29, %s13083_s5 }
  0x5d   :  { %p12506_p0 = pnand %p12504_p13, %p12501_p12 }
  0x5f   :  { %12509 = shalt.err (!%p12506_p0)
}
  0x60   :  { %s12510_s6 = scalar_lea.vmem %s73_s16, 128  ;;  %p12515_p2 = scmp.lt.s32.totalorder %s73_s16, %s73_s16 }
  0x61   :  { %p12511_p1 = scmp.ne.s32.totalorder %s73_s16, %s12510_s6  ;;  %p12516_p3 = scmp.lt.s32.totalorder %s12510_s6, %s12510_s6 }
  0x63   :  { %p12517_p4 = por %p12516_p3, %p12515_p2 }
  0x65   :  { %p12518_p5 = pnand %p12517_p4, %p12511_p1 }
  0x67   :  { %12521 = shalt.err (!%p12518_p5)
}
  0x68   :  { %75 = dma.hbm_to_vmem [thread:$0]  %s13083_s5, 128, %s73_s16, [#allocation10]  }
  0x69   :  { %s12590_s11 = smov [#allocation14]   ;;  %s12522_s15 = scalar_lea.hbm %s13085_s7, 16 }
  0x6a   :  { %s94_s12 = sshll.u32 %s12590_s11, 4  ;;  %p12523_p6 = scmp.ne.s32.totalorder %s13085_s7, %s12522_s15  ;;  %s95_s12 = int_to_ptr.vmem [resolvable:$true] %s94_s12 }
  0x6b   :  { %p12526_p7 = scmp.lt.u32.totalorder %s12522_s15, %s13085_s7 }
  0x6d   :  { %p12528_p8 = pnand %p12526_p7, %p12523_p6 }
  0x6f   :  { %12531 = shalt.err (!%p12528_p8)
}
  0x70   :  { %s12532_s20 = scalar_lea.vmem %s95_s12, 16  ;;  %s12536_s5 = scalar_lea.vmem %s95_s12, 32 }
  0x71   :  { %p12533_p9 = scmp.ne.s32.totalorder %s95_s12, %s12532_s20  ;;  %p12537_p10 = scmp.lt.s32.totalorder %s95_s12, %s95_s12 }
  0x72   :  { %p12538_p11 = scmp.lt.s32.totalorder %s12536_s5, %s12532_s20 }
  0x74   :  { %p12539_p12 = por %p12538_p11, %p12537_p10 }
  0x76   :  { %p12540_p13 = pnand %p12539_p12, %p12533_p9 }
  0x78   :  { %12543 = shalt.err (!%p12540_p13)
}
  0x79   :  { %97 = dma.hbm_to_vmem [thread:$0]  %s13085_s7, 16, %s95_s12, [#allocation13]  }
  0x7a   :  { %12566 = dma.done.wait [#allocation4], 512  }
  0x7b   :  { %12567 = vsyncadd [#allocation4], 4294966784 }
  0x7c   :  { %12568 = dma.done.wait [#allocation7], 272  }
  0x7d   :  { %12569 = vsyncadd [#allocation7], 4294967024 }
  0x7e   :  { %12570 = dma.done.wait [#allocation10], 131200  }
  0x7f   :  { %12571 = vsyncadd [#allocation10], 4294836096 }
  0x80   :  { %12572 = dma.done.wait [#allocation13], 8208  }
  0x81   :  { %12573 = vsyncadd [#allocation13], 4294959088  ;;  %v121_v0 = vld [vmem:[%s13078_s0 + $0x8] sm:$0xff]  ;;  %v123_v1 = vld [vmem:[%s13078_s0 + $0x18] sm:$0xff]  ;;  %vm765_vm0 = vcmask 130048  }
  0x82   :  { %v120_v2 = vld [vmem:[%s13078_s0] sm:$0xff]  ;;  %v12025_v3 = vpack.c.bf16 %v123_v1, %v121_v0  ;;  %v122_v4 = vld [vmem:[%s13078_s0 + $0x10] sm:$0xff]  ;;  %v125_v5 = vld [vmem:[%s13078_s0 + $0x28] sm:$0xff] }
  0x83   :  { %v127_v6 = vld [vmem:[%s13078_s0 + $0x38] sm:$0xff]  ;;  %v12027_v7 = vpack.c.bf16 %v122_v4, %v120_v2  ;;  %v124_v9 = vld [vmem:[%s13078_s0 + $0x20] sm:$0xff]  ;;  %v126_v10 = vld [vmem:[%s13078_s0 + $0x30] sm:$0xff] }
  0x84   :  { %v12029_v8 = vpack.c.bf16 %v127_v6, %v125_v5  ;;  %v12746_v11 = vld [vmem:[#allocation3 + $0x8] sm:$0xff]  ;;  %12026 = vmatprep.subr.bf16.mxu0 %v12025_v3  ;;  %v12031_v12 = vpack.c.bf16 %v126_v10, %v124_v9  ;;  %v131_v14 = vld [vmem:[%s13078_s0 + $0x58] sm:$0xff]  ;;  %v128_v16 = vld [vmem:[%s13078_s0 + $0x40] sm:$0xff] }
  0x85   :  { %220 = vmatprep.mubr.f32.mxu0 %v12746_v11  ;;  %v129_v13 = vld [vmem:[%s13078_s0 + $0x48] sm:$0xff]  ;;  %12028 = vmatpush1.bf16.xpose.msra.mxu0 %v12027_v7  ;;  %v130_v17 = vld [vmem:[%s13078_s0 + $0x50] sm:$0xff]  ;;  %v135_v19 = vld [vmem:[%s13078_s0 + $0x78] sm:$0xff] }
  0x86   :  { %12030 = vmatprep.subr.bf16.mxu1 %v12029_v8  ;;  %v12033_v15 = vpack.c.bf16 %v131_v14, %v129_v13  ;;  %295 = vmatprep.mubr.f32.mxu1 %v12746_v11  ;;  %v133_v18 = vld [vmem:[%s13078_s0 + $0x68] sm:$0xff]  ;;  %v132_v22 = vld [vmem:[%s13078_s0 + $0x60] sm:$0xff]  ;;  %v134_v23 = vld [vmem:[%s13078_s0 + $0x70] sm:$0xff]  ;;  %v12035_v26 = vpack.c.bf16 %v130_v17, %v128_v16 }
  0x87   :  { %12032 = vmatpush1.bf16.xpose.msra.mxu1 %v12031_v12  ;;  %v12037_v20 = vpack.c.bf16 %v135_v19, %v133_v18  ;;  %v137_v21 = vld [vmem:[%s13078_s0 + $0x88] sm:$0xff]  ;;  %v139_v24 = vld [vmem:[%s13078_s0 + $0x98] sm:$0xff]  ;;  %v12780_v25 = vld [vmem:[#allocation3] sm:$0xff]  ;;  %v12039_v31 = vpack.c.bf16 %v134_v23, %v132_v22 }
  0x88   :  { %12034 = vmatprep.subr.bf16.mxu0 %v12033_v15  ;;  %v141_v27 = vld [vmem:[%s13078_s0 + $0xa8] sm:$0xff]  ;;  %v143_v28 = vld [vmem:[%s13078_s0 + $0xb8] sm:$0xff]  ;;  %v12041_v30 = vpack.c.bf16 %v139_v24, %v137_v21  ;;  %v154_v32 = vld [vmem:[#allocation3 + $0x10] sm:$0xff] }
  0x89   :  { %12038 = vmatprep.subr.bf16.mxu1 %v12037_v20  ;;  %v12788_v29 = vld [vmem:[#allocation3 + $0x18] sm:$0xff]  ;;  %v136_v33 = vld [vmem:[%s13078_s0 + $0x80] sm:$0xff]  ;;  %v138_v34 = vld [vmem:[%s13078_s0 + $0x90] sm:$0xff]  ;;  %v12045_v35 = vpack.c.bf16 %v143_v28, %v141_v27 }
  0x8a   :  { %v145_v36 = vld [vmem:[%s13078_s0 + $0xc8] sm:$0xff]  ;;  %v147_v37 = vld [vmem:[%s13078_s0 + $0xd8] sm:$0xff]  ;;  %v140_v38 = vld [vmem:[%s13078_s0 + $0xa0] sm:$0xff]  ;;  %v12043_v42 = vpack.c.bf16 %v138_v34, %v136_v33 }
  0x8b   :  { %v142_v39 = vld [vmem:[%s13078_s0 + $0xb0] sm:$0xff]  ;;  %v149_v40 = vld [vmem:[%s13078_s0 + $0xe8] sm:$0xff]  ;;  %v151_v41 = vld [vmem:[%s13078_s0 + $0xf8] sm:$0xff]  ;;  %v12049_v43 = vpack.c.bf16 %v147_v37, %v145_v36 }
  0x8c   :  { %221 = vmatmul.mubr.f32.vlgmr.msra.gmra.mrb[0].mxu0 %v12780_v25  ;;  %v12047_v44 = vpack.c.bf16 %v142_v39, %v140_v38  ;;  %v144_v45 = vld [vmem:[%s13078_s0 + $0xc0] sm:$0xff]  ;;  %v146_v46 = vld [vmem:[%s13078_s0 + $0xd0] sm:$0xff]  ;;  %v12053_v47 = vpack.c.bf16 %v151_v41, %v149_v40  ;;  %v757_v49 = vld [vmem:[#allocation6 + $0x8] sm:$0xff] }
  0x8d   :  { %12036 = vmatpush1.bf16.xpose.msra.mxu0 %v12035_v26  ;;  %225 = vmatprep.mubr.f32.mxu0 %v12788_v29  ;;  %v756_v48 = vld [vmem:[#allocation6] sm:$0xff]  ;;  %v150_v51 = vld [vmem:[%s13078_s0 + $0xf0] sm:$0xff]  ;;  %v12051_v52 = vpack.c.bf16 %v146_v46, %v144_v45 }
  0x8e   :  { %296 = vmatmul.mubr.f32.vlgmr.msra.gmra.mrb[0].mxu1 %v12780_v25  ;;  %12042 = vmatprep.subr.bf16.mxu0 %v12041_v30  ;;  %v148_v50 = vld [vmem:[%s13078_s0 + $0xe0] sm:$0xff]  ;;  %v12057_v53 = vpack.c.bf16 %v757_v49, %v756_v48  ;;  %v999_v23 = vld [vmem:[#allocation9] sm:$0xff]  ;;  %s12592_s0 = smov [#allocation15]  }
  0x8f   :  { %12040 = vmatpush1.bf16.xpose.msra.mxu1 %v12039_v31  ;;  %300 = vmatprep.mubr.f32.mxu1 %v12788_v29  ;;  %v12055_v54 = vpack.c.bf16 %v150_v51, %v148_v50  ;;  %v1003_v24 = vld [vmem:[#allocation9 + $0x20] sm:$0xff]  ;;  %v1004_v27 = vld [vmem:[#allocation9 + $0x28] sm:$0xff]  ;;  %s10773_s7 = sshll.u32 %s12592_s0, 4  ;;  %s10774_s7 = int_to_ptr.vmem [resolvable:$true] %s10773_s7 }
  0x90   :  { %226 = vmatmul.mubr.f32.gmra.mrb[2].mxu0 %v154_v32  ;;  %12046 = vmatprep.subr.bf16.mxu1 %v12045_v35  ;;  %v10803_v26 = vcombine.high %v999_v23, %v1003_v24  ;;  %v10802_v28 = vcombine.low %v999_v23, %v1003_v24  ;;  %v1007_v31 = vld [vmem:[#allocation9 + $0x40] sm:$0xff]  ;;  %v1008_v33 = vld [vmem:[#allocation9 + $0x48] sm:$0xff]  ;;  %v12868_v23 = vld [vmem:[#allocation9 + $0x30] sm:$0xff]  ;;  %s12544_s27 = scalar_lea.vmem %s10774_s7, 128  ;;  %p12549_p1 = scmp.lt.s32.totalorder %s10774_s7, %s10774_s7 }
  0x91   :  { %370 = vmatprep.mubr.f32.mxu0 %v12746_v11  ;;  %v1012_v35 = vld [vmem:[#allocation9 + $0x68] sm:$0xff]  ;;  %v1015_v39 = vld [vmem:[#allocation9 + $0x80] sm:$0xff]  ;;  %v12870_v24 = vld [vmem:[#allocation9 + $0x18] sm:$0xff]  ;;  %p12545_p0 = scmp.ne.s32.totalorder %s10774_s7, %s12544_s27  ;;  %p12550_p2 = scmp.lt.s32.totalorder %s12544_s27, %s12544_s27 }
  0x92   :  { %301 = vmatmul.mubr.f32.gmra.mrb[2].mxu1 %v154_v32  ;;  %v10812_v37 = vcombine.low %v1008_v33, %v1012_v35  ;;  %v10813_v38 = vcombine.high %v1008_v33, %v1012_v35  ;;  %v1019_v40 = vld [vmem:[#allocation9 + $0xa0] sm:$0xff]  ;;  %v1016_v41 = vld [vmem:[#allocation9 + $0x88] sm:$0xff] }
  0x93   :  { %445 = vmatprep.mubr.f32.mxu1 %v12746_v11  ;;  %v1027_v48 = vld [vmem:[#allocation9 + $0xe0] sm:$0xff]  ;;  %v1024_v49 = vld [vmem:[#allocation9 + $0xc8] sm:$0xff]  ;;  %p12551_p3 = por %p12550_p2, %p12549_p1 }
  0x94   :  { %371 = vmatmul.mubr.f32.vlgmr.msra.gmra.mrb[4].mxu0 %v12780_v25  ;;  %v1028_v51 = vld [vmem:[#allocation9 + $0xe8] sm:$0xff] }
  0x95   :  { %12044 = vmatpush1.bf16.xpose.msra.mxu0 %v12043_v42  ;;  %375 = vmatprep.mubr.f32.mxu0 %v12788_v29  ;;  %v10819_v42 = vcombine.high %v1015_v39, %v1019_v40  ;;  %p12552_p4 = pnand %p12551_p3, %p12545_p0 }
  0x96   :  { %446 = vmatmul.mubr.f32.vlgmr.msra.gmra.mrb[4].mxu1 %v12780_v25  ;;  %12050 = vmatprep.subr.bf16.mxu0 %v12049_v43  ;;  %v1020_v43 = vld [vmem:[#allocation9 + $0xa8] sm:$0xff] }
  0x97   :  { %12048 = vmatpush1.bf16.xpose.msra.mxu1 %v12047_v44  ;;  %450 = vmatprep.mubr.f32.mxu1 %v12788_v29  ;;  %v10818_v44 = vcombine.low %v1015_v39, %v1019_v40  ;;  %v10820_v45 = vcombine.low %v1016_v41, %v1020_v43  ;;  %v10821_v46 = vcombine.high %v1016_v41, %v1020_v43 }
  0x98   :  { %376 = vmatmul.mubr.f32.gmra.mrb[6].mxu0 %v154_v32  ;;  %12054 = vmatprep.subr.bf16.mxu1 %v12053_v47  ;;  %v1023_v47 = vld [vmem:[#allocation9 + $0xc0] sm:$0xff] }
  0x99   :  { %520 = vmatprep.mubr.f32.mxu0 %v12746_v11  ;;  %v10827_v50 = vcombine.high %v1023_v47, %v1027_v48 }
  0x9a   :  { %451 = vmatmul.mubr.f32.gmra.mrb[6].mxu1 %v154_v32 }
  0x9b   :  { %595 = vmatprep.mubr.f32.mxu1 %v12746_v11 }
  0x9c   :  { %521 = vmatmul.mubr.f32.vlgmr.msra.gmra.mrb[8].mxu0 %v12780_v25 }
  0x9d   :  { %12052 = vmatpush1.bf16.xpose.msra.mxu0 %v12051_v52  ;;  %525 = vmatprep.mubr.f32.mxu0 %v12788_v29  ;;  %v10826_v52 = vcombine.low %v1023_v47, %v1027_v48 }
  0x9e   :  { %596 = vmatmul.mubr.f32.vlgmr.msra.gmra.mrb[8].mxu1 %v12780_v25  ;;  %12058 = vmatprep.subr.bf16.mxu0 %v12057_v53 }
  0x9f   :  { %12056 = vmatpush1.bf16.xpose.msra.mxu1 %v12055_v54  ;;  %600 = vmatprep.mubr.f32.mxu1 %v12788_v29  ;;  %v10829_v54 = vcombine.high %v1024_v49, %v1028_v51 }
  0xa0   :  { %526 = vmatmul.mubr.f32.gmra.mrb[10].mxu0 %v154_v32  ;;  %1425 = vmatprep.subr.bf16.mxu1 %v10803_v26 }
  0xa1   :  { %670 = vmatprep.mubr.f32.mxu0 %v12746_v11 }
  0xa2   :  { %601 = vmatmul.mubr.f32.gmra.mrb[10].mxu1 %v154_v32 }
  0xa3   :  { %745 = vmatprep.mubr.f32.mxu1 %v12746_v11 }
  0xa4   :  { %671 = vmatmul.mubr.f32.vlgmr.msra.gmra.mrb[12].mxu0 %v12780_v25 }
  0xa5   :  { %675 = vmatprep.mubr.f32.mxu0 %v12788_v29  ;;  %12060 = vmatpush3.bf16.msra.mxu0 %v12057_v53  ;;  %v10828_v53 = vcombine.low %v1024_v49, %v1028_v51 }
  0xa6   :  { %746 = vmatmul.mubr.f32.vlgmr.msra.gmra.mrb[12].mxu1 %v12780_v25  ;;  %v1000_v25 = vld [vmem:[#allocation9 + $0x8] sm:$0xff] }
  0xa7   :  { %750 = vmatprep.mubr.f32.mxu1 %v12788_v29  ;;  %v10804_v29 = vcombine.low %v1000_v25, %v1004_v27  ;;  %v10805_v30 = vcombine.high %v1000_v25, %v1004_v27  ;;  %1426 = vmatpush1.bf16.msra.mxu1 %v10802_v28  ;;  %v12872_v25 = vld [vmem:[#allocation9 + $0x38] sm:$0xff] }
  0xa8   :  { %676 = vmatmul.mubr.f32.gmra.mrb[14].mxu0 %v154_v32  ;;  %v10808_v28 = vcombine.low %v12870_v24, %v12872_v25 }
  0xa9   :  { %1466 = vmatprep.subr.bf16.mxu0 %v10805_v30 }
  0xaa   :  { %751 = vmatmul.mubr.f32.gmra.mrb[14].mxu1 %v154_v32  ;;  %v1011_v32 = vld [vmem:[#allocation9 + $0x60] sm:$0xff] }
  0xab   :  { %v10811_v34 = vcombine.high %v1007_v31, %v1011_v32  ;;  %v10810_v36 = vcombine.low %v1007_v31, %v1011_v32  ;;  %v10809_v31 = vcombine.high %v12870_v24, %v12872_v25  ;;  %v10785_v32 = vld [vmem:[#allocation8] ss:$0 sm:$0xff] }
  0xad   :  { %1427 = vmatprep.subr.bf16.mxu1 %v10811_v34 }
  0xae   :  { %1428 = vmatpush1.bf16.msra.mxu1 %v10810_v36 }
  0xaf   :  { %1429 = vmatprep.subr.bf16.mxu1 %v10819_v42 }
  0xb2   :  { %1430 = vmatpush1.bf16.msra.mxu1 %v10818_v44 }
  0xb3   :  { %1431 = vmatprep.subr.bf16.mxu1 %v10827_v50 }
  0xb6   :  { %1432 = vmatpush1.bf16.msra.mxu1 %v10826_v52 }
 0x15f   :  { %v222_v55 = vpop.f32.mrb[0].mxu0 }
 0x160   :  { %v224_v56 = vpop.f32.mrb[1].mxu0  ;;  %12001 = vmatprep.mubr.msk.f32.mxu0 %vm765_vm0, %v222_v55  ;;  %v1031_v55 = vld [vmem:[#allocation9 + $0x100] sm:$0xff] }
 0x161   :  { %v297_v57 = vpop.f32.mrb[0].mxu1  ;;  %v1035_v56 = vld [vmem:[#allocation9 + $0x120] sm:$0xff] }
 0x162   :  { %v299_v58 = vpop.f32.mrb[1].mxu1 }
 0x163   :  { %v227_v59 = vpop.f32.mrb[2].mxu0  ;;  %v10835_v58 = vcombine.high %v1031_v55, %v1035_v56 }
 0x164   :  { %v229_v60 = vpop.f32.mrb[3].mxu0  ;;  %12002 = vmatmul.mubr.msk.f32.vlgmr.msra.gmra.mrb[16].mxu0 %vm765_vm0, %v227_v59  ;;  %v1036_v59 = vld [vmem:[#allocation9 + $0x128] sm:$0xff] }
 0x165   :  { %12004 = vmatprep.mubr.msk.f32.mxu0 %vm765_vm0, %v297_v57  ;;  %v302_v61 = vpop.f32.mrb[2].mxu1  ;;  %1467 = vmatpush1.bf16.msra.mxu0 %v10804_v29  ;;  %v1032_v57 = vld [vmem:[#allocation9 + $0x108] sm:$0xff]  ;;  %v10834_v60 = vcombine.low %v1031_v55, %v1035_v56 }
 0x166   :  { %v304_v62 = vpop.f32.mrb[3].mxu1  ;;  %1468 = vmatprep.subr.bf16.mxu0 %v10813_v38  ;;  %1433 = vmatprep.subr.bf16.mxu1 %v10835_v58 }
 0x167   :  { %v372_v63 = vpop.f32.mrb[4].mxu0  ;;  %v10837_v62 = vcombine.high %v1032_v57, %v1036_v59  ;;  %1434 = vmatpush1.bf16.msra.mxu1 %v10834_v60 }
 0x168   :  { %v374_v0 = vpop.f32.mrb[5].mxu0  ;;  %12005 = vmatmul.mubr.msk.f32.gmra.mrb[18].mxu0 %vm765_vm0, %v302_v61  ;;  %v10836_v61 = vcombine.low %v1032_v57, %v1036_v59 }
 0x169   :  { %12007 = vmatprep.mubr.msk.f32.mxu0 %vm765_vm0, %v372_v63  ;;  %v447_v1 = vpop.f32.mrb[4].mxu1  ;;  %1469 = vmatpush1.bf16.msra.mxu0 %v10812_v37  ;;  %v1039_v63 = vld [vmem:[#allocation9 + $0x140] sm:$0xff] }
 0x16a   :  { %v449_v2 = vpop.f32.mrb[5].mxu1  ;;  %1470 = vmatprep.subr.bf16.mxu0 %v10821_v46  ;;  %v1043_v0 = vld [vmem:[#allocation9 + $0x160] sm:$0xff] }
 0x16b   :  { %v377_v3 = vpop.f32.mrb[6].mxu0  ;;  %v10843_v2 = vcombine.high %v1039_v63, %v1043_v0 }
 0x16c   :  { %v379_v4 = vpop.f32.mrb[7].mxu0  ;;  %12008 = vmatmul.mubr.msk.f32.gmra.mrb[20].mxu0 %vm765_vm0, %v377_v3  ;;  %v1044_v3 = vld [vmem:[#allocation9 + $0x168] sm:$0xff] }
 0x16d   :  { %12010 = vmatprep.mubr.msk.f32.mxu0 %vm765_vm0, %v447_v1  ;;  %v452_v5 = vpop.f32.mrb[6].mxu1  ;;  %1471 = vmatpush1.bf16.msra.mxu0 %v10820_v45  ;;  %v1040_v1 = vld [vmem:[#allocation9 + $0x148] sm:$0xff]  ;;  %v10842_v4 = vcombine.low %v1039_v63, %v1043_v0 }
 0x16e   :  { %v454_v6 = vpop.f32.mrb[7].mxu1  ;;  %1472 = vmatprep.subr.bf16.mxu0 %v10829_v54  ;;  %1435 = vmatprep.subr.bf16.mxu1 %v10843_v2 }
 0x16f   :  { %v522_v7 = vpop.f32.mrb[8].mxu0  ;;  %v10845_v6 = vcombine.high %v1040_v1, %v1044_v3  ;;  %1436 = vmatpush1.bf16.msra.mxu1 %v10842_v4 }
 0x170   :  { %v524_v8 = vpop.f32.mrb[9].mxu0  ;;  %12011 = vmatmul.mubr.msk.f32.gmra.mrb[22].mxu0 %vm765_vm0, %v452_v5  ;;  %v10844_v5 = vcombine.low %v1040_v1, %v1044_v3 }
 0x171   :  { %12013 = vmatprep.mubr.msk.f32.mxu0 %vm765_vm0, %v522_v7  ;;  %v597_v9 = vpop.f32.mrb[8].mxu1  ;;  %1473 = vmatpush1.bf16.msra.mxu0 %v10828_v53  ;;  %v1047_v7 = vld [vmem:[#allocation9 + $0x180] sm:$0xff] }
 0x172   :  { %v599_v10 = vpop.f32.mrb[9].mxu1  ;;  %1474 = vmatprep.subr.bf16.mxu0 %v10837_v62  ;;  %v1051_v8 = vld [vmem:[#allocation9 + $0x1a0] sm:$0xff] }
 0x173   :  { %v527_v11 = vpop.f32.mrb[10].mxu0  ;;  %v10850_v10 = vcombine.low %v1047_v7, %v1051_v8 }
 0x174   :  { %v529_v12 = vpop.f32.mrb[11].mxu0  ;;  %12014 = vmatmul.mubr.msk.f32.gmra.mrb[24].mxu0 %vm765_vm0, %v527_v11  ;;  %v10851_v11 = vcombine.high %v1047_v7, %v1051_v8 }
 0x175   :  { %12016 = vmatprep.mubr.msk.f32.mxu0 %vm765_vm0, %v597_v9  ;;  %v602_v13 = vpop.f32.mrb[10].mxu1  ;;  %1475 = vmatpush1.bf16.msra.mxu0 %v10836_v61  ;;  %v1048_v9 = vld [vmem:[#allocation9 + $0x188] sm:$0xff] }
 0x176   :  { %v604_v14 = vpop.f32.mrb[11].mxu1  ;;  %1476 = vmatprep.subr.bf16.mxu0 %v10845_v6  ;;  %v1052_v12 = vld [vmem:[#allocation9 + $0x1a8] sm:$0xff]  ;;  %1437 = vmatprep.subr.bf16.mxu1 %v10851_v11 }
 0x177   :  { %v672_v15 = vpop.f32.mrb[12].mxu0  ;;  %v1059_v14 = vld [vmem:[#allocation9 + $0x1e0] sm:$0xff]  ;;  %1438 = vmatpush1.bf16.msra.mxu1 %v10850_v10 }
 0x178   :  { %v674_v16 = vpop.f32.mrb[13].mxu0  ;;  %12017 = vmatmul.mubr.msk.f32.gmra.mrb[26].mxu0 %vm765_vm0, %v602_v13  ;;  %v1055_v13 = vld [vmem:[#allocation9 + $0x1c0] sm:$0xff] }
 0x179   :  { %12019 = vmatprep.mubr.msk.f32.mxu0 %vm765_vm0, %v672_v15  ;;  %v747_v17 = vpop.f32.mrb[12].mxu1  ;;  %1477 = vmatpush1.bf16.msra.mxu0 %v10844_v5  ;;  %v12591_v15 = vmov 0   ;;  %v10852_v16 = vcombine.low %v1048_v9, %v1052_v12  ;;  %v10858_v26 = vcombine.low %v1055_v13, %v1059_v14 }
 0x17a   :  { %v749_v18 = vpop.f32.mrb[13].mxu1  ;;  %1457 = vmatprep.mubr.bf16.mxu1 %v12591_v15 }
 0x17b   :  { %v677_v19 = vpop.f32.mrb[14].mxu0  ;;  %v10859_v18 = vcombine.high %v1055_v13, %v1059_v14 }
 0x17c   :  { %v679_v20 = vpop.f32.mrb[15].mxu0  ;;  %12020 = vmatmul.mubr.msk.f32.gmra.mrb[28].mxu0 %vm765_vm0, %v677_v19  ;;  %v1056_v19 = vld [vmem:[#allocation9 + $0x1c8] sm:$0xff] }
 0x17d   :  { %12022 = vmatprep.mubr.msk.f32.mxu0 %vm765_vm0, %v747_v17  ;;  %v752_v21 = vpop.f32.mrb[14].mxu1  ;;  %v10853_v17 = vcombine.high %v1048_v9, %v1052_v12  ;;  %v1060_v20 = vld [vmem:[#allocation9 + $0x1e8] sm:$0xff]  ;;  %1439 = vmatprep.subr.bf16.mxu1 %v10859_v18 }
 0x17e   :  { %v754_v22 = vpop.f32.mrb[15].mxu1  ;;  %v10860_v29 = vcombine.low %v1056_v19, %v1060_v20  ;;  %1440 = vmatpush1.bf16.msra.mxu1 %v10858_v26 }
 0x17f   :  { %v10861_v22 = vcombine.high %v1056_v19, %v1060_v20  ;;  %1478 = vmatprep.subr.bf16.mxu0 %v10853_v17 }
 0x180   :  { %12023 = vmatmul.mubr.msk.f32.gmra.mrb[30].mxu0 %vm765_vm0, %v752_v21  ;;  %v12866_v21 = vld [vmem:[#allocation9 + $0x10] sm:$0xff] }
 0x181   :  { %1498 = vmatprep.mubr.bf16.mxu0 %v12591_v15  ;;  %v10806_v27 = vcombine.low %v12866_v21, %v12868_v23  ;;  %1479 = vmatpush1.bf16.msra.mxu0 %v10852_v16  ;;  %v10807_v30 = vcombine.high %v12866_v21, %v12868_v23 }
 0x182   :  { %1480 = vmatprep.subr.bf16.mxu0 %v10861_v22 }
 0x183   :  { %1507 = vmatprep.subr.bf16.mxu1 %v10807_v30  ;;  %v1013_v30 = vld [vmem:[#allocation9 + $0x70] sm:$0xff] }
 0x185   :  { %1481 = vmatpush1.bf16.msra.mxu0 %v10860_v29  ;;  %v1009_v29 = vld [vmem:[#allocation9 + $0x50] sm:$0xff] }
 0x186   :  { %1548 = vmatprep.subr.bf16.mxu0 %v10809_v31 }
 0x237   :  { %v12003_v33 = vpop.f32.mrb[16].mxu0 }
 0x238   :  { %v886_v34 = vadd.f32 %v12003_v33, %v10785_v32  ;;  %v880_v35 = vpop.f32.mrb[17].mxu0  ;;  %v1010_v33 = vld [vmem:[#allocation9 + $0x58] sm:$0xff] }
 0x239   :  { %v881_v36 = vadd.f32 %v10785_v32, %v880_v35 }
 0x23a   :  { %v960_v37 = vmax.f32 %v886_v34, 0.0  ;;  %v1014_v34 = vld [vmem:[#allocation9 + $0x78] sm:$0xff] }
 0x23b   :  { %v959_v38 = vmax.f32 %v881_v36, 0.0  ;;  %v12006_v39 = vpop.f32.mrb[18].mxu0 }
 0x23c   :  { %976 = vst [vmem:[#allocation2 + $0x8] sm:$0xff] %v960_v37  ;;  %v896_v40 = vadd.f32 %v12006_v39, %v10785_v32  ;;  %v890_v41 = vpop.f32.mrb[19].mxu0  ;;  %v10815_v37 = vcombine.high %v1009_v29, %v1013_v30  ;;  %v1021_v39 = vld [vmem:[#allocation9 + $0xb0] sm:$0xff] }
 0x23d   :  { %975 = vst [vmem:[#allocation2] sm:$0xff] %v959_v38  ;;  %v891_v42 = vadd.f32 %v10785_v32, %v890_v41  ;;  %v10817_v38 = vcombine.high %v1010_v33, %v1014_v34  ;;  %v1022_v41 = vld [vmem:[#allocation9 + $0xb8] sm:$0xff] }
 0x23e   :  { %v962_v43 = vmax.f32 %v896_v40, 0.0  ;;  %v1018_v40 = vld [vmem:[#allocation9 + $0x98] sm:$0xff] }
 0x23f   :  { %v961_v44 = vmax.f32 %v891_v42, 0.0  ;;  %v12009_v45 = vpop.f32.mrb[20].mxu0  ;;  %v10814_v42 = vcombine.low %v1009_v29, %v1013_v30  ;;  %v10824_v23 = vcombine.low %v1018_v40, %v1022_v41 }
 0x240   :  { %978 = vst [vmem:[#allocation2 + $0x18] sm:$0xff] %v962_v43  ;;  %v906_v46 = vadd.f32 %v12009_v45, %v10785_v32  ;;  %v900_v47 = vpop.f32.mrb[21].mxu0  ;;  %v10816_v43 = vcombine.low %v1010_v33, %v1014_v34  ;;  %v10825_v45 = vcombine.high %v1018_v40, %v1022_v41  ;;  %v1685_v33 = vld [vmem:[#allocation9 + $0x460] sm:$0xff]  ;;  %v1682_v34 = vld [vmem:[#allocation9 + $0x448] sm:$0xff] }
 0x241   :  { %977 = vst [vmem:[#allocation2 + $0x10] sm:$0xff] %v961_v44  ;;  %v901_v48 = vadd.f32 %v10785_v32, %v900_v47  ;;  %v1029_v47 = vld [vmem:[#allocation9 + $0xf0] sm:$0xff]  ;;  %v1689_v40 = vld [vmem:[#allocation9 + $0x480] sm:$0xff] }
 0x242   :  { %v964_v49 = vmax.f32 %v906_v46, 0.0  ;;  %v1025_v46 = vld [vmem:[#allocation9 + $0xd0] sm:$0xff]  ;;  %v1693_v41 = vld [vmem:[#allocation9 + $0x4a0] sm:$0xff] }
 0x243   :  { %v963_v50 = vmax.f32 %v901_v48, 0.0  ;;  %v12012_v51 = vpop.f32.mrb[22].mxu0  ;;  %v1026_v48 = vld [vmem:[#allocation9 + $0xd8] sm:$0xff]  ;;  %v10831_v24 = vcombine.high %v1025_v46, %v1029_v47 }
 0x244   :  { %980 = vst [vmem:[#allocation2 + $0x28] sm:$0xff] %v964_v49  ;;  %v916_v52 = vadd.f32 %v12012_v51, %v10785_v32  ;;  %v910_v53 = vpop.f32.mrb[23].mxu0  ;;  %v1030_v49 = vld [vmem:[#allocation9 + $0xf8] sm:$0xff] }
 0x245   :  { %979 = vst [vmem:[#allocation2 + $0x20] sm:$0xff] %v963_v50  ;;  %v911_v54 = vadd.f32 %v10785_v32, %v910_v53  ;;  %v10833_v25 = vcombine.high %v1026_v48, %v1030_v49  ;;  %v1034_v50 = vld [vmem:[#allocation9 + $0x118] sm:$0xff]  ;;  %v10832_v53 = vcombine.low %v1026_v48, %v1030_v49  ;;  %v1697_v48 = vld [vmem:[#allocation9 + $0x4c0] sm:$0xff] }
 0x246   :  { %v966_v55 = vmax.f32 %v916_v52, 0.0  ;;  %v1038_v51 = vld [vmem:[#allocation9 + $0x138] sm:$0xff]  ;;  %v10830_v52 = vcombine.low %v1025_v46, %v1029_v47  ;;  %v10883_v46 = vcombine.high %v1689_v40, %v1693_v41  ;;  %v1701_v49 = vld [vmem:[#allocation9 + $0x4e0] sm:$0xff] }
 0x247   :  { %v965_v56 = vmax.f32 %v911_v54, 0.0  ;;  %v12015_v57 = vpop.f32.mrb[24].mxu0 }
 0x248   :  { %982 = vst [vmem:[#allocation2 + $0x38] sm:$0xff] %v966_v55  ;;  %v926_v58 = vadd.f32 %v12015_v57, %v10785_v32  ;;  %v920_v59 = vpop.f32.mrb[25].mxu0  ;;  %v991_v19 = vld [vmem:[#allocation2] ss:$16 sm:$0x3]  ;;  %v10841_v55 = vcombine.high %v1034_v50, %v1038_v51  ;;  %v1045_v57 = vld [vmem:[#allocation9 + $0x170] sm:$0xff] }
 0x249   :  { %981 = vst [vmem:[#allocation2 + $0x30] sm:$0xff] %v965_v56  ;;  %v921_v60 = vadd.f32 %v10785_v32, %v920_v59  ;;  %v1041_v56 = vld [vmem:[#allocation9 + $0x150] sm:$0xff]  ;;  %v1046_v59 = vld [vmem:[#allocation9 + $0x178] sm:$0xff] }
 0x24a   :  { %v968_v61 = vmax.f32 %v926_v58, 0.0  ;;  %v1042_v58 = vld [vmem:[#allocation9 + $0x158] sm:$0xff] }
 0x24b   :  { %v967_v62 = vmax.f32 %v921_v60, 0.0  ;;  %v12018_v63 = vpop.f32.mrb[26].mxu0 }
 0x24c   :  { %984 = vst [vmem:[#allocation2 + $0x48] sm:$0xff] %v968_v61  ;;  %v936_v0 = vadd.f32 %v12018_v63, %v10785_v32  ;;  %v930_v1 = vpop.f32.mrb[27].mxu0  ;;  %v10840_v61 = vcombine.low %v1034_v50, %v1038_v51  ;;  %v10849_v63 = vcombine.high %v1042_v58, %v1046_v59  ;;  %v1709_v50 = vld [vmem:[#allocation9 + $0x520] sm:$0xff]  ;;  %v1706_v51 = vld [vmem:[#allocation9 + $0x508] sm:$0xff] }
 0x24d   :  { %983 = vst [vmem:[#allocation2 + $0x40] sm:$0xff] %v967_v62  ;;  %v931_v2 = vadd.f32 %v10785_v32, %v930_v1  ;;  %v10847_v62 = vcombine.high %v1041_v56, %v1045_v57  ;;  %v1053_v1 = vld [vmem:[#allocation9 + $0x1b0] sm:$0xff] }
 0x24e   :  { %v970_v3 = vmax.f32 %v936_v0, 0.0  ;;  %v1049_v0 = vld [vmem:[#allocation9 + $0x190] sm:$0xff] }
 0x24f   :  { %v969_v4 = vmax.f32 %v931_v2, 0.0  ;;  %v12021_v5 = vpop.f32.mrb[28].mxu0  ;;  %v1050_v2 = vld [vmem:[#allocation9 + $0x198] sm:$0xff] }
 0x250   :  { %986 = vst [vmem:[#allocation2 + $0x58] sm:$0xff] %v970_v3  ;;  %v946_v6 = vadd.f32 %v12021_v5, %v10785_v32  ;;  %v940_v7 = vpop.f32.mrb[29].mxu0  ;;  %v992_v18 = vld [vmem:[#allocation2] ss:$16 sm:$0xc]  ;;  %v10848_v5 = vcombine.low %v1042_v58, %v1046_v59  ;;  %v1717_v58 = vld [vmem:[#allocation9 + $0x560] sm:$0xff] }
 0x251   :  { %985 = vst [vmem:[#allocation2 + $0x50] sm:$0xff] %v969_v4  ;;  %v941_v8 = vadd.f32 %v10785_v32, %v940_v7  ;;  %v993_v22 = vor.u32 %v992_v18, %v991_v19  ;;  %v1054_v3 = vld [vmem:[#allocation9 + $0x1b8] sm:$0xff]  ;;  %v10846_v4 = vcombine.low %v1041_v56, %v1045_v57  ;;  %v1677_v18 = vld [vmem:[#allocation9 + $0x420] sm:$0xff]  ;;  %v1674_v19 = vld [vmem:[#allocation9 + $0x408] sm:$0xff] }
 0x252   :  { %v972_v9 = vmax.f32 %v946_v6, 0.0  ;;  %v10855_v6 = vcombine.high %v1049_v0, %v1053_v1  ;;  %v10857_v7 = vcombine.high %v1050_v2, %v1054_v3  ;;  %v1713_v57 = vld [vmem:[#allocation9 + $0x540] sm:$0xff]  ;;  %v1714_v59 = vld [vmem:[#allocation9 + $0x548] sm:$0xff] }
 0x253   :  { %v971_v10 = vmax.f32 %v941_v8, 0.0  ;;  %v12024_v11 = vpop.f32.mrb[30].mxu0  ;;  %v1057_v8 = vld [vmem:[#allocation9 + $0x1d0] sm:$0xff] }
 0x254   :  { %988 = vst [vmem:[#allocation2 + $0x68] sm:$0xff] %v972_v9  ;;  %v956_v12 = vadd.f32 %v12024_v11, %v10785_v32  ;;  %v950_v13 = vpop.f32.mrb[31].mxu0  ;;  %v1061_v9 = vld [vmem:[#allocation9 + $0x1f0] sm:$0xff]  ;;  %v1062_v11 = vld [vmem:[#allocation9 + $0x1f8] sm:$0xff] }
 0x255   :  { %987 = vst [vmem:[#allocation2 + $0x60] sm:$0xff] %v971_v10  ;;  %v951_v14 = vadd.f32 %v10785_v32, %v950_v13  ;;  %v1017_v32 = vld [vmem:[#allocation9 + $0x90] sm:$0xff]  ;;  %v1058_v10 = vld [vmem:[#allocation9 + $0x1d8] sm:$0xff]  ;;  %v10856_v13 = vcombine.low %v1050_v2, %v1054_v3  ;;  %v1725_v2 = vld [vmem:[#allocation9 + $0x5a0] sm:$0xff] }
 0x256   :  { %v974_v16 = vmax.f32 %v956_v12, 0.0  ;;  %v10823_v44 = vcombine.high %v1017_v32, %v1021_v39  ;;  %v10822_v21 = vcombine.low %v1017_v32, %v1021_v39  ;;  %v10854_v12 = vcombine.low %v1049_v0, %v1053_v1  ;;  %v1721_v1 = vld [vmem:[#allocation9 + $0x580] sm:$0xff]  ;;  %v1722_v3 = vld [vmem:[#allocation9 + $0x588] sm:$0xff] }
 0x257   :  { %v973_v17 = vmax.f32 %v951_v14, 0.0  ;;  %v10863_v14 = vcombine.high %v1057_v8, %v1061_v9 }
 0x258   :  { %990 = vst [vmem:[#allocation2 + $0x78] sm:$0xff] %v974_v16  ;;  %v994_v20 = vld [vmem:[#allocation2] ss:$16 sm:$0x30]  ;;  %v10865_v16 = vcombine.high %v1058_v10, %v1062_v11 }
 0x259   :  { %989 = vst [vmem:[#allocation2 + $0x70] sm:$0xff] %v973_v17  ;;  %v995_v26 = vor.u32 %v994_v20, %v993_v22  ;;  %v1673_v17 = vld [vmem:[#allocation9 + $0x400] sm:$0xff]  ;;  %v1678_v20 = vld [vmem:[#allocation9 + $0x428] sm:$0xff]  ;;  %v10862_v22 = vcombine.low %v1057_v8, %v1061_v9 }
 0x25a   :  { %v10867_v29 = vcombine.high %v1673_v17, %v1677_v18  ;;  %v10869_v30 = vcombine.high %v1674_v19, %v1678_v20  ;;  %v1729_v9 = vld [vmem:[#allocation9 + $0x5c0] sm:$0xff] }
 0x260   :  { %v996_v31 = vld [vmem:[#allocation2] ss:$16 sm:$0xc0] }
 0x261   :  { %v997_v35 = vor.u32 %v996_v31, %v995_v26  ;;  %v10864_v26 = vcombine.low %v1058_v10, %v1062_v11  ;;  %v1681_v31 = vld [vmem:[#allocation9 + $0x440] sm:$0xff]  ;;  %v1730_v11 = vld [vmem:[#allocation9 + $0x5c8] sm:$0xff] }
 0x262   :  { %v10875_v32 = vcombine.high %v1681_v31, %v1685_v33  ;;  %v1733_v10 = vld [vmem:[#allocation9 + $0x5e0] sm:$0xff] }
 0x263   :  { %v12882_v36 = vpack.c.bf16 %v997_v35, %v997_v35  ;;  %v1686_v35 = vld [vmem:[#allocation9 + $0x468] sm:$0xff] }
 0x264   :  { %v10877_v39 = vcombine.high %v1682_v34, %v1686_v35 }
 0x265   :  { %1458 = vmatmul.mubr.bf16.vlgmr.msra.gmra.mrb[16].mxu1 %v12882_v36  ;;  %1499 = vmatmul.mubr.bf16.vlgmr.msra.gmra.mrb[32].mxu0 %v12882_v36 }
 0x266   :  { %1508 = vmatpush1.bf16.msra.mxu1 %v10806_v27  ;;  %1549 = vmatpush1.bf16.msra.mxu0 %v10808_v28  ;;  %v1033_v27 = vld [vmem:[#allocation9 + $0x110] sm:$0xff] }
 0x267   :  { %1509 = vmatprep.subr.bf16.mxu1 %v10815_v37  ;;  %1550 = vmatprep.subr.bf16.mxu0 %v10817_v38  ;;  %v1037_v28 = vld [vmem:[#allocation9 + $0x130] sm:$0xff]  ;;  %v10866_v37 = vcombine.low %v1673_v17, %v1677_v18  ;;  %v10868_v38 = vcombine.low %v1674_v19, %v1678_v20  ;;  %v10923_v19 = vcombine.high %v1729_v9, %v1733_v10 }
 0x268   :  { %1539 = vmatprep.mubr.bf16.mxu1 %v12591_v15  ;;  %1580 = vmatprep.mubr.bf16.mxu0 %v12591_v15  ;;  %v10839_v54 = vcombine.high %v1033_v27, %v1037_v28  ;;  %v10838_v60 = vcombine.low %v1033_v27, %v1037_v28  ;;  %v1705_v28 = vld [vmem:[#allocation9 + $0x500] sm:$0xff] }
 0x269   :  { %v1664_v17 = vld [vmem:[#allocation2 + $0x2] ss:$16 sm:$0x3] }
 0x26a   :  { %1510 = vmatpush1.bf16.msra.mxu1 %v10814_v42  ;;  %1551 = vmatpush1.bf16.msra.mxu0 %v10816_v43  ;;  %v1690_v42 = vld [vmem:[#allocation9 + $0x488] sm:$0xff]  ;;  %v1667_v18 = vld [vmem:[#allocation2 + $0x2] ss:$16 sm:$0x30] }
 0x26b   :  { %1511 = vmatprep.subr.bf16.mxu1 %v10823_v44  ;;  %1552 = vmatprep.subr.bf16.mxu0 %v10825_v45  ;;  %v1694_v43 = vld [vmem:[#allocation9 + $0x4a8] sm:$0xff]  ;;  %v10874_v44 = vcombine.low %v1681_v31, %v1685_v33  ;;  %v10876_v45 = vcombine.low %v1682_v34, %v1686_v35  ;;  %v1676_v31 = vld [vmem:[#allocation9 + $0x418] sm:$0xff]  ;;  %v10922_v35 = vcombine.low %v1729_v9, %v1733_v10  ;;  %v1723_v10 = vld [vmem:[#allocation9 + $0x590] sm:$0xff] }
 0x26c   :  { %v10885_v47 = vcombine.high %v1690_v42, %v1694_v43  ;;  %v1680_v33 = vld [vmem:[#allocation9 + $0x438] sm:$0xff] }
 0x26e   :  { %1512 = vmatpush1.bf16.msra.mxu1 %v10822_v21  ;;  %1553 = vmatpush1.bf16.msra.mxu0 %v10824_v23  ;;  %v1698_v21 = vld [vmem:[#allocation9 + $0x4c8] sm:$0xff] }
 0x26f   :  { %1513 = vmatprep.subr.bf16.mxu1 %v10831_v24  ;;  %1554 = vmatprep.subr.bf16.mxu0 %v10833_v25  ;;  %v1702_v23 = vld [vmem:[#allocation9 + $0x4e8] sm:$0xff]  ;;  %v10882_v24 = vcombine.low %v1689_v40, %v1693_v41  ;;  %v10891_v25 = vcombine.high %v1697_v48, %v1701_v49  ;;  %v1683_v40 = vld [vmem:[#allocation9 + $0x450] sm:$0xff] }
 0x270   :  { %v10893_v27 = vcombine.high %v1698_v21, %v1702_v23  ;;  %v1687_v41 = vld [vmem:[#allocation9 + $0x470] sm:$0xff] }
 0x272   :  { %1514 = vmatpush1.bf16.msra.mxu1 %v10830_v52  ;;  %1555 = vmatpush1.bf16.msra.mxu0 %v10832_v53  ;;  %v1710_v52 = vld [vmem:[#allocation9 + $0x528] sm:$0xff]  ;;  %v10890_v53 = vcombine.low %v1697_v48, %v1701_v49  ;;  %v1691_v49 = vld [vmem:[#allocation9 + $0x490] sm:$0xff] }
 0x273   :  { %1515 = vmatprep.subr.bf16.mxu1 %v10839_v54  ;;  %1556 = vmatprep.subr.bf16.mxu0 %v10841_v55  ;;  %v10892_v54 = vcombine.low %v1698_v21, %v1702_v23  ;;  %v10899_v55 = vcombine.high %v1705_v28, %v1709_v50  ;;  %v10901_v56 = vcombine.high %v1706_v51, %v1710_v52  ;;  %v1695_v21 = vld [vmem:[#allocation9 + $0x4b0] sm:$0xff]  ;;  %v1692_v23 = vld [vmem:[#allocation9 + $0x498] sm:$0xff] }
 0x276   :  { %1516 = vmatpush1.bf16.msra.mxu1 %v10838_v60  ;;  %1557 = vmatpush1.bf16.msra.mxu0 %v10840_v61  ;;  %v1718_v60 = vld [vmem:[#allocation9 + $0x568] sm:$0xff]  ;;  %v10898_v61 = vcombine.low %v1705_v28, %v1709_v50  ;;  %v1699_v50 = vld [vmem:[#allocation9 + $0x4d0] sm:$0xff] }
 0x277   :  { %1517 = vmatprep.subr.bf16.mxu1 %v10847_v62  ;;  %1558 = vmatprep.subr.bf16.mxu0 %v10849_v63  ;;  %v10900_v62 = vcombine.low %v1706_v51, %v1710_v52  ;;  %v10907_v63 = vcombine.high %v1713_v57, %v1717_v58  ;;  %v10909_v0 = vcombine.high %v1714_v59, %v1718_v60  ;;  %v1703_v51 = vld [vmem:[#allocation9 + $0x4f0] sm:$0xff]  ;;  %v1700_v52 = vld [vmem:[#allocation9 + $0x4d8] sm:$0xff] }
 0x27a   :  { %1518 = vmatpush1.bf16.msra.mxu1 %v10846_v4  ;;  %1559 = vmatpush1.bf16.msra.mxu0 %v10848_v5  ;;  %v1726_v4 = vld [vmem:[#allocation9 + $0x5a8] sm:$0xff]  ;;  %v10906_v5 = vcombine.low %v1713_v57, %v1717_v58  ;;  %v1707_v58 = vld [vmem:[#allocation9 + $0x510] sm:$0xff] }
 0x27b   :  { %1519 = vmatprep.subr.bf16.mxu1 %v10855_v6  ;;  %1560 = vmatprep.subr.bf16.mxu0 %v10857_v7  ;;  %v10908_v6 = vcombine.low %v1714_v59, %v1718_v60  ;;  %v10915_v7 = vcombine.high %v1721_v1, %v1725_v2  ;;  %v10917_v8 = vcombine.high %v1722_v3, %v1726_v4  ;;  %v1711_v59 = vld [vmem:[#allocation9 + $0x530] sm:$0xff]  ;;  %v1708_v60 = vld [vmem:[#allocation9 + $0x518] sm:$0xff] }
 0x27e   :  { %1520 = vmatpush1.bf16.msra.mxu1 %v10854_v12  ;;  %1561 = vmatpush1.bf16.msra.mxu0 %v10856_v13  ;;  %v1734_v12 = vld [vmem:[#allocation9 + $0x5e8] sm:$0xff]  ;;  %v1665_v13 = vld [vmem:[#allocation2 + $0x2] ss:$16 sm:$0xc] }
 0x27f   :  { %1521 = vmatprep.subr.bf16.mxu1 %v10863_v14  ;;  %1562 = vmatprep.subr.bf16.mxu0 %v10865_v16  ;;  %v10914_v14 = vcombine.low %v1721_v1, %v1725_v2  ;;  %v10916_v16 = vcombine.low %v1722_v3, %v1726_v4  ;;  %v10925_v20 = vcombine.high %v1730_v11, %v1734_v12  ;;  %v1715_v2 = vld [vmem:[#allocation9 + $0x550] sm:$0xff]  ;;  %v1716_v4 = vld [vmem:[#allocation9 + $0x558] sm:$0xff] }
 0x280   :  { %v1719_v3 = vld [vmem:[#allocation9 + $0x570] sm:$0xff] }
 0x282   :  { %1522 = vmatpush1.bf16.msra.mxu1 %v10862_v22  ;;  %1563 = vmatpush1.bf16.msra.mxu0 %v10864_v26  ;;  %v1666_v22 = vor.u32 %v1665_v13, %v1664_v17  ;;  %v1675_v26 = vld [vmem:[#allocation9 + $0x410] sm:$0xff]  ;;  %v1728_v13 = vld [vmem:[#allocation9 + $0x5b8] sm:$0xff] }
 0x283   :  { %2057 = vmatprep.subr.bf16.mxu1 %v10867_v29  ;;  %2098 = vmatprep.subr.bf16.mxu0 %v10869_v30  ;;  %v1679_v29 = vld [vmem:[#allocation9 + $0x430] sm:$0xff] }
 0x284   :  { %v1669_v30 = vld [vmem:[#allocation2 + $0x2] ss:$16 sm:$0xc0]  ;;  %v1668_v34 = vor.u32 %v1667_v18, %v1666_v22  ;;  %v1732_v22 = vld [vmem:[#allocation9 + $0x5d8] sm:$0xff] }
 0x285   :  { %1540 = vmatmul.mubr.bf16.vlgmr.msra.gmra.mrb[20].mxu1 %v12882_v36  ;;  %1581 = vmatmul.mubr.bf16.vlgmr.msra.gmra.mrb[36].mxu0 %v12882_v36  ;;  %v10884_v36 = vcombine.low %v1690_v42, %v1694_v43  ;;  %v1684_v42 = vld [vmem:[#allocation9 + $0x458] sm:$0xff] }
 0x286   :  { %2058 = vmatpush1.bf16.msra.mxu1 %v10866_v37  ;;  %2099 = vmatpush1.bf16.msra.mxu0 %v10868_v38  ;;  %v10924_v37 = vcombine.low %v1730_v11, %v1734_v12  ;;  %v1670_v38 = vor.u32 %v1669_v30, %v1668_v34  ;;  %v1688_v43 = vld [vmem:[#allocation9 + $0x478] sm:$0xff]  ;;  %v1727_v11 = vld [vmem:[#allocation9 + $0x5b0] sm:$0xff]  ;;  %v2239_v34 = vld [vmem:[#allocation9 + $0x600] sm:$0xff] }
 0x287   :  { %2059 = vmatprep.subr.bf16.mxu1 %v10875_v32  ;;  %2100 = vmatprep.subr.bf16.mxu0 %v10877_v39  ;;  %v10871_v32 = vcombine.high %v1675_v26, %v1679_v29  ;;  %v10873_v39 = vcombine.high %v1676_v31, %v1680_v33  ;;  %v10881_v48 = vcombine.high %v1684_v42, %v1688_v43  ;;  %v1724_v12 = vld [vmem:[#allocation9 + $0x598] sm:$0xff] }
 0x288   :  { %2089 = vmatprep.mubr.bf16.mxu1 %v12591_v15  ;;  %2130 = vmatprep.mubr.bf16.mxu0 %v12591_v15  ;;  %v10919_v17 = vcombine.high %v1723_v10, %v1727_v11  ;;  %v10921_v18 = vcombine.high %v1724_v12, %v1728_v13  ;;  %v10920_v30 = vcombine.low %v1724_v12, %v1728_v13  ;;  %v2291_v12 = vld [vmem:[#allocation9 + $0x7a0] sm:$0xff]  ;;  %v2288_v13 = vld [vmem:[#allocation9 + $0x788] sm:$0xff] }
 0x28a   :  { %2060 = vmatpush1.bf16.msra.mxu1 %v10874_v44  ;;  %2101 = vmatpush1.bf16.msra.mxu0 %v10876_v45  ;;  %v10870_v44 = vcombine.low %v1675_v26, %v1679_v29  ;;  %v10872_v45 = vcombine.low %v1676_v31, %v1680_v33  ;;  %v1736_v26 = vld [vmem:[#allocation9 + $0x5f8] sm:$0xff]  ;;  %v10918_v29 = vcombine.low %v1723_v10, %v1727_v11  ;;  %v2287_v11 = vld [vmem:[#allocation9 + $0x780] sm:$0xff] }
 0x28b   :  { %2061 = vmatprep.subr.bf16.mxu1 %v10883_v46  ;;  %2102 = vmatprep.subr.bf16.mxu0 %v10885_v47  ;;  %v12898_v46 = vpack.c.bf16 %v1670_v38, %v1670_v38  ;;  %v10879_v47 = vcombine.high %v1683_v40, %v1687_v41  ;;  %v10929_v33 = vcombine.high %v1732_v22, %v1736_v26  ;;  %v2244_v38 = vld [vmem:[#allocation9 + $0x628] sm:$0xff] }
 0x28e   :  { %2062 = vmatpush1.bf16.msra.mxu1 %v10882_v24  ;;  %2103 = vmatpush1.bf16.msra.mxu0 %v10884_v36  ;;  %v1696_v24 = vld [vmem:[#allocation9 + $0x4b8] sm:$0xff]  ;;  %v10878_v36 = vcombine.low %v1683_v40, %v1687_v41 }
 0x28f   :  { %2063 = vmatprep.subr.bf16.mxu1 %v10891_v25  ;;  %2104 = vmatprep.subr.bf16.mxu0 %v10893_v27  ;;  %v10880_v25 = vcombine.low %v1684_v42, %v1688_v43  ;;  %v10887_v27 = vcombine.high %v1691_v49, %v1695_v21  ;;  %v10889_v28 = vcombine.high %v1692_v23, %v1696_v24  ;;  %v2247_v42 = vld [vmem:[#allocation9 + $0x640] sm:$0xff] }
 0x290   :  { %v2251_v43 = vld [vmem:[#allocation9 + $0x660] sm:$0xff] }
 0x292   :  { %2064 = vmatpush1.bf16.msra.mxu1 %v10890_v53  ;;  %2105 = vmatpush1.bf16.msra.mxu0 %v10892_v54  ;;  %v1704_v53 = vld [vmem:[#allocation9 + $0x4f8] sm:$0xff]  ;;  %v10886_v54 = vcombine.low %v1691_v49, %v1695_v21  ;;  %v10939_v49 = vcombine.high %v2247_v42, %v2251_v43 }
 0x293   :  { %2065 = vmatprep.subr.bf16.mxu1 %v10899_v55  ;;  %2106 = vmatprep.subr.bf16.mxu0 %v10901_v56  ;;  %v10888_v55 = vcombine.low %v1692_v23, %v1696_v24  ;;  %v10895_v56 = vcombine.high %v1699_v50, %v1703_v51  ;;  %v10897_v57 = vcombine.high %v1700_v52, %v1704_v53  ;;  %v2255_v23 = vld [vmem:[#allocation9 + $0x680] sm:$0xff] }
 0x294   :  { %v2259_v24 = vld [vmem:[#allocation9 + $0x6a0] sm:$0xff] }
 0x296   :  { %2066 = vmatpush1.bf16.msra.mxu1 %v10898_v61  ;;  %2107 = vmatpush1.bf16.msra.mxu0 %v10900_v62  ;;  %v1712_v61 = vld [vmem:[#allocation9 + $0x538] sm:$0xff]  ;;  %v10894_v62 = vcombine.low %v1699_v50, %v1703_v51  ;;  %v10947_v50 = vcombine.high %v2255_v23, %v2259_v24 }
 0x297   :  { %2067 = vmatprep.subr.bf16.mxu1 %v10907_v63  ;;  %2108 = vmatprep.subr.bf16.mxu0 %v10909_v0  ;;  %v10896_v63 = vcombine.low %v1700_v52, %v1704_v53  ;;  %v10903_v0 = vcombine.high %v1707_v58, %v1711_v59  ;;  %v10905_v1 = vcombine.high %v1708_v60, %v1712_v61  ;;  %v2263_v52 = vld [vmem:[#allocation9 + $0x6c0] sm:$0xff] }
 0x298   :  { %v2267_v53 = vld [vmem:[#allocation9 + $0x6e0] sm:$0xff] }
 0x29a   :  { %2068 = vmatpush1.bf16.msra.mxu1 %v10906_v5  ;;  %2109 = vmatpush1.bf16.msra.mxu0 %v10908_v6  ;;  %v1720_v5 = vld [vmem:[#allocation9 + $0x578] sm:$0xff]  ;;  %v10902_v6 = vcombine.low %v1707_v58, %v1711_v59  ;;  %v2271_v59 = vld [vmem:[#allocation9 + $0x700] sm:$0xff] }
 0x29b   :  { %2069 = vmatprep.subr.bf16.mxu1 %v10915_v7  ;;  %2110 = vmatprep.subr.bf16.mxu0 %v10917_v8  ;;  %v10904_v7 = vcombine.low %v1708_v60, %v1712_v61  ;;  %v10911_v8 = vcombine.high %v1715_v2, %v1719_v3  ;;  %v10913_v9 = vcombine.high %v1716_v4, %v1720_v5  ;;  %v2275_v60 = vld [vmem:[#allocation9 + $0x720] sm:$0xff]  ;;  %v2272_v61 = vld [vmem:[#allocation9 + $0x708] sm:$0xff] }
 0x29e   :  { %2070 = vmatpush1.bf16.msra.mxu1 %v10914_v14  ;;  %2111 = vmatpush1.bf16.msra.mxu0 %v10916_v16  ;;  %v10910_v14 = vcombine.low %v1715_v2, %v1719_v3  ;;  %v10912_v16 = vcombine.low %v1716_v4, %v1720_v5  ;;  %v2279_v3 = vld [vmem:[#allocation9 + $0x740] sm:$0xff]  ;;  %v2280_v5 = vld [vmem:[#allocation9 + $0x748] sm:$0xff] }
 0x29f   :  { %2071 = vmatprep.subr.bf16.mxu1 %v10923_v19  ;;  %2112 = vmatprep.subr.bf16.mxu0 %v10925_v20  ;;  %v1731_v19 = vld [vmem:[#allocation9 + $0x5d0] sm:$0xff]  ;;  %v2283_v4 = vld [vmem:[#allocation9 + $0x760] sm:$0xff] }
 0x2a0   :  { %v1735_v20 = vld [vmem:[#allocation9 + $0x5f0] sm:$0xff] }
 0x2a1   :  { %v10927_v31 = vcombine.high %v1731_v19, %v1735_v20 }
 0x2a2   :  { %2072 = vmatpush1.bf16.msra.mxu1 %v10922_v35  ;;  %2113 = vmatpush1.bf16.msra.mxu0 %v10924_v37  ;;  %v2243_v35 = vld [vmem:[#allocation9 + $0x620] sm:$0xff]  ;;  %v2240_v37 = vld [vmem:[#allocation9 + $0x608] sm:$0xff] }
 0x2a3   :  { %2139 = vmatprep.subr.bf16.mxu1 %v10871_v32  ;;  %2180 = vmatprep.subr.bf16.mxu0 %v10873_v39  ;;  %v10926_v32 = vcombine.low %v1731_v19, %v1735_v20  ;;  %v10928_v39 = vcombine.low %v1732_v22, %v1736_v26  ;;  %v10931_v40 = vcombine.high %v2239_v34, %v2243_v35  ;;  %v2295_v20 = vld [vmem:[#allocation9 + $0x7c0] sm:$0xff] }
 0x2a4   :  { %v10933_v41 = vcombine.high %v2240_v37, %v2244_v38  ;;  %v2231_v22 = vld [vmem:[#allocation2 + $0x3] ss:$16 sm:$0xc] }
 0x2a5   :  { %2090 = vmatmul.mubr.bf16.vlgmr.msra.gmra.mrb[16].mxu1 %v12898_v46  ;;  %2131 = vmatmul.mubr.bf16.vlgmr.msra.gmra.mrb[32].mxu0 %v12898_v46  ;;  %v2299_v26 = vld [vmem:[#allocation9 + $0x7e0] sm:$0xff] }
 0x2a6   :  { %2140 = vmatpush1.bf16.msra.mxu1 %v10870_v44  ;;  %2181 = vmatpush1.bf16.msra.mxu0 %v10872_v45  ;;  %v2248_v44 = vld [vmem:[#allocation9 + $0x648] sm:$0xff] }
 0x2a7   :  { %2141 = vmatprep.subr.bf16.mxu1 %v10879_v47  ;;  %2182 = vmatprep.subr.bf16.mxu0 %v10881_v48  ;;  %v2252_v45 = vld [vmem:[#allocation9 + $0x668] sm:$0xff]  ;;  %v10930_v47 = vcombine.low %v2239_v34, %v2243_v35  ;;  %v10932_v48 = vcombine.low %v2240_v37, %v2244_v38  ;;  %v2230_v34 = vld [vmem:[#allocation2 + $0x3] ss:$16 sm:$0x3]  ;;  %v10987_v37 = vcombine.high %v2295_v20, %v2299_v26 }
 0x2a8   :  { %2171 = vmatprep.mubr.bf16.mxu1 %v12591_v15  ;;  %2212 = vmatprep.mubr.bf16.mxu0 %v12591_v15  ;;  %v10941_v21 = vcombine.high %v2248_v44, %v2252_v45  ;;  %v2233_v35 = vld [vmem:[#allocation2 + $0x3] ss:$16 sm:$0x30] }
 0x2aa   :  { %2142 = vmatpush1.bf16.msra.mxu1 %v10878_v36  ;;  %2183 = vmatpush1.bf16.msra.mxu0 %v10880_v25  ;;  %v2256_v36 = vld [vmem:[#allocation9 + $0x688] sm:$0xff] }
 0x2ab   :  { %2143 = vmatprep.subr.bf16.mxu1 %v10887_v27  ;;  %2184 = vmatprep.subr.bf16.mxu0 %v10889_v28  ;;  %v2260_v25 = vld [vmem:[#allocation9 + $0x6a8] sm:$0xff]  ;;  %v10938_v27 = vcombine.low %v2247_v42, %v2251_v43  ;;  %v10940_v28 = vcombine.low %v2248_v44, %v2252_v45  ;;  %v2242_v42 = vld [vmem:[#allocation9 + $0x618] sm:$0xff]  ;;  %v10986_v45 = vcombine.low %v2295_v20, %v2299_v26  ;;  %v2293_v26 = vld [vmem:[#allocation9 + $0x7b0] sm:$0xff] }
 0x2ac   :  { %v10949_v51 = vcombine.high %v2256_v36, %v2260_v25  ;;  %v2246_v43 = vld [vmem:[#allocation9 + $0x638] sm:$0xff] }
 0x2ae   :  { %2144 = vmatpush1.bf16.msra.mxu1 %v10886_v54  ;;  %2185 = vmatpush1.bf16.msra.mxu0 %v10888_v55  ;;  %v2264_v54 = vld [vmem:[#allocation9 + $0x6c8] sm:$0xff] }
 0x2af   :  { %2145 = vmatprep.subr.bf16.mxu1 %v10895_v56  ;;  %2186 = vmatprep.subr.bf16.mxu0 %v10897_v57  ;;  %v2268_v55 = vld [vmem:[#allocation9 + $0x6e8] sm:$0xff]  ;;  %v10946_v56 = vcombine.low %v2255_v23, %v2259_v24  ;;  %v10955_v57 = vcombine.high %v2263_v52, %v2267_v53  ;;  %v2249_v23 = vld [vmem:[#allocation9 + $0x650] sm:$0xff] }
 0x2b0   :  { %v10957_v58 = vcombine.high %v2264_v54, %v2268_v55  ;;  %v2253_v24 = vld [vmem:[#allocation9 + $0x670] sm:$0xff] }
 0x2b2   :  { %2146 = vmatpush1.bf16.msra.mxu1 %v10894_v62  ;;  %2187 = vmatpush1.bf16.msra.mxu0 %v10896_v63  ;;  %v2276_v62 = vld [vmem:[#allocation9 + $0x728] sm:$0xff]  ;;  %v10954_v63 = vcombine.low %v2263_v52, %v2267_v53  ;;  %v2257_v53 = vld [vmem:[#allocation9 + $0x690] sm:$0xff] }
 0x2b3   :  { %2147 = vmatprep.subr.bf16.mxu1 %v10903_v0  ;;  %2188 = vmatprep.subr.bf16.mxu0 %v10905_v1  ;;  %v10956_v0 = vcombine.low %v2264_v54, %v2268_v55  ;;  %v10963_v1 = vcombine.high %v2271_v59, %v2275_v60  ;;  %v10965_v2 = vcombine.high %v2272_v61, %v2276_v62  ;;  %v2261_v54 = vld [vmem:[#allocation9 + $0x6b0] sm:$0xff]  ;;  %v2258_v55 = vld [vmem:[#allocation9 + $0x698] sm:$0xff] }
 0x2b6   :  { %2148 = vmatpush1.bf16.msra.mxu1 %v10902_v6  ;;  %2189 = vmatpush1.bf16.msra.mxu0 %v10904_v7  ;;  %v2284_v6 = vld [vmem:[#allocation9 + $0x768] sm:$0xff]  ;;  %v10962_v7 = vcombine.low %v2271_v59, %v2275_v60  ;;  %v2265_v60 = vld [vmem:[#allocation9 + $0x6d0] sm:$0xff] }
 0x2b7   :  { %2149 = vmatprep.subr.bf16.mxu1 %v10911_v8  ;;  %2190 = vmatprep.subr.bf16.mxu0 %v10913_v9  ;;  %v10964_v8 = vcombine.low %v2272_v61, %v2276_v62  ;;  %v10971_v9 = vcombine.high %v2279_v3, %v2283_v4  ;;  %v10973_v10 = vcombine.high %v2280_v5, %v2284_v6  ;;  %v2269_v61 = vld [vmem:[#allocation9 + $0x6f0] sm:$0xff]  ;;  %v2266_v62 = vld [vmem:[#allocation9 + $0x6d8] sm:$0xff] }
 0x2ba   :  { %2150 = vmatpush1.bf16.msra.mxu1 %v10910_v14  ;;  %2191 = vmatpush1.bf16.msra.mxu0 %v10912_v16  ;;  %v2292_v14 = vld [vmem:[#allocation9 + $0x7a8] sm:$0xff]  ;;  %v10970_v16 = vcombine.low %v2279_v3, %v2283_v4  ;;  %v2273_v4 = vld [vmem:[#allocation9 + $0x710] sm:$0xff] }
 0x2bb   :  { %2151 = vmatprep.subr.bf16.mxu1 %v10919_v17  ;;  %2192 = vmatprep.subr.bf16.mxu0 %v10921_v18  ;;  %v10972_v17 = vcombine.low %v2280_v5, %v2284_v6  ;;  %v10979_v18 = vcombine.high %v2287_v11, %v2291_v12  ;;  %v10981_v19 = vcombine.high %v2288_v13, %v2292_v14  ;;  %v2277_v5 = vld [vmem:[#allocation9 + $0x730] sm:$0xff]  ;;  %v2274_v6 = vld [vmem:[#allocation9 + $0x718] sm:$0xff] }
 0x2be   :  { %2152 = vmatpush1.bf16.msra.mxu1 %v10918_v29  ;;  %2193 = vmatpush1.bf16.msra.mxu0 %v10920_v30  ;;  %v2296_v29 = vld [vmem:[#allocation9 + $0x7c8] sm:$0xff] }
 0x2bf   :  { %2153 = vmatprep.subr.bf16.mxu1 %v10927_v31  ;;  %2194 = vmatprep.subr.bf16.mxu0 %v10929_v33  ;;  %v2300_v30 = vld [vmem:[#allocation9 + $0x7e8] sm:$0xff]  ;;  %v10978_v31 = vcombine.low %v2287_v11, %v2291_v12  ;;  %v10980_v33 = vcombine.low %v2288_v13, %v2292_v14  ;;  %v2281_v12 = vld [vmem:[#allocation9 + $0x750] sm:$0xff]  ;;  %v2282_v14 = vld [vmem:[#allocation9 + $0x758] sm:$0xff] }
 0x2c0   :  { %v10989_v38 = vcombine.high %v2296_v29, %v2300_v30  ;;  %v2285_v13 = vld [vmem:[#allocation9 + $0x770] sm:$0xff] }
 0x2c2   :  { %2154 = vmatpush1.bf16.msra.mxu1 %v10926_v32  ;;  %2195 = vmatpush1.bf16.msra.mxu0 %v10928_v39  ;;  %v2232_v32 = vor.u32 %v2231_v22, %v2230_v34  ;;  %v2235_v39 = vld [vmem:[#allocation2 + $0x3] ss:$16 sm:$0xc0] }
 0x2c3   :  { %2623 = vmatprep.subr.bf16.mxu1 %v10931_v40  ;;  %2664 = vmatprep.subr.bf16.mxu0 %v10933_v41  ;;  %v2241_v40 = vld [vmem:[#allocation9 + $0x610] sm:$0xff] }
 0x2c4   :  { %v2245_v41 = vld [vmem:[#allocation9 + $0x630] sm:$0xff]  ;;  %v2234_v44 = vor.u32 %v2233_v35, %v2232_v32  ;;  %v2298_v32 = vld [vmem:[#allocation9 + $0x7d8] sm:$0xff] }
 0x2c5   :  { %2172 = vmatmul.mubr.bf16.vlgmr.msra.gmra.mrb[20].mxu1 %v12898_v46  ;;  %2213 = vmatmul.mubr.bf16.vlgmr.msra.gmra.mrb[36].mxu0 %v12898_v46  ;;  %v10948_v46 = vcombine.low %v2256_v36, %v2260_v25  ;;  %v2250_v36 = vld [vmem:[#allocation9 + $0x658] sm:$0xff]  ;;  %v2289_v22 = vld [vmem:[#allocation9 + $0x790] sm:$0xff] }
 0x2c6   :  { %2624 = vmatpush1.bf16.msra.mxu1 %v10930_v47  ;;  %2665 = vmatpush1.bf16.msra.mxu0 %v10932_v48  ;;  %v10988_v47 = vcombine.low %v2296_v29, %v2300_v30  ;;  %v2236_v48 = vor.u32 %v2235_v39, %v2234_v44  ;;  %v2254_v25 = vld [vmem:[#allocation9 + $0x678] sm:$0xff]  ;;  %v10983_v34 = vcombine.high %v2289_v22, %v2293_v26  ;;  %v1599_v44 = vld [vmem:[#allocation9 + $0x200] sm:$0xff] }
 0x2c7   :  { %2625 = vmatprep.subr.bf16.mxu1 %v10939_v49  ;;  %2666 = vmatprep.subr.bf16.mxu0 %v10941_v21  ;;  %v10935_v49 = vcombine.high %v2241_v40, %v2245_v41  ;;  %v10937_v21 = vcombine.high %v2242_v42, %v2246_v43  ;;  %v10945_v52 = vcombine.high %v2250_v36, %v2254_v25  ;;  %v2290_v29 = vld [vmem:[#allocation9 + $0x798] sm:$0xff] }
 0x2c8   :  { %2655 = vmatprep.mubr.bf16.mxu1 %v12591_v15  ;;  %2696 = vmatprep.mubr.bf16.mxu0 %v12591_v15  ;;  %v2294_v30 = vld [vmem:[#allocation9 + $0x7b8] sm:$0xff] }
 0x2c9   :  { %v10985_v35 = vcombine.high %v2290_v29, %v2294_v30  ;;  %v2302_v39 = vld [vmem:[#allocation9 + $0x7f8] sm:$0xff] }
 0x2ca   :  { %2626 = vmatpush1.bf16.msra.mxu1 %v10938_v27  ;;  %2667 = vmatpush1.bf16.msra.mxu0 %v10940_v28  ;;  %v10934_v27 = vcombine.low %v2241_v40, %v2245_v41  ;;  %v10936_v28 = vcombine.low %v2242_v42, %v2246_v43  ;;  %v10982_v40 = vcombine.low %v2289_v22, %v2293_v26  ;;  %v1647_v26 = vld [vmem:[#allocation9 + $0x380] sm:$0xff] }
 0x2cb   :  { %2627 = vmatprep.subr.bf16.mxu1 %v10947_v50  ;;  %2668 = vmatprep.subr.bf16.mxu0 %v10949_v51  ;;  %v12908_v50 = vpack.c.bf16 %v2236_v48, %v2236_v48  ;;  %v10943_v51 = vcombine.high %v2249_v23, %v2253_v24  ;;  %v10984_v41 = vcombine.low %v2290_v29, %v2294_v30  ;;  %v1604_v48 = vld [vmem:[#allocation9 + $0x228] sm:$0xff]  ;;  %v1651_v29 = vld [vmem:[#allocation9 + $0x3a0] sm:$0xff] }
 0x2cc   :  { %v10993_v43 = vcombine.high %v2298_v32, %v2302_v39  ;;  %v1648_v30 = vld [vmem:[#allocation9 + $0x388] sm:$0xff] }
 0x2ce   :  { %2628 = vmatpush1.bf16.msra.mxu1 %v10946_v56  ;;  %2669 = vmatpush1.bf16.msra.mxu0 %v10948_v46  ;;  %v2262_v56 = vld [vmem:[#allocation9 + $0x6b8] sm:$0xff]  ;;  %v10942_v46 = vcombine.low %v2249_v23, %v2253_v24 }
 0x2cf   :  { %2629 = vmatprep.subr.bf16.mxu1 %v10955_v57  ;;  %2670 = vmatprep.subr.bf16.mxu0 %v10957_v58  ;;  %v10944_v57 = vcombine.low %v2250_v36, %v2254_v25  ;;  %v10951_v58 = vcombine.high %v2257_v53, %v2261_v54  ;;  %v10953_v59 = vcombine.high %v2258_v55, %v2262_v56  ;;  %v1607_v36 = vld [vmem:[#allocation9 + $0x240] sm:$0xff] }
 0x2d0   :  { %v1611_v25 = vld [vmem:[#allocation9 + $0x260] sm:$0xff] }
 0x2d2   :  { %2630 = vmatpush1.bf16.msra.mxu1 %v10954_v63  ;;  %2671 = vmatpush1.bf16.msra.mxu0 %v10956_v0  ;;  %v2270_v63 = vld [vmem:[#allocation9 + $0x6f8] sm:$0xff]  ;;  %v10950_v0 = vcombine.low %v2257_v53, %v2261_v54  ;;  %v11003_v53 = vcombine.high %v1607_v36, %v1611_v25 }
 0x2d3   :  { %2631 = vmatprep.subr.bf16.mxu1 %v10963_v1  ;;  %2672 = vmatprep.subr.bf16.mxu0 %v10965_v2  ;;  %v10952_v1 = vcombine.low %v2258_v55, %v2262_v56  ;;  %v10959_v2 = vcombine.high %v2265_v60, %v2269_v61  ;;  %v10961_v3 = vcombine.high %v2266_v62, %v2270_v63  ;;  %v1615_v55 = vld [vmem:[#allocation9 + $0x280] sm:$0xff] }
 0x2d4   :  { %v1619_v56 = vld [vmem:[#allocation9 + $0x2a0] sm:$0xff] }
 0x2d6   :  { %2632 = vmatpush1.bf16.msra.mxu1 %v10962_v7  ;;  %2673 = vmatpush1.bf16.msra.mxu0 %v10964_v8  ;;  %v2278_v7 = vld [vmem:[#allocation9 + $0x738] sm:$0xff]  ;;  %v10958_v8 = vcombine.low %v2265_v60, %v2269_v61  ;;  %v11011_v60 = vcombine.high %v1615_v55, %v1619_v56 }
 0x2d7   :  { %2633 = vmatprep.subr.bf16.mxu1 %v10971_v9  ;;  %2674 = vmatprep.subr.bf16.mxu0 %v10973_v10  ;;  %v10960_v9 = vcombine.low %v2266_v62, %v2270_v63  ;;  %v10967_v10 = vcombine.high %v2273_v4, %v2277_v5  ;;  %v10969_v11 = vcombine.high %v2274_v6, %v2278_v7  ;;  %v1623_v62 = vld [vmem:[#allocation9 + $0x2c0] sm:$0xff] }
 0x2d8   :  { %v1627_v63 = vld [vmem:[#allocation9 + $0x2e0] sm:$0xff] }
 0x2da   :  { %2634 = vmatpush1.bf16.msra.mxu1 %v10970_v16  ;;  %2675 = vmatpush1.bf16.msra.mxu0 %v10972_v17  ;;  %v2286_v16 = vld [vmem:[#allocation9 + $0x778] sm:$0xff]  ;;  %v10966_v17 = vcombine.low %v2273_v4, %v2277_v5  ;;  %v1631_v5 = vld [vmem:[#allocation9 + $0x300] sm:$0xff] }
 0x2db   :  { %2635 = vmatprep.subr.bf16.mxu1 %v10979_v18  ;;  %2676 = vmatprep.subr.bf16.mxu0 %v10981_v19  ;;  %v10968_v18 = vcombine.low %v2274_v6, %v2278_v7  ;;  %v10975_v19 = vcombine.high %v2281_v12, %v2285_v13  ;;  %v10977_v20 = vcombine.high %v2282_v14, %v2286_v16  ;;  %v1635_v6 = vld [vmem:[#allocation9 + $0x320] sm:$0xff]  ;;  %v1632_v7 = vld [vmem:[#allocation9 + $0x308] sm:$0xff] }
 0x2de   :  { %2636 = vmatpush1.bf16.msra.mxu1 %v10978_v31  ;;  %2677 = vmatpush1.bf16.msra.mxu0 %v10980_v33  ;;  %v10974_v31 = vcombine.low %v2281_v12, %v2285_v13  ;;  %v10976_v33 = vcombine.low %v2282_v14, %v2286_v16  ;;  %v1639_v13 = vld [vmem:[#allocation9 + $0x340] sm:$0xff]  ;;  %v1640_v16 = vld [vmem:[#allocation9 + $0x348] sm:$0xff] }
 0x2df   :  { %2637 = vmatprep.subr.bf16.mxu1 %v10987_v37  ;;  %2678 = vmatprep.subr.bf16.mxu0 %v10989_v38  ;;  %v2297_v37 = vld [vmem:[#allocation9 + $0x7d0] sm:$0xff]  ;;  %v1643_v14 = vld [vmem:[#allocation9 + $0x360] sm:$0xff] }
 0x2e0   :  { %v2301_v38 = vld [vmem:[#allocation9 + $0x7f0] sm:$0xff] }
 0x2e1   :  { %v10991_v42 = vcombine.high %v2297_v37, %v2301_v38 }
 0x2e2   :  { %2638 = vmatpush1.bf16.msra.mxu1 %v10986_v45  ;;  %2679 = vmatpush1.bf16.msra.mxu0 %v10988_v47  ;;  %v1603_v45 = vld [vmem:[#allocation9 + $0x220] sm:$0xff]  ;;  %v1600_v47 = vld [vmem:[#allocation9 + $0x208] sm:$0xff] }
 0x2e3   :  { %2705 = vmatprep.subr.bf16.mxu1 %v10935_v49  ;;  %2746 = vmatprep.subr.bf16.mxu0 %v10937_v21  ;;  %v10990_v49 = vcombine.low %v2297_v37, %v2301_v38  ;;  %v10992_v21 = vcombine.low %v2298_v32, %v2302_v39  ;;  %v10995_v23 = vcombine.high %v1599_v44, %v1603_v45  ;;  %v1655_v38 = vld [vmem:[#allocation9 + $0x3c0] sm:$0xff]  ;;  %v1591_v32 = vld [vmem:[#allocation2 + $0x1] ss:$16 sm:$0xc] }
 0x2e4   :  { %v10997_v24 = vcombine.high %v1600_v47, %v1604_v48  ;;  %v1659_v39 = vld [vmem:[#allocation9 + $0x3e0] sm:$0xff] }
 0x2e5   :  { %2656 = vmatmul.mubr.bf16.vlgmr.msra.gmra.mrb[16].mxu1 %v12908_v50  ;;  %2697 = vmatmul.mubr.bf16.vlgmr.msra.gmra.mrb[32].mxu0 %v12908_v50 }
 0x2e6   :  { %2706 = vmatpush1.bf16.msra.mxu1 %v10934_v27  ;;  %2747 = vmatpush1.bf16.msra.mxu0 %v10936_v28  ;;  %v1608_v27 = vld [vmem:[#allocation9 + $0x248] sm:$0xff] }
 0x2e7   :  { %2707 = vmatprep.subr.bf16.mxu1 %v10943_v51  ;;  %2748 = vmatprep.subr.bf16.mxu0 %v10945_v52  ;;  %v1612_v28 = vld [vmem:[#allocation9 + $0x268] sm:$0xff]  ;;  %v10994_v51 = vcombine.low %v1599_v44, %v1603_v45  ;;  %v10996_v52 = vcombine.low %v1600_v47, %v1604_v48  ;;  %v11051_v47 = vcombine.high %v1655_v38, %v1659_v39 }
 0x2e8   :  { %2737 = vmatprep.mubr.bf16.mxu1 %v12591_v15  ;;  %2778 = vmatprep.mubr.bf16.mxu0 %v12591_v15  ;;  %v11005_v54 = vcombine.high %v1608_v27, %v1612_v28  ;;  %v1590_v44 = vld [vmem:[#allocation2 + $0x1] ss:$16 sm:$0x3] }
 0x2e9   :  { %v1593_v45 = vld [vmem:[#allocation2 + $0x1] ss:$16 sm:$0x30] }
 0x2ea   :  { %2708 = vmatpush1.bf16.msra.mxu1 %v10942_v46  ;;  %2749 = vmatpush1.bf16.msra.mxu0 %v10944_v57  ;;  %v1616_v46 = vld [vmem:[#allocation9 + $0x288] sm:$0xff] }
 0x2eb   :  { %2709 = vmatprep.subr.bf16.mxu1 %v10951_v58  ;;  %2750 = vmatprep.subr.bf16.mxu0 %v10953_v59  ;;  %v1620_v57 = vld [vmem:[#allocation9 + $0x2a8] sm:$0xff]  ;;  %v11002_v58 = vcombine.low %v1607_v36, %v1611_v25  ;;  %v11004_v59 = vcombine.low %v1608_v27, %v1612_v28  ;;  %v1602_v36 = vld [vmem:[#allocation9 + $0x218] sm:$0xff]  ;;  %v11050_v28 = vcombine.low %v1655_v38, %v1659_v39  ;;  %v1653_v39 = vld [vmem:[#allocation9 + $0x3b0] sm:$0xff] }
 0x2ec   :  { %v11013_v61 = vcombine.high %v1616_v46, %v1620_v57  ;;  %v1606_v25 = vld [vmem:[#allocation9 + $0x238] sm:$0xff] }
 0x2ee   :  { %2710 = vmatpush1.bf16.msra.mxu1 %v10950_v0  ;;  %2751 = vmatpush1.bf16.msra.mxu0 %v10952_v1  ;;  %v1624_v0 = vld [vmem:[#allocation9 + $0x2c8] sm:$0xff] }
 0x2ef   :  { %2711 = vmatprep.subr.bf16.mxu1 %v10959_v2  ;;  %2752 = vmatprep.subr.bf16.mxu0 %v10961_v3  ;;  %v1628_v1 = vld [vmem:[#allocation9 + $0x2e8] sm:$0xff]  ;;  %v11010_v2 = vcombine.low %v1615_v55, %v1619_v56  ;;  %v11019_v3 = vcombine.high %v1623_v62, %v1627_v63  ;;  %v1609_v55 = vld [vmem:[#allocation9 + $0x250] sm:$0xff] }
 0x2f0   :  { %v11021_v4 = vcombine.high %v1624_v0, %v1628_v1  ;;  %v1613_v56 = vld [vmem:[#allocation9 + $0x270] sm:$0xff] }
 0x2f2   :  { %2712 = vmatpush1.bf16.msra.mxu1 %v10958_v8  ;;  %2753 = vmatpush1.bf16.msra.mxu0 %v10960_v9  ;;  %v1636_v8 = vld [vmem:[#allocation9 + $0x328] sm:$0xff]  ;;  %v11018_v9 = vcombine.low %v1623_v62, %v1627_v63  ;;  %v1617_v63 = vld [vmem:[#allocation9 + $0x290] sm:$0xff] }
 0x2f3   :  { %2713 = vmatprep.subr.bf16.mxu1 %v10967_v10  ;;  %2754 = vmatprep.subr.bf16.mxu0 %v10969_v11  ;;  %v11020_v10 = vcombine.low %v1624_v0, %v1628_v1  ;;  %v11027_v11 = vcombine.high %v1631_v5, %v1635_v6  ;;  %v11029_v12 = vcombine.high %v1632_v7, %v1636_v8  ;;  %v1621_v0 = vld [vmem:[#allocation9 + $0x2b0] sm:$0xff]  ;;  %v1618_v1 = vld [vmem:[#allocation9 + $0x298] sm:$0xff] }
 0x2f6   :  { %2714 = vmatpush1.bf16.msra.mxu1 %v10966_v17  ;;  %2755 = vmatpush1.bf16.msra.mxu0 %v10968_v18  ;;  %v1644_v17 = vld [vmem:[#allocation9 + $0x368] sm:$0xff]  ;;  %v11026_v18 = vcombine.low %v1631_v5, %v1635_v6  ;;  %v1625_v6 = vld [vmem:[#allocation9 + $0x2d0] sm:$0xff] }
 0x2f7   :  { %2715 = vmatprep.subr.bf16.mxu1 %v10975_v19  ;;  %2756 = vmatprep.subr.bf16.mxu0 %v10977_v20  ;;  %v11028_v19 = vcombine.low %v1632_v7, %v1636_v8  ;;  %v11035_v20 = vcombine.high %v1639_v13, %v1643_v14  ;;  %v11037_v22 = vcombine.high %v1640_v16, %v1644_v17  ;;  %v1629_v7 = vld [vmem:[#allocation9 + $0x2f0] sm:$0xff]  ;;  %v1626_v8 = vld [vmem:[#allocation9 + $0x2d8] sm:$0xff] }
 0x2fa   :  { %2716 = vmatpush1.bf16.msra.mxu1 %v10974_v31  ;;  %2757 = vmatpush1.bf16.msra.mxu0 %v10976_v33  ;;  %v1652_v31 = vld [vmem:[#allocation9 + $0x3a8] sm:$0xff]  ;;  %v11034_v33 = vcombine.low %v1639_v13, %v1643_v14  ;;  %v1633_v14 = vld [vmem:[#allocation9 + $0x310] sm:$0xff] }
 0x2fb   :  { %2717 = vmatprep.subr.bf16.mxu1 %v10983_v34  ;;  %2758 = vmatprep.subr.bf16.mxu0 %v10985_v35  ;;  %v11036_v34 = vcombine.low %v1640_v16, %v1644_v17  ;;  %v11043_v35 = vcombine.high %v1647_v26, %v1651_v29  ;;  %v11045_v37 = vcombine.high %v1648_v30, %v1652_v31  ;;  %v1637_v16 = vld [vmem:[#allocation9 + $0x330] sm:$0xff]  ;;  %v1634_v17 = vld [vmem:[#allocation9 + $0x318] sm:$0xff] }
 0x2fe   :  { %2718 = vmatpush1.bf16.msra.mxu1 %v10982_v40  ;;  %2759 = vmatpush1.bf16.msra.mxu0 %v10984_v41  ;;  %v1656_v40 = vld [vmem:[#allocation9 + $0x3c8] sm:$0xff] }
 0x2ff   :  { %2719 = vmatprep.subr.bf16.mxu1 %v10991_v42  ;;  %2760 = vmatprep.subr.bf16.mxu0 %v10993_v43  ;;  %v1660_v41 = vld [vmem:[#allocation9 + $0x3e8] sm:$0xff]  ;;  %v11042_v42 = vcombine.low %v1647_v26, %v1651_v29  ;;  %v11044_v43 = vcombine.low %v1648_v30, %v1652_v31  ;;  %v1641_v29 = vld [vmem:[#allocation9 + $0x350] sm:$0xff]  ;;  %v1642_v31 = vld [vmem:[#allocation9 + $0x358] sm:$0xff] }
 0x300   :  { %v11053_v48 = vcombine.high %v1656_v40, %v1660_v41  ;;  %v1645_v30 = vld [vmem:[#allocation9 + $0x370] sm:$0xff] }
 0x302   :  { %2720 = vmatpush1.bf16.msra.mxu1 %v10990_v49  ;;  %2761 = vmatpush1.bf16.msra.mxu0 %v10992_v21  ;;  %v1592_v49 = vor.u32 %v1591_v32, %v1590_v44  ;;  %v1595_v21 = vld [vmem:[#allocation2 + $0x1] ss:$16 sm:$0xc0]  ;;  %v1649_v32 = vld [vmem:[#allocation9 + $0x390] sm:$0xff] }
 0x303   :  { %3107 = vmatprep.subr.bf16.mxu1 %v10995_v23  ;;  %3148 = vmatprep.subr.bf16.mxu0 %v10997_v24  ;;  %v1601_v23 = vld [vmem:[#allocation9 + $0x210] sm:$0xff]  ;;  %v11047_v44 = vcombine.high %v1649_v32, %v1653_v39 }
 0x304   :  { %v1605_v24 = vld [vmem:[#allocation9 + $0x230] sm:$0xff]  ;;  %v1594_v27 = vor.u32 %v1593_v45, %v1592_v49  ;;  %v1658_v49 = vld [vmem:[#allocation9 + $0x3d8] sm:$0xff] }
 0x305   :  { %2738 = vmatmul.mubr.bf16.vlgmr.msra.gmra.mrb[20].mxu1 %v12908_v50  ;;  %2779 = vmatmul.mubr.bf16.vlgmr.msra.gmra.mrb[36].mxu0 %v12908_v50  ;;  %v11012_v50 = vcombine.low %v1616_v46, %v1620_v57  ;;  %v1610_v46 = vld [vmem:[#allocation9 + $0x258] sm:$0xff] }
 0x306   :  { %3108 = vmatpush1.bf16.msra.mxu1 %v10994_v51  ;;  %3149 = vmatpush1.bf16.msra.mxu0 %v10996_v52  ;;  %v11052_v51 = vcombine.low %v1656_v40, %v1660_v41  ;;  %v1596_v52 = vor.u32 %v1595_v21, %v1594_v27  ;;  %v1614_v57 = vld [vmem:[#allocation9 + $0x278] sm:$0xff]  ;;  %v3281_v27 = vld [vmem:[#allocation9 + $0x800] sm:$0xff] }
 0x307   :  { %3109 = vmatprep.subr.bf16.mxu1 %v11003_v53  ;;  %3150 = vmatprep.subr.bf16.mxu0 %v11005_v54  ;;  %v10999_v53 = vcombine.high %v1601_v23, %v1605_v24  ;;  %v11001_v54 = vcombine.high %v1602_v36, %v1606_v25  ;;  %v11009_v62 = vcombine.high %v1610_v46, %v1614_v57  ;;  %v1650_v40 = vld [vmem:[#allocation9 + $0x398] sm:$0xff] }
 0x308   :  { %3139 = vmatprep.mubr.bf16.mxu1 %v12591_v15  ;;  %3180 = vmatprep.mubr.bf16.mxu0 %v12591_v15  ;;  %v1654_v41 = vld [vmem:[#allocation9 + $0x3b8] sm:$0xff] }
 0x309   :  { %v11049_v45 = vcombine.high %v1650_v40, %v1654_v41  ;;  %v1662_v21 = vld [vmem:[#allocation9 + $0x3f8] sm:$0xff] }
 0x30a   :  { %3110 = vmatpush1.bf16.msra.mxu1 %v11002_v58  ;;  %3151 = vmatpush1.bf16.msra.mxu0 %v11004_v59  ;;  %v10998_v58 = vcombine.low %v1601_v23, %v1605_v24  ;;  %v11000_v59 = vcombine.low %v1602_v36, %v1606_v25  ;;  %v11046_v23 = vcombine.low %v1649_v32, %v1653_v39  ;;  %v3329_v39 = vld [vmem:[#allocation9 + $0x980] sm:$0xff] }
 0x30b   :  { %3111 = vmatprep.subr.bf16.mxu1 %v11011_v60  ;;  %3152 = vmatprep.subr.bf16.mxu0 %v11013_v61  ;;  %v12918_v60 = vpack.c.bf16 %v1596_v52, %v1596_v52  ;;  %v11007_v61 = vcombine.high %v1609_v55, %v1613_v56  ;;  %v11048_v24 = vcombine.low %v1650_v40, %v1654_v41  ;;  %v3286_v52 = vld [vmem:[#allocation9 + $0x828] sm:$0xff]  ;;  %v3333_v40 = vld [vmem:[#allocation9 + $0x9a0] sm:$0xff] }
 0x30c   :  { %v11057_v25 = vcombine.high %v1658_v49, %v1662_v21  ;;  %v3330_v41 = vld [vmem:[#allocation9 + $0x988] sm:$0xff] }
 0x30e   :  { %3112 = vmatpush1.bf16.msra.mxu1 %v11010_v2  ;;  %3153 = vmatpush1.bf16.msra.mxu0 %v11012_v50  ;;  %v1622_v2 = vld [vmem:[#allocation9 + $0x2b8] sm:$0xff]  ;;  %v11006_v50 = vcombine.low %v1609_v55, %v1613_v56 }
 0x30f   :  { %3113 = vmatprep.subr.bf16.mxu1 %v11019_v3  ;;  %3154 = vmatprep.subr.bf16.mxu0 %v11021_v4  ;;  %v11008_v3 = vcombine.low %v1610_v46, %v1614_v57  ;;  %v11015_v4 = vcombine.high %v1617_v63, %v1621_v0  ;;  %v11017_v5 = vcombine.high %v1618_v1, %v1622_v2  ;;  %v3289_v46 = vld [vmem:[#allocation9 + $0x840] sm:$0xff] }
 0x310   :  { %v3293_v57 = vld [vmem:[#allocation9 + $0x860] sm:$0xff] }
 0x312   :  { %3114 = vmatpush1.bf16.msra.mxu1 %v11018_v9  ;;  %3155 = vmatpush1.bf16.msra.mxu0 %v11020_v10  ;;  %v1630_v9 = vld [vmem:[#allocation9 + $0x2f8] sm:$0xff]  ;;  %v11014_v10 = vcombine.low %v1617_v63, %v1621_v0  ;;  %v11067_v63 = vcombine.high %v3289_v46, %v3293_v57 }
 0x313   :  { %3115 = vmatprep.subr.bf16.mxu1 %v11027_v11  ;;  %3156 = vmatprep.subr.bf16.mxu0 %v11029_v12  ;;  %v11016_v11 = vcombine.low %v1618_v1, %v1622_v2  ;;  %v11023_v12 = vcombine.high %v1625_v6, %v1629_v7  ;;  %v11025_v13 = vcombine.high %v1626_v8, %v1630_v9  ;;  %v3297_v1 = vld [vmem:[#allocation9 + $0x880] sm:$0xff] }
 0x314   :  { %v3301_v2 = vld [vmem:[#allocation9 + $0x8a0] sm:$0xff] }
 0x316   :  { %3116 = vmatpush1.bf16.msra.mxu1 %v11026_v18  ;;  %3157 = vmatpush1.bf16.msra.mxu0 %v11028_v19  ;;  %v1638_v18 = vld [vmem:[#allocation9 + $0x338] sm:$0xff]  ;;  %v11022_v19 = vcombine.low %v1625_v6, %v1629_v7  ;;  %v11075_v6 = vcombine.high %v3297_v1, %v3301_v2 }
 0x317   :  { %3117 = vmatprep.subr.bf16.mxu1 %v11035_v20  ;;  %3158 = vmatprep.subr.bf16.mxu0 %v11037_v22  ;;  %v11024_v20 = vcombine.low %v1626_v8, %v1630_v9  ;;  %v11031_v22 = vcombine.high %v1633_v14, %v1637_v16  ;;  %v11033_v26 = vcombine.high %v1634_v17, %v1638_v18  ;;  %v3305_v8 = vld [vmem:[#allocation9 + $0x8c0] sm:$0xff] }
 0x318   :  { %v3309_v9 = vld [vmem:[#allocation9 + $0x8e0] sm:$0xff] }
 0x31a   :  { %3118 = vmatpush1.bf16.msra.mxu1 %v11034_v33  ;;  %3159 = vmatpush1.bf16.msra.mxu0 %v11036_v34  ;;  %v1646_v33 = vld [vmem:[#allocation9 + $0x378] sm:$0xff]  ;;  %v11030_v34 = vcombine.low %v1633_v14, %v1637_v16  ;;  %v3313_v16 = vld [vmem:[#allocation9 + $0x900] sm:$0xff] }
 0x31b   :  { %3119 = vmatprep.subr.bf16.mxu1 %v11043_v35  ;;  %3160 = vmatprep.subr.bf16.mxu0 %v11045_v37  ;;  %v11032_v35 = vcombine.low %v1634_v17, %v1638_v18  ;;  %v11039_v37 = vcombine.high %v1641_v29, %v1645_v30  ;;  %v11041_v38 = vcombine.high %v1642_v31, %v1646_v33  ;;  %v3317_v17 = vld [vmem:[#allocation9 + $0x920] sm:$0xff]  ;;  %v3314_v18 = vld [vmem:[#allocation9 + $0x908] sm:$0xff] }
 0x31e   :  { %3120 = vmatpush1.bf16.msra.mxu1 %v11042_v42  ;;  %3161 = vmatpush1.bf16.msra.mxu0 %v11044_v43  ;;  %v11038_v42 = vcombine.low %v1641_v29, %v1645_v30  ;;  %v11040_v43 = vcombine.low %v1642_v31, %v1646_v33  ;;  %v3321_v30 = vld [vmem:[#allocation9 + $0x940] sm:$0xff]  ;;  %v3322_v33 = vld [vmem:[#allocation9 + $0x948] sm:$0xff] }
 0x31f   :  { %3121 = vmatprep.subr.bf16.mxu1 %v11051_v47  ;;  %3162 = vmatprep.subr.bf16.mxu0 %v11053_v48  ;;  %v1657_v47 = vld [vmem:[#allocation9 + $0x3d0] sm:$0xff]  ;;  %v3325_v31 = vld [vmem:[#allocation9 + $0x960] sm:$0xff] }
 0x320   :  { %v1661_v48 = vld [vmem:[#allocation9 + $0x3f0] sm:$0xff] }
 0x321   :  { %v11055_v36 = vcombine.high %v1657_v47, %v1661_v48 }
 0x322   :  { %3122 = vmatpush1.bf16.msra.mxu1 %v11050_v28  ;;  %3163 = vmatpush1.bf16.msra.mxu0 %v11052_v51  ;;  %v3285_v28 = vld [vmem:[#allocation9 + $0x820] sm:$0xff]  ;;  %v3282_v51 = vld [vmem:[#allocation9 + $0x808] sm:$0xff] }
 0x323   :  { %3189 = vmatprep.subr.bf16.mxu1 %v10999_v53  ;;  %3230 = vmatprep.subr.bf16.mxu0 %v11001_v54  ;;  %v11054_v53 = vcombine.low %v1657_v47, %v1661_v48  ;;  %v11056_v54 = vcombine.low %v1658_v49, %v1662_v21  ;;  %v11059_v55 = vcombine.high %v3281_v27, %v3285_v28  ;;  %v3337_v48 = vld [vmem:[#allocation9 + $0x9c0] sm:$0xff] }
 0x324   :  { %v11061_v56 = vcombine.high %v3282_v51, %v3286_v52  ;;  %v3273_v49 = vld [vmem:[#allocation2 + $0x4] ss:$16 sm:$0xc] }
 0x325   :  { %3140 = vmatmul.mubr.bf16.vlgmr.msra.gmra.mrb[16].mxu1 %v12918_v60  ;;  %3181 = vmatmul.mubr.bf16.vlgmr.msra.gmra.mrb[32].mxu0 %v12918_v60  ;;  %v3341_v21 = vld [vmem:[#allocation9 + $0x9e0] sm:$0xff] }
 0x326   :  { %3190 = vmatpush1.bf16.msra.mxu1 %v10998_v58  ;;  %3231 = vmatpush1.bf16.msra.mxu0 %v11000_v59  ;;  %v3290_v58 = vld [vmem:[#allocation9 + $0x848] sm:$0xff] }
 0x327   :  { %3191 = vmatprep.subr.bf16.mxu1 %v11007_v61  ;;  %3232 = vmatprep.subr.bf16.mxu0 %v11009_v62  ;;  %v3294_v59 = vld [vmem:[#allocation9 + $0x868] sm:$0xff]  ;;  %v11058_v61 = vcombine.low %v3281_v27, %v3285_v28  ;;  %v11060_v62 = vcombine.low %v3282_v51, %v3286_v52  ;;  %v3272_v27 = vld [vmem:[#allocation2 + $0x4] ss:$16 sm:$0x3]  ;;  %v11115_v51 = vcombine.high %v3337_v48, %v3341_v21 }
 0x328   :  { %3221 = vmatprep.mubr.bf16.mxu1 %v12591_v15  ;;  %3262 = vmatprep.mubr.bf16.mxu0 %v12591_v15  ;;  %v11069_v0 = vcombine.high %v3290_v58, %v3294_v59  ;;  %v3275_v28 = vld [vmem:[#allocation2 + $0x4] ss:$16 sm:$0x30] }
 0x32a   :  { %3192 = vmatpush1.bf16.msra.mxu1 %v11006_v50  ;;  %3233 = vmatpush1.bf16.msra.mxu0 %v11008_v3  ;;  %v3298_v50 = vld [vmem:[#allocation9 + $0x888] sm:$0xff] }
 0x32b   :  { %3193 = vmatprep.subr.bf16.mxu1 %v11015_v4  ;;  %3234 = vmatprep.subr.bf16.mxu0 %v11017_v5  ;;  %v3302_v3 = vld [vmem:[#allocation9 + $0x8a8] sm:$0xff]  ;;  %v11066_v4 = vcombine.low %v3289_v46, %v3293_v57  ;;  %v11068_v5 = vcombine.low %v3290_v58, %v3294_v59  ;;  %v3284_v46 = vld [vmem:[#allocation9 + $0x818] sm:$0xff]  ;;  %v11114_v59 = vcombine.low %v3337_v48, %v3341_v21  ;;  %v3335_v21 = vld [vmem:[#allocation9 + $0x9b0] sm:$0xff] }
 0x32c   :  { %v11077_v7 = vcombine.high %v3298_v50, %v3302_v3  ;;  %v3288_v57 = vld [vmem:[#allocation9 + $0x838] sm:$0xff] }
 0x32e   :  { %3194 = vmatpush1.bf16.msra.mxu1 %v11014_v10  ;;  %3235 = vmatpush1.bf16.msra.mxu0 %v11016_v11  ;;  %v3306_v10 = vld [vmem:[#allocation9 + $0x8c8] sm:$0xff] }
 0x32f   :  { %3195 = vmatprep.subr.bf16.mxu1 %v11023_v12  ;;  %3236 = vmatprep.subr.bf16.mxu0 %v11025_v13  ;;  %v3310_v11 = vld [vmem:[#allocation9 + $0x8e8] sm:$0xff]  ;;  %v11074_v12 = vcombine.low %v3297_v1, %v3301_v2  ;;  %v11083_v13 = vcombine.high %v3305_v8, %v3309_v9  ;;  %v3291_v1 = vld [vmem:[#allocation9 + $0x850] sm:$0xff] }
 0x330   :  { %v11085_v14 = vcombine.high %v3306_v10, %v3310_v11  ;;  %v3295_v2 = vld [vmem:[#allocation9 + $0x870] sm:$0xff] }
 0x332   :  { %3196 = vmatpush1.bf16.msra.mxu1 %v11022_v19  ;;  %3237 = vmatpush1.bf16.msra.mxu0 %v11024_v20  ;;  %v3318_v19 = vld [vmem:[#allocation9 + $0x928] sm:$0xff]  ;;  %v11082_v20 = vcombine.low %v3305_v8, %v3309_v9  ;;  %v3299_v9 = vld [vmem:[#allocation9 + $0x890] sm:$0xff] }
 0x333   :  { %3197 = vmatprep.subr.bf16.mxu1 %v11031_v22  ;;  %3238 = vmatprep.subr.bf16.mxu0 %v11033_v26  ;;  %v11084_v22 = vcombine.low %v3306_v10, %v3310_v11  ;;  %v11091_v26 = vcombine.high %v3313_v16, %v3317_v17  ;;  %v11093_v29 = vcombine.high %v3314_v18, %v3318_v19  ;;  %v3303_v10 = vld [vmem:[#allocation9 + $0x8b0] sm:$0xff]  ;;  %v3300_v11 = vld [vmem:[#allocation9 + $0x898] sm:$0xff] }
 0x336   :  { %3198 = vmatpush1.bf16.msra.mxu1 %v11030_v34  ;;  %3239 = vmatpush1.bf16.msra.mxu0 %v11032_v35  ;;  %v3326_v34 = vld [vmem:[#allocation9 + $0x968] sm:$0xff]  ;;  %v11090_v35 = vcombine.low %v3313_v16, %v3317_v17  ;;  %v3307_v17 = vld [vmem:[#allocation9 + $0x8d0] sm:$0xff] }
 0x337   :  { %3199 = vmatprep.subr.bf16.mxu1 %v11039_v37  ;;  %3240 = vmatprep.subr.bf16.mxu0 %v11041_v38  ;;  %v11092_v37 = vcombine.low %v3314_v18, %v3318_v19  ;;  %v11099_v38 = vcombine.high %v3321_v30, %v3325_v31  ;;  %v11101_v32 = vcombine.high %v3322_v33, %v3326_v34  ;;  %v3311_v18 = vld [vmem:[#allocation9 + $0x8f0] sm:$0xff]  ;;  %v3308_v19 = vld [vmem:[#allocation9 + $0x8d8] sm:$0xff] }
 0x33a   :  { %3200 = vmatpush1.bf16.msra.mxu1 %v11038_v42  ;;  %3241 = vmatpush1.bf16.msra.mxu0 %v11040_v43  ;;  %v3334_v42 = vld [vmem:[#allocation9 + $0x9a8] sm:$0xff]  ;;  %v11098_v43 = vcombine.low %v3321_v30, %v3325_v31  ;;  %v3315_v31 = vld [vmem:[#allocation9 + $0x910] sm:$0xff] }
 0x33b   :  { %3201 = vmatprep.subr.bf16.mxu1 %v11047_v44  ;;  %3242 = vmatprep.subr.bf16.mxu0 %v11049_v45  ;;  %v11100_v44 = vcombine.low %v3322_v33, %v3326_v34  ;;  %v11107_v45 = vcombine.high %v3329_v39, %v3333_v40  ;;  %v11109_v47 = vcombine.high %v3330_v41, %v3334_v42  ;;  %v3319_v33 = vld [vmem:[#allocation9 + $0x930] sm:$0xff]  ;;  %v3316_v34 = vld [vmem:[#allocation9 + $0x918] sm:$0xff] }
 0x33e   :  { %3202 = vmatpush1.bf16.msra.mxu1 %v11046_v23  ;;  %3243 = vmatpush1.bf16.msra.mxu0 %v11048_v24  ;;  %v3338_v23 = vld [vmem:[#allocation9 + $0x9c8] sm:$0xff] }
 0x33f   :  { %3203 = vmatprep.subr.bf16.mxu1 %v11055_v36  ;;  %3244 = vmatprep.subr.bf16.mxu0 %v11057_v25  ;;  %v3342_v24 = vld [vmem:[#allocation9 + $0x9e8] sm:$0xff]  ;;  %v11106_v36 = vcombine.low %v3329_v39, %v3333_v40  ;;  %v11108_v25 = vcombine.low %v3330_v41, %v3334_v42  ;;  %v3323_v40 = vld [vmem:[#allocation9 + $0x950] sm:$0xff]  ;;  %v3324_v42 = vld [vmem:[#allocation9 + $0x958] sm:$0xff] }
 0x340   :  { %v11117_v52 = vcombine.high %v3338_v23, %v3342_v24  ;;  %v3327_v41 = vld [vmem:[#allocation9 + $0x970] sm:$0xff] }
 0x342   :  { %3204 = vmatpush1.bf16.msra.mxu1 %v11054_v53  ;;  %3245 = vmatpush1.bf16.msra.mxu0 %v11056_v54  ;;  %v3274_v53 = vor.u32 %v3273_v49, %v3272_v27  ;;  %v3277_v54 = vld [vmem:[#allocation2 + $0x4] ss:$16 sm:$0xc0] }
 0x343   :  { %3665 = vmatprep.subr.bf16.mxu1 %v11059_v55  ;;  %3706 = vmatprep.subr.bf16.mxu0 %v11061_v56  ;;  %v3283_v55 = vld [vmem:[#allocation9 + $0x810] sm:$0xff] }
 0x344   :  { %v3287_v56 = vld [vmem:[#allocation9 + $0x830] sm:$0xff]  ;;  %v3276_v58 = vor.u32 %v3275_v28, %v3274_v53  ;;  %v3340_v53 = vld [vmem:[#allocation9 + $0x9d8] sm:$0xff] }
 0x345   :  { %3222 = vmatmul.mubr.bf16.vlgmr.msra.gmra.mrb[20].mxu1 %v12918_v60  ;;  %3263 = vmatmul.mubr.bf16.vlgmr.msra.gmra.mrb[36].mxu0 %v12918_v60  ;;  %v11076_v60 = vcombine.low %v3298_v50, %v3302_v3  ;;  %v3292_v50 = vld [vmem:[#allocation9 + $0x858] sm:$0xff]  ;;  %v3331_v49 = vld [vmem:[#allocation9 + $0x990] sm:$0xff] }
 0x346   :  { %3666 = vmatpush1.bf16.msra.mxu1 %v11058_v61  ;;  %3707 = vmatpush1.bf16.msra.mxu0 %v11060_v62  ;;  %v11116_v61 = vcombine.low %v3338_v23, %v3342_v24  ;;  %v3278_v62 = vor.u32 %v3277_v54, %v3276_v58  ;;  %v3296_v3 = vld [vmem:[#allocation9 + $0x878] sm:$0xff]  ;;  %v11111_v27 = vcombine.high %v3331_v49, %v3335_v21  ;;  %v3847_v58 = vld [vmem:[#allocation9 + $0xa00] sm:$0xff] }
 0x347   :  { %3667 = vmatprep.subr.bf16.mxu1 %v11067_v63  ;;  %3708 = vmatprep.subr.bf16.mxu0 %v11069_v0  ;;  %v11063_v63 = vcombine.high %v3283_v55, %v3287_v56  ;;  %v11065_v0 = vcombine.high %v3284_v46, %v3288_v57  ;;  %v11073_v8 = vcombine.high %v3292_v50, %v3296_v3  ;;  %v3332_v23 = vld [vmem:[#allocation9 + $0x998] sm:$0xff] }
 0x348   :  { %3697 = vmatprep.mubr.bf16.mxu1 %v12591_v15  ;;  %3738 = vmatprep.mubr.bf16.mxu0 %v12591_v15  ;;  %v3336_v24 = vld [vmem:[#allocation9 + $0x9b8] sm:$0xff] }
 0x349   :  { %v11113_v28 = vcombine.high %v3332_v23, %v3336_v24  ;;  %v3344_v54 = vld [vmem:[#allocation9 + $0x9f8] sm:$0xff] }
 0x34a   :  { %3668 = vmatpush1.bf16.msra.mxu1 %v11066_v4  ;;  %3709 = vmatpush1.bf16.msra.mxu0 %v11068_v5  ;;  %v11062_v4 = vcombine.low %v3283_v55, %v3287_v56  ;;  %v11064_v5 = vcombine.low %v3284_v46, %v3288_v57  ;;  %v11110_v55 = vcombine.low %v3331_v49, %v3335_v21  ;;  %v3895_v21 = vld [vmem:[#allocation9 + $0xb80] sm:$0xff] }
 0x34b   :  { %3669 = vmatprep.subr.bf16.mxu1 %v11075_v6  ;;  %3710 = vmatprep.subr.bf16.mxu0 %v11077_v7  ;;  %v12928_v6 = vpack.c.bf16 %v3278_v62, %v3278_v62  ;;  %v11071_v7 = vcombine.high %v3291_v1, %v3295_v2  ;;  %v11112_v56 = vcombine.low %v3332_v23, %v3336_v24  ;;  %v3852_v62 = vld [vmem:[#allocation9 + $0xa28] sm:$0xff]  ;;  %v3899_v23 = vld [vmem:[#allocation9 + $0xba0] sm:$0xff] }
 0x34c   :  { %v11121_v57 = vcombine.high %v3340_v53, %v3344_v54  ;;  %v3896_v24 = vld [vmem:[#allocation9 + $0xb88] sm:$0xff] }
 0x34e   :  { %3670 = vmatpush1.bf16.msra.mxu1 %v11074_v12  ;;  %3711 = vmatpush1.bf16.msra.mxu0 %v11076_v60  ;;  %v3304_v12 = vld [vmem:[#allocation9 + $0x8b8] sm:$0xff]  ;;  %v11070_v60 = vcombine.low %v3291_v1, %v3295_v2 }
 0x34f   :  { %3671 = vmatprep.subr.bf16.mxu1 %v11083_v13  ;;  %3712 = vmatprep.subr.bf16.mxu0 %v11085_v14  ;;  %v11072_v13 = vcombine.low %v3292_v50, %v3296_v3  ;;  %v11079_v14 = vcombine.high %v3299_v9, %v3303_v10  ;;  %v11081_v16 = vcombine.high %v3300_v11, %v3304_v12  ;;  %v3855_v50 = vld [vmem:[#allocation9 + $0xa40] sm:$0xff] }
 0x350   :  { %v3859_v3 = vld [vmem:[#allocation9 + $0xa60] sm:$0xff] }
 0x352   :  { %3672 = vmatpush1.bf16.msra.mxu1 %v11082_v20  ;;  %3713 = vmatpush1.bf16.msra.mxu0 %v11084_v22  ;;  %v3312_v20 = vld [vmem:[#allocation9 + $0x8f8] sm:$0xff]  ;;  %v11078_v22 = vcombine.low %v3299_v9, %v3303_v10  ;;  %v11131_v9 = vcombine.high %v3855_v50, %v3859_v3 }
 0x353   :  { %3673 = vmatprep.subr.bf16.mxu1 %v11091_v26  ;;  %3714 = vmatprep.subr.bf16.mxu0 %v11093_v29  ;;  %v11080_v26 = vcombine.low %v3300_v11, %v3304_v12  ;;  %v11087_v29 = vcombine.high %v3307_v17, %v3311_v18  ;;  %v11089_v30 = vcombine.high %v3308_v19, %v3312_v20  ;;  %v3863_v11 = vld [vmem:[#allocation9 + $0xa80] sm:$0xff] }
 0x354   :  { %v3867_v12 = vld [vmem:[#allocation9 + $0xaa0] sm:$0xff] }
 0x356   :  { %3674 = vmatpush1.bf16.msra.mxu1 %v11090_v35  ;;  %3715 = vmatpush1.bf16.msra.mxu0 %v11092_v37  ;;  %v3320_v35 = vld [vmem:[#allocation9 + $0x938] sm:$0xff]  ;;  %v11086_v37 = vcombine.low %v3307_v17, %v3311_v18  ;;  %v11139_v17 = vcombine.high %v3863_v11, %v3867_v12 }
 0x357   :  { %3675 = vmatprep.subr.bf16.mxu1 %v11099_v38  ;;  %3716 = vmatprep.subr.bf16.mxu0 %v11101_v32  ;;  %v11088_v38 = vcombine.low %v3308_v19, %v3312_v20  ;;  %v11095_v32 = vcombine.high %v3315_v31, %v3319_v33  ;;  %v11097_v39 = vcombine.high %v3316_v34, %v3320_v35  ;;  %v3871_v19 = vld [vmem:[#allocation9 + $0xac0] sm:$0xff] }
 0x358   :  { %v3875_v20 = vld [vmem:[#allocation9 + $0xae0] sm:$0xff] }
 0x35a   :  { %3676 = vmatpush1.bf16.msra.mxu1 %v11098_v43  ;;  %3717 = vmatpush1.bf16.msra.mxu0 %v11100_v44  ;;  %v3328_v43 = vld [vmem:[#allocation9 + $0x978] sm:$0xff]  ;;  %v11094_v44 = vcombine.low %v3315_v31, %v3319_v33  ;;  %v3879_v33 = vld [vmem:[#allocation9 + $0xb00] sm:$0xff] }
 0x35b   :  { %3677 = vmatprep.subr.bf16.mxu1 %v11107_v45  ;;  %3718 = vmatprep.subr.bf16.mxu0 %v11109_v47  ;;  %v11096_v45 = vcombine.low %v3316_v34, %v3320_v35  ;;  %v11103_v47 = vcombine.high %v3323_v40, %v3327_v41  ;;  %v11105_v48 = vcombine.high %v3324_v42, %v3328_v43  ;;  %v3883_v34 = vld [vmem:[#allocation9 + $0xb20] sm:$0xff]  ;;  %v3880_v35 = vld [vmem:[#allocation9 + $0xb08] sm:$0xff] }
 0x35e   :  { %3678 = vmatpush1.bf16.msra.mxu1 %v11106_v36  ;;  %3719 = vmatpush1.bf16.msra.mxu0 %v11108_v25  ;;  %v11102_v36 = vcombine.low %v3323_v40, %v3327_v41  ;;  %v11104_v25 = vcombine.low %v3324_v42, %v3328_v43  ;;  %v3887_v41 = vld [vmem:[#allocation9 + $0xb40] sm:$0xff]  ;;  %v3888_v43 = vld [vmem:[#allocation9 + $0xb48] sm:$0xff] }
 0x35f   :  { %3679 = vmatprep.subr.bf16.mxu1 %v11115_v51  ;;  %3720 = vmatprep.subr.bf16.mxu0 %v11117_v52  ;;  %v3339_v51 = vld [vmem:[#allocation9 + $0x9d0] sm:$0xff]  ;;  %v3891_v42 = vld [vmem:[#allocation9 + $0xb60] sm:$0xff] }
 0x360   :  { %v3343_v52 = vld [vmem:[#allocation9 + $0x9f0] sm:$0xff] }
 0x361   :  { %v11119_v46 = vcombine.high %v3339_v51, %v3343_v52 }
 0x362   :  { %3680 = vmatpush1.bf16.msra.mxu1 %v11114_v59  ;;  %3721 = vmatpush1.bf16.msra.mxu0 %v11116_v61  ;;  %v3851_v59 = vld [vmem:[#allocation9 + $0xa20] sm:$0xff]  ;;  %v3848_v61 = vld [vmem:[#allocation9 + $0xa08] sm:$0xff] }
 0x363   :  { %3747 = vmatprep.subr.bf16.mxu1 %v11063_v63  ;;  %3788 = vmatprep.subr.bf16.mxu0 %v11065_v0  ;;  %v11118_v63 = vcombine.low %v3339_v51, %v3343_v52  ;;  %v11120_v0 = vcombine.low %v3340_v53, %v3344_v54  ;;  %v11123_v1 = vcombine.high %v3847_v58, %v3851_v59  ;;  %v3903_v52 = vld [vmem:[#allocation9 + $0xbc0] sm:$0xff] }
 0x364   :  { %v11125_v2 = vcombine.high %v3848_v61, %v3852_v62  ;;  %v3839_v53 = vld [vmem:[#allocation2 + $0x5] ss:$16 sm:$0xc] }
 0x365   :  { %3698 = vmatmul.mubr.bf16.vlgmr.msra.gmra.mrb[16].mxu1 %v12928_v6  ;;  %3739 = vmatmul.mubr.bf16.vlgmr.msra.gmra.mrb[32].mxu0 %v12928_v6  ;;  %v3907_v54 = vld [vmem:[#allocation9 + $0xbe0] sm:$0xff] }
 0x366   :  { %3748 = vmatpush1.bf16.msra.mxu1 %v11062_v4  ;;  %3789 = vmatpush1.bf16.msra.mxu0 %v11064_v5  ;;  %v3856_v4 = vld [vmem:[#allocation9 + $0xa48] sm:$0xff] }
 0x367   :  { %3749 = vmatprep.subr.bf16.mxu1 %v11071_v7  ;;  %3790 = vmatprep.subr.bf16.mxu0 %v11073_v8  ;;  %v3860_v5 = vld [vmem:[#allocation9 + $0xa68] sm:$0xff]  ;;  %v11122_v7 = vcombine.low %v3847_v58, %v3851_v59  ;;  %v11124_v8 = vcombine.low %v3848_v61, %v3852_v62  ;;  %v3838_v58 = vld [vmem:[#allocation2 + $0x5] ss:$16 sm:$0x3]  ;;  %v11179_v61 = vcombine.high %v3903_v52, %v3907_v54 }
 0x368   :  { %3779 = vmatprep.mubr.bf16.mxu1 %v12591_v15  ;;  %3820 = vmatprep.mubr.bf16.mxu0 %v12591_v15  ;;  %v11133_v10 = vcombine.high %v3856_v4, %v3860_v5  ;;  %v3841_v59 = vld [vmem:[#allocation2 + $0x5] ss:$16 sm:$0x30] }
 0x36a   :  { %3750 = vmatpush1.bf16.msra.mxu1 %v11070_v60  ;;  %3791 = vmatpush1.bf16.msra.mxu0 %v11072_v13  ;;  %v3864_v60 = vld [vmem:[#allocation9 + $0xa88] sm:$0xff] }
 0x36b   :  { %3751 = vmatprep.subr.bf16.mxu1 %v11079_v14  ;;  %3792 = vmatprep.subr.bf16.mxu0 %v11081_v16  ;;  %v3868_v13 = vld [vmem:[#allocation9 + $0xaa8] sm:$0xff]  ;;  %v11130_v14 = vcombine.low %v3855_v50, %v3859_v3  ;;  %v11132_v16 = vcombine.low %v3856_v4, %v3860_v5  ;;  %v3850_v50 = vld [vmem:[#allocation9 + $0xa18] sm:$0xff]  ;;  %v11178_v5 = vcombine.low %v3903_v52, %v3907_v54  ;;  %v3901_v54 = vld [vmem:[#allocation9 + $0xbb0] sm:$0xff] }
 0x36c   :  { %v11141_v18 = vcombine.high %v3864_v60, %v3868_v13  ;;  %v3854_v3 = vld [vmem:[#allocation9 + $0xa38] sm:$0xff] }
 0x36e   :  { %3752 = vmatpush1.bf16.msra.mxu1 %v11078_v22  ;;  %3793 = vmatpush1.bf16.msra.mxu0 %v11080_v26  ;;  %v3872_v22 = vld [vmem:[#allocation9 + $0xac8] sm:$0xff] }
 0x36f   :  { %3753 = vmatprep.subr.bf16.mxu1 %v11087_v29  ;;  %3794 = vmatprep.subr.bf16.mxu0 %v11089_v30  ;;  %v3876_v26 = vld [vmem:[#allocation9 + $0xae8] sm:$0xff]  ;;  %v11138_v29 = vcombine.low %v3863_v11, %v3867_v12  ;;  %v11147_v30 = vcombine.high %v3871_v19, %v3875_v20  ;;  %v3857_v11 = vld [vmem:[#allocation9 + $0xa50] sm:$0xff] }
 0x370   :  { %v11149_v31 = vcombine.high %v3872_v22, %v3876_v26  ;;  %v3861_v12 = vld [vmem:[#allocation9 + $0xa70] sm:$0xff] }
 0x372   :  { %3754 = vmatpush1.bf16.msra.mxu1 %v11086_v37  ;;  %3795 = vmatpush1.bf16.msra.mxu0 %v11088_v38  ;;  %v3884_v37 = vld [vmem:[#allocation9 + $0xb28] sm:$0xff]  ;;  %v11146_v38 = vcombine.low %v3871_v19, %v3875_v20  ;;  %v3865_v20 = vld [vmem:[#allocation9 + $0xa90] sm:$0xff] }
 0x373   :  { %3755 = vmatprep.subr.bf16.mxu1 %v11095_v32  ;;  %3796 = vmatprep.subr.bf16.mxu0 %v11097_v39  ;;  %v11148_v32 = vcombine.low %v3872_v22, %v3876_v26  ;;  %v11155_v39 = vcombine.high %v3879_v33, %v3883_v34  ;;  %v11157_v40 = vcombine.high %v3880_v35, %v3884_v37  ;;  %v3869_v22 = vld [vmem:[#allocation9 + $0xab0] sm:$0xff]  ;;  %v3866_v26 = vld [vmem:[#allocation9 + $0xa98] sm:$0xff] }
 0x376   :  { %3756 = vmatpush1.bf16.msra.mxu1 %v11094_v44  ;;  %3797 = vmatpush1.bf16.msra.mxu0 %v11096_v45  ;;  %v3892_v44 = vld [vmem:[#allocation9 + $0xb68] sm:$0xff]  ;;  %v11154_v45 = vcombine.low %v3879_v33, %v3883_v34  ;;  %v3873_v34 = vld [vmem:[#allocation9 + $0xad0] sm:$0xff] }
 0x377   :  { %3757 = vmatprep.subr.bf16.mxu1 %v11103_v47  ;;  %3798 = vmatprep.subr.bf16.mxu0 %v11105_v48  ;;  %v11156_v47 = vcombine.low %v3880_v35, %v3884_v37  ;;  %v11163_v48 = vcombine.high %v3887_v41, %v3891_v42  ;;  %v11165_v49 = vcombine.high %v3888_v43, %v3892_v44  ;;  %v3877_v35 = vld [vmem:[#allocation9 + $0xaf0] sm:$0xff]  ;;  %v3874_v37 = vld [vmem:[#allocation9 + $0xad8] sm:$0xff] }
 0x37a   :  { %3758 = vmatpush1.bf16.msra.mxu1 %v11102_v36  ;;  %3799 = vmatpush1.bf16.msra.mxu0 %v11104_v25  ;;  %v3900_v36 = vld [vmem:[#allocation9 + $0xba8] sm:$0xff]  ;;  %v11162_v25 = vcombine.low %v3887_v41, %v3891_v42  ;;  %v3881_v42 = vld [vmem:[#allocation9 + $0xb10] sm:$0xff] }
 0x37b   :  { %3759 = vmatprep.subr.bf16.mxu1 %v11111_v27  ;;  %3800 = vmatprep.subr.bf16.mxu0 %v11113_v28  ;;  %v11164_v27 = vcombine.low %v3888_v43, %v3892_v44  ;;  %v11171_v28 = vcombine.high %v3895_v21, %v3899_v23  ;;  %v11173_v51 = vcombine.high %v3896_v24, %v3900_v36  ;;  %v3885_v43 = vld [vmem:[#allocation9 + $0xb30] sm:$0xff]  ;;  %v3882_v44 = vld [vmem:[#allocation9 + $0xb18] sm:$0xff] }
 0x37e   :  { %3760 = vmatpush1.bf16.msra.mxu1 %v11110_v55  ;;  %3801 = vmatpush1.bf16.msra.mxu0 %v11112_v56  ;;  %v3904_v55 = vld [vmem:[#allocation9 + $0xbc8] sm:$0xff] }
 0x37f   :  { %3761 = vmatprep.subr.bf16.mxu1 %v11119_v46  ;;  %3802 = vmatprep.subr.bf16.mxu0 %v11121_v57  ;;  %v3908_v56 = vld [vmem:[#allocation9 + $0xbe8] sm:$0xff]  ;;  %v11170_v46 = vcombine.low %v3895_v21, %v3899_v23  ;;  %v11172_v57 = vcombine.low %v3896_v24, %v3900_v36  ;;  %v3889_v23 = vld [vmem:[#allocation9 + $0xb50] sm:$0xff]  ;;  %v3890_v36 = vld [vmem:[#allocation9 + $0xb58] sm:$0xff] }
 0x380   :  { %v11181_v62 = vcombine.high %v3904_v55, %v3908_v56  ;;  %v3893_v24 = vld [vmem:[#allocation9 + $0xb70] sm:$0xff] }
 0x382   :  { %3762 = vmatpush1.bf16.msra.mxu1 %v11118_v63  ;;  %3803 = vmatpush1.bf16.msra.mxu0 %v11120_v0  ;;  %v3840_v63 = vor.u32 %v3839_v53, %v3838_v58  ;;  %v3843_v0 = vld [vmem:[#allocation2 + $0x5] ss:$16 sm:$0xc0] }
 0x383   :  { %4231 = vmatprep.subr.bf16.mxu1 %v11123_v1  ;;  %4272 = vmatprep.subr.bf16.mxu0 %v11125_v2  ;;  %v3849_v1 = vld [vmem:[#allocation9 + $0xa10] sm:$0xff] }
 0x384   :  { %v3853_v2 = vld [vmem:[#allocation9 + $0xa30] sm:$0xff]  ;;  %v3842_v4 = vor.u32 %v3841_v59, %v3840_v63  ;;  %v3906_v63 = vld [vmem:[#allocation9 + $0xbd8] sm:$0xff] }
 0x385   :  { %3780 = vmatmul.mubr.bf16.vlgmr.msra.gmra.mrb[20].mxu1 %v12928_v6  ;;  %3821 = vmatmul.mubr.bf16.vlgmr.msra.gmra.mrb[36].mxu0 %v12928_v6  ;;  %v11140_v6 = vcombine.low %v3864_v60, %v3868_v13  ;;  %v3858_v60 = vld [vmem:[#allocation9 + $0xa58] sm:$0xff]  ;;  %v3897_v53 = vld [vmem:[#allocation9 + $0xb90] sm:$0xff] }
 0x386   :  { %4232 = vmatpush1.bf16.msra.mxu1 %v11122_v7  ;;  %4273 = vmatpush1.bf16.msra.mxu0 %v11124_v8  ;;  %v11180_v7 = vcombine.low %v3904_v55, %v3908_v56  ;;  %v3844_v8 = vor.u32 %v3843_v0, %v3842_v4  ;;  %v3862_v13 = vld [vmem:[#allocation9 + $0xa78] sm:$0xff]  ;;  %v11175_v58 = vcombine.high %v3897_v53, %v3901_v54  ;;  %v4413_v4 = vld [vmem:[#allocation9 + $0xc00] sm:$0xff] }
 0x387   :  { %4233 = vmatprep.subr.bf16.mxu1 %v11131_v9  ;;  %4274 = vmatprep.subr.bf16.mxu0 %v11133_v10  ;;  %v11127_v9 = vcombine.high %v3849_v1, %v3853_v2  ;;  %v11129_v10 = vcombine.high %v3850_v50, %v3854_v3  ;;  %v11137_v19 = vcombine.high %v3858_v60, %v3862_v13  ;;  %v3898_v55 = vld [vmem:[#allocation9 + $0xb98] sm:$0xff] }
 0x388   :  { %4263 = vmatprep.mubr.bf16.mxu1 %v12591_v15  ;;  %4304 = vmatprep.mubr.bf16.mxu0 %v12591_v15  ;;  %v3902_v56 = vld [vmem:[#allocation9 + $0xbb8] sm:$0xff] }
 0x389   :  { %v11177_v59 = vcombine.high %v3898_v55, %v3902_v56  ;;  %v3910_v0 = vld [vmem:[#allocation9 + $0xbf8] sm:$0xff] }
 0x38a   :  { %4234 = vmatpush1.bf16.msra.mxu1 %v11130_v14  ;;  %4275 = vmatpush1.bf16.msra.mxu0 %v11132_v16  ;;  %v11126_v14 = vcombine.low %v3849_v1, %v3853_v2  ;;  %v11128_v16 = vcombine.low %v3850_v50, %v3854_v3  ;;  %v11174_v1 = vcombine.low %v3897_v53, %v3901_v54  ;;  %v4461_v54 = vld [vmem:[#allocation9 + $0xd80] sm:$0xff] }
 0x38b   :  { %4235 = vmatprep.subr.bf16.mxu1 %v11139_v17  ;;  %4276 = vmatprep.subr.bf16.mxu0 %v11141_v18  ;;  %v12938_v17 = vpack.c.bf16 %v3844_v8, %v3844_v8  ;;  %v11135_v18 = vcombine.high %v3857_v11, %v3861_v12  ;;  %v11176_v2 = vcombine.low %v3898_v55, %v3902_v56  ;;  %v4418_v8 = vld [vmem:[#allocation9 + $0xc28] sm:$0xff]  ;;  %v4465_v55 = vld [vmem:[#allocation9 + $0xda0] sm:$0xff] }
 0x38c   :  { %v11185_v3 = vcombine.high %v3906_v63, %v3910_v0  ;;  %v4462_v56 = vld [vmem:[#allocation9 + $0xd88] sm:$0xff] }
 0x38e   :  { %4236 = vmatpush1.bf16.msra.mxu1 %v11138_v29  ;;  %4277 = vmatpush1.bf16.msra.mxu0 %v11140_v6  ;;  %v3870_v29 = vld [vmem:[#allocation9 + $0xab8] sm:$0xff]  ;;  %v11134_v6 = vcombine.low %v3857_v11, %v3861_v12 }
 0x38f   :  { %4237 = vmatprep.subr.bf16.mxu1 %v11147_v30  ;;  %4278 = vmatprep.subr.bf16.mxu0 %v11149_v31  ;;  %v11136_v30 = vcombine.low %v3858_v60, %v3862_v13  ;;  %v11143_v31 = vcombine.high %v3865_v20, %v3869_v22  ;;  %v11145_v33 = vcombine.high %v3866_v26, %v3870_v29  ;;  %v4421_v60 = vld [vmem:[#allocation9 + $0xc40] sm:$0xff] }
 0x390   :  { %v4425_v13 = vld [vmem:[#allocation9 + $0xc60] sm:$0xff] }
 0x392   :  { %4238 = vmatpush1.bf16.msra.mxu1 %v11146_v38  ;;  %4279 = vmatpush1.bf16.msra.mxu0 %v11148_v32  ;;  %v3878_v38 = vld [vmem:[#allocation9 + $0xaf8] sm:$0xff]  ;;  %v11142_v32 = vcombine.low %v3865_v20, %v3869_v22  ;;  %v11195_v20 = vcombine.high %v4421_v60, %v4425_v13 }
 0x393   :  { %4239 = vmatprep.subr.bf16.mxu1 %v11155_v39  ;;  %4280 = vmatprep.subr.bf16.mxu0 %v11157_v40  ;;  %v11144_v39 = vcombine.low %v3866_v26, %v3870_v29  ;;  %v11151_v40 = vcombine.high %v3873_v34, %v3877_v35  ;;  %v11153_v41 = vcombine.high %v3874_v37, %v3878_v38  ;;  %v4429_v26 = vld [vmem:[#allocation9 + $0xc80] sm:$0xff] }
 0x394   :  { %v4433_v29 = vld [vmem:[#allocation9 + $0xca0] sm:$0xff] }
 0x396   :  { %4240 = vmatpush1.bf16.msra.mxu1 %v11154_v45  ;;  %4281 = vmatpush1.bf16.msra.mxu0 %v11156_v47  ;;  %v3886_v45 = vld [vmem:[#allocation9 + $0xb38] sm:$0xff]  ;;  %v11150_v47 = vcombine.low %v3873_v34, %v3877_v35  ;;  %v11203_v34 = vcombine.high %v4429_v26, %v4433_v29 }
 0x397   :  { %4241 = vmatprep.subr.bf16.mxu1 %v11163_v48  ;;  %4282 = vmatprep.subr.bf16.mxu0 %v11165_v49  ;;  %v11152_v48 = vcombine.low %v3874_v37, %v3878_v38  ;;  %v11159_v49 = vcombine.high %v3881_v42, %v3885_v43  ;;  %v11161_v21 = vcombine.high %v3882_v44, %v3886_v45  ;;  %v4437_v37 = vld [vmem:[#allocation9 + $0xcc0] sm:$0xff] }
 0x398   :  { %v4441_v38 = vld [vmem:[#allocation9 + $0xce0] sm:$0xff] }
 0x39a   :  { %4242 = vmatpush1.bf16.msra.mxu1 %v11162_v25  ;;  %4283 = vmatpush1.bf16.msra.mxu0 %v11164_v27  ;;  %v3894_v25 = vld [vmem:[#allocation9 + $0xb78] sm:$0xff]  ;;  %v11158_v27 = vcombine.low %v3881_v42, %v3885_v43  ;;  %v4445_v43 = vld [vmem:[#allocation9 + $0xd00] sm:$0xff] }
 0x39b   :  { %4243 = vmatprep.subr.bf16.mxu1 %v11171_v28  ;;  %4284 = vmatprep.subr.bf16.mxu0 %v11173_v51  ;;  %v11160_v28 = vcombine.low %v3882_v44, %v3886_v45  ;;  %v11167_v51 = vcombine.high %v3889_v23, %v3893_v24  ;;  %v11169_v52 = vcombine.high %v3890_v36, %v3894_v25  ;;  %v4449_v44 = vld [vmem:[#allocation9 + $0xd20] sm:$0xff]  ;;  %v4446_v45 = vld [vmem:[#allocation9 + $0xd08] sm:$0xff] }
 0x39e   :  { %4244 = vmatpush1.bf16.msra.mxu1 %v11170_v46  ;;  %4285 = vmatpush1.bf16.msra.mxu0 %v11172_v57  ;;  %v11166_v46 = vcombine.low %v3889_v23, %v3893_v24  ;;  %v11168_v57 = vcombine.low %v3890_v36, %v3894_v25  ;;  %v4453_v24 = vld [vmem:[#allocation9 + $0xd40] sm:$0xff]  ;;  %v4454_v25 = vld [vmem:[#allocation9 + $0xd48] sm:$0xff] }
 0x39f   :  { %4245 = vmatprep.subr.bf16.mxu1 %v11179_v61  ;;  %4286 = vmatprep.subr.bf16.mxu0 %v11181_v62  ;;  %v3905_v61 = vld [vmem:[#allocation9 + $0xbd0] sm:$0xff]  ;;  %v4457_v36 = vld [vmem:[#allocation9 + $0xd60] sm:$0xff] }
 0x3a0   :  { %v3909_v62 = vld [vmem:[#allocation9 + $0xbf0] sm:$0xff] }
 0x3a1   :  { %v11183_v50 = vcombine.high %v3905_v61, %v3909_v62 }
 0x3a2   :  { %4246 = vmatpush1.bf16.msra.mxu1 %v11178_v5  ;;  %4287 = vmatpush1.bf16.msra.mxu0 %v11180_v7  ;;  %v4417_v5 = vld [vmem:[#allocation9 + $0xc20] sm:$0xff]  ;;  %v4414_v7 = vld [vmem:[#allocation9 + $0xc08] sm:$0xff] }
 0x3a3   :  { %4313 = vmatprep.subr.bf16.mxu1 %v11127_v9  ;;  %4354 = vmatprep.subr.bf16.mxu0 %v11129_v10  ;;  %v11182_v9 = vcombine.low %v3905_v61, %v3909_v62  ;;  %v11184_v10 = vcombine.low %v3906_v63, %v3910_v0  ;;  %v11187_v11 = vcombine.high %v4413_v4, %v4417_v5  ;;  %v4469_v62 = vld [vmem:[#allocation9 + $0xdc0] sm:$0xff] }
 0x3a4   :  { %v11189_v12 = vcombine.high %v4414_v7, %v4418_v8  ;;  %v4405_v63 = vld [vmem:[#allocation2 + $0x6] ss:$16 sm:$0xc] }
 0x3a5   :  { %4264 = vmatmul.mubr.bf16.vlgmr.msra.gmra.mrb[16].mxu1 %v12938_v17  ;;  %4305 = vmatmul.mubr.bf16.vlgmr.msra.gmra.mrb[32].mxu0 %v12938_v17  ;;  %v4473_v0 = vld [vmem:[#allocation9 + $0xde0] sm:$0xff] }
 0x3a6   :  { %4314 = vmatpush1.bf16.msra.mxu1 %v11126_v14  ;;  %4355 = vmatpush1.bf16.msra.mxu0 %v11128_v16  ;;  %v4422_v14 = vld [vmem:[#allocation9 + $0xc48] sm:$0xff] }
 0x3a7   :  { %4315 = vmatprep.subr.bf16.mxu1 %v11135_v18  ;;  %4356 = vmatprep.subr.bf16.mxu0 %v11137_v19  ;;  %v4426_v16 = vld [vmem:[#allocation9 + $0xc68] sm:$0xff]  ;;  %v11186_v18 = vcombine.low %v4413_v4, %v4417_v5  ;;  %v11188_v19 = vcombine.low %v4414_v7, %v4418_v8  ;;  %v4404_v4 = vld [vmem:[#allocation2 + $0x6] ss:$16 sm:$0x3]  ;;  %v11243_v7 = vcombine.high %v4469_v62, %v4473_v0 }
 0x3a8   :  { %4345 = vmatprep.mubr.bf16.mxu1 %v12591_v15  ;;  %4386 = vmatprep.mubr.bf16.mxu0 %v12591_v15  ;;  %v11197_v22 = vcombine.high %v4422_v14, %v4426_v16  ;;  %v4407_v5 = vld [vmem:[#allocation2 + $0x6] ss:$16 sm:$0x30] }
 0x3aa   :  { %4316 = vmatpush1.bf16.msra.mxu1 %v11134_v6  ;;  %4357 = vmatpush1.bf16.msra.mxu0 %v11136_v30  ;;  %v4430_v6 = vld [vmem:[#allocation9 + $0xc88] sm:$0xff] }
 0x3ab   :  { %4317 = vmatprep.subr.bf16.mxu1 %v11143_v31  ;;  %4358 = vmatprep.subr.bf16.mxu0 %v11145_v33  ;;  %v4434_v30 = vld [vmem:[#allocation9 + $0xca8] sm:$0xff]  ;;  %v11194_v31 = vcombine.low %v4421_v60, %v4425_v13  ;;  %v11196_v33 = vcombine.low %v4422_v14, %v4426_v16  ;;  %v4416_v60 = vld [vmem:[#allocation9 + $0xc18] sm:$0xff]  ;;  %v11242_v16 = vcombine.low %v4469_v62, %v4473_v0  ;;  %v4467_v0 = vld [vmem:[#allocation9 + $0xdb0] sm:$0xff] }
 0x3ac   :  { %v11205_v35 = vcombine.high %v4430_v6, %v4434_v30  ;;  %v4420_v13 = vld [vmem:[#allocation9 + $0xc38] sm:$0xff] }
 0x3ae   :  { %4318 = vmatpush1.bf16.msra.mxu1 %v11142_v32  ;;  %4359 = vmatpush1.bf16.msra.mxu0 %v11144_v39  ;;  %v4438_v32 = vld [vmem:[#allocation9 + $0xcc8] sm:$0xff] }
 0x3af   :  { %4319 = vmatprep.subr.bf16.mxu1 %v11151_v40  ;;  %4360 = vmatprep.subr.bf16.mxu0 %v11153_v41  ;;  %v4442_v39 = vld [vmem:[#allocation9 + $0xce8] sm:$0xff]  ;;  %v11202_v40 = vcombine.low %v4429_v26, %v4433_v29  ;;  %v11211_v41 = vcombine.high %v4437_v37, %v4441_v38  ;;  %v4423_v26 = vld [vmem:[#allocation9 + $0xc50] sm:$0xff] }
 0x3b0   :  { %v11213_v42 = vcombine.high %v4438_v32, %v4442_v39  ;;  %v4427_v29 = vld [vmem:[#allocation9 + $0xc70] sm:$0xff] }
 0x3b2   :  { %4320 = vmatpush1.bf16.msra.mxu1 %v11150_v47  ;;  %4361 = vmatpush1.bf16.msra.mxu0 %v11152_v48  ;;  %v4450_v47 = vld [vmem:[#allocation9 + $0xd28] sm:$0xff]  ;;  %v11210_v48 = vcombine.low %v4437_v37, %v4441_v38  ;;  %v4431_v38 = vld [vmem:[#allocation9 + $0xc90] sm:$0xff] }
 0x3b3   :  { %4321 = vmatprep.subr.bf16.mxu1 %v11159_v49  ;;  %4362 = vmatprep.subr.bf16.mxu0 %v11161_v21  ;;  %v11212_v49 = vcombine.low %v4438_v32, %v4442_v39  ;;  %v11219_v21 = vcombine.high %v4445_v43, %v4449_v44  ;;  %v11221_v23 = vcombine.high %v4446_v45, %v4450_v47  ;;  %v4435_v32 = vld [vmem:[#allocation9 + $0xcb0] sm:$0xff]  ;;  %v4432_v39 = vld [vmem:[#allocation9 + $0xc98] sm:$0xff] }
 0x3b6   :  { %4322 = vmatpush1.bf16.msra.mxu1 %v11158_v27  ;;  %4363 = vmatpush1.bf16.msra.mxu0 %v11160_v28  ;;  %v4458_v27 = vld [vmem:[#allocation9 + $0xd68] sm:$0xff]  ;;  %v11218_v28 = vcombine.low %v4445_v43, %v4449_v44  ;;  %v4439_v44 = vld [vmem:[#allocation9 + $0xcd0] sm:$0xff] }
 0x3b7   :  { %4323 = vmatprep.subr.bf16.mxu1 %v11167_v51  ;;  %4364 = vmatprep.subr.bf16.mxu0 %v11169_v52  ;;  %v11220_v51 = vcombine.low %v4446_v45, %v4450_v47  ;;  %v11227_v52 = vcombine.high %v4453_v24, %v4457_v36  ;;  %v11229_v53 = vcombine.high %v4454_v25, %v4458_v27  ;;  %v4443_v45 = vld [vmem:[#allocation9 + $0xcf0] sm:$0xff]  ;;  %v4440_v47 = vld [vmem:[#allocation9 + $0xcd8] sm:$0xff] }
 0x3ba   :  { %4324 = vmatpush1.bf16.msra.mxu1 %v11166_v46  ;;  %4365 = vmatpush1.bf16.msra.mxu0 %v11168_v57  ;;  %v4466_v46 = vld [vmem:[#allocation9 + $0xda8] sm:$0xff]  ;;  %v11226_v57 = vcombine.low %v4453_v24, %v4457_v36  ;;  %v4447_v36 = vld [vmem:[#allocation9 + $0xd10] sm:$0xff] }
 0x3bb   :  { %4325 = vmatprep.subr.bf16.mxu1 %v11175_v58  ;;  %4366 = vmatprep.subr.bf16.mxu0 %v11177_v59  ;;  %v11228_v58 = vcombine.low %v4454_v25, %v4458_v27  ;;  %v11235_v59 = vcombine.high %v4461_v54, %v4465_v55  ;;  %v11237_v61 = vcombine.high %v4462_v56, %v4466_v46  ;;  %v4451_v25 = vld [vmem:[#allocation9 + $0xd30] sm:$0xff]  ;;  %v4448_v27 = vld [vmem:[#allocation9 + $0xd18] sm:$0xff] }
 0x3be   :  { %4326 = vmatpush1.bf16.msra.mxu1 %v11174_v1  ;;  %4367 = vmatpush1.bf16.msra.mxu0 %v11176_v2  ;;  %v4470_v1 = vld [vmem:[#allocation9 + $0xdc8] sm:$0xff] }
 0x3bf   :  { %4327 = vmatprep.subr.bf16.mxu1 %v11183_v50  ;;  %4368 = vmatprep.subr.bf16.mxu0 %v11185_v3  ;;  %v4474_v2 = vld [vmem:[#allocation9 + $0xde8] sm:$0xff]  ;;  %v11234_v50 = vcombine.low %v4461_v54, %v4465_v55  ;;  %v11236_v3 = vcombine.low %v4462_v56, %v4466_v46  ;;  %v4455_v55 = vld [vmem:[#allocation9 + $0xd50] sm:$0xff]  ;;  %v4456_v46 = vld [vmem:[#allocation9 + $0xd58] sm:$0xff] }
 0x3c0   :  { %v11245_v8 = vcombine.high %v4470_v1, %v4474_v2  ;;  %v4459_v56 = vld [vmem:[#allocation9 + $0xd70] sm:$0xff] }
 0x3c2   :  { %4328 = vmatpush1.bf16.msra.mxu1 %v11182_v9  ;;  %4369 = vmatpush1.bf16.msra.mxu0 %v11184_v10  ;;  %v4406_v9 = vor.u32 %v4405_v63, %v4404_v4  ;;  %v4409_v10 = vld [vmem:[#allocation2 + $0x6] ss:$16 sm:$0xc0] }
 0x3c3   :  { %4797 = vmatprep.subr.bf16.mxu1 %v11187_v11  ;;  %4838 = vmatprep.subr.bf16.mxu0 %v11189_v12  ;;  %v4415_v11 = vld [vmem:[#allocation9 + $0xc10] sm:$0xff] }
 0x3c4   :  { %v4419_v12 = vld [vmem:[#allocation9 + $0xc30] sm:$0xff]  ;;  %v4408_v14 = vor.u32 %v4407_v5, %v4406_v9  ;;  %v4472_v9 = vld [vmem:[#allocation9 + $0xdd8] sm:$0xff] }
 0x3c5   :  { %4346 = vmatmul.mubr.bf16.vlgmr.msra.gmra.mrb[20].mxu1 %v12938_v17  ;;  %4387 = vmatmul.mubr.bf16.vlgmr.msra.gmra.mrb[36].mxu0 %v12938_v17  ;;  %v11204_v17 = vcombine.low %v4430_v6, %v4434_v30  ;;  %v4424_v6 = vld [vmem:[#allocation9 + $0xc58] sm:$0xff]  ;;  %v4463_v63 = vld [vmem:[#allocation9 + $0xd90] sm:$0xff] }
 0x3c6   :  { %4798 = vmatpush1.bf16.msra.mxu1 %v11186_v18  ;;  %4839 = vmatpush1.bf16.msra.mxu0 %v11188_v19  ;;  %v11244_v18 = vcombine.low %v4470_v1, %v4474_v2  ;;  %v4410_v19 = vor.u32 %v4409_v10, %v4408_v14  ;;  %v4428_v30 = vld [vmem:[#allocation9 + $0xc78] sm:$0xff]  ;;  %v11239_v4 = vcombine.high %v4463_v63, %v4467_v0  ;;  %v4979_v14 = vld [vmem:[#allocation9 + $0xe00] sm:$0xff] }
 0x3c7   :  { %4799 = vmatprep.subr.bf16.mxu1 %v11195_v20  ;;  %4840 = vmatprep.subr.bf16.mxu0 %v11197_v22  ;;  %v11191_v20 = vcombine.high %v4415_v11, %v4419_v12  ;;  %v11193_v22 = vcombine.high %v4416_v60, %v4420_v13  ;;  %v11201_v37 = vcombine.high %v4424_v6, %v4428_v30  ;;  %v4464_v1 = vld [vmem:[#allocation9 + $0xd98] sm:$0xff] }
 0x3c8   :  { %4829 = vmatprep.mubr.bf16.mxu1 %v12591_v15  ;;  %4870 = vmatprep.mubr.bf16.mxu0 %v12591_v15  ;;  %v4468_v2 = vld [vmem:[#allocation9 + $0xdb8] sm:$0xff] }
 0x3c9   :  { %v11241_v5 = vcombine.high %v4464_v1, %v4468_v2  ;;  %v4476_v10 = vld [vmem:[#allocation9 + $0xdf8] sm:$0xff] }
 0x3ca   :  { %4800 = vmatpush1.bf16.msra.mxu1 %v11194_v31  ;;  %4841 = vmatpush1.bf16.msra.mxu0 %v11196_v33  ;;  %v11190_v31 = vcombine.low %v4415_v11, %v4419_v12  ;;  %v11192_v33 = vcombine.low %v4416_v60, %v4420_v13  ;;  %v11238_v11 = vcombine.low %v4463_v63, %v4467_v0  ;;  %v5027_v0 = vld [vmem:[#allocation9 + $0xf80] sm:$0xff] }
 0x3cb   :  { %4801 = vmatprep.subr.bf16.mxu1 %v11203_v34  ;;  %4842 = vmatprep.subr.bf16.mxu0 %v11205_v35  ;;  %v12948_v34 = vpack.c.bf16 %v4410_v19, %v4410_v19  ;;  %v11199_v35 = vcombine.high %v4423_v26, %v4427_v29  ;;  %v11240_v12 = vcombine.low %v4464_v1, %v4468_v2  ;;  %v4984_v19 = vld [vmem:[#allocation9 + $0xe28] sm:$0xff]  ;;  %v5031_v1 = vld [vmem:[#allocation9 + $0xfa0] sm:$0xff] }
 0x3cc   :  { %v11249_v13 = vcombine.high %v4472_v9, %v4476_v10  ;;  %v5028_v2 = vld [vmem:[#allocation9 + $0xf88] sm:$0xff] }
 0x3ce   :  { %4802 = vmatpush1.bf16.msra.mxu1 %v11202_v40  ;;  %4843 = vmatpush1.bf16.msra.mxu0 %v11204_v17  ;;  %v4436_v40 = vld [vmem:[#allocation9 + $0xcb8] sm:$0xff]  ;;  %v11198_v17 = vcombine.low %v4423_v26, %v4427_v29 }
 0x3cf   :  { %4803 = vmatprep.subr.bf16.mxu1 %v11211_v41  ;;  %4844 = vmatprep.subr.bf16.mxu0 %v11213_v42  ;;  %v11200_v41 = vcombine.low %v4424_v6, %v4428_v30  ;;  %v11207_v42 = vcombine.high %v4431_v38, %v4435_v32  ;;  %v11209_v43 = vcombine.high %v4432_v39, %v4436_v40  ;;  %v4987_v6 = vld [vmem:[#allocation9 + $0xe40] sm:$0xff] }
 0x3d0   :  { %v4991_v30 = vld [vmem:[#allocation9 + $0xe60] sm:$0xff] }
 0x3d2   :  { %4804 = vmatpush1.bf16.msra.mxu1 %v11210_v48  ;;  %4845 = vmatpush1.bf16.msra.mxu0 %v11212_v49  ;;  %v4444_v48 = vld [vmem:[#allocation9 + $0xcf8] sm:$0xff]  ;;  %v11206_v49 = vcombine.low %v4431_v38, %v4435_v32  ;;  %v11259_v38 = vcombine.high %v4987_v6, %v4991_v30 }
 0x3d3   :  { %4805 = vmatprep.subr.bf16.mxu1 %v11219_v21  ;;  %4846 = vmatprep.subr.bf16.mxu0 %v11221_v23  ;;  %v11208_v21 = vcombine.low %v4432_v39, %v4436_v40  ;;  %v11215_v23 = vcombine.high %v4439_v44, %v4443_v45  ;;  %v11217_v24 = vcombine.high %v4440_v47, %v4444_v48  ;;  %v4995_v39 = vld [vmem:[#allocation9 + $0xe80] sm:$0xff] }
 0x3d4   :  { %v4999_v40 = vld [vmem:[#allocation9 + $0xea0] sm:$0xff] }
 0x3d6   :  { %4806 = vmatpush1.bf16.msra.mxu1 %v11218_v28  ;;  %4847 = vmatpush1.bf16.msra.mxu0 %v11220_v51  ;;  %v4452_v28 = vld [vmem:[#allocation9 + $0xd38] sm:$0xff]  ;;  %v11214_v51 = vcombine.low %v4439_v44, %v4443_v45  ;;  %v11267_v44 = vcombine.high %v4995_v39, %v4999_v40 }
 0x3d7   :  { %4807 = vmatprep.subr.bf16.mxu1 %v11227_v52  ;;  %4848 = vmatprep.subr.bf16.mxu0 %v11229_v53  ;;  %v11216_v52 = vcombine.low %v4440_v47, %v4444_v48  ;;  %v11223_v53 = vcombine.high %v4447_v36, %v4451_v25  ;;  %v11225_v54 = vcombine.high %v4448_v27, %v4452_v28  ;;  %v5003_v47 = vld [vmem:[#allocation9 + $0xec0] sm:$0xff] }
 0x3d8   :  { %v5007_v48 = vld [vmem:[#allocation9 + $0xee0] sm:$0xff] }
 0x3da   :  { %4808 = vmatpush1.bf16.msra.mxu1 %v11226_v57  ;;  %4849 = vmatpush1.bf16.msra.mxu0 %v11228_v58  ;;  %v4460_v57 = vld [vmem:[#allocation9 + $0xd78] sm:$0xff]  ;;  %v11222_v58 = vcombine.low %v4447_v36, %v4451_v25  ;;  %v5011_v25 = vld [vmem:[#allocation9 + $0xf00] sm:$0xff] }
 0x3db   :  { %4809 = vmatprep.subr.bf16.mxu1 %v11235_v59  ;;  %4850 = vmatprep.subr.bf16.mxu0 %v11237_v61  ;;  %v11224_v59 = vcombine.low %v4448_v27, %v4452_v28  ;;  %v11231_v61 = vcombine.high %v4455_v55, %v4459_v56  ;;  %v11233_v62 = vcombine.high %v4456_v46, %v4460_v57  ;;  %v5015_v27 = vld [vmem:[#allocation9 + $0xf20] sm:$0xff]  ;;  %v5012_v28 = vld [vmem:[#allocation9 + $0xf08] sm:$0xff] }
 0x3de   :  { %4810 = vmatpush1.bf16.msra.mxu1 %v11234_v50  ;;  %4851 = vmatpush1.bf16.msra.mxu0 %v11236_v3  ;;  %v11230_v50 = vcombine.low %v4455_v55, %v4459_v56  ;;  %v11232_v3 = vcombine.low %v4456_v46, %v4460_v57  ;;  %v5019_v56 = vld [vmem:[#allocation9 + $0xf40] sm:$0xff]  ;;  %v5020_v57 = vld [vmem:[#allocation9 + $0xf48] sm:$0xff] }
 0x3df   :  { %4811 = vmatprep.subr.bf16.mxu1 %v11243_v7  ;;  %4852 = vmatprep.subr.bf16.mxu0 %v11245_v8  ;;  %v4471_v7 = vld [vmem:[#allocation9 + $0xdd0] sm:$0xff]  ;;  %v5023_v46 = vld [vmem:[#allocation9 + $0xf60] sm:$0xff] }
 0x3e0   :  { %v4475_v8 = vld [vmem:[#allocation9 + $0xdf0] sm:$0xff] }
 0x3e1   :  { %v11247_v60 = vcombine.high %v4471_v7, %v4475_v8 }
 0x3e2   :  { %4812 = vmatpush1.bf16.msra.mxu1 %v11242_v16  ;;  %4853 = vmatpush1.bf16.msra.mxu0 %v11244_v18  ;;  %v4983_v16 = vld [vmem:[#allocation9 + $0xe20] sm:$0xff]  ;;  %v4980_v18 = vld [vmem:[#allocation9 + $0xe08] sm:$0xff] }
 0x3e3   :  { %4879 = vmatprep.subr.bf16.mxu1 %v11191_v20  ;;  %4920 = vmatprep.subr.bf16.mxu0 %v11193_v22  ;;  %v11246_v20 = vcombine.low %v4471_v7, %v4475_v8  ;;  %v11248_v22 = vcombine.low %v4472_v9, %v4476_v10  ;;  %v11251_v26 = vcombine.high %v4979_v14, %v4983_v16  ;;  %v5035_v8 = vld [vmem:[#allocation9 + $0xfc0] sm:$0xff] }
 0x3e4   :  { %v11253_v29 = vcombine.high %v4980_v18, %v4984_v19  ;;  %v4971_v9 = vld [vmem:[#allocation2 + $0x7] ss:$16 sm:$0xc] }
 0x3e5   :  { %4830 = vmatmul.mubr.bf16.vlgmr.msra.gmra.mrb[16].mxu1 %v12948_v34  ;;  %4871 = vmatmul.mubr.bf16.vlgmr.msra.gmra.mrb[32].mxu0 %v12948_v34  ;;  %v5039_v10 = vld [vmem:[#allocation9 + $0xfe0] sm:$0xff] }
 0x3e6   :  { %4880 = vmatpush1.bf16.msra.mxu1 %v11190_v31  ;;  %4921 = vmatpush1.bf16.msra.mxu0 %v11192_v33  ;;  %v4988_v31 = vld [vmem:[#allocation9 + $0xe48] sm:$0xff] }
 0x3e7   :  { %4881 = vmatprep.subr.bf16.mxu1 %v11199_v35  ;;  %4922 = vmatprep.subr.bf16.mxu0 %v11201_v37  ;;  %v4992_v33 = vld [vmem:[#allocation9 + $0xe68] sm:$0xff]  ;;  %v11250_v35 = vcombine.low %v4979_v14, %v4983_v16  ;;  %v11252_v37 = vcombine.low %v4980_v18, %v4984_v19  ;;  %v4970_v14 = vld [vmem:[#allocation2 + $0x7] ss:$16 sm:$0x3]  ;;  %v11307_v18 = vcombine.high %v5035_v8, %v5039_v10 }
 0x3e8   :  { %4911 = vmatprep.mubr.bf16.mxu1 %v12591_v15  ;;  %4952 = vmatprep.mubr.bf16.mxu0 %v12591_v15  ;;  %v11261_v32 = vcombine.high %v4988_v31, %v4992_v33  ;;  %v4973_v16 = vld [vmem:[#allocation2 + $0x7] ss:$16 sm:$0x30] }
 0x3ea   :  { %4882 = vmatpush1.bf16.msra.mxu1 %v11198_v17  ;;  %4923 = vmatpush1.bf16.msra.mxu0 %v11200_v41  ;;  %v4996_v17 = vld [vmem:[#allocation9 + $0xe88] sm:$0xff] }
 0x3eb   :  { %4883 = vmatprep.subr.bf16.mxu1 %v11207_v42  ;;  %4924 = vmatprep.subr.bf16.mxu0 %v11209_v43  ;;  %v5000_v41 = vld [vmem:[#allocation9 + $0xea8] sm:$0xff]  ;;  %v11258_v42 = vcombine.low %v4987_v6, %v4991_v30  ;;  %v11260_v43 = vcombine.low %v4988_v31, %v4992_v33  ;;  %v4982_v6 = vld [vmem:[#allocation9 + $0xe18] sm:$0xff]  ;;  %v11306_v33 = vcombine.low %v5035_v8, %v5039_v10  ;;  %v5033_v10 = vld [vmem:[#allocation9 + $0xfb0] sm:$0xff] }
 0x3ec   :  { %v11269_v45 = vcombine.high %v4996_v17, %v5000_v41  ;;  %v4986_v30 = vld [vmem:[#allocation9 + $0xe38] sm:$0xff] }
 0x3ee   :  { %4884 = vmatpush1.bf16.msra.mxu1 %v11206_v49  ;;  %4925 = vmatpush1.bf16.msra.mxu0 %v11208_v21  ;;  %v5004_v49 = vld [vmem:[#allocation9 + $0xec8] sm:$0xff] }
 0x3ef   :  { %4885 = vmatprep.subr.bf16.mxu1 %v11215_v23  ;;  %4926 = vmatprep.subr.bf16.mxu0 %v11217_v24  ;;  %v5008_v21 = vld [vmem:[#allocation9 + $0xee8] sm:$0xff]  ;;  %v11266_v23 = vcombine.low %v4995_v39, %v4999_v40  ;;  %v11275_v24 = vcombine.high %v5003_v47, %v5007_v48  ;;  %v4989_v39 = vld [vmem:[#allocation9 + $0xe50] sm:$0xff] }
 0x3f0   :  { %v11277_v36 = vcombine.high %v5004_v49, %v5008_v21  ;;  %v4993_v40 = vld [vmem:[#allocation9 + $0xe70] sm:$0xff] }
 0x3f2   :  { %4886 = vmatpush1.bf16.msra.mxu1 %v11214_v51  ;;  %4927 = vmatpush1.bf16.msra.mxu0 %v11216_v52  ;;  %v5016_v51 = vld [vmem:[#allocation9 + $0xf28] sm:$0xff]  ;;  %v11274_v52 = vcombine.low %v5003_v47, %v5007_v48  ;;  %v4997_v48 = vld [vmem:[#allocation9 + $0xe90] sm:$0xff] }
 0x3f3   :  { %4887 = vmatprep.subr.bf16.mxu1 %v11223_v53  ;;  %4928 = vmatprep.subr.bf16.mxu0 %v11225_v54  ;;  %v11276_v53 = vcombine.low %v5004_v49, %v5008_v21  ;;  %v11283_v54 = vcombine.high %v5011_v25, %v5015_v27  ;;  %v11285_v55 = vcombine.high %v5012_v28, %v5016_v51  ;;  %v5001_v49 = vld [vmem:[#allocation9 + $0xeb0] sm:$0xff]  ;;  %v4998_v21 = vld [vmem:[#allocation9 + $0xe98] sm:$0xff] }
 0x3f6   :  { %4888 = vmatpush1.bf16.msra.mxu1 %v11222_v58  ;;  %4929 = vmatpush1.bf16.msra.mxu0 %v11224_v59  ;;  %v5024_v58 = vld [vmem:[#allocation9 + $0xf68] sm:$0xff]  ;;  %v11282_v59 = vcombine.low %v5011_v25, %v5015_v27  ;;  %v5005_v27 = vld [vmem:[#allocation9 + $0xed0] sm:$0xff] }
 0x3f7   :  { %4889 = vmatprep.subr.bf16.mxu1 %v11231_v61  ;;  %4930 = vmatprep.subr.bf16.mxu0 %v11233_v62  ;;  %v11284_v61 = vcombine.low %v5012_v28, %v5016_v51  ;;  %v11291_v62 = vcombine.high %v5019_v56, %v5023_v46  ;;  %v11293_v63 = vcombine.high %v5020_v57, %v5024_v58  ;;  %v5009_v28 = vld [vmem:[#allocation9 + $0xef0] sm:$0xff]  ;;  %v5006_v51 = vld [vmem:[#allocation9 + $0xed8] sm:$0xff] }
 0x3fa   :  { %4890 = vmatpush1.bf16.msra.mxu1 %v11230_v50  ;;  %4931 = vmatpush1.bf16.msra.mxu0 %v11232_v3  ;;  %v5032_v50 = vld [vmem:[#allocation9 + $0xfa8] sm:$0xff]  ;;  %v11290_v3 = vcombine.low %v5019_v56, %v5023_v46  ;;  %v5013_v46 = vld [vmem:[#allocation9 + $0xf10] sm:$0xff] }
 0x3fb   :  { %4891 = vmatprep.subr.bf16.mxu1 %v11239_v4  ;;  %4932 = vmatprep.subr.bf16.mxu0 %v11241_v5  ;;  %v11292_v4 = vcombine.low %v5020_v57, %v5024_v58  ;;  %v11299_v5 = vcombine.high %v5027_v0, %v5031_v1  ;;  %v11301_v7 = vcombine.high %v5028_v2, %v5032_v50  ;;  %v5017_v57 = vld [vmem:[#allocation9 + $0xf30] sm:$0xff]  ;;  %v5014_v58 = vld [vmem:[#allocation9 + $0xf18] sm:$0xff] }
 0x3fe   :  { %4892 = vmatpush1.bf16.msra.mxu1 %v11238_v11  ;;  %4933 = vmatpush1.bf16.msra.mxu0 %v11240_v12  ;;  %v5036_v11 = vld [vmem:[#allocation9 + $0xfc8] sm:$0xff] }
 0x3ff   :  { %4893 = vmatprep.subr.bf16.mxu1 %v11247_v60  ;;  %4934 = vmatprep.subr.bf16.mxu0 %v11249_v13  ;;  %v5040_v12 = vld [vmem:[#allocation9 + $0xfe8] sm:$0xff]  ;;  %v11298_v60 = vcombine.low %v5027_v0, %v5031_v1  ;;  %v11300_v13 = vcombine.low %v5028_v2, %v5032_v50  ;;  %v5021_v1 = vld [vmem:[#allocation9 + $0xf50] sm:$0xff]  ;;  %v5022_v50 = vld [vmem:[#allocation9 + $0xf58] sm:$0xff] }
 0x400   :  { %v11309_v19 = vcombine.high %v5036_v11, %v5040_v12  ;;  %v5025_v2 = vld [vmem:[#allocation9 + $0xf70] sm:$0xff] }
 0x402   :  { %4894 = vmatpush1.bf16.msra.mxu1 %v11246_v20  ;;  %4935 = vmatpush1.bf16.msra.mxu0 %v11248_v22  ;;  %v4972_v20 = vor.u32 %v4971_v9, %v4970_v14  ;;  %v4975_v22 = vld [vmem:[#allocation2 + $0x7] ss:$16 sm:$0xc0] }
 0x403   :  { %5363 = vmatprep.subr.bf16.mxu1 %v11251_v26  ;;  %5404 = vmatprep.subr.bf16.mxu0 %v11253_v29  ;;  %v4981_v26 = vld [vmem:[#allocation9 + $0xe10] sm:$0xff] }
 0x404   :  { %v4985_v29 = vld [vmem:[#allocation9 + $0xe30] sm:$0xff]  ;;  %v4974_v31 = vor.u32 %v4973_v16, %v4972_v20  ;;  %v5038_v20 = vld [vmem:[#allocation9 + $0xfd8] sm:$0xff] }
 0x405   :  { %4912 = vmatmul.mubr.bf16.vlgmr.msra.gmra.mrb[20].mxu1 %v12948_v34  ;;  %4953 = vmatmul.mubr.bf16.vlgmr.msra.gmra.mrb[36].mxu0 %v12948_v34  ;;  %v11268_v34 = vcombine.low %v4996_v17, %v5000_v41  ;;  %v4990_v17 = vld [vmem:[#allocation9 + $0xe58] sm:$0xff]  ;;  %v5029_v9 = vld [vmem:[#allocation9 + $0xf90] sm:$0xff] }
 0x406   :  { %5364 = vmatpush1.bf16.msra.mxu1 %v11250_v35  ;;  %5405 = vmatpush1.bf16.msra.mxu0 %v11252_v37  ;;  %v11308_v35 = vcombine.low %v5036_v11, %v5040_v12  ;;  %v4976_v37 = vor.u32 %v4975_v22, %v4974_v31  ;;  %v4994_v41 = vld [vmem:[#allocation9 + $0xe78] sm:$0xff]  ;;  %v11303_v14 = vcombine.high %v5029_v9, %v5033_v10  ;;  %v5545_v31 = vld [vmem:[#allocation9 + $0x1000] sm:$0xff] }
 0x407   :  { %5365 = vmatprep.subr.bf16.mxu1 %v11259_v38  ;;  %5406 = vmatprep.subr.bf16.mxu0 %v11261_v32  ;;  %v11255_v38 = vcombine.high %v4981_v26, %v4985_v29  ;;  %v11257_v32 = vcombine.high %v4982_v6, %v4986_v30  ;;  %v11265_v47 = vcombine.high %v4990_v17, %v4994_v41  ;;  %v5030_v11 = vld [vmem:[#allocation9 + $0xf98] sm:$0xff] }
 0x408   :  { %5395 = vmatprep.mubr.bf16.mxu1 %v12591_v15  ;;  %5436 = vmatprep.mubr.bf16.mxu0 %v12591_v15  ;;  %v5034_v12 = vld [vmem:[#allocation9 + $0xfb8] sm:$0xff] }
 0x409   :  { %v11305_v16 = vcombine.high %v5030_v11, %v5034_v12  ;;  %v5042_v22 = vld [vmem:[#allocation9 + $0xff8] sm:$0xff] }
 0x40a   :  { %5366 = vmatpush1.bf16.msra.mxu1 %v11258_v42  ;;  %5407 = vmatpush1.bf16.msra.mxu0 %v11260_v43  ;;  %v11254_v42 = vcombine.low %v4981_v26, %v4985_v29  ;;  %v11256_v43 = vcombine.low %v4982_v6, %v4986_v30  ;;  %v11302_v26 = vcombine.low %v5029_v9, %v5033_v10  ;;  %v5593_v10 = vld [vmem:[#allocation9 + $0x1180] sm:$0xff] }
 0x40b   :  { %5367 = vmatprep.subr.bf16.mxu1 %v11267_v44  ;;  %5408 = vmatprep.subr.bf16.mxu0 %v11269_v45  ;;  %v12958_v44 = vpack.c.bf16 %v4976_v37, %v4976_v37  ;;  %v11263_v45 = vcombine.high %v4989_v39, %v4993_v40  ;;  %v11304_v29 = vcombine.low %v5030_v11, %v5034_v12  ;;  %v5550_v37 = vld [vmem:[#allocation9 + $0x1028] sm:$0xff]  ;;  %v5597_v11 = vld [vmem:[#allocation9 + $0x11a0] sm:$0xff] }
 0x40c   :  { %v11313_v30 = vcombine.high %v5038_v20, %v5042_v22  ;;  %v5594_v12 = vld [vmem:[#allocation9 + $0x1188] sm:$0xff] }
 0x40e   :  { %5368 = vmatpush1.bf16.msra.mxu1 %v11266_v23  ;;  %5409 = vmatpush1.bf16.msra.mxu0 %v11268_v34  ;;  %v5002_v23 = vld [vmem:[#allocation9 + $0xeb8] sm:$0xff]  ;;  %v11262_v34 = vcombine.low %v4989_v39, %v4993_v40 }
 0x40f   :  { %5369 = vmatprep.subr.bf16.mxu1 %v11275_v24  ;;  %5410 = vmatprep.subr.bf16.mxu0 %v11277_v36  ;;  %v11264_v24 = vcombine.low %v4990_v17, %v4994_v41  ;;  %v11271_v36 = vcombine.high %v4997_v48, %v5001_v49  ;;  %v11273_v25 = vcombine.high %v4998_v21, %v5002_v23  ;;  %v5553_v17 = vld [vmem:[#allocation9 + $0x1040] sm:$0xff] }
 0x410   :  { %v5557_v41 = vld [vmem:[#allocation9 + $0x1060] sm:$0xff] }
 0x412   :  { %5370 = vmatpush1.bf16.msra.mxu1 %v11274_v52  ;;  %5411 = vmatpush1.bf16.msra.mxu0 %v11276_v53  ;;  %v5010_v52 = vld [vmem:[#allocation9 + $0xef8] sm:$0xff]  ;;  %v11270_v53 = vcombine.low %v4997_v48, %v5001_v49  ;;  %v11323_v48 = vcombine.high %v5553_v17, %v5557_v41 }
 0x413   :  { %5371 = vmatprep.subr.bf16.mxu1 %v11283_v54  ;;  %5412 = vmatprep.subr.bf16.mxu0 %v11285_v55  ;;  %v11272_v54 = vcombine.low %v4998_v21, %v5002_v23  ;;  %v11279_v55 = vcombine.high %v5005_v27, %v5009_v28  ;;  %v11281_v56 = vcombine.high %v5006_v51, %v5010_v52  ;;  %v5561_v21 = vld [vmem:[#allocation9 + $0x1080] sm:$0xff] }
 0x414   :  { %v5565_v23 = vld [vmem:[#allocation9 + $0x10a0] sm:$0xff] }
 0x416   :  { %5372 = vmatpush1.bf16.msra.mxu1 %v11282_v59  ;;  %5413 = vmatpush1.bf16.msra.mxu0 %v11284_v61  ;;  %v5018_v59 = vld [vmem:[#allocation9 + $0xf38] sm:$0xff]  ;;  %v11278_v61 = vcombine.low %v5005_v27, %v5009_v28  ;;  %v11331_v27 = vcombine.high %v5561_v21, %v5565_v23 }
 0x417   :  { %5373 = vmatprep.subr.bf16.mxu1 %v11291_v62  ;;  %5414 = vmatprep.subr.bf16.mxu0 %v11293_v63  ;;  %v11280_v62 = vcombine.low %v5006_v51, %v5010_v52  ;;  %v11287_v63 = vcombine.high %v5013_v46, %v5017_v57  ;;  %v11289_v0 = vcombine.high %v5014_v58, %v5018_v59  ;;  %v5569_v51 = vld [vmem:[#allocation9 + $0x10c0] sm:$0xff] }
 0x418   :  { %v5573_v52 = vld [vmem:[#allocation9 + $0x10e0] sm:$0xff] }
 0x41a   :  { %5374 = vmatpush1.bf16.msra.mxu1 %v11290_v3  ;;  %5415 = vmatpush1.bf16.msra.mxu0 %v11292_v4  ;;  %v5026_v3 = vld [vmem:[#allocation9 + $0xf78] sm:$0xff]  ;;  %v11286_v4 = vcombine.low %v5013_v46, %v5017_v57  ;;  %v5577_v57 = vld [vmem:[#allocation9 + $0x1100] sm:$0xff] }
 0x41b   :  { %5375 = vmatprep.subr.bf16.mxu1 %v11299_v5  ;;  %5416 = vmatprep.subr.bf16.mxu0 %v11301_v7  ;;  %v11288_v5 = vcombine.low %v5014_v58, %v5018_v59  ;;  %v11295_v7 = vcombine.high %v5021_v1, %v5025_v2  ;;  %v11297_v8 = vcombine.high %v5022_v50, %v5026_v3  ;;  %v5581_v58 = vld [vmem:[#allocation9 + $0x1120] sm:$0xff]  ;;  %v5578_v59 = vld [vmem:[#allocation9 + $0x1108] sm:$0xff] }
 0x41e   :  { %5376 = vmatpush1.bf16.msra.mxu1 %v11298_v60  ;;  %5417 = vmatpush1.bf16.msra.mxu0 %v11300_v13  ;;  %v11294_v60 = vcombine.low %v5021_v1, %v5025_v2  ;;  %v11296_v13 = vcombine.low %v5022_v50, %v5026_v3  ;;  %v5585_v2 = vld [vmem:[#allocation9 + $0x1140] sm:$0xff]  ;;  %v5586_v3 = vld [vmem:[#allocation9 + $0x1148] sm:$0xff] }
 0x41f   :  { %5377 = vmatprep.subr.bf16.mxu1 %v11307_v18  ;;  %5418 = vmatprep.subr.bf16.mxu0 %v11309_v19  ;;  %v5037_v18 = vld [vmem:[#allocation9 + $0xfd0] sm:$0xff]  ;;  %v5589_v50 = vld [vmem:[#allocation9 + $0x1160] sm:$0xff] }
 0x420   :  { %v5041_v19 = vld [vmem:[#allocation9 + $0xff0] sm:$0xff] }
 0x421   :  { %v11311_v6 = vcombine.high %v5037_v18, %v5041_v19 }
 0x422   :  { %5378 = vmatpush1.bf16.msra.mxu1 %v11306_v33  ;;  %5419 = vmatpush1.bf16.msra.mxu0 %v11308_v35  ;;  %v5549_v33 = vld [vmem:[#allocation9 + $0x1020] sm:$0xff]  ;;  %v5546_v35 = vld [vmem:[#allocation9 + $0x1008] sm:$0xff] }
 0x423   :  { %5445 = vmatprep.subr.bf16.mxu1 %v11255_v38  ;;  %5486 = vmatprep.subr.bf16.mxu0 %v11257_v32  ;;  %v11310_v38 = vcombine.low %v5037_v18, %v5041_v19  ;;  %v11312_v32 = vcombine.low %v5038_v20, %v5042_v22  ;;  %v11315_v39 = vcombine.high %v5545_v31, %v5549_v33  ;;  %v5601_v19 = vld [vmem:[#allocation9 + $0x11c0] sm:$0xff] }
 0x424   :  { %v11317_v40 = vcombine.high %v5546_v35, %v5550_v37  ;;  %v5537_v20 = vld [vmem:[#allocation2 + $0x8] ss:$16 sm:$0xc] }
 0x425   :  { %5396 = vmatmul.mubr.bf16.vlgmr.msra.gmra.mrb[16].mxu1 %v12958_v44  ;;  %5437 = vmatmul.mubr.bf16.vlgmr.msra.gmra.mrb[32].mxu0 %v12958_v44  ;;  %v5605_v22 = vld [vmem:[#allocation9 + $0x11e0] sm:$0xff] }
 0x426   :  { %5446 = vmatpush1.bf16.msra.mxu1 %v11254_v42  ;;  %5487 = vmatpush1.bf16.msra.mxu0 %v11256_v43  ;;  %v5554_v42 = vld [vmem:[#allocation9 + $0x1048] sm:$0xff] }
 0x427   :  { %5447 = vmatprep.subr.bf16.mxu1 %v11263_v45  ;;  %5488 = vmatprep.subr.bf16.mxu0 %v11265_v47  ;;  %v5558_v43 = vld [vmem:[#allocation9 + $0x1068] sm:$0xff]  ;;  %v11314_v45 = vcombine.low %v5545_v31, %v5549_v33  ;;  %v11316_v47 = vcombine.low %v5546_v35, %v5550_v37  ;;  %v5536_v31 = vld [vmem:[#allocation2 + $0x8] ss:$16 sm:$0x3]  ;;  %v11371_v35 = vcombine.high %v5601_v19, %v5605_v22 }
 0x428   :  { %5477 = vmatprep.mubr.bf16.mxu1 %v12591_v15  ;;  %5518 = vmatprep.mubr.bf16.mxu0 %v12591_v15  ;;  %v11325_v49 = vcombine.high %v5554_v42, %v5558_v43  ;;  %v5539_v33 = vld [vmem:[#allocation2 + $0x8] ss:$16 sm:$0x30] }
 0x42a   :  { %5448 = vmatpush1.bf16.msra.mxu1 %v11262_v34  ;;  %5489 = vmatpush1.bf16.msra.mxu0 %v11264_v24  ;;  %v5562_v34 = vld [vmem:[#allocation9 + $0x1088] sm:$0xff] }
 0x42b   :  { %5449 = vmatprep.subr.bf16.mxu1 %v11271_v36  ;;  %5490 = vmatprep.subr.bf16.mxu0 %v11273_v25  ;;  %v5566_v24 = vld [vmem:[#allocation9 + $0x10a8] sm:$0xff]  ;;  %v11322_v36 = vcombine.low %v5553_v17, %v5557_v41  ;;  %v11324_v25 = vcombine.low %v5554_v42, %v5558_v43  ;;  %v5548_v17 = vld [vmem:[#allocation9 + $0x1018] sm:$0xff]  ;;  %v11370_v43 = vcombine.low %v5601_v19, %v5605_v22  ;;  %v5599_v22 = vld [vmem:[#allocation9 + $0x11b0] sm:$0xff] }
 0x42c   :  { %v11333_v28 = vcombine.high %v5562_v34, %v5566_v24  ;;  %v5552_v41 = vld [vmem:[#allocation9 + $0x1038] sm:$0xff] }
 0x42e   :  { %5450 = vmatpush1.bf16.msra.mxu1 %v11270_v53  ;;  %5491 = vmatpush1.bf16.msra.mxu0 %v11272_v54  ;;  %v5570_v53 = vld [vmem:[#allocation9 + $0x10c8] sm:$0xff] }
 0x42f   :  { %5451 = vmatprep.subr.bf16.mxu1 %v11279_v55  ;;  %5492 = vmatprep.subr.bf16.mxu0 %v11281_v56  ;;  %v5574_v54 = vld [vmem:[#allocation9 + $0x10e8] sm:$0xff]  ;;  %v11330_v55 = vcombine.low %v5561_v21, %v5565_v23  ;;  %v11339_v56 = vcombine.high %v5569_v51, %v5573_v52  ;;  %v5555_v21 = vld [vmem:[#allocation9 + $0x1050] sm:$0xff] }
 0x430   :  { %v11341_v46 = vcombine.high %v5570_v53, %v5574_v54  ;;  %v5559_v23 = vld [vmem:[#allocation9 + $0x1070] sm:$0xff] }
 0x432   :  { %5452 = vmatpush1.bf16.msra.mxu1 %v11278_v61  ;;  %5493 = vmatpush1.bf16.msra.mxu0 %v11280_v62  ;;  %v5582_v61 = vld [vmem:[#allocation9 + $0x1128] sm:$0xff]  ;;  %v11338_v62 = vcombine.low %v5569_v51, %v5573_v52  ;;  %v5563_v52 = vld [vmem:[#allocation9 + $0x1090] sm:$0xff] }
 0x433   :  { %5453 = vmatprep.subr.bf16.mxu1 %v11287_v63  ;;  %5494 = vmatprep.subr.bf16.mxu0 %v11289_v0  ;;  %v11340_v63 = vcombine.low %v5570_v53, %v5574_v54  ;;  %v11347_v0 = vcombine.high %v5577_v57, %v5581_v58  ;;  %v11349_v1 = vcombine.high %v5578_v59, %v5582_v61  ;;  %v5567_v53 = vld [vmem:[#allocation9 + $0x10b0] sm:$0xff]  ;;  %v5564_v54 = vld [vmem:[#allocation9 + $0x1098] sm:$0xff] }
 0x436   :  { %5454 = vmatpush1.bf16.msra.mxu1 %v11286_v4  ;;  %5495 = vmatpush1.bf16.msra.mxu0 %v11288_v5  ;;  %v5590_v4 = vld [vmem:[#allocation9 + $0x1168] sm:$0xff]  ;;  %v11346_v5 = vcombine.low %v5577_v57, %v5581_v58  ;;  %v5571_v58 = vld [vmem:[#allocation9 + $0x10d0] sm:$0xff] }
 0x437   :  { %5455 = vmatprep.subr.bf16.mxu1 %v11295_v7  ;;  %5496 = vmatprep.subr.bf16.mxu0 %v11297_v8  ;;  %v11348_v7 = vcombine.low %v5578_v59, %v5582_v61  ;;  %v11355_v8 = vcombine.high %v5585_v2, %v5589_v50  ;;  %v11357_v9 = vcombine.high %v5586_v3, %v5590_v4  ;;  %v5575_v59 = vld [vmem:[#allocation9 + $0x10f0] sm:$0xff]  ;;  %v5572_v61 = vld [vmem:[#allocation9 + $0x10d8] sm:$0xff] }
 0x43a   :  { %5456 = vmatpush1.bf16.msra.mxu1 %v11294_v60  ;;  %5497 = vmatpush1.bf16.msra.mxu0 %v11296_v13  ;;  %v5598_v60 = vld [vmem:[#allocation9 + $0x11a8] sm:$0xff]  ;;  %v11354_v13 = vcombine.low %v5585_v2, %v5589_v50  ;;  %v5579_v50 = vld [vmem:[#allocation9 + $0x1110] sm:$0xff] }
 0x43b   :  { %5457 = vmatprep.subr.bf16.mxu1 %v11303_v14  ;;  %5498 = vmatprep.subr.bf16.mxu0 %v11305_v16  ;;  %v11356_v14 = vcombine.low %v5586_v3, %v5590_v4  ;;  %v11363_v16 = vcombine.high %v5593_v10, %v5597_v11  ;;  %v11365_v18 = vcombine.high %v5594_v12, %v5598_v60  ;;  %v5583_v3 = vld [vmem:[#allocation9 + $0x1130] sm:$0xff]  ;;  %v5580_v4 = vld [vmem:[#allocation9 + $0x1118] sm:$0xff] }
 0x43e   :  { %5458 = vmatpush1.bf16.msra.mxu1 %v11302_v26  ;;  %5499 = vmatpush1.bf16.msra.mxu0 %v11304_v29  ;;  %v5602_v26 = vld [vmem:[#allocation9 + $0x11c8] sm:$0xff] }
 0x43f   :  { %5459 = vmatprep.subr.bf16.mxu1 %v11311_v6  ;;  %5500 = vmatprep.subr.bf16.mxu0 %v11313_v30  ;;  %v5606_v29 = vld [vmem:[#allocation9 + $0x11e8] sm:$0xff]  ;;  %v11362_v6 = vcombine.low %v5593_v10, %v5597_v11  ;;  %v11364_v30 = vcombine.low %v5594_v12, %v5598_v60  ;;  %v5587_v11 = vld [vmem:[#allocation9 + $0x1150] sm:$0xff]  ;;  %v5588_v60 = vld [vmem:[#allocation9 + $0x1158] sm:$0xff] }
 0x440   :  { %v11373_v37 = vcombine.high %v5602_v26, %v5606_v29  ;;  %v5591_v12 = vld [vmem:[#allocation9 + $0x1170] sm:$0xff] }
 0x442   :  { %5460 = vmatpush1.bf16.msra.mxu1 %v11310_v38  ;;  %5501 = vmatpush1.bf16.msra.mxu0 %v11312_v32  ;;  %v5538_v38 = vor.u32 %v5537_v20, %v5536_v31  ;;  %v5541_v32 = vld [vmem:[#allocation2 + $0x8] ss:$16 sm:$0xc0] }
 0x443   :  { %5929 = vmatprep.subr.bf16.mxu1 %v11315_v39  ;;  %5970 = vmatprep.subr.bf16.mxu0 %v11317_v40  ;;  %v5547_v39 = vld [vmem:[#allocation9 + $0x1010] sm:$0xff] }
 0x444   :  { %v5551_v40 = vld [vmem:[#allocation9 + $0x1030] sm:$0xff]  ;;  %v5540_v42 = vor.u32 %v5539_v33, %v5538_v38  ;;  %v5604_v38 = vld [vmem:[#allocation9 + $0x11d8] sm:$0xff] }
 0x445   :  { %5478 = vmatmul.mubr.bf16.vlgmr.msra.gmra.mrb[20].mxu1 %v12958_v44  ;;  %5519 = vmatmul.mubr.bf16.vlgmr.msra.gmra.mrb[36].mxu0 %v12958_v44  ;;  %v11332_v44 = vcombine.low %v5562_v34, %v5566_v24  ;;  %v5556_v34 = vld [vmem:[#allocation9 + $0x1058] sm:$0xff]  ;;  %v5595_v20 = vld [vmem:[#allocation9 + $0x1190] sm:$0xff] }
 0x446   :  { %5930 = vmatpush1.bf16.msra.mxu1 %v11314_v45  ;;  %5971 = vmatpush1.bf16.msra.mxu0 %v11316_v47  ;;  %v11372_v45 = vcombine.low %v5602_v26, %v5606_v29  ;;  %v5542_v47 = vor.u32 %v5541_v32, %v5540_v42  ;;  %v5560_v24 = vld [vmem:[#allocation9 + $0x1078] sm:$0xff]  ;;  %v11367_v31 = vcombine.high %v5595_v20, %v5599_v22  ;;  %v6111_v42 = vld [vmem:[#allocation9 + $0x1200] sm:$0xff] }
 0x447   :  { %5931 = vmatprep.subr.bf16.mxu1 %v11323_v48  ;;  %5972 = vmatprep.subr.bf16.mxu0 %v11325_v49  ;;  %v11319_v48 = vcombine.high %v5547_v39, %v5551_v40  ;;  %v11321_v49 = vcombine.high %v5548_v17, %v5552_v41  ;;  %v11329_v51 = vcombine.high %v5556_v34, %v5560_v24  ;;  %v5596_v26 = vld [vmem:[#allocation9 + $0x1198] sm:$0xff] }
 0x448   :  { %5961 = vmatprep.mubr.bf16.mxu1 %v12591_v15  ;;  %6002 = vmatprep.mubr.bf16.mxu0 %v12591_v15  ;;  %v5600_v29 = vld [vmem:[#allocation9 + $0x11b8] sm:$0xff] }
 0x449   :  { %v11369_v33 = vcombine.high %v5596_v26, %v5600_v29  ;;  %v5608_v32 = vld [vmem:[#allocation9 + $0x11f8] sm:$0xff] }
 0x44a   :  { %5932 = vmatpush1.bf16.msra.mxu1 %v11322_v36  ;;  %5973 = vmatpush1.bf16.msra.mxu0 %v11324_v25  ;;  %v11318_v36 = vcombine.low %v5547_v39, %v5551_v40  ;;  %v11320_v25 = vcombine.low %v5548_v17, %v5552_v41  ;;  %v11366_v39 = vcombine.low %v5595_v20, %v5599_v22  ;;  %v6159_v22 = vld [vmem:[#allocation9 + $0x1380] sm:$0xff] }
 0x44b   :  { %5933 = vmatprep.subr.bf16.mxu1 %v11331_v27  ;;  %5974 = vmatprep.subr.bf16.mxu0 %v11333_v28  ;;  %v12968_v27 = vpack.c.bf16 %v5542_v47, %v5542_v47  ;;  %v11327_v28 = vcombine.high %v5555_v21, %v5559_v23  ;;  %v11368_v40 = vcombine.low %v5596_v26, %v5600_v29  ;;  %v6116_v47 = vld [vmem:[#allocation9 + $0x1228] sm:$0xff]  ;;  %v6163_v26 = vld [vmem:[#allocation9 + $0x13a0] sm:$0xff] }
 0x44c   :  { %v11377_v41 = vcombine.high %v5604_v38, %v5608_v32  ;;  %v6160_v29 = vld [vmem:[#allocation9 + $0x1388] sm:$0xff] }
 0x44e   :  { %5934 = vmatpush1.bf16.msra.mxu1 %v11330_v55  ;;  %5975 = vmatpush1.bf16.msra.mxu0 %v11332_v44  ;;  %v5568_v55 = vld [vmem:[#allocation9 + $0x10b8] sm:$0xff]  ;;  %v11326_v44 = vcombine.low %v5555_v21, %v5559_v23 }
 0x44f   :  { %5935 = vmatprep.subr.bf16.mxu1 %v11339_v56  ;;  %5976 = vmatprep.subr.bf16.mxu0 %v11341_v46  ;;  %v11328_v56 = vcombine.low %v5556_v34, %v5560_v24  ;;  %v11335_v46 = vcombine.high %v5563_v52, %v5567_v53  ;;  %v11337_v57 = vcombine.high %v5564_v54, %v5568_v55  ;;  %v6119_v34 = vld [vmem:[#allocation9 + $0x1240] sm:$0xff] }
 0x450   :  { %v6123_v24 = vld [vmem:[#allocation9 + $0x1260] sm:$0xff] }
 0x452   :  { %5936 = vmatpush1.bf16.msra.mxu1 %v11338_v62  ;;  %5977 = vmatpush1.bf16.msra.mxu0 %v11340_v63  ;;  %v5576_v62 = vld [vmem:[#allocation9 + $0x10f8] sm:$0xff]  ;;  %v11334_v63 = vcombine.low %v5563_v52, %v5567_v53  ;;  %v11387_v52 = vcombine.high %v6119_v34, %v6123_v24 }
 0x453   :  { %5937 = vmatprep.subr.bf16.mxu1 %v11347_v0  ;;  %5978 = vmatprep.subr.bf16.mxu0 %v11349_v1  ;;  %v11336_v0 = vcombine.low %v5564_v54, %v5568_v55  ;;  %v11343_v1 = vcombine.high %v5571_v58, %v5575_v59  ;;  %v11345_v2 = vcombine.high %v5572_v61, %v5576_v62  ;;  %v6127_v54 = vld [vmem:[#allocation9 + $0x1280] sm:$0xff] }
 0x454   :  { %v6131_v55 = vld [vmem:[#allocation9 + $0x12a0] sm:$0xff] }
 0x456   :  { %5938 = vmatpush1.bf16.msra.mxu1 %v11346_v5  ;;  %5979 = vmatpush1.bf16.msra.mxu0 %v11348_v7  ;;  %v5584_v5 = vld [vmem:[#allocation9 + $0x1138] sm:$0xff]  ;;  %v11342_v7 = vcombine.low %v5571_v58, %v5575_v59  ;;  %v11395_v58 = vcombine.high %v6127_v54, %v6131_v55 }
 0x457   :  { %5939 = vmatprep.subr.bf16.mxu1 %v11355_v8  ;;  %5980 = vmatprep.subr.bf16.mxu0 %v11357_v9  ;;  %v11344_v8 = vcombine.low %v5572_v61, %v5576_v62  ;;  %v11351_v9 = vcombine.high %v5579_v50, %v5583_v3  ;;  %v11353_v10 = vcombine.high %v5580_v4, %v5584_v5  ;;  %v6135_v61 = vld [vmem:[#allocation9 + $0x12c0] sm:$0xff] }
 0x458   :  { %v6139_v62 = vld [vmem:[#allocation9 + $0x12e0] sm:$0xff] }
 0x45a   :  { %5940 = vmatpush1.bf16.msra.mxu1 %v11354_v13  ;;  %5981 = vmatpush1.bf16.msra.mxu0 %v11356_v14  ;;  %v5592_v13 = vld [vmem:[#allocation9 + $0x1178] sm:$0xff]  ;;  %v11350_v14 = vcombine.low %v5579_v50, %v5583_v3  ;;  %v6143_v3 = vld [vmem:[#allocation9 + $0x1300] sm:$0xff] }
 0x45b   :  { %5941 = vmatprep.subr.bf16.mxu1 %v11363_v16  ;;  %5982 = vmatprep.subr.bf16.mxu0 %v11365_v18  ;;  %v11352_v16 = vcombine.low %v5580_v4, %v5584_v5  ;;  %v11359_v18 = vcombine.high %v5587_v11, %v5591_v12  ;;  %v11361_v19 = vcombine.high %v5588_v60, %v5592_v13  ;;  %v6147_v4 = vld [vmem:[#allocation9 + $0x1320] sm:$0xff]  ;;  %v6144_v5 = vld [vmem:[#allocation9 + $0x1308] sm:$0xff] }
 0x45e   :  { %5942 = vmatpush1.bf16.msra.mxu1 %v11362_v6  ;;  %5983 = vmatpush1.bf16.msra.mxu0 %v11364_v30  ;;  %v11358_v6 = vcombine.low %v5587_v11, %v5591_v12  ;;  %v11360_v30 = vcombine.low %v5588_v60, %v5592_v13  ;;  %v6151_v12 = vld [vmem:[#allocation9 + $0x1340] sm:$0xff]  ;;  %v6152_v13 = vld [vmem:[#allocation9 + $0x1348] sm:$0xff] }
 0x45f   :  { %5943 = vmatprep.subr.bf16.mxu1 %v11371_v35  ;;  %5984 = vmatprep.subr.bf16.mxu0 %v11373_v37  ;;  %v5603_v35 = vld [vmem:[#allocation9 + $0x11d0] sm:$0xff]  ;;  %v6155_v60 = vld [vmem:[#allocation9 + $0x1360] sm:$0xff] }
 0x460   :  { %v5607_v37 = vld [vmem:[#allocation9 + $0x11f0] sm:$0xff] }
 0x461   :  { %v11375_v17 = vcombine.high %v5603_v35, %v5607_v37 }
 0x462   :  { %5944 = vmatpush1.bf16.msra.mxu1 %v11370_v43  ;;  %5985 = vmatpush1.bf16.msra.mxu0 %v11372_v45  ;;  %v6115_v43 = vld [vmem:[#allocation9 + $0x1220] sm:$0xff]  ;;  %v6112_v45 = vld [vmem:[#allocation9 + $0x1208] sm:$0xff] }
 0x463   :  { %6011 = vmatprep.subr.bf16.mxu1 %v11319_v48  ;;  %6052 = vmatprep.subr.bf16.mxu0 %v11321_v49  ;;  %v11374_v48 = vcombine.low %v5603_v35, %v5607_v37  ;;  %v11376_v49 = vcombine.low %v5604_v38, %v5608_v32  ;;  %v11379_v21 = vcombine.high %v6111_v42, %v6115_v43  ;;  %v6167_v37 = vld [vmem:[#allocation9 + $0x13c0] sm:$0xff] }
 0x464   :  { %v11381_v23 = vcombine.high %v6112_v45, %v6116_v47  ;;  %v6103_v38 = vld [vmem:[#allocation2 + $0x9] ss:$16 sm:$0xc] }
 0x465   :  { %5962 = vmatmul.mubr.bf16.vlgmr.msra.gmra.mrb[16].mxu1 %v12968_v27  ;;  %6003 = vmatmul.mubr.bf16.vlgmr.msra.gmra.mrb[32].mxu0 %v12968_v27  ;;  %v6171_v32 = vld [vmem:[#allocation9 + $0x13e0] sm:$0xff] }
 0x466   :  { %6012 = vmatpush1.bf16.msra.mxu1 %v11318_v36  ;;  %6053 = vmatpush1.bf16.msra.mxu0 %v11320_v25  ;;  %v6120_v36 = vld [vmem:[#allocation9 + $0x1248] sm:$0xff] }
 0x467   :  { %6013 = vmatprep.subr.bf16.mxu1 %v11327_v28  ;;  %6054 = vmatprep.subr.bf16.mxu0 %v11329_v51  ;;  %v6124_v25 = vld [vmem:[#allocation9 + $0x1268] sm:$0xff]  ;;  %v11378_v28 = vcombine.low %v6111_v42, %v6115_v43  ;;  %v11380_v51 = vcombine.low %v6112_v45, %v6116_v47  ;;  %v6102_v42 = vld [vmem:[#allocation2 + $0x9] ss:$16 sm:$0x3]  ;;  %v11435_v45 = vcombine.high %v6167_v37, %v6171_v32 }
 0x468   :  { %6043 = vmatprep.mubr.bf16.mxu1 %v12591_v15  ;;  %6084 = vmatprep.mubr.bf16.mxu0 %v12591_v15  ;;  %v11389_v53 = vcombine.high %v6120_v36, %v6124_v25  ;;  %v6105_v43 = vld [vmem:[#allocation2 + $0x9] ss:$16 sm:$0x30] }
 0x46a   :  { %6014 = vmatpush1.bf16.msra.mxu1 %v11326_v44  ;;  %6055 = vmatpush1.bf16.msra.mxu0 %v11328_v56  ;;  %v6128_v44 = vld [vmem:[#allocation9 + $0x1288] sm:$0xff] }
 0x46b   :  { %6015 = vmatprep.subr.bf16.mxu1 %v11335_v46  ;;  %6056 = vmatprep.subr.bf16.mxu0 %v11337_v57  ;;  %v6132_v56 = vld [vmem:[#allocation9 + $0x12a8] sm:$0xff]  ;;  %v11386_v46 = vcombine.low %v6119_v34, %v6123_v24  ;;  %v11388_v57 = vcombine.low %v6120_v36, %v6124_v25  ;;  %v6114_v34 = vld [vmem:[#allocation9 + $0x1218] sm:$0xff]  ;;  %v11434_v25 = vcombine.low %v6167_v37, %v6171_v32  ;;  %v6165_v32 = vld [vmem:[#allocation9 + $0x13b0] sm:$0xff] }
 0x46c   :  { %v11397_v59 = vcombine.high %v6128_v44, %v6132_v56  ;;  %v6118_v24 = vld [vmem:[#allocation9 + $0x1238] sm:$0xff] }
 0x46e   :  { %6016 = vmatpush1.bf16.msra.mxu1 %v11334_v63  ;;  %6057 = vmatpush1.bf16.msra.mxu0 %v11336_v0  ;;  %v6136_v63 = vld [vmem:[#allocation9 + $0x12c8] sm:$0xff] }
 0x46f   :  { %6017 = vmatprep.subr.bf16.mxu1 %v11343_v1  ;;  %6058 = vmatprep.subr.bf16.mxu0 %v11345_v2  ;;  %v6140_v0 = vld [vmem:[#allocation9 + $0x12e8] sm:$0xff]  ;;  %v11394_v1 = vcombine.low %v6127_v54, %v6131_v55  ;;  %v11403_v2 = vcombine.high %v6135_v61, %v6139_v62  ;;  %v6121_v54 = vld [vmem:[#allocation9 + $0x1250] sm:$0xff] }
 0x470   :  { %v11405_v50 = vcombine.high %v6136_v63, %v6140_v0  ;;  %v6125_v55 = vld [vmem:[#allocation9 + $0x1270] sm:$0xff] }
 0x472   :  { %6018 = vmatpush1.bf16.msra.mxu1 %v11342_v7  ;;  %6059 = vmatpush1.bf16.msra.mxu0 %v11344_v8  ;;  %v6148_v7 = vld [vmem:[#allocation9 + $0x1328] sm:$0xff]  ;;  %v11402_v8 = vcombine.low %v6135_v61, %v6139_v62  ;;  %v6129_v62 = vld [vmem:[#allocation9 + $0x1290] sm:$0xff] }
 0x473   :  { %6019 = vmatprep.subr.bf16.mxu1 %v11351_v9  ;;  %6060 = vmatprep.subr.bf16.mxu0 %v11353_v10  ;;  %v11404_v9 = vcombine.low %v6136_v63, %v6140_v0  ;;  %v11411_v10 = vcombine.high %v6143_v3, %v6147_v4  ;;  %v11413_v11 = vcombine.high %v6144_v5, %v6148_v7  ;;  %v6133_v63 = vld [vmem:[#allocation9 + $0x12b0] sm:$0xff]  ;;  %v6130_v0 = vld [vmem:[#allocation9 + $0x1298] sm:$0xff] }
 0x476   :  { %6020 = vmatpush1.bf16.msra.mxu1 %v11350_v14  ;;  %6061 = vmatpush1.bf16.msra.mxu0 %v11352_v16  ;;  %v6156_v14 = vld [vmem:[#allocation9 + $0x1368] sm:$0xff]  ;;  %v11410_v16 = vcombine.low %v6143_v3, %v6147_v4  ;;  %v6137_v4 = vld [vmem:[#allocation9 + $0x12d0] sm:$0xff] }
 0x477   :  { %6021 = vmatprep.subr.bf16.mxu1 %v11359_v18  ;;  %6062 = vmatprep.subr.bf16.mxu0 %v11361_v19  ;;  %v11412_v18 = vcombine.low %v6144_v5, %v6148_v7  ;;  %v11419_v19 = vcombine.high %v6151_v12, %v6155_v60  ;;  %v11421_v20 = vcombine.high %v6152_v13, %v6156_v14  ;;  %v6141_v5 = vld [vmem:[#allocation9 + $0x12f0] sm:$0xff]  ;;  %v6138_v7 = vld [vmem:[#allocation9 + $0x12d8] sm:$0xff] }
 0x47a   :  { %6022 = vmatpush1.bf16.msra.mxu1 %v11358_v6  ;;  %6063 = vmatpush1.bf16.msra.mxu0 %v11360_v30  ;;  %v6164_v6 = vld [vmem:[#allocation9 + $0x13a8] sm:$0xff]  ;;  %v11418_v30 = vcombine.low %v6151_v12, %v6155_v60  ;;  %v6145_v60 = vld [vmem:[#allocation9 + $0x1310] sm:$0xff] }
 0x47b   :  { %6023 = vmatprep.subr.bf16.mxu1 %v11367_v31  ;;  %6064 = vmatprep.subr.bf16.mxu0 %v11369_v33  ;;  %v11420_v31 = vcombine.low %v6152_v13, %v6156_v14  ;;  %v11427_v33 = vcombine.high %v6159_v22, %v6163_v26  ;;  %v11429_v35 = vcombine.high %v6160_v29, %v6164_v6  ;;  %v6149_v13 = vld [vmem:[#allocation9 + $0x1330] sm:$0xff]  ;;  %v6146_v14 = vld [vmem:[#allocation9 + $0x1318] sm:$0xff] }
 0x47e   :  { %6024 = vmatpush1.bf16.msra.mxu1 %v11366_v39  ;;  %6065 = vmatpush1.bf16.msra.mxu0 %v11368_v40  ;;  %v6168_v39 = vld [vmem:[#allocation9 + $0x13c8] sm:$0xff] }
 0x47f   :  { %6025 = vmatprep.subr.bf16.mxu1 %v11375_v17  ;;  %6066 = vmatprep.subr.bf16.mxu0 %v11377_v41  ;;  %v6172_v40 = vld [vmem:[#allocation9 + $0x13e8] sm:$0xff]  ;;  %v11426_v17 = vcombine.low %v6159_v22, %v6163_v26  ;;  %v11428_v41 = vcombine.low %v6160_v29, %v6164_v6  ;;  %v6153_v26 = vld [vmem:[#allocation9 + $0x1350] sm:$0xff]  ;;  %v6154_v6 = vld [vmem:[#allocation9 + $0x1358] sm:$0xff] }
 0x480   :  { %v11437_v47 = vcombine.high %v6168_v39, %v6172_v40  ;;  %v6157_v29 = vld [vmem:[#allocation9 + $0x1370] sm:$0xff] }
 0x482   :  { %6026 = vmatpush1.bf16.msra.mxu1 %v11374_v48  ;;  %6067 = vmatpush1.bf16.msra.mxu0 %v11376_v49  ;;  %v6104_v48 = vor.u32 %v6103_v38, %v6102_v42  ;;  %v6107_v49 = vld [vmem:[#allocation2 + $0x9] ss:$16 sm:$0xc0] }
 0x483   :  { %6495 = vmatprep.subr.bf16.mxu1 %v11379_v21  ;;  %6536 = vmatprep.subr.bf16.mxu0 %v11381_v23  ;;  %v6113_v21 = vld [vmem:[#allocation9 + $0x1210] sm:$0xff] }
 0x484   :  { %v6117_v23 = vld [vmem:[#allocation9 + $0x1230] sm:$0xff]  ;;  %v6106_v36 = vor.u32 %v6105_v43, %v6104_v48  ;;  %v6170_v48 = vld [vmem:[#allocation9 + $0x13d8] sm:$0xff] }
 0x485   :  { %6044 = vmatmul.mubr.bf16.vlgmr.msra.gmra.mrb[20].mxu1 %v12968_v27  ;;  %6085 = vmatmul.mubr.bf16.vlgmr.msra.gmra.mrb[36].mxu0 %v12968_v27  ;;  %v11396_v27 = vcombine.low %v6128_v44, %v6132_v56  ;;  %v6122_v44 = vld [vmem:[#allocation9 + $0x1258] sm:$0xff]  ;;  %v6161_v38 = vld [vmem:[#allocation9 + $0x1390] sm:$0xff] }
 0x486   :  { %6496 = vmatpush1.bf16.msra.mxu1 %v11378_v28  ;;  %6537 = vmatpush1.bf16.msra.mxu0 %v11380_v51  ;;  %v11436_v28 = vcombine.low %v6168_v39, %v6172_v40  ;;  %v6108_v51 = vor.u32 %v6107_v49, %v6106_v36  ;;  %v6126_v56 = vld [vmem:[#allocation9 + $0x1278] sm:$0xff]  ;;  %v11431_v42 = vcombine.high %v6161_v38, %v6165_v32  ;;  %v6677_v36 = vld [vmem:[#allocation9 + $0x1400] sm:$0xff] }
 0x487   :  { %6497 = vmatprep.subr.bf16.mxu1 %v11387_v52  ;;  %6538 = vmatprep.subr.bf16.mxu0 %v11389_v53  ;;  %v11383_v52 = vcombine.high %v6113_v21, %v6117_v23  ;;  %v11385_v53 = vcombine.high %v6114_v34, %v6118_v24  ;;  %v11393_v61 = vcombine.high %v6122_v44, %v6126_v56  ;;  %v6162_v39 = vld [vmem:[#allocation9 + $0x1398] sm:$0xff] }
 0x488   :  { %6527 = vmatprep.mubr.bf16.mxu1 %v12591_v15  ;;  %6568 = vmatprep.mubr.bf16.mxu0 %v12591_v15  ;;  %v6166_v40 = vld [vmem:[#allocation9 + $0x13b8] sm:$0xff] }
 0x489   :  { %v11433_v43 = vcombine.high %v6162_v39, %v6166_v40  ;;  %v6174_v49 = vld [vmem:[#allocation9 + $0x13f8] sm:$0xff] }
 0x48a   :  { %6498 = vmatpush1.bf16.msra.mxu1 %v11386_v46  ;;  %6539 = vmatpush1.bf16.msra.mxu0 %v11388_v57  ;;  %v11382_v46 = vcombine.low %v6113_v21, %v6117_v23  ;;  %v11384_v57 = vcombine.low %v6114_v34, %v6118_v24  ;;  %v11430_v21 = vcombine.low %v6161_v38, %v6165_v32  ;;  %v6725_v32 = vld [vmem:[#allocation9 + $0x1580] sm:$0xff] }
 0x48b   :  { %6499 = vmatprep.subr.bf16.mxu1 %v11395_v58  ;;  %6540 = vmatprep.subr.bf16.mxu0 %v11397_v59  ;;  %v12978_v58 = vpack.c.bf16 %v6108_v51, %v6108_v51  ;;  %v11391_v59 = vcombine.high %v6121_v54, %v6125_v55  ;;  %v11432_v23 = vcombine.low %v6162_v39, %v6166_v40  ;;  %v6682_v51 = vld [vmem:[#allocation9 + $0x1428] sm:$0xff]  ;;  %v6729_v39 = vld [vmem:[#allocation9 + $0x15a0] sm:$0xff] }
 0x48c   :  { %v11441_v24 = vcombine.high %v6170_v48, %v6174_v49  ;;  %v6726_v40 = vld [vmem:[#allocation9 + $0x1588] sm:$0xff] }
 0x48e   :  { %6500 = vmatpush1.bf16.msra.mxu1 %v11394_v1  ;;  %6541 = vmatpush1.bf16.msra.mxu0 %v11396_v27  ;;  %v6134_v1 = vld [vmem:[#allocation9 + $0x12b8] sm:$0xff]  ;;  %v11390_v27 = vcombine.low %v6121_v54, %v6125_v55 }
 0x48f   :  { %6501 = vmatprep.subr.bf16.mxu1 %v11403_v2  ;;  %6542 = vmatprep.subr.bf16.mxu0 %v11405_v50  ;;  %v11392_v2 = vcombine.low %v6122_v44, %v6126_v56  ;;  %v11399_v50 = vcombine.high %v6129_v62, %v6133_v63  ;;  %v11401_v3 = vcombine.high %v6130_v0, %v6134_v1  ;;  %v6685_v44 = vld [vmem:[#allocation9 + $0x1440] sm:$0xff] }
 0x490   :  { %v6689_v56 = vld [vmem:[#allocation9 + $0x1460] sm:$0xff] }
 0x492   :  { %6502 = vmatpush1.bf16.msra.mxu1 %v11402_v8  ;;  %6543 = vmatpush1.bf16.msra.mxu0 %v11404_v9  ;;  %v6142_v8 = vld [vmem:[#allocation9 + $0x12f8] sm:$0xff]  ;;  %v11398_v9 = vcombine.low %v6129_v62, %v6133_v63  ;;  %v11451_v62 = vcombine.high %v6685_v44, %v6689_v56 }
 0x493   :  { %6503 = vmatprep.subr.bf16.mxu1 %v11411_v10  ;;  %6544 = vmatprep.subr.bf16.mxu0 %v11413_v11  ;;  %v11400_v10 = vcombine.low %v6130_v0, %v6134_v1  ;;  %v11407_v11 = vcombine.high %v6137_v4, %v6141_v5  ;;  %v11409_v12 = vcombine.high %v6138_v7, %v6142_v8  ;;  %v6693_v0 = vld [vmem:[#allocation9 + $0x1480] sm:$0xff] }
 0x494   :  { %v6697_v1 = vld [vmem:[#allocation9 + $0x14a0] sm:$0xff] }
 0x496   :  { %6504 = vmatpush1.bf16.msra.mxu1 %v11410_v16  ;;  %6545 = vmatpush1.bf16.msra.mxu0 %v11412_v18  ;;  %v6150_v16 = vld [vmem:[#allocation9 + $0x1338] sm:$0xff]  ;;  %v11406_v18 = vcombine.low %v6137_v4, %v6141_v5  ;;  %v11459_v4 = vcombine.high %v6693_v0, %v6697_v1 }
 0x497   :  { %6505 = vmatprep.subr.bf16.mxu1 %v11419_v19  ;;  %6546 = vmatprep.subr.bf16.mxu0 %v11421_v20  ;;  %v11408_v19 = vcombine.low %v6138_v7, %v6142_v8  ;;  %v11415_v20 = vcombine.high %v6145_v60, %v6149_v13  ;;  %v11417_v22 = vcombine.high %v6146_v14, %v6150_v16  ;;  %v6701_v7 = vld [vmem:[#allocation9 + $0x14c0] sm:$0xff] }
 0x498   :  { %v6705_v8 = vld [vmem:[#allocation9 + $0x14e0] sm:$0xff] }
 0x49a   :  { %6506 = vmatpush1.bf16.msra.mxu1 %v11418_v30  ;;  %6547 = vmatpush1.bf16.msra.mxu0 %v11420_v31  ;;  %v6158_v30 = vld [vmem:[#allocation9 + $0x1378] sm:$0xff]  ;;  %v11414_v31 = vcombine.low %v6145_v60, %v6149_v13  ;;  %v6709_v13 = vld [vmem:[#allocation9 + $0x1500] sm:$0xff] }
 0x49b   :  { %6507 = vmatprep.subr.bf16.mxu1 %v11427_v33  ;;  %6548 = vmatprep.subr.bf16.mxu0 %v11429_v35  ;;  %v11416_v33 = vcombine.low %v6146_v14, %v6150_v16  ;;  %v11423_v35 = vcombine.high %v6153_v26, %v6157_v29  ;;  %v11425_v37 = vcombine.high %v6154_v6, %v6158_v30  ;;  %v6713_v14 = vld [vmem:[#allocation9 + $0x1520] sm:$0xff]  ;;  %v6710_v16 = vld [vmem:[#allocation9 + $0x1508] sm:$0xff] }
 0x49e   :  { %6508 = vmatpush1.bf16.msra.mxu1 %v11426_v17  ;;  %6549 = vmatpush1.bf16.msra.mxu0 %v11428_v41  ;;  %v11422_v17 = vcombine.low %v6153_v26, %v6157_v29  ;;  %v11424_v41 = vcombine.low %v6154_v6, %v6158_v30  ;;  %v6717_v29 = vld [vmem:[#allocation9 + $0x1540] sm:$0xff]  ;;  %v6718_v30 = vld [vmem:[#allocation9 + $0x1548] sm:$0xff] }
 0x49f   :  { %6509 = vmatprep.subr.bf16.mxu1 %v11435_v45  ;;  %6550 = vmatprep.subr.bf16.mxu0 %v11437_v47  ;;  %v6169_v45 = vld [vmem:[#allocation9 + $0x13d0] sm:$0xff]  ;;  %v6721_v6 = vld [vmem:[#allocation9 + $0x1560] sm:$0xff] }
 0x4a0   :  { %v6173_v47 = vld [vmem:[#allocation9 + $0x13f0] sm:$0xff] }
 0x4a1   :  { %v11439_v34 = vcombine.high %v6169_v45, %v6173_v47 }
 0x4a2   :  { %6510 = vmatpush1.bf16.msra.mxu1 %v11434_v25  ;;  %6551 = vmatpush1.bf16.msra.mxu0 %v11436_v28  ;;  %v6681_v25 = vld [vmem:[#allocation9 + $0x1420] sm:$0xff]  ;;  %v6678_v28 = vld [vmem:[#allocation9 + $0x1408] sm:$0xff] }
 0x4a3   :  { %6577 = vmatprep.subr.bf16.mxu1 %v11383_v52  ;;  %6618 = vmatprep.subr.bf16.mxu0 %v11385_v53  ;;  %v11438_v52 = vcombine.low %v6169_v45, %v6173_v47  ;;  %v11440_v53 = vcombine.low %v6170_v48, %v6174_v49  ;;  %v11443_v54 = vcombine.high %v6677_v36, %v6681_v25  ;;  %v6733_v47 = vld [vmem:[#allocation9 + $0x15c0] sm:$0xff]  ;;  %v6669_v48 = vld [vmem:[#allocation2 + $0xa] ss:$16 sm:$0xc] }
 0x4a4   :  { %v11445_v55 = vcombine.high %v6678_v28, %v6682_v51  ;;  %v6737_v49 = vld [vmem:[#allocation9 + $0x15e0] sm:$0xff] }
 0x4a5   :  { %6528 = vmatmul.mubr.bf16.vlgmr.msra.gmra.mrb[16].mxu1 %v12978_v58  ;;  %6569 = vmatmul.mubr.bf16.vlgmr.msra.gmra.mrb[32].mxu0 %v12978_v58 }
 0x4a6   :  { %6578 = vmatpush1.bf16.msra.mxu1 %v11382_v46  ;;  %6619 = vmatpush1.bf16.msra.mxu0 %v11384_v57  ;;  %v6686_v46 = vld [vmem:[#allocation9 + $0x1448] sm:$0xff] }
 0x4a7   :  { %6579 = vmatprep.subr.bf16.mxu1 %v11391_v59  ;;  %6620 = vmatprep.subr.bf16.mxu0 %v11393_v61  ;;  %v6690_v57 = vld [vmem:[#allocation9 + $0x1468] sm:$0xff]  ;;  %v11442_v59 = vcombine.low %v6677_v36, %v6681_v25  ;;  %v11444_v61 = vcombine.low %v6678_v28, %v6682_v51  ;;  %v11499_v28 = vcombine.high %v6733_v47, %v6737_v49 }
 0x4a8   :  { %6609 = vmatprep.mubr.bf16.mxu1 %v12591_v15  ;;  %6650 = vmatprep.mubr.bf16.mxu0 %v12591_v15  ;;  %v11453_v63 = vcombine.high %v6686_v46, %v6690_v57  ;;  %v6668_v36 = vld [vmem:[#allocation2 + $0xa] ss:$16 sm:$0x3] }
 0x4a9   :  { %v6671_v25 = vld [vmem:[#allocation2 + $0xa] ss:$16 sm:$0x30] }
 0x4aa   :  { %6580 = vmatpush1.bf16.msra.mxu1 %v11390_v27  ;;  %6621 = vmatpush1.bf16.msra.mxu0 %v11392_v2  ;;  %v6694_v27 = vld [vmem:[#allocation9 + $0x1488] sm:$0xff] }
 0x4ab   :  { %6581 = vmatprep.subr.bf16.mxu1 %v11399_v50  ;;  %6622 = vmatprep.subr.bf16.mxu0 %v11401_v3  ;;  %v6698_v2 = vld [vmem:[#allocation9 + $0x14a8] sm:$0xff]  ;;  %v11450_v50 = vcombine.low %v6685_v44, %v6689_v56  ;;  %v11452_v3 = vcombine.low %v6686_v46, %v6690_v57  ;;  %v6680_v44 = vld [vmem:[#allocation9 + $0x1418] sm:$0xff]  ;;  %v11498_v57 = vcombine.low %v6733_v47, %v6737_v49  ;;  %v6731_v49 = vld [vmem:[#allocation9 + $0x15b0] sm:$0xff] }
 0x4ac   :  { %v11461_v5 = vcombine.high %v6694_v27, %v6698_v2  ;;  %v6684_v56 = vld [vmem:[#allocation9 + $0x1438] sm:$0xff] }
 0x4ae   :  { %6582 = vmatpush1.bf16.msra.mxu1 %v11398_v9  ;;  %6623 = vmatpush1.bf16.msra.mxu0 %v11400_v10  ;;  %v6702_v9 = vld [vmem:[#allocation9 + $0x14c8] sm:$0xff] }
 0x4af   :  { %6583 = vmatprep.subr.bf16.mxu1 %v11407_v11  ;;  %6624 = vmatprep.subr.bf16.mxu0 %v11409_v12  ;;  %v6706_v10 = vld [vmem:[#allocation9 + $0x14e8] sm:$0xff]  ;;  %v11458_v11 = vcombine.low %v6693_v0, %v6697_v1  ;;  %v11467_v12 = vcombine.high %v6701_v7, %v6705_v8  ;;  %v6687_v0 = vld [vmem:[#allocation9 + $0x1450] sm:$0xff] }
 0x4b0   :  { %v11469_v60 = vcombine.high %v6702_v9, %v6706_v10  ;;  %v6691_v1 = vld [vmem:[#allocation9 + $0x1470] sm:$0xff] }
 0x4b2   :  { %6584 = vmatpush1.bf16.msra.mxu1 %v11406_v18  ;;  %6625 = vmatpush1.bf16.msra.mxu0 %v11408_v19  ;;  %v6714_v18 = vld [vmem:[#allocation9 + $0x1528] sm:$0xff]  ;;  %v11466_v19 = vcombine.low %v6701_v7, %v6705_v8  ;;  %v6695_v8 = vld [vmem:[#allocation9 + $0x1490] sm:$0xff] }
 0x4b3   :  { %6585 = vmatprep.subr.bf16.mxu1 %v11415_v20  ;;  %6626 = vmatprep.subr.bf16.mxu0 %v11417_v22  ;;  %v11468_v20 = vcombine.low %v6702_v9, %v6706_v10  ;;  %v11475_v22 = vcombine.high %v6709_v13, %v6713_v14  ;;  %v11477_v26 = vcombine.high %v6710_v16, %v6714_v18  ;;  %v6699_v9 = vld [vmem:[#allocation9 + $0x14b0] sm:$0xff]  ;;  %v6696_v10 = vld [vmem:[#allocation9 + $0x1498] sm:$0xff] }
 0x4b6   :  { %6586 = vmatpush1.bf16.msra.mxu1 %v11414_v31  ;;  %6627 = vmatpush1.bf16.msra.mxu0 %v11416_v33  ;;  %v6722_v31 = vld [vmem:[#allocation9 + $0x1568] sm:$0xff]  ;;  %v11474_v33 = vcombine.low %v6709_v13, %v6713_v14  ;;  %v6703_v14 = vld [vmem:[#allocation9 + $0x14d0] sm:$0xff] }
 0x4b7   :  { %6587 = vmatprep.subr.bf16.mxu1 %v11423_v35  ;;  %6628 = vmatprep.subr.bf16.mxu0 %v11425_v37  ;;  %v11476_v35 = vcombine.low %v6710_v16, %v6714_v18  ;;  %v11483_v37 = vcombine.high %v6717_v29, %v6721_v6  ;;  %v11485_v38 = vcombine.high %v6718_v30, %v6722_v31  ;;  %v6707_v16 = vld [vmem:[#allocation9 + $0x14f0] sm:$0xff]  ;;  %v6704_v18 = vld [vmem:[#allocation9 + $0x14d8] sm:$0xff] }
 0x4ba   :  { %6588 = vmatpush1.bf16.msra.mxu1 %v11422_v17  ;;  %6629 = vmatpush1.bf16.msra.mxu0 %v11424_v41  ;;  %v6730_v17 = vld [vmem:[#allocation9 + $0x15a8] sm:$0xff]  ;;  %v11482_v41 = vcombine.low %v6717_v29, %v6721_v6  ;;  %v6711_v6 = vld [vmem:[#allocation9 + $0x1510] sm:$0xff] }
 0x4bb   :  { %6589 = vmatprep.subr.bf16.mxu1 %v11431_v42  ;;  %6630 = vmatprep.subr.bf16.mxu0 %v11433_v43  ;;  %v11484_v42 = vcombine.low %v6718_v30, %v6722_v31  ;;  %v11491_v43 = vcombine.high %v6725_v32, %v6729_v39  ;;  %v11493_v45 = vcombine.high %v6726_v40, %v6730_v17  ;;  %v6715_v30 = vld [vmem:[#allocation9 + $0x1530] sm:$0xff]  ;;  %v6712_v31 = vld [vmem:[#allocation9 + $0x1518] sm:$0xff] }
 0x4be   :  { %6590 = vmatpush1.bf16.msra.mxu1 %v11430_v21  ;;  %6631 = vmatpush1.bf16.msra.mxu0 %v11432_v23  ;;  %v6734_v21 = vld [vmem:[#allocation9 + $0x15c8] sm:$0xff] }
 0x4bf   :  { %6591 = vmatprep.subr.bf16.mxu1 %v11439_v34  ;;  %6632 = vmatprep.subr.bf16.mxu0 %v11441_v24  ;;  %v6738_v23 = vld [vmem:[#allocation9 + $0x15e8] sm:$0xff]  ;;  %v11490_v34 = vcombine.low %v6725_v32, %v6729_v39  ;;  %v11492_v24 = vcombine.low %v6726_v40, %v6730_v17  ;;  %v6719_v39 = vld [vmem:[#allocation9 + $0x1550] sm:$0xff]  ;;  %v6720_v17 = vld [vmem:[#allocation9 + $0x1558] sm:$0xff] }
 0x4c0   :  { %v11501_v51 = vcombine.high %v6734_v21, %v6738_v23  ;;  %v6723_v40 = vld [vmem:[#allocation9 + $0x1570] sm:$0xff] }
 0x4c2   :  { %6592 = vmatpush1.bf16.msra.mxu1 %v11438_v52  ;;  %6633 = vmatpush1.bf16.msra.mxu0 %v11440_v53  ;;  %v6670_v52 = vor.u32 %v6669_v48, %v6668_v36  ;;  %v6673_v53 = vld [vmem:[#allocation2 + $0xa] ss:$16 sm:$0xc0]  ;;  %v6727_v48 = vld [vmem:[#allocation9 + $0x1590] sm:$0xff] }
 0x4c3   :  { %7061 = vmatprep.subr.bf16.mxu1 %v11443_v54  ;;  %7102 = vmatprep.subr.bf16.mxu0 %v11445_v55  ;;  %v6679_v54 = vld [vmem:[#allocation9 + $0x1410] sm:$0xff]  ;;  %v11495_v36 = vcombine.high %v6727_v48, %v6731_v49 }
 0x4c4   :  { %v6683_v55 = vld [vmem:[#allocation9 + $0x1430] sm:$0xff]  ;;  %v6672_v46 = vor.u32 %v6671_v25, %v6670_v52  ;;  %v6736_v52 = vld [vmem:[#allocation9 + $0x15d8] sm:$0xff] }
 0x4c5   :  { %6610 = vmatmul.mubr.bf16.vlgmr.msra.gmra.mrb[20].mxu1 %v12978_v58  ;;  %6651 = vmatmul.mubr.bf16.vlgmr.msra.gmra.mrb[36].mxu0 %v12978_v58  ;;  %v11460_v58 = vcombine.low %v6694_v27, %v6698_v2  ;;  %v6688_v27 = vld [vmem:[#allocation9 + $0x1458] sm:$0xff] }
 0x4c6   :  { %7062 = vmatpush1.bf16.msra.mxu1 %v11442_v59  ;;  %7103 = vmatpush1.bf16.msra.mxu0 %v11444_v61  ;;  %v11500_v59 = vcombine.low %v6734_v21, %v6738_v23  ;;  %v6674_v61 = vor.u32 %v6673_v53, %v6672_v46  ;;  %v6692_v2 = vld [vmem:[#allocation9 + $0x1478] sm:$0xff]  ;;  %v7243_v46 = vld [vmem:[#allocation9 + $0x1600] sm:$0xff] }
 0x4c7   :  { %7063 = vmatprep.subr.bf16.mxu1 %v11451_v62  ;;  %7104 = vmatprep.subr.bf16.mxu0 %v11453_v63  ;;  %v11447_v62 = vcombine.high %v6679_v54, %v6683_v55  ;;  %v11449_v63 = vcombine.high %v6680_v44, %v6684_v56  ;;  %v11457_v7 = vcombine.high %v6688_v27, %v6692_v2  ;;  %v6728_v21 = vld [vmem:[#allocation9 + $0x1598] sm:$0xff] }
 0x4c8   :  { %7093 = vmatprep.mubr.bf16.mxu1 %v12591_v15  ;;  %7134 = vmatprep.mubr.bf16.mxu0 %v12591_v15  ;;  %v6732_v23 = vld [vmem:[#allocation9 + $0x15b8] sm:$0xff] }
 0x4c9   :  { %v11497_v25 = vcombine.high %v6728_v21, %v6732_v23  ;;  %v6740_v53 = vld [vmem:[#allocation9 + $0x15f8] sm:$0xff] }
 0x4ca   :  { %7064 = vmatpush1.bf16.msra.mxu1 %v11450_v50  ;;  %7105 = vmatpush1.bf16.msra.mxu0 %v11452_v3  ;;  %v11446_v50 = vcombine.low %v6679_v54, %v6683_v55  ;;  %v11448_v3 = vcombine.low %v6680_v44, %v6684_v56  ;;  %v11494_v54 = vcombine.low %v6727_v48, %v6731_v49  ;;  %v7291_v49 = vld [vmem:[#allocation9 + $0x1780] sm:$0xff] }
 0x4cb   :  { %7065 = vmatprep.subr.bf16.mxu1 %v11459_v4  ;;  %7106 = vmatprep.subr.bf16.mxu0 %v11461_v5  ;;  %v12988_v4 = vpack.c.bf16 %v6674_v61, %v6674_v61  ;;  %v11455_v5 = vcombine.high %v6687_v0, %v6691_v1  ;;  %v11496_v55 = vcombine.low %v6728_v21, %v6732_v23  ;;  %v7248_v61 = vld [vmem:[#allocation9 + $0x1628] sm:$0xff]  ;;  %v7295_v21 = vld [vmem:[#allocation9 + $0x17a0] sm:$0xff] }
 0x4cc   :  { %v11505_v56 = vcombine.high %v6736_v52, %v6740_v53  ;;  %v7292_v23 = vld [vmem:[#allocation9 + $0x1788] sm:$0xff] }
 0x4ce   :  { %7066 = vmatpush1.bf16.msra.mxu1 %v11458_v11  ;;  %7107 = vmatpush1.bf16.msra.mxu0 %v11460_v58  ;;  %v6700_v11 = vld [vmem:[#allocation9 + $0x14b8] sm:$0xff]  ;;  %v11454_v58 = vcombine.low %v6687_v0, %v6691_v1 }
 0x4cf   :  { %7067 = vmatprep.subr.bf16.mxu1 %v11467_v12  ;;  %7108 = vmatprep.subr.bf16.mxu0 %v11469_v60  ;;  %v11456_v12 = vcombine.low %v6688_v27, %v6692_v2  ;;  %v11463_v60 = vcombine.high %v6695_v8, %v6699_v9  ;;  %v11465_v13 = vcombine.high %v6696_v10, %v6700_v11  ;;  %v7251_v27 = vld [vmem:[#allocation9 + $0x1640] sm:$0xff] }
 0x4d0   :  { %v7255_v2 = vld [vmem:[#allocation9 + $0x1660] sm:$0xff] }
 0x4d2   :  { %7068 = vmatpush1.bf16.msra.mxu1 %v11466_v19  ;;  %7109 = vmatpush1.bf16.msra.mxu0 %v11468_v20  ;;  %v6708_v19 = vld [vmem:[#allocation9 + $0x14f8] sm:$0xff]  ;;  %v11462_v20 = vcombine.low %v6695_v8, %v6699_v9  ;;  %v11515_v8 = vcombine.high %v7251_v27, %v7255_v2 }
 0x4d3   :  { %7069 = vmatprep.subr.bf16.mxu1 %v11475_v22  ;;  %7110 = vmatprep.subr.bf16.mxu0 %v11477_v26  ;;  %v11464_v22 = vcombine.low %v6696_v10, %v6700_v11  ;;  %v11471_v26 = vcombine.high %v6703_v14, %v6707_v16  ;;  %v11473_v29 = vcombine.high %v6704_v18, %v6708_v19  ;;  %v7259_v10 = vld [vmem:[#allocation9 + $0x1680] sm:$0xff] }
 0x4d4   :  { %v7263_v11 = vld [vmem:[#allocation9 + $0x16a0] sm:$0xff] }
 0x4d6   :  { %7070 = vmatpush1.bf16.msra.mxu1 %v11474_v33  ;;  %7111 = vmatpush1.bf16.msra.mxu0 %v11476_v35  ;;  %v6716_v33 = vld [vmem:[#allocation9 + $0x1538] sm:$0xff]  ;;  %v11470_v35 = vcombine.low %v6703_v14, %v6707_v16  ;;  %v11523_v14 = vcombine.high %v7259_v10, %v7263_v11 }
 0x4d7   :  { %7071 = vmatprep.subr.bf16.mxu1 %v11483_v37  ;;  %7112 = vmatprep.subr.bf16.mxu0 %v11485_v38  ;;  %v11472_v37 = vcombine.low %v6704_v18, %v6708_v19  ;;  %v11479_v38 = vcombine.high %v6711_v6, %v6715_v30  ;;  %v11481_v32 = vcombine.high %v6712_v31, %v6716_v33  ;;  %v7267_v18 = vld [vmem:[#allocation9 + $0x16c0] sm:$0xff] }
 0x4d8   :  { %v7271_v19 = vld [vmem:[#allocation9 + $0x16e0] sm:$0xff] }
 0x4da   :  { %7072 = vmatpush1.bf16.msra.mxu1 %v11482_v41  ;;  %7113 = vmatpush1.bf16.msra.mxu0 %v11484_v42  ;;  %v6724_v41 = vld [vmem:[#allocation9 + $0x1578] sm:$0xff]  ;;  %v11478_v42 = vcombine.low %v6711_v6, %v6715_v30  ;;  %v7275_v30 = vld [vmem:[#allocation9 + $0x1700] sm:$0xff] }
 0x4db   :  { %7073 = vmatprep.subr.bf16.mxu1 %v11491_v43  ;;  %7114 = vmatprep.subr.bf16.mxu0 %v11493_v45  ;;  %v11480_v43 = vcombine.low %v6712_v31, %v6716_v33  ;;  %v11487_v45 = vcombine.high %v6719_v39, %v6723_v40  ;;  %v11489_v47 = vcombine.high %v6720_v17, %v6724_v41  ;;  %v7279_v31 = vld [vmem:[#allocation9 + $0x1720] sm:$0xff]  ;;  %v7276_v33 = vld [vmem:[#allocation9 + $0x1708] sm:$0xff] }
 0x4de   :  { %7074 = vmatpush1.bf16.msra.mxu1 %v11490_v34  ;;  %7115 = vmatpush1.bf16.msra.mxu0 %v11492_v24  ;;  %v11486_v34 = vcombine.low %v6719_v39, %v6723_v40  ;;  %v11488_v24 = vcombine.low %v6720_v17, %v6724_v41  ;;  %v7283_v40 = vld [vmem:[#allocation9 + $0x1740] sm:$0xff]  ;;  %v7284_v41 = vld [vmem:[#allocation9 + $0x1748] sm:$0xff] }
 0x4df   :  { %7075 = vmatprep.subr.bf16.mxu1 %v11499_v28  ;;  %7116 = vmatprep.subr.bf16.mxu0 %v11501_v51  ;;  %v6735_v28 = vld [vmem:[#allocation9 + $0x15d0] sm:$0xff]  ;;  %v7287_v17 = vld [vmem:[#allocation9 + $0x1760] sm:$0xff] }
 0x4e0   :  { %v6739_v51 = vld [vmem:[#allocation9 + $0x15f0] sm:$0xff] }
 0x4e1   :  { %v11503_v44 = vcombine.high %v6735_v28, %v6739_v51 }
 0x4e2   :  { %7076 = vmatpush1.bf16.msra.mxu1 %v11498_v57  ;;  %7117 = vmatpush1.bf16.msra.mxu0 %v11500_v59  ;;  %v7247_v57 = vld [vmem:[#allocation9 + $0x1620] sm:$0xff]  ;;  %v7244_v59 = vld [vmem:[#allocation9 + $0x1608] sm:$0xff] }
 0x4e3   :  { %7143 = vmatprep.subr.bf16.mxu1 %v11447_v62  ;;  %7184 = vmatprep.subr.bf16.mxu0 %v11449_v63  ;;  %v11502_v62 = vcombine.low %v6735_v28, %v6739_v51  ;;  %v11504_v63 = vcombine.low %v6736_v52, %v6740_v53  ;;  %v11507_v0 = vcombine.high %v7243_v46, %v7247_v57  ;;  %v7299_v51 = vld [vmem:[#allocation9 + $0x17c0] sm:$0xff]  ;;  %v7235_v52 = vld [vmem:[#allocation2 + $0xb] ss:$16 sm:$0xc] }
 0x4e4   :  { %v11509_v1 = vcombine.high %v7244_v59, %v7248_v61  ;;  %v7303_v53 = vld [vmem:[#allocation9 + $0x17e0] sm:$0xff] }
 0x4e5   :  { %7094 = vmatmul.mubr.bf16.vlgmr.msra.gmra.mrb[16].mxu1 %v12988_v4  ;;  %7135 = vmatmul.mubr.bf16.vlgmr.msra.gmra.mrb[32].mxu0 %v12988_v4 }
 0x4e6   :  { %7144 = vmatpush1.bf16.msra.mxu1 %v11446_v50  ;;  %7185 = vmatpush1.bf16.msra.mxu0 %v11448_v3  ;;  %v7252_v50 = vld [vmem:[#allocation9 + $0x1648] sm:$0xff] }
 0x4e7   :  { %7145 = vmatprep.subr.bf16.mxu1 %v11455_v5  ;;  %7186 = vmatprep.subr.bf16.mxu0 %v11457_v7  ;;  %v7256_v3 = vld [vmem:[#allocation9 + $0x1668] sm:$0xff]  ;;  %v11506_v5 = vcombine.low %v7243_v46, %v7247_v57  ;;  %v11508_v7 = vcombine.low %v7244_v59, %v7248_v61  ;;  %v11563_v59 = vcombine.high %v7299_v51, %v7303_v53 }
 0x4e8   :  { %7175 = vmatprep.mubr.bf16.mxu1 %v12591_v15  ;;  %7216 = vmatprep.mubr.bf16.mxu0 %v12591_v15  ;;  %v11517_v9 = vcombine.high %v7252_v50, %v7256_v3  ;;  %v7234_v46 = vld [vmem:[#allocation2 + $0xb] ss:$16 sm:$0x3] }
 0x4e9   :  { %v7237_v57 = vld [vmem:[#allocation2 + $0xb] ss:$16 sm:$0x30] }
 0x4ea   :  { %7146 = vmatpush1.bf16.msra.mxu1 %v11454_v58  ;;  %7187 = vmatpush1.bf16.msra.mxu0 %v11456_v12  ;;  %v7260_v58 = vld [vmem:[#allocation9 + $0x1688] sm:$0xff] }
 0x4eb   :  { %7147 = vmatprep.subr.bf16.mxu1 %v11463_v60  ;;  %7188 = vmatprep.subr.bf16.mxu0 %v11465_v13  ;;  %v7264_v12 = vld [vmem:[#allocation9 + $0x16a8] sm:$0xff]  ;;  %v11514_v60 = vcombine.low %v7251_v27, %v7255_v2  ;;  %v11516_v13 = vcombine.low %v7252_v50, %v7256_v3  ;;  %v7246_v27 = vld [vmem:[#allocation9 + $0x1618] sm:$0xff]  ;;  %v11562_v3 = vcombine.low %v7299_v51, %v7303_v53  ;;  %v7297_v53 = vld [vmem:[#allocation9 + $0x17b0] sm:$0xff] }
 0x4ec   :  { %v11525_v16 = vcombine.high %v7260_v58, %v7264_v12  ;;  %v7250_v2 = vld [vmem:[#allocation9 + $0x1638] sm:$0xff] }
 0x4ee   :  { %7148 = vmatpush1.bf16.msra.mxu1 %v11462_v20  ;;  %7189 = vmatpush1.bf16.msra.mxu0 %v11464_v22  ;;  %v7268_v20 = vld [vmem:[#allocation9 + $0x16c8] sm:$0xff] }
 0x4ef   :  { %7149 = vmatprep.subr.bf16.mxu1 %v11471_v26  ;;  %7190 = vmatprep.subr.bf16.mxu0 %v11473_v29  ;;  %v7272_v22 = vld [vmem:[#allocation9 + $0x16e8] sm:$0xff]  ;;  %v11522_v26 = vcombine.low %v7259_v10, %v7263_v11  ;;  %v11531_v29 = vcombine.high %v7267_v18, %v7271_v19  ;;  %v7253_v10 = vld [vmem:[#allocation9 + $0x1650] sm:$0xff] }
 0x4f0   :  { %v11533_v6 = vcombine.high %v7268_v20, %v7272_v22  ;;  %v7257_v11 = vld [vmem:[#allocation9 + $0x1670] sm:$0xff] }
 0x4f2   :  { %7150 = vmatpush1.bf16.msra.mxu1 %v11470_v35  ;;  %7191 = vmatpush1.bf16.msra.mxu0 %v11472_v37  ;;  %v7280_v35 = vld [vmem:[#allocation9 + $0x1728] sm:$0xff]  ;;  %v11530_v37 = vcombine.low %v7267_v18, %v7271_v19  ;;  %v7261_v19 = vld [vmem:[#allocation9 + $0x1690] sm:$0xff] }
 0x4f3   :  { %7151 = vmatprep.subr.bf16.mxu1 %v11479_v38  ;;  %7192 = vmatprep.subr.bf16.mxu0 %v11481_v32  ;;  %v11532_v38 = vcombine.low %v7268_v20, %v7272_v22  ;;  %v11539_v32 = vcombine.high %v7275_v30, %v7279_v31  ;;  %v11541_v39 = vcombine.high %v7276_v33, %v7280_v35  ;;  %v7265_v20 = vld [vmem:[#allocation9 + $0x16b0] sm:$0xff]  ;;  %v7262_v22 = vld [vmem:[#allocation9 + $0x1698] sm:$0xff] }
 0x4f6   :  { %7152 = vmatpush1.bf16.msra.mxu1 %v11478_v42  ;;  %7193 = vmatpush1.bf16.msra.mxu0 %v11480_v43  ;;  %v7288_v42 = vld [vmem:[#allocation9 + $0x1768] sm:$0xff]  ;;  %v11538_v43 = vcombine.low %v7275_v30, %v7279_v31  ;;  %v7269_v31 = vld [vmem:[#allocation9 + $0x16d0] sm:$0xff] }
 0x4f7   :  { %7153 = vmatprep.subr.bf16.mxu1 %v11487_v45  ;;  %7194 = vmatprep.subr.bf16.mxu0 %v11489_v47  ;;  %v11540_v45 = vcombine.low %v7276_v33, %v7280_v35  ;;  %v11547_v47 = vcombine.high %v7283_v40, %v7287_v17  ;;  %v11549_v48 = vcombine.high %v7284_v41, %v7288_v42  ;;  %v7273_v33 = vld [vmem:[#allocation9 + $0x16f0] sm:$0xff]  ;;  %v7270_v35 = vld [vmem:[#allocation9 + $0x16d8] sm:$0xff] }
 0x4fa   :  { %7154 = vmatpush1.bf16.msra.mxu1 %v11486_v34  ;;  %7195 = vmatpush1.bf16.msra.mxu0 %v11488_v24  ;;  %v7296_v34 = vld [vmem:[#allocation9 + $0x17a8] sm:$0xff]  ;;  %v11546_v24 = vcombine.low %v7283_v40, %v7287_v17  ;;  %v7277_v17 = vld [vmem:[#allocation9 + $0x1710] sm:$0xff] }
 0x4fb   :  { %7155 = vmatprep.subr.bf16.mxu1 %v11495_v36  ;;  %7196 = vmatprep.subr.bf16.mxu0 %v11497_v25  ;;  %v11548_v36 = vcombine.low %v7284_v41, %v7288_v42  ;;  %v11555_v25 = vcombine.high %v7291_v49, %v7295_v21  ;;  %v11557_v28 = vcombine.high %v7292_v23, %v7296_v34  ;;  %v7281_v41 = vld [vmem:[#allocation9 + $0x1730] sm:$0xff]  ;;  %v7278_v42 = vld [vmem:[#allocation9 + $0x1718] sm:$0xff] }
 0x4fe   :  { %7156 = vmatpush1.bf16.msra.mxu1 %v11494_v54  ;;  %7197 = vmatpush1.bf16.msra.mxu0 %v11496_v55  ;;  %v7300_v54 = vld [vmem:[#allocation9 + $0x17c8] sm:$0xff] }
 0x4ff   :  { %7157 = vmatprep.subr.bf16.mxu1 %v11503_v44  ;;  %7198 = vmatprep.subr.bf16.mxu0 %v11505_v56  ;;  %v7304_v55 = vld [vmem:[#allocation9 + $0x17e8] sm:$0xff]  ;;  %v11554_v44 = vcombine.low %v7291_v49, %v7295_v21  ;;  %v11556_v56 = vcombine.low %v7292_v23, %v7296_v34  ;;  %v7285_v21 = vld [vmem:[#allocation9 + $0x1750] sm:$0xff]  ;;  %v7286_v34 = vld [vmem:[#allocation9 + $0x1758] sm:$0xff] }
 0x500   :  { %v11565_v61 = vcombine.high %v7300_v54, %v7304_v55  ;;  %v7289_v23 = vld [vmem:[#allocation9 + $0x1770] sm:$0xff] }
 0x502   :  { %7158 = vmatpush1.bf16.msra.mxu1 %v11502_v62  ;;  %7199 = vmatpush1.bf16.msra.mxu0 %v11504_v63  ;;  %v7236_v62 = vor.u32 %v7235_v52, %v7234_v46  ;;  %v7239_v63 = vld [vmem:[#allocation2 + $0xb] ss:$16 sm:$0xc0]  ;;  %v7293_v52 = vld [vmem:[#allocation9 + $0x1790] sm:$0xff] }
 0x503   :  { %7627 = vmatprep.subr.bf16.mxu1 %v11507_v0  ;;  %7668 = vmatprep.subr.bf16.mxu0 %v11509_v1  ;;  %v7245_v0 = vld [vmem:[#allocation9 + $0x1610] sm:$0xff]  ;;  %v11559_v46 = vcombine.high %v7293_v52, %v7297_v53 }
 0x504   :  { %v7249_v1 = vld [vmem:[#allocation9 + $0x1630] sm:$0xff]  ;;  %v7238_v50 = vor.u32 %v7237_v57, %v7236_v62  ;;  %v7302_v62 = vld [vmem:[#allocation9 + $0x17d8] sm:$0xff] }
 0x505   :  { %7176 = vmatmul.mubr.bf16.vlgmr.msra.gmra.mrb[20].mxu1 %v12988_v4  ;;  %7217 = vmatmul.mubr.bf16.vlgmr.msra.gmra.mrb[36].mxu0 %v12988_v4  ;;  %v11524_v4 = vcombine.low %v7260_v58, %v7264_v12  ;;  %v7254_v58 = vld [vmem:[#allocation9 + $0x1658] sm:$0xff] }
 0x506   :  { %7628 = vmatpush1.bf16.msra.mxu1 %v11506_v5  ;;  %7669 = vmatpush1.bf16.msra.mxu0 %v11508_v7  ;;  %v11564_v5 = vcombine.low %v7300_v54, %v7304_v55  ;;  %v7240_v7 = vor.u32 %v7239_v63, %v7238_v50  ;;  %v7258_v12 = vld [vmem:[#allocation9 + $0x1678] sm:$0xff]  ;;  %v7809_v50 = vld [vmem:[#allocation9 + $0x1800] sm:$0xff] }
 0x507   :  { %7629 = vmatprep.subr.bf16.mxu1 %v11515_v8  ;;  %7670 = vmatprep.subr.bf16.mxu0 %v11517_v9  ;;  %v11511_v8 = vcombine.high %v7245_v0, %v7249_v1  ;;  %v11513_v9 = vcombine.high %v7246_v27, %v7250_v2  ;;  %v11521_v18 = vcombine.high %v7254_v58, %v7258_v12  ;;  %v7294_v54 = vld [vmem:[#allocation9 + $0x1798] sm:$0xff] }
 0x508   :  { %7659 = vmatprep.mubr.bf16.mxu1 %v12591_v15  ;;  %7700 = vmatprep.mubr.bf16.mxu0 %v12591_v15  ;;  %v7298_v55 = vld [vmem:[#allocation9 + $0x17b8] sm:$0xff] }
 0x509   :  { %v11561_v57 = vcombine.high %v7294_v54, %v7298_v55  ;;  %v7306_v63 = vld [vmem:[#allocation9 + $0x17f8] sm:$0xff] }
 0x50a   :  { %7630 = vmatpush1.bf16.msra.mxu1 %v11514_v60  ;;  %7671 = vmatpush1.bf16.msra.mxu0 %v11516_v13  ;;  %v11510_v60 = vcombine.low %v7245_v0, %v7249_v1  ;;  %v11512_v13 = vcombine.low %v7246_v27, %v7250_v2  ;;  %v11558_v0 = vcombine.low %v7293_v52, %v7297_v53  ;;  %v7857_v53 = vld [vmem:[#allocation9 + $0x1980] sm:$0xff] }
 0x50b   :  { %7631 = vmatprep.subr.bf16.mxu1 %v11523_v14  ;;  %7672 = vmatprep.subr.bf16.mxu0 %v11525_v16  ;;  %v12998_v14 = vpack.c.bf16 %v7240_v7, %v7240_v7  ;;  %v11519_v16 = vcombine.high %v7253_v10, %v7257_v11  ;;  %v11560_v1 = vcombine.low %v7294_v54, %v7298_v55  ;;  %v7814_v7 = vld [vmem:[#allocation9 + $0x1828] sm:$0xff]  ;;  %v7861_v54 = vld [vmem:[#allocation9 + $0x19a0] sm:$0xff] }
 0x50c   :  { %v11569_v2 = vcombine.high %v7302_v62, %v7306_v63  ;;  %v7858_v55 = vld [vmem:[#allocation9 + $0x1988] sm:$0xff] }
 0x50e   :  { %7632 = vmatpush1.bf16.msra.mxu1 %v11522_v26  ;;  %7673 = vmatpush1.bf16.msra.mxu0 %v11524_v4  ;;  %v7266_v26 = vld [vmem:[#allocation9 + $0x16b8] sm:$0xff]  ;;  %v11518_v4 = vcombine.low %v7253_v10, %v7257_v11 }
 0x50f   :  { %7633 = vmatprep.subr.bf16.mxu1 %v11531_v29  ;;  %7674 = vmatprep.subr.bf16.mxu0 %v11533_v6  ;;  %v11520_v29 = vcombine.low %v7254_v58, %v7258_v12  ;;  %v11527_v6 = vcombine.high %v7261_v19, %v7265_v20  ;;  %v11529_v30 = vcombine.high %v7262_v22, %v7266_v26  ;;  %v7817_v58 = vld [vmem:[#allocation9 + $0x1840] sm:$0xff] }
 0x510   :  { %v7821_v12 = vld [vmem:[#allocation9 + $0x1860] sm:$0xff] }
 0x512   :  { %7634 = vmatpush1.bf16.msra.mxu1 %v11530_v37  ;;  %7675 = vmatpush1.bf16.msra.mxu0 %v11532_v38  ;;  %v7274_v37 = vld [vmem:[#allocation9 + $0x16f8] sm:$0xff]  ;;  %v11526_v38 = vcombine.low %v7261_v19, %v7265_v20  ;;  %v11579_v19 = vcombine.high %v7817_v58, %v7821_v12 }
 0x513   :  { %7635 = vmatprep.subr.bf16.mxu1 %v11539_v32  ;;  %7676 = vmatprep.subr.bf16.mxu0 %v11541_v39  ;;  %v11528_v32 = vcombine.low %v7262_v22, %v7266_v26  ;;  %v11535_v39 = vcombine.high %v7269_v31, %v7273_v33  ;;  %v11537_v40 = vcombine.high %v7270_v35, %v7274_v37  ;;  %v7825_v22 = vld [vmem:[#allocation9 + $0x1880] sm:$0xff] }
 0x514   :  { %v7829_v26 = vld [vmem:[#allocation9 + $0x18a0] sm:$0xff] }
 0x516   :  { %7636 = vmatpush1.bf16.msra.mxu1 %v11538_v43  ;;  %7677 = vmatpush1.bf16.msra.mxu0 %v11540_v45  ;;  %v7282_v43 = vld [vmem:[#allocation9 + $0x1738] sm:$0xff]  ;;  %v11534_v45 = vcombine.low %v7269_v31, %v7273_v33  ;;  %v11587_v31 = vcombine.high %v7825_v22, %v7829_v26 }
 0x517   :  { %7637 = vmatprep.subr.bf16.mxu1 %v11547_v47  ;;  %7678 = vmatprep.subr.bf16.mxu0 %v11549_v48  ;;  %v11536_v47 = vcombine.low %v7270_v35, %v7274_v37  ;;  %v11543_v48 = vcombine.high %v7277_v17, %v7281_v41  ;;  %v11545_v49 = vcombine.high %v7278_v42, %v7282_v43  ;;  %v7833_v35 = vld [vmem:[#allocation9 + $0x18c0] sm:$0xff] }
 0x518   :  { %v7837_v37 = vld [vmem:[#allocation9 + $0x18e0] sm:$0xff] }
 0x51a   :  { %7638 = vmatpush1.bf16.msra.mxu1 %v11546_v24  ;;  %7679 = vmatpush1.bf16.msra.mxu0 %v11548_v36  ;;  %v7290_v24 = vld [vmem:[#allocation9 + $0x1778] sm:$0xff]  ;;  %v11542_v36 = vcombine.low %v7277_v17, %v7281_v41  ;;  %v7841_v41 = vld [vmem:[#allocation9 + $0x1900] sm:$0xff] }
 0x51b   :  { %7639 = vmatprep.subr.bf16.mxu1 %v11555_v25  ;;  %7680 = vmatprep.subr.bf16.mxu0 %v11557_v28  ;;  %v11544_v25 = vcombine.low %v7278_v42, %v7282_v43  ;;  %v11551_v28 = vcombine.high %v7285_v21, %v7289_v23  ;;  %v11553_v51 = vcombine.high %v7286_v34, %v7290_v24  ;;  %v7845_v42 = vld [vmem:[#allocation9 + $0x1920] sm:$0xff]  ;;  %v7842_v43 = vld [vmem:[#allocation9 + $0x1908] sm:$0xff] }
 0x51e   :  { %7640 = vmatpush1.bf16.msra.mxu1 %v11554_v44  ;;  %7681 = vmatpush1.bf16.msra.mxu0 %v11556_v56  ;;  %v11550_v44 = vcombine.low %v7285_v21, %v7289_v23  ;;  %v11552_v56 = vcombine.low %v7286_v34, %v7290_v24  ;;  %v7849_v23 = vld [vmem:[#allocation9 + $0x1940] sm:$0xff]  ;;  %v7850_v24 = vld [vmem:[#allocation9 + $0x1948] sm:$0xff] }
 0x51f   :  { %7641 = vmatprep.subr.bf16.mxu1 %v11563_v59  ;;  %7682 = vmatprep.subr.bf16.mxu0 %v11565_v61  ;;  %v7301_v59 = vld [vmem:[#allocation9 + $0x17d0] sm:$0xff]  ;;  %v7853_v34 = vld [vmem:[#allocation9 + $0x1960] sm:$0xff] }
 0x520   :  { %v7305_v61 = vld [vmem:[#allocation9 + $0x17f0] sm:$0xff] }
 0x521   :  { %v11567_v27 = vcombine.high %v7301_v59, %v7305_v61 }
 0x522   :  { %7642 = vmatpush1.bf16.msra.mxu1 %v11562_v3  ;;  %7683 = vmatpush1.bf16.msra.mxu0 %v11564_v5  ;;  %v7813_v3 = vld [vmem:[#allocation9 + $0x1820] sm:$0xff]  ;;  %v7810_v5 = vld [vmem:[#allocation9 + $0x1808] sm:$0xff] }
 0x523   :  { %7709 = vmatprep.subr.bf16.mxu1 %v11511_v8  ;;  %7750 = vmatprep.subr.bf16.mxu0 %v11513_v9  ;;  %v11566_v8 = vcombine.low %v7301_v59, %v7305_v61  ;;  %v11568_v9 = vcombine.low %v7302_v62, %v7306_v63  ;;  %v11571_v10 = vcombine.high %v7809_v50, %v7813_v3  ;;  %v7865_v61 = vld [vmem:[#allocation9 + $0x19c0] sm:$0xff]  ;;  %v7801_v62 = vld [vmem:[#allocation2 + $0xc] ss:$16 sm:$0xc] }
 0x524   :  { %v11573_v11 = vcombine.high %v7810_v5, %v7814_v7  ;;  %v7869_v63 = vld [vmem:[#allocation9 + $0x19e0] sm:$0xff] }
 0x525   :  { %7660 = vmatmul.mubr.bf16.vlgmr.msra.gmra.mrb[16].mxu1 %v12998_v14  ;;  %7701 = vmatmul.mubr.bf16.vlgmr.msra.gmra.mrb[32].mxu0 %v12998_v14 }
 0x526   :  { %7710 = vmatpush1.bf16.msra.mxu1 %v11510_v60  ;;  %7751 = vmatpush1.bf16.msra.mxu0 %v11512_v13  ;;  %v7818_v60 = vld [vmem:[#allocation9 + $0x1848] sm:$0xff] }
 0x527   :  { %7711 = vmatprep.subr.bf16.mxu1 %v11519_v16  ;;  %7752 = vmatprep.subr.bf16.mxu0 %v11521_v18  ;;  %v7822_v13 = vld [vmem:[#allocation9 + $0x1868] sm:$0xff]  ;;  %v11570_v16 = vcombine.low %v7809_v50, %v7813_v3  ;;  %v11572_v18 = vcombine.low %v7810_v5, %v7814_v7  ;;  %v11627_v5 = vcombine.high %v7865_v61, %v7869_v63 }
 0x528   :  { %7741 = vmatprep.mubr.bf16.mxu1 %v12591_v15  ;;  %7782 = vmatprep.mubr.bf16.mxu0 %v12591_v15  ;;  %v11581_v20 = vcombine.high %v7818_v60, %v7822_v13  ;;  %v7800_v50 = vld [vmem:[#allocation2 + $0xc] ss:$16 sm:$0x3] }
 0x529   :  { %v7803_v3 = vld [vmem:[#allocation2 + $0xc] ss:$16 sm:$0x30] }
 0x52a   :  { %7712 = vmatpush1.bf16.msra.mxu1 %v11518_v4  ;;  %7753 = vmatpush1.bf16.msra.mxu0 %v11520_v29  ;;  %v7826_v4 = vld [vmem:[#allocation9 + $0x1888] sm:$0xff] }
 0x52b   :  { %7713 = vmatprep.subr.bf16.mxu1 %v11527_v6  ;;  %7754 = vmatprep.subr.bf16.mxu0 %v11529_v30  ;;  %v7830_v29 = vld [vmem:[#allocation9 + $0x18a8] sm:$0xff]  ;;  %v11578_v6 = vcombine.low %v7817_v58, %v7821_v12  ;;  %v11580_v30 = vcombine.low %v7818_v60, %v7822_v13  ;;  %v7812_v58 = vld [vmem:[#allocation9 + $0x1818] sm:$0xff]  ;;  %v11626_v13 = vcombine.low %v7865_v61, %v7869_v63  ;;  %v7863_v63 = vld [vmem:[#allocation9 + $0x19b0] sm:$0xff] }
 0x52c   :  { %v11589_v33 = vcombine.high %v7826_v4, %v7830_v29  ;;  %v7816_v12 = vld [vmem:[#allocation9 + $0x1838] sm:$0xff] }
 0x52e   :  { %7714 = vmatpush1.bf16.msra.mxu1 %v11526_v38  ;;  %7755 = vmatpush1.bf16.msra.mxu0 %v11528_v32  ;;  %v7834_v38 = vld [vmem:[#allocation9 + $0x18c8] sm:$0xff] }
 0x52f   :  { %7715 = vmatprep.subr.bf16.mxu1 %v11535_v39  ;;  %7756 = vmatprep.subr.bf16.mxu0 %v11537_v40  ;;  %v7838_v32 = vld [vmem:[#allocation9 + $0x18e8] sm:$0xff]  ;;  %v11586_v39 = vcombine.low %v7825_v22, %v7829_v26  ;;  %v11595_v40 = vcombine.high %v7833_v35, %v7837_v37  ;;  %v7819_v22 = vld [vmem:[#allocation9 + $0x1850] sm:$0xff] }
 0x530   :  { %v11597_v17 = vcombine.high %v7834_v38, %v7838_v32  ;;  %v7823_v26 = vld [vmem:[#allocation9 + $0x1870] sm:$0xff] }
 0x532   :  { %7716 = vmatpush1.bf16.msra.mxu1 %v11534_v45  ;;  %7757 = vmatpush1.bf16.msra.mxu0 %v11536_v47  ;;  %v7846_v45 = vld [vmem:[#allocation9 + $0x1928] sm:$0xff]  ;;  %v11594_v47 = vcombine.low %v7833_v35, %v7837_v37  ;;  %v7827_v37 = vld [vmem:[#allocation9 + $0x1890] sm:$0xff] }
 0x533   :  { %7717 = vmatprep.subr.bf16.mxu1 %v11543_v48  ;;  %7758 = vmatprep.subr.bf16.mxu0 %v11545_v49  ;;  %v11596_v48 = vcombine.low %v7834_v38, %v7838_v32  ;;  %v11603_v49 = vcombine.high %v7841_v41, %v7845_v42  ;;  %v11605_v21 = vcombine.high %v7842_v43, %v7846_v45  ;;  %v7831_v38 = vld [vmem:[#allocation9 + $0x18b0] sm:$0xff]  ;;  %v7828_v32 = vld [vmem:[#allocation9 + $0x1898] sm:$0xff] }
 0x536   :  { %7718 = vmatpush1.bf16.msra.mxu1 %v11542_v36  ;;  %7759 = vmatpush1.bf16.msra.mxu0 %v11544_v25  ;;  %v7854_v36 = vld [vmem:[#allocation9 + $0x1968] sm:$0xff]  ;;  %v11602_v25 = vcombine.low %v7841_v41, %v7845_v42  ;;  %v7835_v42 = vld [vmem:[#allocation9 + $0x18d0] sm:$0xff] }
 0x537   :  { %7719 = vmatprep.subr.bf16.mxu1 %v11551_v28  ;;  %7760 = vmatprep.subr.bf16.mxu0 %v11553_v51  ;;  %v11604_v28 = vcombine.low %v7842_v43, %v7846_v45  ;;  %v11611_v51 = vcombine.high %v7849_v23, %v7853_v34  ;;  %v11613_v52 = vcombine.high %v7850_v24, %v7854_v36  ;;  %v7839_v43 = vld [vmem:[#allocation9 + $0x18f0] sm:$0xff]  ;;  %v7836_v45 = vld [vmem:[#allocation9 + $0x18d8] sm:$0xff] }
 0x53a   :  { %7720 = vmatpush1.bf16.msra.mxu1 %v11550_v44  ;;  %7761 = vmatpush1.bf16.msra.mxu0 %v11552_v56  ;;  %v7862_v44 = vld [vmem:[#allocation9 + $0x19a8] sm:$0xff]  ;;  %v11610_v56 = vcombine.low %v7849_v23, %v7853_v34  ;;  %v7843_v34 = vld [vmem:[#allocation9 + $0x1910] sm:$0xff] }
 0x53b   :  { %7721 = vmatprep.subr.bf16.mxu1 %v11559_v46  ;;  %7762 = vmatprep.subr.bf16.mxu0 %v11561_v57  ;;  %v11612_v46 = vcombine.low %v7850_v24, %v7854_v36  ;;  %v11619_v57 = vcombine.high %v7857_v53, %v7861_v54  ;;  %v11621_v59 = vcombine.high %v7858_v55, %v7862_v44  ;;  %v7847_v24 = vld [vmem:[#allocation9 + $0x1930] sm:$0xff]  ;;  %v7844_v36 = vld [vmem:[#allocation9 + $0x1918] sm:$0xff] }
 0x53e   :  { %7722 = vmatpush1.bf16.msra.mxu1 %v11558_v0  ;;  %7763 = vmatpush1.bf16.msra.mxu0 %v11560_v1  ;;  %v7866_v0 = vld [vmem:[#allocation9 + $0x19c8] sm:$0xff] }
 0x53f   :  { %7723 = vmatprep.subr.bf16.mxu1 %v11567_v27  ;;  %7764 = vmatprep.subr.bf16.mxu0 %v11569_v2  ;;  %v7870_v1 = vld [vmem:[#allocation9 + $0x19e8] sm:$0xff]  ;;  %v11618_v27 = vcombine.low %v7857_v53, %v7861_v54  ;;  %v11620_v2 = vcombine.low %v7858_v55, %v7862_v44  ;;  %v7851_v54 = vld [vmem:[#allocation9 + $0x1950] sm:$0xff]  ;;  %v7852_v44 = vld [vmem:[#allocation9 + $0x1958] sm:$0xff] }
 0x540   :  { %v11629_v7 = vcombine.high %v7866_v0, %v7870_v1  ;;  %v7855_v55 = vld [vmem:[#allocation9 + $0x1970] sm:$0xff] }
 0x542   :  { %7724 = vmatpush1.bf16.msra.mxu1 %v11566_v8  ;;  %7765 = vmatpush1.bf16.msra.mxu0 %v11568_v9  ;;  %v7802_v8 = vor.u32 %v7801_v62, %v7800_v50  ;;  %v7805_v9 = vld [vmem:[#allocation2 + $0xc] ss:$16 sm:$0xc0]  ;;  %v7859_v62 = vld [vmem:[#allocation9 + $0x1990] sm:$0xff] }
 0x543   :  { %8193 = vmatprep.subr.bf16.mxu1 %v11571_v10  ;;  %8234 = vmatprep.subr.bf16.mxu0 %v11573_v11  ;;  %v7811_v10 = vld [vmem:[#allocation9 + $0x1810] sm:$0xff]  ;;  %v11623_v50 = vcombine.high %v7859_v62, %v7863_v63 }
 0x544   :  { %v7815_v11 = vld [vmem:[#allocation9 + $0x1830] sm:$0xff]  ;;  %v7804_v60 = vor.u32 %v7803_v3, %v7802_v8  ;;  %v7868_v8 = vld [vmem:[#allocation9 + $0x19d8] sm:$0xff] }
 0x545   :  { %7742 = vmatmul.mubr.bf16.vlgmr.msra.gmra.mrb[20].mxu1 %v12998_v14  ;;  %7783 = vmatmul.mubr.bf16.vlgmr.msra.gmra.mrb[36].mxu0 %v12998_v14  ;;  %v11588_v14 = vcombine.low %v7826_v4, %v7830_v29  ;;  %v7820_v4 = vld [vmem:[#allocation9 + $0x1858] sm:$0xff] }
 0x546   :  { %8194 = vmatpush1.bf16.msra.mxu1 %v11570_v16  ;;  %8235 = vmatpush1.bf16.msra.mxu0 %v11572_v18  ;;  %v11628_v16 = vcombine.low %v7866_v0, %v7870_v1  ;;  %v7806_v18 = vor.u32 %v7805_v9, %v7804_v60  ;;  %v7824_v29 = vld [vmem:[#allocation9 + $0x1878] sm:$0xff]  ;;  %v8375_v60 = vld [vmem:[#allocation9 + $0x1a00] sm:$0xff] }
 0x547   :  { %8195 = vmatprep.subr.bf16.mxu1 %v11579_v19  ;;  %8236 = vmatprep.subr.bf16.mxu0 %v11581_v20  ;;  %v11575_v19 = vcombine.high %v7811_v10, %v7815_v11  ;;  %v11577_v20 = vcombine.high %v7812_v58, %v7816_v12  ;;  %v11585_v35 = vcombine.high %v7820_v4, %v7824_v29  ;;  %v7860_v0 = vld [vmem:[#allocation9 + $0x1998] sm:$0xff] }
 0x548   :  { %8225 = vmatprep.mubr.bf16.mxu1 %v12591_v15  ;;  %8266 = vmatprep.mubr.bf16.mxu0 %v12591_v15  ;;  %v7864_v1 = vld [vmem:[#allocation9 + $0x19b8] sm:$0xff] }
 0x549   :  { %v11625_v3 = vcombine.high %v7860_v0, %v7864_v1  ;;  %v7872_v9 = vld [vmem:[#allocation9 + $0x19f8] sm:$0xff] }
 0x54a   :  { %8196 = vmatpush1.bf16.msra.mxu1 %v11578_v6  ;;  %8237 = vmatpush1.bf16.msra.mxu0 %v11580_v30  ;;  %v11574_v6 = vcombine.low %v7811_v10, %v7815_v11  ;;  %v11576_v30 = vcombine.low %v7812_v58, %v7816_v12  ;;  %v11622_v10 = vcombine.low %v7859_v62, %v7863_v63  ;;  %v8423_v63 = vld [vmem:[#allocation9 + $0x1b80] sm:$0xff] }
 0x54b   :  { %8197 = vmatprep.subr.bf16.mxu1 %v11587_v31  ;;  %8238 = vmatprep.subr.bf16.mxu0 %v11589_v33  ;;  %v13008_v31 = vpack.c.bf16 %v7806_v18, %v7806_v18  ;;  %v11583_v33 = vcombine.high %v7819_v22, %v7823_v26  ;;  %v11624_v11 = vcombine.low %v7860_v0, %v7864_v1  ;;  %v8380_v18 = vld [vmem:[#allocation9 + $0x1a28] sm:$0xff]  ;;  %v8427_v0 = vld [vmem:[#allocation9 + $0x1ba0] sm:$0xff] }
 0x54c   :  { %v11633_v12 = vcombine.high %v7868_v8, %v7872_v9  ;;  %v8424_v1 = vld [vmem:[#allocation9 + $0x1b88] sm:$0xff] }
 0x54e   :  { %8198 = vmatpush1.bf16.msra.mxu1 %v11586_v39  ;;  %8239 = vmatpush1.bf16.msra.mxu0 %v11588_v14  ;;  %v7832_v39 = vld [vmem:[#allocation9 + $0x18b8] sm:$0xff]  ;;  %v11582_v14 = vcombine.low %v7819_v22, %v7823_v26 }
 0x54f   :  { %8199 = vmatprep.subr.bf16.mxu1 %v11595_v40  ;;  %8240 = vmatprep.subr.bf16.mxu0 %v11597_v17  ;;  %v11584_v40 = vcombine.low %v7820_v4, %v7824_v29  ;;  %v11591_v17 = vcombine.high %v7827_v37, %v7831_v38  ;;  %v11593_v41 = vcombine.high %v7828_v32, %v7832_v39  ;;  %v8383_v4 = vld [vmem:[#allocation9 + $0x1a40] sm:$0xff] }
 0x550   :  { %v8387_v29 = vld [vmem:[#allocation9 + $0x1a60] sm:$0xff] }
 0x552   :  { %8200 = vmatpush1.bf16.msra.mxu1 %v11594_v47  ;;  %8241 = vmatpush1.bf16.msra.mxu0 %v11596_v48  ;;  %v7840_v47 = vld [vmem:[#allocation9 + $0x18f8] sm:$0xff]  ;;  %v11590_v48 = vcombine.low %v7827_v37, %v7831_v38  ;;  %v11643_v37 = vcombine.high %v8383_v4, %v8387_v29 }
 0x553   :  { %8201 = vmatprep.subr.bf16.mxu1 %v11603_v49  ;;  %8242 = vmatprep.subr.bf16.mxu0 %v11605_v21  ;;  %v11592_v49 = vcombine.low %v7828_v32, %v7832_v39  ;;  %v11599_v21 = vcombine.high %v7835_v42, %v7839_v43  ;;  %v11601_v23 = vcombine.high %v7836_v45, %v7840_v47  ;;  %v8391_v32 = vld [vmem:[#allocation9 + $0x1a80] sm:$0xff] }
 0x554   :  { %v8395_v39 = vld [vmem:[#allocation9 + $0x1aa0] sm:$0xff] }
 0x556   :  { %8202 = vmatpush1.bf16.msra.mxu1 %v11602_v25  ;;  %8243 = vmatpush1.bf16.msra.mxu0 %v11604_v28  ;;  %v7848_v25 = vld [vmem:[#allocation9 + $0x1938] sm:$0xff]  ;;  %v11598_v28 = vcombine.low %v7835_v42, %v7839_v43  ;;  %v11651_v42 = vcombine.high %v8391_v32, %v8395_v39 }
 0x557   :  { %8203 = vmatprep.subr.bf16.mxu1 %v11611_v51  ;;  %8244 = vmatprep.subr.bf16.mxu0 %v11613_v52  ;;  %v11600_v51 = vcombine.low %v7836_v45, %v7840_v47  ;;  %v11607_v52 = vcombine.high %v7843_v34, %v7847_v24  ;;  %v11609_v53 = vcombine.high %v7844_v36, %v7848_v25  ;;  %v8399_v45 = vld [vmem:[#allocation9 + $0x1ac0] sm:$0xff] }
 0x558   :  { %v8403_v47 = vld [vmem:[#allocation9 + $0x1ae0] sm:$0xff] }
 0x55a   :  { %8204 = vmatpush1.bf16.msra.mxu1 %v11610_v56  ;;  %8245 = vmatpush1.bf16.msra.mxu0 %v11612_v46  ;;  %v7856_v56 = vld [vmem:[#allocation9 + $0x1978] sm:$0xff]  ;;  %v11606_v46 = vcombine.low %v7843_v34, %v7847_v24  ;;  %v8407_v24 = vld [vmem:[#allocation9 + $0x1b00] sm:$0xff] }
 0x55b   :  { %8205 = vmatprep.subr.bf16.mxu1 %v11619_v57  ;;  %8246 = vmatprep.subr.bf16.mxu0 %v11621_v59  ;;  %v11608_v57 = vcombine.low %v7844_v36, %v7848_v25  ;;  %v11615_v59 = vcombine.high %v7851_v54, %v7855_v55  ;;  %v11617_v61 = vcombine.high %v7852_v44, %v7856_v56  ;;  %v8411_v36 = vld [vmem:[#allocation9 + $0x1b20] sm:$0xff]  ;;  %v8408_v25 = vld [vmem:[#allocation9 + $0x1b08] sm:$0xff] }
 0x55e   :  { %8206 = vmatpush1.bf16.msra.mxu1 %v11618_v27  ;;  %8247 = vmatpush1.bf16.msra.mxu0 %v11620_v2  ;;  %v11614_v27 = vcombine.low %v7851_v54, %v7855_v55  ;;  %v11616_v2 = vcombine.low %v7852_v44, %v7856_v56  ;;  %v8415_v55 = vld [vmem:[#allocation9 + $0x1b40] sm:$0xff]  ;;  %v8416_v56 = vld [vmem:[#allocation9 + $0x1b48] sm:$0xff] }
 0x55f   :  { %8207 = vmatprep.subr.bf16.mxu1 %v11627_v5  ;;  %8248 = vmatprep.subr.bf16.mxu0 %v11629_v7  ;;  %v7867_v5 = vld [vmem:[#allocation9 + $0x19d0] sm:$0xff]  ;;  %v8419_v44 = vld [vmem:[#allocation9 + $0x1b60] sm:$0xff] }
 0x560   :  { %v7871_v7 = vld [vmem:[#allocation9 + $0x19f0] sm:$0xff] }
 0x561   :  { %v11631_v58 = vcombine.high %v7867_v5, %v7871_v7 }
 0x562   :  { %8208 = vmatpush1.bf16.msra.mxu1 %v11626_v13  ;;  %8249 = vmatpush1.bf16.msra.mxu0 %v11628_v16  ;;  %v8379_v13 = vld [vmem:[#allocation9 + $0x1a20] sm:$0xff]  ;;  %v8376_v16 = vld [vmem:[#allocation9 + $0x1a08] sm:$0xff] }
 0x563   :  { %8275 = vmatprep.subr.bf16.mxu1 %v11575_v19  ;;  %8316 = vmatprep.subr.bf16.mxu0 %v11577_v20  ;;  %v11630_v19 = vcombine.low %v7867_v5, %v7871_v7  ;;  %v11632_v20 = vcombine.low %v7868_v8, %v7872_v9  ;;  %v11635_v22 = vcombine.high %v8375_v60, %v8379_v13  ;;  %v8431_v7 = vld [vmem:[#allocation9 + $0x1bc0] sm:$0xff]  ;;  %v8367_v8 = vld [vmem:[#allocation2 + $0xd] ss:$16 sm:$0xc] }
 0x564   :  { %v11637_v26 = vcombine.high %v8376_v16, %v8380_v18  ;;  %v8435_v9 = vld [vmem:[#allocation9 + $0x1be0] sm:$0xff] }
 0x565   :  { %8226 = vmatmul.mubr.bf16.vlgmr.msra.gmra.mrb[16].mxu1 %v13008_v31  ;;  %8267 = vmatmul.mubr.bf16.vlgmr.msra.gmra.mrb[32].mxu0 %v13008_v31 }
 0x566   :  { %8276 = vmatpush1.bf16.msra.mxu1 %v11574_v6  ;;  %8317 = vmatpush1.bf16.msra.mxu0 %v11576_v30  ;;  %v8384_v6 = vld [vmem:[#allocation9 + $0x1a48] sm:$0xff] }
 0x567   :  { %8277 = vmatprep.subr.bf16.mxu1 %v11583_v33  ;;  %8318 = vmatprep.subr.bf16.mxu0 %v11585_v35  ;;  %v8388_v30 = vld [vmem:[#allocation9 + $0x1a68] sm:$0xff]  ;;  %v11634_v33 = vcombine.low %v8375_v60, %v8379_v13  ;;  %v11636_v35 = vcombine.low %v8376_v16, %v8380_v18  ;;  %v11691_v16 = vcombine.high %v8431_v7, %v8435_v9 }
 0x568   :  { %8307 = vmatprep.mubr.bf16.mxu1 %v12591_v15  ;;  %8348 = vmatprep.mubr.bf16.mxu0 %v12591_v15  ;;  %v11645_v38 = vcombine.high %v8384_v6, %v8388_v30  ;;  %v8366_v60 = vld [vmem:[#allocation2 + $0xd] ss:$16 sm:$0x3] }
 0x569   :  { %v8369_v13 = vld [vmem:[#allocation2 + $0xd] ss:$16 sm:$0x30] }
 0x56a   :  { %8278 = vmatpush1.bf16.msra.mxu1 %v11582_v14  ;;  %8319 = vmatpush1.bf16.msra.mxu0 %v11584_v40  ;;  %v8392_v14 = vld [vmem:[#allocation9 + $0x1a88] sm:$0xff] }
 0x56b   :  { %8279 = vmatprep.subr.bf16.mxu1 %v11591_v17  ;;  %8320 = vmatprep.subr.bf16.mxu0 %v11593_v41  ;;  %v8396_v40 = vld [vmem:[#allocation9 + $0x1aa8] sm:$0xff]  ;;  %v11642_v17 = vcombine.low %v8383_v4, %v8387_v29  ;;  %v11644_v41 = vcombine.low %v8384_v6, %v8388_v30  ;;  %v8378_v4 = vld [vmem:[#allocation9 + $0x1a18] sm:$0xff]  ;;  %v11690_v30 = vcombine.low %v8431_v7, %v8435_v9  ;;  %v8429_v9 = vld [vmem:[#allocation9 + $0x1bb0] sm:$0xff] }
 0x56c   :  { %v11653_v43 = vcombine.high %v8392_v14, %v8396_v40  ;;  %v8382_v29 = vld [vmem:[#allocation9 + $0x1a38] sm:$0xff] }
 0x56e   :  { %8280 = vmatpush1.bf16.msra.mxu1 %v11590_v48  ;;  %8321 = vmatpush1.bf16.msra.mxu0 %v11592_v49  ;;  %v8400_v48 = vld [vmem:[#allocation9 + $0x1ac8] sm:$0xff] }
 0x56f   :  { %8281 = vmatprep.subr.bf16.mxu1 %v11599_v21  ;;  %8322 = vmatprep.subr.bf16.mxu0 %v11601_v23  ;;  %v8404_v49 = vld [vmem:[#allocation9 + $0x1ae8] sm:$0xff]  ;;  %v11650_v21 = vcombine.low %v8391_v32, %v8395_v39  ;;  %v11659_v23 = vcombine.high %v8399_v45, %v8403_v47  ;;  %v8385_v32 = vld [vmem:[#allocation9 + $0x1a50] sm:$0xff] }
 0x570   :  { %v11661_v34 = vcombine.high %v8400_v48, %v8404_v49  ;;  %v8389_v39 = vld [vmem:[#allocation9 + $0x1a70] sm:$0xff] }
 0x572   :  { %8282 = vmatpush1.bf16.msra.mxu1 %v11598_v28  ;;  %8323 = vmatpush1.bf16.msra.mxu0 %v11600_v51  ;;  %v8412_v28 = vld [vmem:[#allocation9 + $0x1b28] sm:$0xff]  ;;  %v11658_v51 = vcombine.low %v8399_v45, %v8403_v47  ;;  %v8393_v47 = vld [vmem:[#allocation9 + $0x1a90] sm:$0xff] }
 0x573   :  { %8283 = vmatprep.subr.bf16.mxu1 %v11607_v52  ;;  %8324 = vmatprep.subr.bf16.mxu0 %v11609_v53  ;;  %v11660_v52 = vcombine.low %v8400_v48, %v8404_v49  ;;  %v11667_v53 = vcombine.high %v8407_v24, %v8411_v36  ;;  %v11669_v54 = vcombine.high %v8408_v25, %v8412_v28  ;;  %v8397_v48 = vld [vmem:[#allocation9 + $0x1ab0] sm:$0xff]  ;;  %v8394_v49 = vld [vmem:[#allocation9 + $0x1a98] sm:$0xff] }
 0x576   :  { %8284 = vmatpush1.bf16.msra.mxu1 %v11606_v46  ;;  %8325 = vmatpush1.bf16.msra.mxu0 %v11608_v57  ;;  %v8420_v46 = vld [vmem:[#allocation9 + $0x1b68] sm:$0xff]  ;;  %v11666_v57 = vcombine.low %v8407_v24, %v8411_v36  ;;  %v8401_v36 = vld [vmem:[#allocation9 + $0x1ad0] sm:$0xff] }
 0x577   :  { %8285 = vmatprep.subr.bf16.mxu1 %v11615_v59  ;;  %8326 = vmatprep.subr.bf16.mxu0 %v11617_v61  ;;  %v11668_v59 = vcombine.low %v8408_v25, %v8412_v28  ;;  %v11675_v61 = vcombine.high %v8415_v55, %v8419_v44  ;;  %v11677_v62 = vcombine.high %v8416_v56, %v8420_v46  ;;  %v8405_v25 = vld [vmem:[#allocation9 + $0x1af0] sm:$0xff]  ;;  %v8402_v28 = vld [vmem:[#allocation9 + $0x1ad8] sm:$0xff] }
 0x57a   :  { %8286 = vmatpush1.bf16.msra.mxu1 %v11614_v27  ;;  %8327 = vmatpush1.bf16.msra.mxu0 %v11616_v2  ;;  %v8428_v27 = vld [vmem:[#allocation9 + $0x1ba8] sm:$0xff]  ;;  %v11674_v2 = vcombine.low %v8415_v55, %v8419_v44  ;;  %v8409_v44 = vld [vmem:[#allocation9 + $0x1b10] sm:$0xff] }
 0x57b   :  { %8287 = vmatprep.subr.bf16.mxu1 %v11623_v50  ;;  %8328 = vmatprep.subr.bf16.mxu0 %v11625_v3  ;;  %v11676_v50 = vcombine.low %v8416_v56, %v8420_v46  ;;  %v11683_v3 = vcombine.high %v8423_v63, %v8427_v0  ;;  %v11685_v5 = vcombine.high %v8424_v1, %v8428_v27  ;;  %v8413_v56 = vld [vmem:[#allocation9 + $0x1b30] sm:$0xff]  ;;  %v8410_v46 = vld [vmem:[#allocation9 + $0x1b18] sm:$0xff] }
 0x57e   :  { %8288 = vmatpush1.bf16.msra.mxu1 %v11622_v10  ;;  %8329 = vmatpush1.bf16.msra.mxu0 %v11624_v11  ;;  %v8432_v10 = vld [vmem:[#allocation9 + $0x1bc8] sm:$0xff] }
 0x57f   :  { %8289 = vmatprep.subr.bf16.mxu1 %v11631_v58  ;;  %8330 = vmatprep.subr.bf16.mxu0 %v11633_v12  ;;  %v8436_v11 = vld [vmem:[#allocation9 + $0x1be8] sm:$0xff]  ;;  %v11682_v58 = vcombine.low %v8423_v63, %v8427_v0  ;;  %v11684_v12 = vcombine.low %v8424_v1, %v8428_v27  ;;  %v8417_v0 = vld [vmem:[#allocation9 + $0x1b50] sm:$0xff]  ;;  %v8418_v27 = vld [vmem:[#allocation9 + $0x1b58] sm:$0xff] }
 0x580   :  { %v11693_v18 = vcombine.high %v8432_v10, %v8436_v11  ;;  %v8421_v1 = vld [vmem:[#allocation9 + $0x1b70] sm:$0xff] }
 0x582   :  { %8290 = vmatpush1.bf16.msra.mxu1 %v11630_v19  ;;  %8331 = vmatpush1.bf16.msra.mxu0 %v11632_v20  ;;  %v8368_v19 = vor.u32 %v8367_v8, %v8366_v60  ;;  %v8371_v20 = vld [vmem:[#allocation2 + $0xd] ss:$16 sm:$0xc0]  ;;  %v8425_v8 = vld [vmem:[#allocation9 + $0x1b90] sm:$0xff] }
 0x583   :  { %8759 = vmatprep.subr.bf16.mxu1 %v11635_v22  ;;  %8800 = vmatprep.subr.bf16.mxu0 %v11637_v26  ;;  %v8377_v22 = vld [vmem:[#allocation9 + $0x1a10] sm:$0xff]  ;;  %v11687_v60 = vcombine.high %v8425_v8, %v8429_v9 }
 0x584   :  { %v8381_v26 = vld [vmem:[#allocation9 + $0x1a30] sm:$0xff]  ;;  %v8370_v6 = vor.u32 %v8369_v13, %v8368_v19  ;;  %v8434_v19 = vld [vmem:[#allocation9 + $0x1bd8] sm:$0xff] }
 0x585   :  { %8308 = vmatmul.mubr.bf16.vlgmr.msra.gmra.mrb[20].mxu1 %v13008_v31  ;;  %8349 = vmatmul.mubr.bf16.vlgmr.msra.gmra.mrb[36].mxu0 %v13008_v31  ;;  %v11652_v31 = vcombine.low %v8392_v14, %v8396_v40  ;;  %v8386_v14 = vld [vmem:[#allocation9 + $0x1a58] sm:$0xff] }
 0x586   :  { %8760 = vmatpush1.bf16.msra.mxu1 %v11634_v33  ;;  %8801 = vmatpush1.bf16.msra.mxu0 %v11636_v35  ;;  %v11692_v33 = vcombine.low %v8432_v10, %v8436_v11  ;;  %v8372_v35 = vor.u32 %v8371_v20, %v8370_v6  ;;  %v8390_v40 = vld [vmem:[#allocation9 + $0x1a78] sm:$0xff]  ;;  %v8941_v6 = vld [vmem:[#allocation9 + $0x1c00] sm:$0xff] }
 0x587   :  { %8761 = vmatprep.subr.bf16.mxu1 %v11643_v37  ;;  %8802 = vmatprep.subr.bf16.mxu0 %v11645_v38  ;;  %v11639_v37 = vcombine.high %v8377_v22, %v8381_v26  ;;  %v11641_v38 = vcombine.high %v8378_v4, %v8382_v29  ;;  %v11649_v45 = vcombine.high %v8386_v14, %v8390_v40  ;;  %v8426_v10 = vld [vmem:[#allocation9 + $0x1b98] sm:$0xff] }
 0x588   :  { %8791 = vmatprep.mubr.bf16.mxu1 %v12591_v15  ;;  %8832 = vmatprep.mubr.bf16.mxu0 %v12591_v15  ;;  %v8430_v11 = vld [vmem:[#allocation9 + $0x1bb8] sm:$0xff] }
 0x589   :  { %v11689_v13 = vcombine.high %v8426_v10, %v8430_v11  ;;  %v8438_v20 = vld [vmem:[#allocation9 + $0x1bf8] sm:$0xff] }
 0x58a   :  { %8762 = vmatpush1.bf16.msra.mxu1 %v11642_v17  ;;  %8803 = vmatpush1.bf16.msra.mxu0 %v11644_v41  ;;  %v11638_v17 = vcombine.low %v8377_v22, %v8381_v26  ;;  %v11640_v41 = vcombine.low %v8378_v4, %v8382_v29  ;;  %v11686_v22 = vcombine.low %v8425_v8, %v8429_v9  ;;  %v8989_v9 = vld [vmem:[#allocation9 + $0x1d80] sm:$0xff] }
 0x58b   :  { %8763 = vmatprep.subr.bf16.mxu1 %v11651_v42  ;;  %8804 = vmatprep.subr.bf16.mxu0 %v11653_v43  ;;  %v13018_v42 = vpack.c.bf16 %v8372_v35, %v8372_v35  ;;  %v11647_v43 = vcombine.high %v8385_v32, %v8389_v39  ;;  %v11688_v26 = vcombine.low %v8426_v10, %v8430_v11  ;;  %v8946_v35 = vld [vmem:[#allocation9 + $0x1c28] sm:$0xff]  ;;  %v8993_v10 = vld [vmem:[#allocation9 + $0x1da0] sm:$0xff] }
 0x58c   :  { %v11697_v29 = vcombine.high %v8434_v19, %v8438_v20  ;;  %v8990_v11 = vld [vmem:[#allocation9 + $0x1d88] sm:$0xff] }
 0x58e   :  { %8764 = vmatpush1.bf16.msra.mxu1 %v11650_v21  ;;  %8805 = vmatpush1.bf16.msra.mxu0 %v11652_v31  ;;  %v8398_v21 = vld [vmem:[#allocation9 + $0x1ab8] sm:$0xff]  ;;  %v11646_v31 = vcombine.low %v8385_v32, %v8389_v39 }
 0x58f   :  { %8765 = vmatprep.subr.bf16.mxu1 %v11659_v23  ;;  %8806 = vmatprep.subr.bf16.mxu0 %v11661_v34  ;;  %v11648_v23 = vcombine.low %v8386_v14, %v8390_v40  ;;  %v11655_v34 = vcombine.high %v8393_v47, %v8397_v48  ;;  %v11657_v24 = vcombine.high %v8394_v49, %v8398_v21  ;;  %v8949_v14 = vld [vmem:[#allocation9 + $0x1c40] sm:$0xff] }
 0x590   :  { %v8953_v40 = vld [vmem:[#allocation9 + $0x1c60] sm:$0xff] }
 0x592   :  { %8766 = vmatpush1.bf16.msra.mxu1 %v11658_v51  ;;  %8807 = vmatpush1.bf16.msra.mxu0 %v11660_v52  ;;  %v8406_v51 = vld [vmem:[#allocation9 + $0x1af8] sm:$0xff]  ;;  %v11654_v52 = vcombine.low %v8393_v47, %v8397_v48  ;;  %v11707_v47 = vcombine.high %v8949_v14, %v8953_v40 }
 0x593   :  { %8767 = vmatprep.subr.bf16.mxu1 %v11667_v53  ;;  %8808 = vmatprep.subr.bf16.mxu0 %v11669_v54  ;;  %v11656_v53 = vcombine.low %v8394_v49, %v8398_v21  ;;  %v11663_v54 = vcombine.high %v8401_v36, %v8405_v25  ;;  %v11665_v55 = vcombine.high %v8402_v28, %v8406_v51  ;;  %v8957_v49 = vld [vmem:[#allocation9 + $0x1c80] sm:$0xff] }
 0x594   :  { %v8961_v21 = vld [vmem:[#allocation9 + $0x1ca0] sm:$0xff] }
 0x596   :  { %8768 = vmatpush1.bf16.msra.mxu1 %v11666_v57  ;;  %8809 = vmatpush1.bf16.msra.mxu0 %v11668_v59  ;;  %v8414_v57 = vld [vmem:[#allocation9 + $0x1b38] sm:$0xff]  ;;  %v11662_v59 = vcombine.low %v8401_v36, %v8405_v25  ;;  %v11715_v36 = vcombine.high %v8957_v49, %v8961_v21 }
 0x597   :  { %8769 = vmatprep.subr.bf16.mxu1 %v11675_v61  ;;  %8810 = vmatprep.subr.bf16.mxu0 %v11677_v62  ;;  %v11664_v61 = vcombine.low %v8402_v28, %v8406_v51  ;;  %v11671_v62 = vcombine.high %v8409_v44, %v8413_v56  ;;  %v11673_v63 = vcombine.high %v8410_v46, %v8414_v57  ;;  %v8965_v28 = vld [vmem:[#allocation9 + $0x1cc0] sm:$0xff] }
 0x598   :  { %v8969_v51 = vld [vmem:[#allocation9 + $0x1ce0] sm:$0xff] }
 0x59a   :  { %8770 = vmatpush1.bf16.msra.mxu1 %v11674_v2  ;;  %8811 = vmatpush1.bf16.msra.mxu0 %v11676_v50  ;;  %v8422_v2 = vld [vmem:[#allocation9 + $0x1b78] sm:$0xff]  ;;  %v11670_v50 = vcombine.low %v8409_v44, %v8413_v56  ;;  %v8973_v56 = vld [vmem:[#allocation9 + $0x1d00] sm:$0xff] }
 0x59b   :  { %8771 = vmatprep.subr.bf16.mxu1 %v11683_v3  ;;  %8812 = vmatprep.subr.bf16.mxu0 %v11685_v5  ;;  %v11672_v3 = vcombine.low %v8410_v46, %v8414_v57  ;;  %v11679_v5 = vcombine.high %v8417_v0, %v8421_v1  ;;  %v11681_v7 = vcombine.high %v8418_v27, %v8422_v2  ;;  %v8977_v46 = vld [vmem:[#allocation9 + $0x1d20] sm:$0xff]  ;;  %v8974_v57 = vld [vmem:[#allocation9 + $0x1d08] sm:$0xff] }
 0x59e   :  { %8772 = vmatpush1.bf16.msra.mxu1 %v11682_v58  ;;  %8813 = vmatpush1.bf16.msra.mxu0 %v11684_v12  ;;  %v11678_v58 = vcombine.low %v8417_v0, %v8421_v1  ;;  %v11680_v12 = vcombine.low %v8418_v27, %v8422_v2  ;;  %v8981_v1 = vld [vmem:[#allocation9 + $0x1d40] sm:$0xff]  ;;  %v8982_v2 = vld [vmem:[#allocation9 + $0x1d48] sm:$0xff] }
 0x59f   :  { %8773 = vmatprep.subr.bf16.mxu1 %v11691_v16  ;;  %8814 = vmatprep.subr.bf16.mxu0 %v11693_v18  ;;  %v8433_v16 = vld [vmem:[#allocation9 + $0x1bd0] sm:$0xff]  ;;  %v8985_v27 = vld [vmem:[#allocation9 + $0x1d60] sm:$0xff] }
 0x5a0   :  { %v8437_v18 = vld [vmem:[#allocation9 + $0x1bf0] sm:$0xff] }
 0x5a1   :  { %v11695_v4 = vcombine.high %v8433_v16, %v8437_v18 }
 0x5a2   :  { %8774 = vmatpush1.bf16.msra.mxu1 %v11690_v30  ;;  %8815 = vmatpush1.bf16.msra.mxu0 %v11692_v33  ;;  %v8945_v30 = vld [vmem:[#allocation9 + $0x1c20] sm:$0xff]  ;;  %v8942_v33 = vld [vmem:[#allocation9 + $0x1c08] sm:$0xff] }
 0x5a3   :  { %8841 = vmatprep.subr.bf16.mxu1 %v11639_v37  ;;  %8882 = vmatprep.subr.bf16.mxu0 %v11641_v38  ;;  %v11694_v37 = vcombine.low %v8433_v16, %v8437_v18  ;;  %v11696_v38 = vcombine.low %v8434_v19, %v8438_v20  ;;  %v11699_v32 = vcombine.high %v8941_v6, %v8945_v30  ;;  %v8997_v18 = vld [vmem:[#allocation9 + $0x1dc0] sm:$0xff]  ;;  %v8933_v19 = vld [vmem:[#allocation2 + $0xe] ss:$16 sm:$0xc] }
 0x5a4   :  { %v11701_v39 = vcombine.high %v8942_v33, %v8946_v35  ;;  %v9001_v20 = vld [vmem:[#allocation9 + $0x1de0] sm:$0xff] }
 0x5a5   :  { %8792 = vmatmul.mubr.bf16.vlgmr.msra.gmra.mrb[16].mxu1 %v13018_v42  ;;  %8833 = vmatmul.mubr.bf16.vlgmr.msra.gmra.mrb[32].mxu0 %v13018_v42 }
 0x5a6   :  { %8842 = vmatpush1.bf16.msra.mxu1 %v11638_v17  ;;  %8883 = vmatpush1.bf16.msra.mxu0 %v11640_v41  ;;  %v8950_v17 = vld [vmem:[#allocation9 + $0x1c48] sm:$0xff] }
 0x5a7   :  { %8843 = vmatprep.subr.bf16.mxu1 %v11647_v43  ;;  %8884 = vmatprep.subr.bf16.mxu0 %v11649_v45  ;;  %v8954_v41 = vld [vmem:[#allocation9 + $0x1c68] sm:$0xff]  ;;  %v11698_v43 = vcombine.low %v8941_v6, %v8945_v30  ;;  %v11700_v45 = vcombine.low %v8942_v33, %v8946_v35  ;;  %v11755_v33 = vcombine.high %v8997_v18, %v9001_v20 }
 0x5a8   :  { %8873 = vmatprep.mubr.bf16.mxu1 %v12591_v15  ;;  %8914 = vmatprep.mubr.bf16.mxu0 %v12591_v15  ;;  %v11709_v48 = vcombine.high %v8950_v17, %v8954_v41  ;;  %v8932_v6 = vld [vmem:[#allocation2 + $0xe] ss:$16 sm:$0x3] }
 0x5a9   :  { %v8935_v30 = vld [vmem:[#allocation2 + $0xe] ss:$16 sm:$0x30] }
 0x5aa   :  { %8844 = vmatpush1.bf16.msra.mxu1 %v11646_v31  ;;  %8885 = vmatpush1.bf16.msra.mxu0 %v11648_v23  ;;  %v8958_v31 = vld [vmem:[#allocation9 + $0x1c88] sm:$0xff] }
 0x5ab   :  { %8845 = vmatprep.subr.bf16.mxu1 %v11655_v34  ;;  %8886 = vmatprep.subr.bf16.mxu0 %v11657_v24  ;;  %v8962_v23 = vld [vmem:[#allocation9 + $0x1ca8] sm:$0xff]  ;;  %v11706_v34 = vcombine.low %v8949_v14, %v8953_v40  ;;  %v11708_v24 = vcombine.low %v8950_v17, %v8954_v41  ;;  %v8944_v14 = vld [vmem:[#allocation9 + $0x1c18] sm:$0xff]  ;;  %v11754_v41 = vcombine.low %v8997_v18, %v9001_v20  ;;  %v8995_v20 = vld [vmem:[#allocation9 + $0x1db0] sm:$0xff] }
 0x5ac   :  { %v11717_v25 = vcombine.high %v8958_v31, %v8962_v23  ;;  %v8948_v40 = vld [vmem:[#allocation9 + $0x1c38] sm:$0xff] }
 0x5ae   :  { %8846 = vmatpush1.bf16.msra.mxu1 %v11654_v52  ;;  %8887 = vmatpush1.bf16.msra.mxu0 %v11656_v53  ;;  %v8966_v52 = vld [vmem:[#allocation9 + $0x1cc8] sm:$0xff] }
 0x5af   :  { %8847 = vmatprep.subr.bf16.mxu1 %v11663_v54  ;;  %8888 = vmatprep.subr.bf16.mxu0 %v11665_v55  ;;  %v8970_v53 = vld [vmem:[#allocation9 + $0x1ce8] sm:$0xff]  ;;  %v11714_v54 = vcombine.low %v8957_v49, %v8961_v21  ;;  %v11723_v55 = vcombine.high %v8965_v28, %v8969_v51  ;;  %v8951_v49 = vld [vmem:[#allocation9 + $0x1c50] sm:$0xff] }
 0x5b0   :  { %v11725_v44 = vcombine.high %v8966_v52, %v8970_v53  ;;  %v8955_v21 = vld [vmem:[#allocation9 + $0x1c70] sm:$0xff] }
 0x5b2   :  { %8848 = vmatpush1.bf16.msra.mxu1 %v11662_v59  ;;  %8889 = vmatpush1.bf16.msra.mxu0 %v11664_v61  ;;  %v8978_v59 = vld [vmem:[#allocation9 + $0x1d28] sm:$0xff]  ;;  %v11722_v61 = vcombine.low %v8965_v28, %v8969_v51  ;;  %v8959_v51 = vld [vmem:[#allocation9 + $0x1c90] sm:$0xff] }
 0x5b3   :  { %8849 = vmatprep.subr.bf16.mxu1 %v11671_v62  ;;  %8890 = vmatprep.subr.bf16.mxu0 %v11673_v63  ;;  %v11724_v62 = vcombine.low %v8966_v52, %v8970_v53  ;;  %v11731_v63 = vcombine.high %v8973_v56, %v8977_v46  ;;  %v11733_v0 = vcombine.high %v8974_v57, %v8978_v59  ;;  %v8963_v52 = vld [vmem:[#allocation9 + $0x1cb0] sm:$0xff]  ;;  %v8960_v53 = vld [vmem:[#allocation9 + $0x1c98] sm:$0xff] }
 0x5b6   :  { %8850 = vmatpush1.bf16.msra.mxu1 %v11670_v50  ;;  %8891 = vmatpush1.bf16.msra.mxu0 %v11672_v3  ;;  %v8986_v50 = vld [vmem:[#allocation9 + $0x1d68] sm:$0xff]  ;;  %v11730_v3 = vcombine.low %v8973_v56, %v8977_v46  ;;  %v8967_v46 = vld [vmem:[#allocation9 + $0x1cd0] sm:$0xff] }
 0x5b7   :  { %8851 = vmatprep.subr.bf16.mxu1 %v11679_v5  ;;  %8892 = vmatprep.subr.bf16.mxu0 %v11681_v7  ;;  %v11732_v5 = vcombine.low %v8974_v57, %v8978_v59  ;;  %v11739_v7 = vcombine.high %v8981_v1, %v8985_v27  ;;  %v11741_v8 = vcombine.high %v8982_v2, %v8986_v50  ;;  %v8971_v57 = vld [vmem:[#allocation9 + $0x1cf0] sm:$0xff]  ;;  %v8968_v59 = vld [vmem:[#allocation9 + $0x1cd8] sm:$0xff] }
 0x5ba   :  { %8852 = vmatpush1.bf16.msra.mxu1 %v11678_v58  ;;  %8893 = vmatpush1.bf16.msra.mxu0 %v11680_v12  ;;  %v8994_v58 = vld [vmem:[#allocation9 + $0x1da8] sm:$0xff]  ;;  %v11738_v12 = vcombine.low %v8981_v1, %v8985_v27  ;;  %v8975_v27 = vld [vmem:[#allocation9 + $0x1d10] sm:$0xff] }
 0x5bb   :  { %8853 = vmatprep.subr.bf16.mxu1 %v11687_v60  ;;  %8894 = vmatprep.subr.bf16.mxu0 %v11689_v13  ;;  %v11740_v60 = vcombine.low %v8982_v2, %v8986_v50  ;;  %v11747_v13 = vcombine.high %v8989_v9, %v8993_v10  ;;  %v11749_v16 = vcombine.high %v8990_v11, %v8994_v58  ;;  %v8979_v2 = vld [vmem:[#allocation9 + $0x1d30] sm:$0xff]  ;;  %v8976_v50 = vld [vmem:[#allocation9 + $0x1d18] sm:$0xff] }
 0x5be   :  { %8854 = vmatpush1.bf16.msra.mxu1 %v11686_v22  ;;  %8895 = vmatpush1.bf16.msra.mxu0 %v11688_v26  ;;  %v8998_v22 = vld [vmem:[#allocation9 + $0x1dc8] sm:$0xff] }
 0x5bf   :  { %8855 = vmatprep.subr.bf16.mxu1 %v11695_v4  ;;  %8896 = vmatprep.subr.bf16.mxu0 %v11697_v29  ;;  %v9002_v26 = vld [vmem:[#allocation9 + $0x1de8] sm:$0xff]  ;;  %v11746_v4 = vcombine.low %v8989_v9, %v8993_v10  ;;  %v11748_v29 = vcombine.low %v8990_v11, %v8994_v58  ;;  %v8983_v10 = vld [vmem:[#allocation9 + $0x1d50] sm:$0xff]  ;;  %v8984_v58 = vld [vmem:[#allocation9 + $0x1d58] sm:$0xff] }
 0x5c0   :  { %v11757_v35 = vcombine.high %v8998_v22, %v9002_v26  ;;  %v8987_v11 = vld [vmem:[#allocation9 + $0x1d70] sm:$0xff] }
 0x5c2   :  { %8856 = vmatpush1.bf16.msra.mxu1 %v11694_v37  ;;  %8897 = vmatpush1.bf16.msra.mxu0 %v11696_v38  ;;  %v8934_v37 = vor.u32 %v8933_v19, %v8932_v6  ;;  %v8937_v38 = vld [vmem:[#allocation2 + $0xe] ss:$16 sm:$0xc0]  ;;  %v8991_v19 = vld [vmem:[#allocation9 + $0x1d90] sm:$0xff] }
 0x5c3   :  { %9325 = vmatprep.subr.bf16.mxu1 %v11699_v32  ;;  %9366 = vmatprep.subr.bf16.mxu0 %v11701_v39  ;;  %v8943_v32 = vld [vmem:[#allocation9 + $0x1c10] sm:$0xff]  ;;  %v11751_v6 = vcombine.high %v8991_v19, %v8995_v20 }
 0x5c4   :  { %v8947_v39 = vld [vmem:[#allocation9 + $0x1c30] sm:$0xff]  ;;  %v8936_v17 = vor.u32 %v8935_v30, %v8934_v37  ;;  %v9000_v37 = vld [vmem:[#allocation9 + $0x1dd8] sm:$0xff] }
 0x5c5   :  { %8874 = vmatmul.mubr.bf16.vlgmr.msra.gmra.mrb[20].mxu1 %v13018_v42  ;;  %8915 = vmatmul.mubr.bf16.vlgmr.msra.gmra.mrb[36].mxu0 %v13018_v42  ;;  %v11716_v42 = vcombine.low %v8958_v31, %v8962_v23  ;;  %v8952_v31 = vld [vmem:[#allocation9 + $0x1c58] sm:$0xff] }
 0x5c6   :  { %9326 = vmatpush1.bf16.msra.mxu1 %v11698_v43  ;;  %9367 = vmatpush1.bf16.msra.mxu0 %v11700_v45  ;;  %v11756_v43 = vcombine.low %v8998_v22, %v9002_v26  ;;  %v8938_v45 = vor.u32 %v8937_v38, %v8936_v17  ;;  %v8956_v23 = vld [vmem:[#allocation9 + $0x1c78] sm:$0xff]  ;;  %v9507_v17 = vld [vmem:[#allocation9 + $0x1e00] sm:$0xff] }
 0x5c7   :  { %9327 = vmatprep.subr.bf16.mxu1 %v11707_v47  ;;  %9368 = vmatprep.subr.bf16.mxu0 %v11709_v48  ;;  %v11703_v47 = vcombine.high %v8943_v32, %v8947_v39  ;;  %v11705_v48 = vcombine.high %v8944_v14, %v8948_v40  ;;  %v11713_v28 = vcombine.high %v8952_v31, %v8956_v23  ;;  %v8992_v22 = vld [vmem:[#allocation9 + $0x1d98] sm:$0xff] }
 0x5c8   :  { %9357 = vmatprep.mubr.bf16.mxu1 %v12591_v15  ;;  %9398 = vmatprep.mubr.bf16.mxu0 %v12591_v15  ;;  %v8996_v26 = vld [vmem:[#allocation9 + $0x1db8] sm:$0xff] }
 0x5c9   :  { %v11753_v30 = vcombine.high %v8992_v22, %v8996_v26  ;;  %v9004_v38 = vld [vmem:[#allocation9 + $0x1df8] sm:$0xff] }
 0x5ca   :  { %9328 = vmatpush1.bf16.msra.mxu1 %v11706_v34  ;;  %9369 = vmatpush1.bf16.msra.mxu0 %v11708_v24  ;;  %v11702_v34 = vcombine.low %v8943_v32, %v8947_v39  ;;  %v11704_v24 = vcombine.low %v8944_v14, %v8948_v40  ;;  %v11750_v32 = vcombine.low %v8991_v19, %v8995_v20  ;;  %v9555_v20 = vld [vmem:[#allocation9 + $0x1f80] sm:$0xff] }
 0x5cb   :  { %9329 = vmatprep.subr.bf16.mxu1 %v11715_v36  ;;  %9370 = vmatprep.subr.bf16.mxu0 %v11717_v25  ;;  %v13028_v36 = vpack.c.bf16 %v8938_v45, %v8938_v45  ;;  %v11711_v25 = vcombine.high %v8951_v49, %v8955_v21  ;;  %v11752_v39 = vcombine.low %v8992_v22, %v8996_v26  ;;  %v9512_v45 = vld [vmem:[#allocation9 + $0x1e28] sm:$0xff]  ;;  %v9559_v22 = vld [vmem:[#allocation9 + $0x1fa0] sm:$0xff] }
 0x5cc   :  { %v11761_v40 = vcombine.high %v9000_v37, %v9004_v38  ;;  %v9556_v26 = vld [vmem:[#allocation9 + $0x1f88] sm:$0xff] }
 0x5ce   :  { %9330 = vmatpush1.bf16.msra.mxu1 %v11714_v54  ;;  %9371 = vmatpush1.bf16.msra.mxu0 %v11716_v42  ;;  %v8964_v54 = vld [vmem:[#allocation9 + $0x1cb8] sm:$0xff]  ;;  %v11710_v42 = vcombine.low %v8951_v49, %v8955_v21 }
 0x5cf   :  { %9331 = vmatprep.subr.bf16.mxu1 %v11723_v55  ;;  %9372 = vmatprep.subr.bf16.mxu0 %v11725_v44  ;;  %v11712_v55 = vcombine.low %v8952_v31, %v8956_v23  ;;  %v11719_v44 = vcombine.high %v8959_v51, %v8963_v52  ;;  %v11721_v56 = vcombine.high %v8960_v53, %v8964_v54  ;;  %v9515_v31 = vld [vmem:[#allocation9 + $0x1e40] sm:$0xff] }
 0x5d0   :  { %v9519_v23 = vld [vmem:[#allocation9 + $0x1e60] sm:$0xff] }
 0x5d2   :  { %9332 = vmatpush1.bf16.msra.mxu1 %v11722_v61  ;;  %9373 = vmatpush1.bf16.msra.mxu0 %v11724_v62  ;;  %v8972_v61 = vld [vmem:[#allocation9 + $0x1cf8] sm:$0xff]  ;;  %v11718_v62 = vcombine.low %v8959_v51, %v8963_v52  ;;  %v11771_v51 = vcombine.high %v9515_v31, %v9519_v23 }
 0x5d3   :  { %9333 = vmatprep.subr.bf16.mxu1 %v11731_v63  ;;  %9374 = vmatprep.subr.bf16.mxu0 %v11733_v0  ;;  %v11720_v63 = vcombine.low %v8960_v53, %v8964_v54  ;;  %v11727_v0 = vcombine.high %v8967_v46, %v8971_v57  ;;  %v11729_v1 = vcombine.high %v8968_v59, %v8972_v61  ;;  %v9523_v53 = vld [vmem:[#allocation9 + $0x1e80] sm:$0xff] }
 0x5d4   :  { %v9527_v54 = vld [vmem:[#allocation9 + $0x1ea0] sm:$0xff] }
 0x5d6   :  { %9334 = vmatpush1.bf16.msra.mxu1 %v11730_v3  ;;  %9375 = vmatpush1.bf16.msra.mxu0 %v11732_v5  ;;  %v8980_v3 = vld [vmem:[#allocation9 + $0x1d38] sm:$0xff]  ;;  %v11726_v5 = vcombine.low %v8967_v46, %v8971_v57  ;;  %v11779_v46 = vcombine.high %v9523_v53, %v9527_v54 }
 0x5d7   :  { %9335 = vmatprep.subr.bf16.mxu1 %v11739_v7  ;;  %9376 = vmatprep.subr.bf16.mxu0 %v11741_v8  ;;  %v11728_v7 = vcombine.low %v8968_v59, %v8972_v61  ;;  %v11735_v8 = vcombine.high %v8975_v27, %v8979_v2  ;;  %v11737_v9 = vcombine.high %v8976_v50, %v8980_v3  ;;  %v9531_v59 = vld [vmem:[#allocation9 + $0x1ec0] sm:$0xff] }
 0x5d8   :  { %v9535_v61 = vld [vmem:[#allocation9 + $0x1ee0] sm:$0xff] }
 0x5da   :  { %9336 = vmatpush1.bf16.msra.mxu1 %v11738_v12  ;;  %9377 = vmatpush1.bf16.msra.mxu0 %v11740_v60  ;;  %v8988_v12 = vld [vmem:[#allocation9 + $0x1d78] sm:$0xff]  ;;  %v11734_v60 = vcombine.low %v8975_v27, %v8979_v2  ;;  %v9539_v2 = vld [vmem:[#allocation9 + $0x1f00] sm:$0xff] }
 0x5db   :  { %9337 = vmatprep.subr.bf16.mxu1 %v11747_v13  ;;  %9378 = vmatprep.subr.bf16.mxu0 %v11749_v16  ;;  %v11736_v13 = vcombine.low %v8976_v50, %v8980_v3  ;;  %v11743_v16 = vcombine.high %v8983_v10, %v8987_v11  ;;  %v11745_v18 = vcombine.high %v8984_v58, %v8988_v12  ;;  %v9543_v50 = vld [vmem:[#allocation9 + $0x1f20] sm:$0xff]  ;;  %v9540_v3 = vld [vmem:[#allocation9 + $0x1f08] sm:$0xff] }
 0x5de   :  { %9338 = vmatpush1.bf16.msra.mxu1 %v11746_v4  ;;  %9379 = vmatpush1.bf16.msra.mxu0 %v11748_v29  ;;  %v11742_v4 = vcombine.low %v8983_v10, %v8987_v11  ;;  %v11744_v29 = vcombine.low %v8984_v58, %v8988_v12  ;;  %v9547_v11 = vld [vmem:[#allocation9 + $0x1f40] sm:$0xff]  ;;  %v9548_v12 = vld [vmem:[#allocation9 + $0x1f48] sm:$0xff] }
 0x5df   :  { %9339 = vmatprep.subr.bf16.mxu1 %v11755_v33  ;;  %9380 = vmatprep.subr.bf16.mxu0 %v11757_v35  ;;  %v8999_v33 = vld [vmem:[#allocation9 + $0x1dd0] sm:$0xff]  ;;  %v9551_v58 = vld [vmem:[#allocation9 + $0x1f60] sm:$0xff] }
 0x5e0   :  { %v9003_v35 = vld [vmem:[#allocation9 + $0x1df0] sm:$0xff] }
 0x5e1   :  { %v11759_v14 = vcombine.high %v8999_v33, %v9003_v35 }
 0x5e2   :  { %9340 = vmatpush1.bf16.msra.mxu1 %v11754_v41  ;;  %9381 = vmatpush1.bf16.msra.mxu0 %v11756_v43  ;;  %v9511_v41 = vld [vmem:[#allocation9 + $0x1e20] sm:$0xff]  ;;  %v9508_v43 = vld [vmem:[#allocation9 + $0x1e08] sm:$0xff] }
 0x5e3   :  { %9407 = vmatprep.subr.bf16.mxu1 %v11703_v47  ;;  %9448 = vmatprep.subr.bf16.mxu0 %v11705_v48  ;;  %v11758_v47 = vcombine.low %v8999_v33, %v9003_v35  ;;  %v11760_v48 = vcombine.low %v9000_v37, %v9004_v38  ;;  %v11763_v49 = vcombine.high %v9507_v17, %v9511_v41  ;;  %v9563_v35 = vld [vmem:[#allocation9 + $0x1fc0] sm:$0xff]  ;;  %v9499_v37 = vld [vmem:[#allocation2 + $0xf] ss:$16 sm:$0xc] }
 0x5e4   :  { %v11765_v21 = vcombine.high %v9508_v43, %v9512_v45  ;;  %v9567_v38 = vld [vmem:[#allocation9 + $0x1fe0] sm:$0xff] }
 0x5e5   :  { %9358 = vmatmul.mubr.bf16.vlgmr.msra.gmra.mrb[16].mxu1 %v13028_v36  ;;  %9399 = vmatmul.mubr.bf16.vlgmr.msra.gmra.mrb[32].mxu0 %v13028_v36 }
 0x5e6   :  { %9408 = vmatpush1.bf16.msra.mxu1 %v11702_v34  ;;  %9449 = vmatpush1.bf16.msra.mxu0 %v11704_v24  ;;  %v9516_v34 = vld [vmem:[#allocation9 + $0x1e48] sm:$0xff] }
 0x5e7   :  { %9409 = vmatprep.subr.bf16.mxu1 %v11711_v25  ;;  %9450 = vmatprep.subr.bf16.mxu0 %v11713_v28  ;;  %v9520_v24 = vld [vmem:[#allocation9 + $0x1e68] sm:$0xff]  ;;  %v11762_v25 = vcombine.low %v9507_v17, %v9511_v41  ;;  %v11764_v28 = vcombine.low %v9508_v43, %v9512_v45  ;;  %v11819_v43 = vcombine.high %v9563_v35, %v9567_v38 }
 0x5e8   :  { %9439 = vmatprep.mubr.bf16.mxu1 %v12591_v15  ;;  %9480 = vmatprep.mubr.bf16.mxu0 %v12591_v15  ;;  %v11773_v52 = vcombine.high %v9516_v34, %v9520_v24  ;;  %v9498_v17 = vld [vmem:[#allocation2 + $0xf] ss:$16 sm:$0x3] }
 0x5e9   :  { %v9501_v41 = vld [vmem:[#allocation2 + $0xf] ss:$16 sm:$0x30] }
 0x5ea   :  { %9410 = vmatpush1.bf16.msra.mxu1 %v11710_v42  ;;  %9451 = vmatpush1.bf16.msra.mxu0 %v11712_v55  ;;  %v9524_v42 = vld [vmem:[#allocation9 + $0x1e88] sm:$0xff] }
 0x5eb   :  { %9411 = vmatprep.subr.bf16.mxu1 %v11719_v44  ;;  %9452 = vmatprep.subr.bf16.mxu0 %v11721_v56  ;;  %v9528_v55 = vld [vmem:[#allocation9 + $0x1ea8] sm:$0xff]  ;;  %v11770_v44 = vcombine.low %v9515_v31, %v9519_v23  ;;  %v11772_v56 = vcombine.low %v9516_v34, %v9520_v24  ;;  %v9510_v31 = vld [vmem:[#allocation9 + $0x1e18] sm:$0xff]  ;;  %v11818_v24 = vcombine.low %v9563_v35, %v9567_v38  ;;  %v9557_v35 = vld [vmem:[#allocation9 + $0x1f90] sm:$0xff] }
 0x5ec   :  { %v11781_v57 = vcombine.high %v9524_v42, %v9528_v55  ;;  %v9514_v23 = vld [vmem:[#allocation9 + $0x1e38] sm:$0xff] }
 0x5ed   :  { %v9558_v38 = vld [vmem:[#allocation9 + $0x1f98] sm:$0xff] }
 0x5ee   :  { %9412 = vmatpush1.bf16.msra.mxu1 %v11718_v62  ;;  %9453 = vmatpush1.bf16.msra.mxu0 %v11720_v63  ;;  %v9532_v62 = vld [vmem:[#allocation9 + $0x1ec8] sm:$0xff] }
 0x5ef   :  { %9413 = vmatprep.subr.bf16.mxu1 %v11727_v0  ;;  %9454 = vmatprep.subr.bf16.mxu0 %v11729_v1  ;;  %v9536_v63 = vld [vmem:[#allocation9 + $0x1ee8] sm:$0xff]  ;;  %v11778_v0 = vcombine.low %v9523_v53, %v9527_v54  ;;  %v11787_v1 = vcombine.high %v9531_v59, %v9535_v61  ;;  %v9517_v53 = vld [vmem:[#allocation9 + $0x1e50] sm:$0xff] }
 0x5f0   :  { %v11789_v27 = vcombine.high %v9532_v62, %v9536_v63  ;;  %v9521_v54 = vld [vmem:[#allocation9 + $0x1e70] sm:$0xff] }
 0x5f2   :  { %9414 = vmatpush1.bf16.msra.mxu1 %v11726_v5  ;;  %9455 = vmatpush1.bf16.msra.mxu0 %v11728_v7  ;;  %v9544_v5 = vld [vmem:[#allocation9 + $0x1f28] sm:$0xff]  ;;  %v11786_v7 = vcombine.low %v9531_v59, %v9535_v61  ;;  %v9525_v61 = vld [vmem:[#allocation9 + $0x1e90] sm:$0xff] }
 0x5f3   :  { %9415 = vmatprep.subr.bf16.mxu1 %v11735_v8  ;;  %9456 = vmatprep.subr.bf16.mxu0 %v11737_v9  ;;  %v11788_v8 = vcombine.low %v9532_v62, %v9536_v63  ;;  %v11795_v9 = vcombine.high %v9539_v2, %v9543_v50  ;;  %v11797_v10 = vcombine.high %v9540_v3, %v9544_v5  ;;  %v9529_v62 = vld [vmem:[#allocation9 + $0x1eb0] sm:$0xff]  ;;  %v9526_v63 = vld [vmem:[#allocation9 + $0x1e98] sm:$0xff] }
 0x5f6   :  { %9416 = vmatpush1.bf16.msra.mxu1 %v11734_v60  ;;  %9457 = vmatpush1.bf16.msra.mxu0 %v11736_v13  ;;  %v9552_v60 = vld [vmem:[#allocation9 + $0x1f68] sm:$0xff]  ;;  %v11794_v13 = vcombine.low %v9539_v2, %v9543_v50  ;;  %v9533_v50 = vld [vmem:[#allocation9 + $0x1ed0] sm:$0xff] }
 0x5f7   :  { %9417 = vmatprep.subr.bf16.mxu1 %v11743_v16  ;;  %9458 = vmatprep.subr.bf16.mxu0 %v11745_v18  ;;  %v11796_v16 = vcombine.low %v9540_v3, %v9544_v5  ;;  %v11803_v18 = vcombine.high %v9547_v11, %v9551_v58  ;;  %v11805_v19 = vcombine.high %v9548_v12, %v9552_v60  ;;  %v9537_v3 = vld [vmem:[#allocation9 + $0x1ef0] sm:$0xff]  ;;  %v9534_v5 = vld [vmem:[#allocation9 + $0x1ed8] sm:$0xff] }
 0x5fa   :  { %9418 = vmatpush1.bf16.msra.mxu1 %v11742_v4  ;;  %9459 = vmatpush1.bf16.msra.mxu0 %v11744_v29  ;;  %v9560_v4 = vld [vmem:[#allocation9 + $0x1fa8] sm:$0xff]  ;;  %v11802_v29 = vcombine.low %v9547_v11, %v9551_v58  ;;  %v9541_v58 = vld [vmem:[#allocation9 + $0x1f10] sm:$0xff] }
 0x5fb   :  { %9419 = vmatprep.subr.bf16.mxu1 %v11751_v6  ;;  %9460 = vmatprep.subr.bf16.mxu0 %v11753_v30  ;;  %v11804_v6 = vcombine.low %v9548_v12, %v9552_v60  ;;  %v11811_v30 = vcombine.high %v9555_v20, %v9559_v22  ;;  %v11813_v33 = vcombine.high %v9556_v26, %v9560_v4  ;;  %v9545_v12 = vld [vmem:[#allocation9 + $0x1f30] sm:$0xff]  ;;  %v9542_v60 = vld [vmem:[#allocation9 + $0x1f18] sm:$0xff] }
 0x5fe   :  { %9420 = vmatpush1.bf16.msra.mxu1 %v11750_v32  ;;  %9461 = vmatpush1.bf16.msra.mxu0 %v11752_v39  ;;  %v9564_v32 = vld [vmem:[#allocation9 + $0x1fc8] sm:$0xff] }
 0x5ff   :  { %9421 = vmatprep.subr.bf16.mxu1 %v11759_v14  ;;  %9462 = vmatprep.subr.bf16.mxu0 %v11761_v40  ;;  %v9568_v39 = vld [vmem:[#allocation9 + $0x1fe8] sm:$0xff]  ;;  %v11810_v14 = vcombine.low %v9555_v20, %v9559_v22  ;;  %v11812_v40 = vcombine.low %v9556_v26, %v9560_v4  ;;  %v9549_v20 = vld [vmem:[#allocation9 + $0x1f50] sm:$0xff]  ;;  %v9550_v26 = vld [vmem:[#allocation9 + $0x1f58] sm:$0xff] }
 0x600   :  { %v11821_v45 = vcombine.high %v9564_v32, %v9568_v39  ;;  %v9553_v22 = vld [vmem:[#allocation9 + $0x1f70] sm:$0xff]  ;;  %v9554_v4 = vld [vmem:[#allocation9 + $0x1f78] sm:$0xff] }
 0x602   :  { %9422 = vmatpush1.bf16.msra.mxu1 %v11758_v47  ;;  %9463 = vmatpush1.bf16.msra.mxu0 %v11760_v48  ;;  %v9500_v47 = vor.u32 %v9499_v37, %v9498_v17  ;;  %v9503_v48 = vld [vmem:[#allocation2 + $0xf] ss:$16 sm:$0xc0]  ;;  %v9561_v37 = vld [vmem:[#allocation9 + $0x1fb0] sm:$0xff] }
 0x603   :  { %9891 = vmatprep.subr.bf16.mxu1 %v11763_v49  ;;  %9932 = vmatprep.subr.bf16.mxu0 %v11765_v21  ;;  %v9509_v49 = vld [vmem:[#allocation9 + $0x1e10] sm:$0xff] }
 0x604   :  { %v9513_v21 = vld [vmem:[#allocation9 + $0x1e30] sm:$0xff]  ;;  %v9502_v34 = vor.u32 %v9501_v41, %v9500_v47  ;;  %v9570_v47 = vld [vmem:[#allocation9 + $0x1ff8] sm:$0xff] }
 0x605   :  { %9440 = vmatmul.mubr.bf16.vlgmr.msra.gmra.mrb[20].mxu1 %v13028_v36  ;;  %9481 = vmatmul.mubr.bf16.vlgmr.msra.gmra.mrb[36].mxu0 %v13028_v36  ;;  %v11780_v36 = vcombine.low %v9524_v42, %v9528_v55  ;;  %v9518_v42 = vld [vmem:[#allocation9 + $0x1e58] sm:$0xff]  ;;  %v9565_v41 = vld [vmem:[#allocation9 + $0x1fd0] sm:$0xff] }
 0x606   :  { %9892 = vmatpush1.bf16.msra.mxu1 %v11762_v25  ;;  %9933 = vmatpush1.bf16.msra.mxu0 %v11764_v28  ;;  %v11820_v25 = vcombine.low %v9564_v32, %v9568_v39  ;;  %v9504_v28 = vor.u32 %v9503_v48, %v9502_v34  ;;  %v9522_v55 = vld [vmem:[#allocation9 + $0x1e78] sm:$0xff]  ;;  %v11806_v39 = vcombine.low %v9549_v20, %v9553_v22 }
 0x607   :  { %9893 = vmatprep.subr.bf16.mxu1 %v11771_v51  ;;  %9934 = vmatprep.subr.bf16.mxu0 %v11773_v52  ;;  %v11767_v51 = vcombine.high %v9509_v49, %v9513_v21  ;;  %v11769_v52 = vcombine.high %v9510_v31, %v9514_v23  ;;  %v11777_v59 = vcombine.high %v9518_v42, %v9522_v55  ;;  %v9562_v32 = vld [vmem:[#allocation9 + $0x1fb8] sm:$0xff] }
 0x608   :  { %9923 = vmatprep.mubr.bf16.mxu1 %v12591_v15  ;;  %9964 = vmatprep.mubr.bf16.mxu0 %v12591_v15  ;;  %v11817_v17 = vcombine.high %v9558_v38, %v9562_v32  ;;  %v11814_v48 = vcombine.low %v9557_v35, %v9561_v37 }
 0x60a   :  { %9894 = vmatpush1.bf16.msra.mxu1 %v11770_v44  ;;  %9935 = vmatpush1.bf16.msra.mxu0 %v11772_v56  ;;  %v11766_v44 = vcombine.low %v9509_v49, %v9513_v21  ;;  %v11768_v56 = vcombine.low %v9510_v31, %v9514_v23  ;;  %v11816_v49 = vcombine.low %v9558_v38, %v9562_v32 }
 0x60b   :  { %9895 = vmatprep.subr.bf16.mxu1 %v11779_v46  ;;  %9936 = vmatprep.subr.bf16.mxu0 %v11781_v57  ;;  %v13038_v46 = vpack.c.bf16 %v9504_v28, %v9504_v28  ;;  %v11775_v57 = vcombine.high %v9517_v53, %v9521_v54  ;;  %v12328_v28 = vld [vmem:[#allocation12] sm:$0xff]  }
 0x60e   :  { %9896 = vmatpush1.bf16.msra.mxu1 %v11778_v0  ;;  %9937 = vmatpush1.bf16.msra.mxu0 %v11780_v36  ;;  %v9530_v0 = vld [vmem:[#allocation9 + $0x1eb8] sm:$0xff]  ;;  %v11774_v36 = vcombine.low %v9517_v53, %v9521_v54  ;;  %v12331_v53 = vld [vmem:[#allocation12 + $0xc8] sm:$0xff]  }
 0x60f   :  { %9897 = vmatprep.subr.bf16.mxu1 %v11787_v1  ;;  %9938 = vmatprep.subr.bf16.mxu0 %v11789_v27  ;;  %v11776_v1 = vcombine.low %v9518_v42, %v9522_v55  ;;  %v11783_v27 = vcombine.high %v9525_v61, %v9529_v62  ;;  %v11785_v2 = vcombine.high %v9526_v63, %v9530_v0  ;;  %v12332_v54 = vld [vmem:[#allocation12 + $0x8] sm:$0xff]   ;;  %v12334_v55 = vld [vmem:[#allocation12 + $0x50] sm:$0xff]  }
 0x610   :  { %v12333_v42 = vld [vmem:[#allocation12 + $0x88] sm:$0xff]  }
 0x612   :  { %9898 = vmatpush1.bf16.msra.mxu1 %v11786_v7  ;;  %9939 = vmatpush1.bf16.msra.mxu0 %v11788_v8  ;;  %v9538_v7 = vld [vmem:[#allocation9 + $0x1ef8] sm:$0xff]  ;;  %v11782_v8 = vcombine.low %v9525_v61, %v9529_v62  ;;  %v12339_v61 = vld [vmem:[#allocation12 + $0xd8] sm:$0xff]  }
 0x613   :  { %9899 = vmatprep.subr.bf16.mxu1 %v11795_v9  ;;  %9940 = vmatprep.subr.bf16.mxu0 %v11797_v10  ;;  %v11784_v9 = vcombine.low %v9526_v63, %v9530_v0  ;;  %v11791_v10 = vcombine.high %v9533_v50, %v9537_v3  ;;  %v11793_v11 = vcombine.high %v9534_v5, %v9538_v7  ;;  %v12340_v62 = vld [vmem:[#allocation12 + $0x18] sm:$0xff]   ;;  %v12342_v63 = vld [vmem:[#allocation12 + $0x60] sm:$0xff]  }
 0x614   :  { %v12343_v0 = vld [vmem:[#allocation12 + $0xe0] sm:$0xff]  }
 0x616   :  { %9900 = vmatpush1.bf16.msra.mxu1 %v11794_v13  ;;  %9941 = vmatpush1.bf16.msra.mxu0 %v11796_v16  ;;  %v9546_v13 = vld [vmem:[#allocation9 + $0x1f38] sm:$0xff]  ;;  %v11790_v16 = vcombine.low %v9533_v50, %v9537_v3  ;;  %v12348_v50 = vld [vmem:[#allocation12 + $0x28] sm:$0xff]  }
 0x617   :  { %9901 = vmatprep.subr.bf16.mxu1 %v11803_v18  ;;  %9942 = vmatprep.subr.bf16.mxu0 %v11805_v19  ;;  %v11792_v18 = vcombine.low %v9534_v5, %v9538_v7  ;;  %v11799_v19 = vcombine.high %v9541_v58, %v9545_v12  ;;  %v12349_v3 = vld [vmem:[#allocation12 + $0xa8] sm:$0xff]   ;;  %v12350_v5 = vld [vmem:[#allocation12 + $0x70] sm:$0xff]  }
 0x618   :  { %v12351_v7 = vld [vmem:[#allocation12 + $0xf0] sm:$0xff]  }
 0x61a   :  { %9902 = vmatpush1.bf16.msra.mxu1 %v11802_v29  ;;  %9943 = vmatpush1.bf16.msra.mxu0 %v11804_v6  ;;  %v11798_v29 = vcombine.low %v9541_v58, %v9545_v12  ;;  %v11800_v6 = vcombine.low %v9542_v60, %v9546_v13  ;;  %v12356_v58 = vld [vmem:[#allocation12 + $0x38] sm:$0xff]  }
 0x61b   :  { %9903 = vmatprep.subr.bf16.mxu1 %v11811_v30  ;;  %9944 = vmatprep.subr.bf16.mxu0 %v11813_v33  ;;  %v11807_v30 = vcombine.high %v9549_v20, %v9553_v22  ;;  %v11809_v33 = vcombine.high %v9550_v26, %v9554_v4  ;;  %v12357_v12 = vld [vmem:[#allocation12 + $0xb8] sm:$0xff]  }
 0x61c   :  { %v13050_v20 = vld [vmem:[#allocation11] sm:$0xff] }
 0x61e   :  { %9904 = vmatpush1.bf16.msra.mxu1 %v11810_v14  ;;  %9945 = vmatpush1.bf16.msra.mxu0 %v11812_v40  ;;  %v11808_v14 = vcombine.low %v9550_v26, %v9554_v4  ;;  %v11815_v40 = vcombine.high %v9557_v35, %v9561_v37 }
 0x61f   :  { %9905 = vmatprep.subr.bf16.mxu1 %v11819_v43  ;;  %9946 = vmatprep.subr.bf16.mxu0 %v11821_v45  ;;  %v9569_v43 = vld [vmem:[#allocation9 + $0x1ff0] sm:$0xff]  ;;  %v9566_v45 = vld [vmem:[#allocation9 + $0x1fd8] sm:$0xff] }
 0x620   :  { %v11823_v21 = vcombine.high %v9565_v41, %v9569_v43  ;;  %v11825_v31 = vcombine.high %v9566_v45, %v9570_v47  ;;  %v11822_v23 = vcombine.low %v9565_v41, %v9569_v43  ;;  %v11824_v34 = vcombine.low %v9566_v45, %v9570_v47 }
 0x622   :  { %9906 = vmatpush1.bf16.msra.mxu1 %v11818_v24  ;;  %9947 = vmatpush1.bf16.msra.mxu0 %v11820_v25  ;;  %v12326_v24 = vld [vmem:[#allocation12 + $0x40] sm:$0xff]  }
 0x623   :  { %9973 = vmatprep.subr.bf16.mxu1 %v11767_v51  ;;  %10014 = vmatprep.subr.bf16.mxu0 %v11769_v52  ;;  %v12327_v25 = vld [vmem:[#allocation12 + $0xc0] sm:$0xff]   ;;  %v12330_v52 = vld [vmem:[#allocation12 + $0x48] sm:$0xff]  }
 0x624   :  { %v12329_v51 = vld [vmem:[#allocation12 + $0x80] sm:$0xff]  }
 0x625   :  { %9924 = vmatmul.mubr.bf16.vlgmr.msra.gmra.mrb[16].mxu1 %v13038_v46  ;;  %9965 = vmatmul.mubr.bf16.vlgmr.msra.gmra.mrb[32].mxu0 %v13038_v46 }
 0x626   :  { %9974 = vmatpush1.bf16.msra.mxu1 %v11766_v44  ;;  %10015 = vmatpush1.bf16.msra.mxu0 %v11768_v56  ;;  %v12335_v44 = vld [vmem:[#allocation12 + $0xd0] sm:$0xff]  }
 0x627   :  { %9975 = vmatprep.subr.bf16.mxu1 %v11775_v57  ;;  %10016 = vmatprep.subr.bf16.mxu0 %v11777_v59  ;;  %v12336_v56 = vld [vmem:[#allocation12 + $0x10] sm:$0xff]   ;;  %v12338_v59 = vld [vmem:[#allocation12 + $0x58] sm:$0xff]  }
 0x628   :  { %10005 = vmatprep.mubr.bf16.mxu1 %v12591_v15  ;;  %10046 = vmatprep.mubr.bf16.mxu0 %v12591_v15  ;;  %v11801_v15 = vcombine.high %v9542_v60, %v9546_v13  ;;  %v12337_v57 = vld [vmem:[#allocation12 + $0x90] sm:$0xff]   ;;  %v12358_v60 = vld [vmem:[#allocation12 + $0x140] sm:$0xff]  }
 0x629   :  { %v12359_v13 = vld [vmem:[#allocation12 + $0x1c0] sm:$0xff]  }
 0x62a   :  { %9976 = vmatpush1.bf16.msra.mxu1 %v11774_v36  ;;  %10017 = vmatpush1.bf16.msra.mxu0 %v11776_v1  ;;  %v12344_v36 = vld [vmem:[#allocation12 + $0x20] sm:$0xff]  }
 0x62b   :  { %9977 = vmatprep.subr.bf16.mxu1 %v11783_v27  ;;  %10018 = vmatprep.subr.bf16.mxu0 %v11785_v2  ;;  %v12345_v1 = vld [vmem:[#allocation12 + $0xa0] sm:$0xff]   ;;  %v12346_v27 = vld [vmem:[#allocation12 + $0x68] sm:$0xff]  }
 0x62c   :  { %v12347_v2 = vld [vmem:[#allocation12 + $0xe8] sm:$0xff]  }
 0x62e   :  { %9978 = vmatpush1.bf16.msra.mxu1 %v11782_v8  ;;  %10019 = vmatpush1.bf16.msra.mxu0 %v11784_v9  ;;  %v12352_v8 = vld [vmem:[#allocation12 + $0x30] sm:$0xff]  }
 0x62f   :  { %9979 = vmatprep.subr.bf16.mxu1 %v11791_v10  ;;  %10020 = vmatprep.subr.bf16.mxu0 %v11793_v11  ;;  %v12353_v9 = vld [vmem:[#allocation12 + $0xb0] sm:$0xff]   ;;  %v12354_v10 = vld [vmem:[#allocation12 + $0x78] sm:$0xff]  }
 0x630   :  { %v12355_v11 = vld [vmem:[#allocation12 + $0xf8] sm:$0xff]  }
 0x632   :  { %9980 = vmatpush1.bf16.msra.mxu1 %v11790_v16  ;;  %10021 = vmatpush1.bf16.msra.mxu0 %v11792_v18  ;;  %v1065_v16 = vlaneseq }
 0x633   :  { %9981 = vmatprep.subr.bf16.mxu1 %v11799_v19  ;;  %10022 = vmatprep.subr.bf16.mxu0 %v11801_v15 }
 0x634   :  { %v13046_v18 = vshrl.u32 %v1065_v16, 7  ;;  %v12385_v16 = vld [vmem:[#allocation12 + $0x1b0] sm:$0xff]  }
 0x636   :  { %9982 = vmatpush1.bf16.msra.mxu1 %v11798_v29  ;;  %10023 = vmatpush1.bf16.msra.mxu0 %v11800_v6  ;;  %v1067_v19 = vsub.s32 0, %v13046_v18  ;;  %v1075_v15 = vsub.s32 2, %v13046_v18  ;;  %v1071_v22 = vsub.s32 1, %v13046_v18  ;;  %v1079_v26 = vsub.s32 3, %v13046_v18 }
 0x637   :  { %9983 = vmatprep.subr.bf16.mxu1 %v11807_v30  ;;  %10024 = vmatprep.subr.bf16.mxu0 %v11809_v33 }
 0x638   :  { %v1068_v4 = vrot.slane %v13050_v20, %v1067_v19  ;;  %v1076_v29 = vrot.slane %v13050_v20, %v1075_v15  ;;  %v1072_v6 = vrot.slane %v13050_v20, %v1071_v22  ;;  %v1080_v30 = vrot.slane %v13050_v20, %v1079_v26  ;;  %v12386_v19 = vld [vmem:[#allocation12 + $0x178] sm:$0xff]  }
 0x63a   :  { %9984 = vmatpush1.bf16.msra.mxu1 %v11806_v39  ;;  %10025 = vmatpush1.bf16.msra.mxu0 %v11808_v14 }
 0x63b   :  { %9985 = vmatprep.subr.bf16.mxu1 %v11815_v40  ;;  %10026 = vmatprep.subr.bf16.mxu0 %v11817_v17 }
 0x63e   :  { %9986 = vmatpush1.bf16.msra.mxu1 %v11814_v48  ;;  %10027 = vmatpush1.bf16.msra.mxu0 %v11816_v49 }
 0x63f   :  { %9987 = vmatprep.subr.bf16.mxu1 %v11823_v21  ;;  %10028 = vmatprep.subr.bf16.mxu0 %v11825_v31 }
 0x642   :  { %9988 = vmatpush1.bf16.msra.mxu1 %v11822_v23  ;;  %10029 = vmatpush1.bf16.msra.mxu0 %v11824_v34  ;;  %v12360_v34 = vld [vmem:[#allocation12 + $0x100] sm:$0xff]  }
 0x643   :  { %11909 = vmatprep.subr.bf16.mxu1 %v12326_v24  ;;  %11931 = vmatprep.subr.bf16.mxu0 %v12327_v25  ;;  %v12361_v24 = vld [vmem:[#allocation12 + $0x180] sm:$0xff]  }
 0x645   :  { %10006 = vmatmul.mubr.bf16.vlgmr.msra.gmra.mrb[20].mxu1 %v13038_v46  ;;  %10047 = vmatmul.mubr.bf16.vlgmr.msra.gmra.mrb[36].mxu0 %v13038_v46  ;;  %v12341_v46 = vld [vmem:[#allocation12 + $0x98] sm:$0xff]  }
 0x646   :  { %11910 = vmatpush3.bf16.msra.mxu1 %v12328_v28  ;;  %11932 = vmatpush3.bf16.msra.mxu0 %v12329_v51  ;;  %v12362_v51 = vld [vmem:[#allocation12 + $0x148] sm:$0xff]  }
 0x647   :  { %11911 = vmatprep.subr.bf16.mxu1 %v12330_v52  ;;  %11933 = vmatprep.subr.bf16.mxu0 %v12331_v53  ;;  %v12363_v52 = vld [vmem:[#allocation12 + $0x1c8] sm:$0xff]  }
 0x648   :  { %v12364_v53 = vld [vmem:[#allocation12 + $0x108] sm:$0xff]  }
 0x64a   :  { %11912 = vmatpush3.bf16.msra.mxu1 %v12332_v54  ;;  %11934 = vmatpush3.bf16.msra.mxu0 %v12333_v42  ;;  %v12365_v54 = vld [vmem:[#allocation12 + $0x188] sm:$0xff]   ;;  %v12366_v42 = vld [vmem:[#allocation12 + $0x150] sm:$0xff]  }
 0x64b   :  { %11913 = vmatprep.subr.bf16.mxu1 %v12334_v55  ;;  %11935 = vmatprep.subr.bf16.mxu0 %v12335_v44  ;;  %v12367_v55 = vld [vmem:[#allocation12 + $0x1d0] sm:$0xff]  }
 0x64c   :  { %v12368_v44 = vld [vmem:[#allocation12 + $0x110] sm:$0xff]  }
 0x64e   :  { %11914 = vmatpush3.bf16.msra.mxu1 %v12336_v56  ;;  %11936 = vmatpush3.bf16.msra.mxu0 %v12337_v57  ;;  %v12369_v56 = vld [vmem:[#allocation12 + $0x190] sm:$0xff]   ;;  %v12370_v57 = vld [vmem:[#allocation12 + $0x158] sm:$0xff]  }
 0x64f   :  { %11915 = vmatprep.subr.bf16.mxu1 %v12338_v59  ;;  %11937 = vmatprep.subr.bf16.mxu0 %v12339_v61  ;;  %v12371_v59 = vld [vmem:[#allocation12 + $0x1d8] sm:$0xff]  }
 0x650   :  { %v12372_v61 = vld [vmem:[#allocation12 + $0x118] sm:$0xff]  }
 0x652   :  { %11916 = vmatpush3.bf16.msra.mxu1 %v12340_v62  ;;  %11938 = vmatpush3.bf16.msra.mxu0 %v12341_v46  ;;  %v12373_v62 = vld [vmem:[#allocation12 + $0x198] sm:$0xff]   ;;  %v12374_v46 = vld [vmem:[#allocation12 + $0x160] sm:$0xff]  }
 0x653   :  { %11917 = vmatprep.subr.bf16.mxu1 %v12342_v63  ;;  %11939 = vmatprep.subr.bf16.mxu0 %v12343_v0  ;;  %v12375_v63 = vld [vmem:[#allocation12 + $0x1e0] sm:$0xff]  }
 0x654   :  { %v12376_v0 = vld [vmem:[#allocation12 + $0x120] sm:$0xff]  }
 0x656   :  { %11918 = vmatpush3.bf16.msra.mxu1 %v12344_v36  ;;  %11940 = vmatpush3.bf16.msra.mxu0 %v12345_v1  ;;  %v12377_v36 = vld [vmem:[#allocation12 + $0x1a0] sm:$0xff]   ;;  %v12378_v1 = vld [vmem:[#allocation12 + $0x168] sm:$0xff]  }
 0x657   :  { %11919 = vmatprep.subr.bf16.mxu1 %v12346_v27  ;;  %11941 = vmatprep.subr.bf16.mxu0 %v12347_v2  ;;  %v12379_v27 = vld [vmem:[#allocation12 + $0x1e8] sm:$0xff]   ;;  %v1083_v2 = vsub.s32 4, %v13046_v18 }
 0x65a   :  { %11920 = vmatpush3.bf16.msra.mxu1 %v12348_v50  ;;  %11942 = vmatpush3.bf16.msra.mxu0 %v12349_v3  ;;  %v1091_v50 = vsub.s32 6, %v13046_v18  ;;  %v12380_v3 = vld [vmem:[#allocation12 + $0x128] sm:$0xff]  }
 0x65b   :  { %11921 = vmatprep.subr.bf16.mxu1 %v12350_v5  ;;  %11943 = vmatprep.subr.bf16.mxu0 %v12351_v7  ;;  %v12381_v5 = vld [vmem:[#allocation12 + $0x1a8] sm:$0xff]   ;;  %v1087_v7 = vsub.s32 5, %v13046_v18 }
 0x65e   :  { %11922 = vmatpush3.bf16.msra.mxu1 %v12352_v8  ;;  %11944 = vmatpush3.bf16.msra.mxu0 %v12353_v9  ;;  %v1095_v8 = vsub.s32 7, %v13046_v18  ;;  %v12382_v9 = vld [vmem:[#allocation12 + $0x170] sm:$0xff]   ;;  %v12387_v18 = vld [vmem:[#allocation12 + $0x1f8] sm:$0xff]  }
 0x65f   :  { %11923 = vmatprep.subr.bf16.mxu1 %v12354_v10  ;;  %11945 = vmatprep.subr.bf16.mxu0 %v12355_v11  ;;  %v12383_v10 = vld [vmem:[#allocation12 + $0x1f0] sm:$0xff]   ;;  %v1084_v11 = vrot.slane %v13050_v20, %v1083_v2 }
 0x662   :  { %11924 = vmatpush3.bf16.msra.mxu1 %v12356_v58  ;;  %11946 = vmatpush3.bf16.msra.mxu0 %v12357_v12  ;;  %v1092_v58 = vrot.slane %v13050_v20, %v1091_v50  ;;  %v1088_v12 = vrot.slane %v13050_v20, %v1087_v7 }
 0x663   :  { %11953 = vmatprep.subr.bf16.mxu1 %v12358_v60  ;;  %11975 = vmatprep.subr.bf16.mxu0 %v12359_v13  ;;  %v1096_v60 = vrot.slane %v13050_v20, %v1095_v8  ;;  %v12384_v13 = vld [vmem:[#allocation12 + $0x130] sm:$0xff]   ;;  %v12389_v20 = vld [vmem:[#allocation12 + $0x1b8] sm:$0xff]  }
 0x6f8   :  { %v9925_v33 = vpop.f32.mrb[16].mxu1  ;;  %v9966_v35 = vpop.f32.mrb[32].mxu0 }
 0x6f9   :  { %v12061_v37 = vadd.f32 %v9925_v33, %v1068_v4  ;;  %v12063_v38 = vadd.f32 %v9966_v35, %v1076_v29  ;;  %v9927_v32 = vpop.f32.mrb[17].mxu1  ;;  %v9968_v39 = vpop.f32.mrb[33].mxu0 }
 0x6fa   :  { %v12062_v14 = vadd.f32 %v9927_v32, %v1072_v6  ;;  %v12064_v40 = vadd.f32 %v9968_v39, %v1080_v30  ;;  %v9929_v17 = vpop.f32.mrb[18].mxu1  ;;  %v9970_v41 = vpop.f32.mrb[34].mxu0 }
 0x6fb   :  { %v10071_v43 = vmax.f32 %v12061_v37, 0.0  ;;  %v10073_v45 = vmax.f32 %v12063_v38, 0.0  ;;  %v9930_v47 = vpop.f32.mrb[19].mxu1  ;;  %v9971_v48 = vpop.f32.mrb[35].mxu0  ;;  %v12388_v38 = vld [vmem:[#allocation12 + $0x138] sm:$0xff]  }
 0x6fc   :  { %v10072_v49 = vmax.f32 %v12062_v14, 0.0  ;;  %v10074_v21 = vmax.f32 %v12064_v40, 0.0 }
 0x6fd   :  { %v10079_v25 = vpack.c.bf16 %v10071_v43, %v10071_v43  ;;  %v10081_v28 = vpack.c.bf16 %v10073_v45, %v10073_v45 }
 0x6fe   :  { %v10080_v31 = vpack.c.bf16 %v10072_v49, %v10072_v49  ;;  %v10082_v23 = vpack.c.bf16 %v10074_v21, %v10074_v21 }
 0x700   :  { %10638 = vmatprep.mubr.bf16.mxu1 %v10080_v31  ;;  %10678 = vmatprep.mubr.bf16.mxu0 %v10082_v23  ;;  %v11826_v31 = vld [vmem:[#allocation14] ss:$0 sm:$0xff] }
 0x701   :  { %10639 = vmatmul.mubr.bf16.vlgmr.msra.gmra.mrb[24].mxu1 %v10079_v25  ;;  %10679 = vmatmul.mubr.bf16.vlgmr.msra.gmra.mrb[40].mxu0 %v10081_v28 }
 0x702   :  { %11954 = vmatpush3.bf16.msra.mxu1 %v12360_v34  ;;  %11976 = vmatpush3.bf16.msra.mxu0 %v12361_v24 }
 0x703   :  { %11955 = vmatprep.subr.bf16.mxu1 %v12362_v51  ;;  %11977 = vmatprep.subr.bf16.mxu0 %v12363_v52 }
 0x706   :  { %11956 = vmatpush3.bf16.msra.mxu1 %v12364_v53  ;;  %11978 = vmatpush3.bf16.msra.mxu0 %v12365_v54 }
 0x707   :  { %11957 = vmatprep.subr.bf16.mxu1 %v12366_v42  ;;  %11979 = vmatprep.subr.bf16.mxu0 %v12367_v55 }
 0x70a   :  { %11958 = vmatpush3.bf16.msra.mxu1 %v12368_v44  ;;  %11980 = vmatpush3.bf16.msra.mxu0 %v12369_v56 }
 0x70b   :  { %11959 = vmatprep.subr.bf16.mxu1 %v12370_v57  ;;  %11981 = vmatprep.subr.bf16.mxu0 %v12371_v59 }
 0x70e   :  { %11960 = vmatpush3.bf16.msra.mxu1 %v12372_v61  ;;  %11982 = vmatpush3.bf16.msra.mxu0 %v12373_v62 }
 0x70f   :  { %11961 = vmatprep.subr.bf16.mxu1 %v12374_v46  ;;  %11983 = vmatprep.subr.bf16.mxu0 %v12375_v63 }
 0x712   :  { %11962 = vmatpush3.bf16.msra.mxu1 %v12376_v0  ;;  %11984 = vmatpush3.bf16.msra.mxu0 %v12377_v36 }
 0x713   :  { %11963 = vmatprep.subr.bf16.mxu1 %v12378_v1  ;;  %11985 = vmatprep.subr.bf16.mxu0 %v12379_v27 }
 0x716   :  { %11964 = vmatpush3.bf16.msra.mxu1 %v12380_v3  ;;  %11986 = vmatpush3.bf16.msra.mxu0 %v12381_v5 }
 0x717   :  { %11965 = vmatprep.subr.bf16.mxu1 %v12382_v9  ;;  %11987 = vmatprep.subr.bf16.mxu0 %v12383_v10 }
 0x718   :  { %v10007_v15 = vpop.f32.mrb[20].mxu1  ;;  %v10048_v22 = vpop.f32.mrb[36].mxu0 }
 0x719   :  { %v12065_v26 = vadd.f32 %v10007_v15, %v1084_v11  ;;  %v12067_v4 = vadd.f32 %v10048_v22, %v1092_v58  ;;  %v10009_v29 = vpop.f32.mrb[21].mxu1  ;;  %v10050_v6 = vpop.f32.mrb[37].mxu0 }
 0x71a   :  { %v12066_v30 = vadd.f32 %v10009_v29, %v1088_v12  ;;  %v12068_v33 = vadd.f32 %v10050_v6, %v1096_v60  ;;  %v10011_v35 = vpop.f32.mrb[22].mxu1  ;;  %v10052_v37 = vpop.f32.mrb[38].mxu0  ;;  %11966 = vmatpush3.bf16.msra.mxu1 %v12384_v13  ;;  %11988 = vmatpush3.bf16.msra.mxu0 %v12385_v16 }
 0x71b   :  { %v10075_v32 = vmax.f32 %v12065_v26, 0.0  ;;  %v10077_v39 = vmax.f32 %v12067_v4, 0.0  ;;  %v10012_v14 = vpop.f32.mrb[23].mxu1  ;;  %v10053_v40 = vpop.f32.mrb[39].mxu0  ;;  %11967 = vmatprep.subr.bf16.mxu1 %v12386_v19  ;;  %11989 = vmatprep.subr.bf16.mxu0 %v12387_v18 }
 0x71c   :  { %v10076_v17 = vmax.f32 %v12066_v30, 0.0  ;;  %v10078_v41 = vmax.f32 %v12068_v33, 0.0 }
 0x71d   :  { %v10083_v47 = vpack.c.bf16 %v10075_v32, %v10075_v32  ;;  %v10085_v48 = vpack.c.bf16 %v10077_v39, %v10077_v39 }
 0x71e   :  { %v10084_v43 = vpack.c.bf16 %v10076_v17, %v10076_v17  ;;  %v10086_v45 = vpack.c.bf16 %v10078_v41, %v10078_v41  ;;  %11968 = vmatpush3.bf16.msra.mxu1 %v12388_v38  ;;  %11990 = vmatpush3.bf16.msra.mxu0 %v12389_v20 }
 0x720   :  { %10718 = vmatprep.mubr.bf16.mxu1 %v10084_v43  ;;  %10758 = vmatprep.mubr.bf16.mxu0 %v10086_v45 }
 0x721   :  { %10719 = vmatmul.mubr.bf16.vlgmr.msra.gmra.mrb[28].mxu1 %v10083_v47  ;;  %10759 = vmatmul.mubr.bf16.vlgmr.msra.gmra.mrb[44].mxu0 %v10085_v48 }
 0x7d4   :  { %v11925_v49 = vpop.f32.mrb[24].mxu1  ;;  %v11947_v21 = vpop.f32.mrb[40].mxu0 }
 0x7d5   :  { %v11926_v23 = vpop.f32.mrb[25].mxu1  ;;  %v11948_v34 = vpop.f32.mrb[41].mxu0 }
 0x7d6   :  { %v11927_v24 = vadd.f32 %v11926_v23, %v11925_v49  ;;  %v11949_v25 = vadd.f32 %v11948_v34, %v11947_v21  ;;  %v11928_v28 = vpop.f32.mrb[26].mxu1  ;;  %v11950_v51 = vpop.f32.mrb[42].mxu0 }
 0x7d7   :  { %v11929_v52 = vpop.f32.mrb[27].mxu1  ;;  %v11951_v53 = vpop.f32.mrb[43].mxu0 }
 0x7d8   :  { %v10641_v54 = vadd.f32 %v11927_v24, %v11826_v31 }
 0x7da   :  { %v10681_v42 = vadd.f32 %v11949_v25, %v10641_v54 }
 0x7f4   :  { %v11969_v55 = vpop.f32.mrb[28].mxu1  ;;  %v11991_v44 = vpop.f32.mrb[44].mxu0 }
 0x7f5   :  { %v11970_v56 = vpop.f32.mrb[29].mxu1  ;;  %v11992_v57 = vpop.f32.mrb[45].mxu0 }
 0x7f6   :  { %v11971_v59 = vadd.f32 %v11970_v56, %v11969_v55  ;;  %v11993_v61 = vadd.f32 %v11992_v57, %v11991_v44  ;;  %v11972_v62 = vpop.f32.mrb[30].mxu1  ;;  %v11994_v46 = vpop.f32.mrb[46].mxu0 }
 0x7f7   :  { %v11973_v63 = vpop.f32.mrb[31].mxu1  ;;  %v11995_v0 = vpop.f32.mrb[47].mxu0 }
 0x7f8   :  { %v10721_v36 = vadd.f32 %v11971_v59, %v10681_v42 }
 0x7fa   :  { %v10761_v1 = vadd.f32 %v11993_v61, %v10721_v36 }
 0x7fc   :  { %10766 = vst [vmem:[#allocation15] sm:$0xff] %v10761_v1 }
 0x7fd   :  { %12555 = shalt.err (!%p12552_p4)
}
 0x7fe   :  { %s12556_s28 = scalar_lea.hbm %s13086_s8, 128 }
 0x7ff   :  { %p12557_p5 = scmp.ne.s32.totalorder %s13086_s8, %s12556_s28  ;;  %p12560_p6 = scmp.lt.u32.totalorder %s12556_s28, %s13086_s8 }
 0x801   :  { %p12562_p7 = pnand %p12560_p6, %p12557_p5 }
 0x803   :  { %12565 = shalt.err (!%p12562_p7)
}
 0x804   :  { %10776 = dma.vmem_to_hbm [thread:$0]  %s10774_s7, 128, %s13086_s8, [#allocation5]  }
 0x805   :  { %12574 = dma.done.wait [#allocation5], 128  }
 0x806   :  { %12575 = vsyncadd [#allocation5], 4294967168 }
 0x807   :  { %10780 = vsyncpa [#allocation4], 1 }
 0x808   :  { %10781 = vsyncpa [#allocation7], 1 }
 0x809   :  { %10782 = vsyncpa [#allocation10], 1 }
 0x80a   :  { %10783 = vsyncpa [#allocation13], 1 }
 0x80b   :  { %10784 = vsyncpa [#allocation5], 1 }

</bundles_post_ra>
